<compile_context>
chip_gen: v5e
topology: v5e:2x2
jax: 0.10.0
libtpu: 0.0.40
codegen_flags: <defaults>
</compile_context>

<pallas_src>
import functools

import numpy as np
import jax
import jax.numpy as jnp
from jax.experimental import pallas as pl
from jax.experimental.pallas import tpu as pltpu

EPS = 1e-4       # studioGAN batchnorm_2d eps
LANE = 128       # TPU lane width: channel dims are padded to a multiple of this


def _round_up(n, m):
    return ((n + m - 1) // m) * m


# ------------------------------- Pallas kernel ------------------------------ #
def _genblock_kernel(xp_ref, bn1_ref, w1_ref, bn2_ref, w2_ref, w0_ref,
                     o_ref, ap_ref, hp_ref, acc_ref):
    """Fused GenBlock:  BN1 -> ReLU -> conv3x3 -> BN2 -> ReLU -> conv3x3
                        (+ 1x1-conv skip on the raw upsampled input, + biases).

    xp_ref : [B, 2H+2, 2W+2, Cp] f32  raw input, nearest-2x upsampled, zero
                                      spatial border, channels padded to Cp.
    bn1_ref: [2, Cp]    f32  rows = (gamma1, beta1)
    w1_ref : [9, Cp, Co] bf16 conv2d1 weights, tap-major (t = kh*3 + kw)
    bn2_ref: [3, Co]    f32  rows = (gamma2, beta2, bias2 + bias0)
    w2_ref : [9, Co, Co] bf16 conv2d2 weights
    w0_ref : [Cp, Co]   bf16 conv2d0 (1x1) weights
    o_ref  : [B*2H*2W, Co] f32 output (NHWC rows, lane-dense channels)
    """
    B, Hp, Wp, C = xp_ref.shape
    H2, W2 = Hp - 2, Wp - 2
    Co = o_ref.shape[-1]
    M = B * H2 * W2
    inv_m = 1.0 / M

    # ---- BN1 (train-mode batch stats, one pass) + ReLU ----------------------
    # nearest-2x upsampling replicates every value 4x, so batch stats over the
    # upsampled interior equal PyTorch's bn1-before-upsample statistics.
    x = xp_ref[:, 1:1 + H2, 1:1 + W2, :].reshape(M, C)
    mean = jnp.sum(x, axis=0, keepdims=True) * inv_m
    var = jnp.maximum(jnp.sum(x * x, axis=0, keepdims=True) * inv_m - mean * mean, 0.0)
    scale = bn1_ref[0:1, :] * jax.lax.rsqrt(var + EPS)
    shift = bn1_ref[1:2, :] - mean * scale
    a = jnp.maximum(x * scale + shift, 0.0)

    # zero-bordered activation buffer == conv2d1's padding=1
    ap_ref[...] = jnp.zeros_like(ap_ref)
    ap_ref[:, 1:1 + H2, 1:1 + W2, :] = a.reshape(B, H2, W2, C)

    # ---- conv2d1: 3x3 / pad 1 as 9 shifted-slice matmuls (bf16 in, f32 acc) --
    # (conv2d1's bias is omitted: it is exactly cancelled by train-mode BN2.)
    acc_ref[...] = jnp.zeros_like(acc_ref)
    for t in range(9):
        dr, dc = t // 3, t % 3
        lhs = ap_ref[:, dr:dr + H2, dc:dc + W2, :].reshape(M, C)
        acc_ref[...] += jnp.dot(lhs.astype(jnp.bfloat16), w1_ref[t],
                                preferred_element_type=jnp.float32)

    # ---- BN2 + ReLU ----------------------------------------------------------
    y = acc_ref[...]
    mean2 = jnp.sum(y, axis=0, keepdims=True) * inv_m
    var2 = jnp.maximum(jnp.sum(y * y, axis=0, keepdims=True) * inv_m - mean2 * mean2, 0.0)
    scale2 = bn2_ref[0:1, :] * jax.lax.rsqrt(var2 + EPS)
    shift2 = bn2_ref[1:2, :] - mean2 * scale2
    h = jnp.maximum(y * scale2 + shift2, 0.0)

    hp_ref[...] = jnp.zeros_like(hp_ref)
    hp_ref[:, 1:1 + H2, 1:1 + W2, :] = h.reshape(B, H2, W2, Co)

    # ---- conv2d2: 3x3 / pad 1 -------------------------------------------------
    acc_ref[...] = jnp.zeros_like(acc_ref)
    for t in range(9):
        dr, dc = t // 3, t % 3
        lhs = hp_ref[:, dr:dr + H2, dc:dc + W2, :].reshape(M, Co)
        acc_ref[...] += jnp.dot(lhs.astype(jnp.bfloat16), w2_ref[t],
                                preferred_element_type=jnp.float32)

    # ---- skip path: conv2d0 (1x1) on the raw upsampled input -----------------
    xr = xp_ref[:, 1:1 + H2, 1:1 + W2, :].reshape(M, C)
    skip = jnp.dot(xr.astype(jnp.bfloat16), w0_ref[...],
                   preferred_element_type=jnp.float32)

    # ---- out = conv2 + skip + (bias2 + bias0) ---------------------------------
    o_ref[...] = acc_ref[...] + skip + bn2_ref[2:3, :]


# --------------------------------- wrapper ---------------------------------- #
@functools.partial(jax.jit, static_argnames=("cout",))
def genblock_forward(prepped, x_nchw, label, *, cout):
    """GenBlock.forward(x, label) for the conditional_bn=False configuration."""
    del label   # unused in this configuration (see TODO at top of file)
    B, cin, H, W = x_nchw.shape
    cp = prepped['bn1'].shape[1]
    cop = prepped['bn2'].shape[1]
    H2, W2 = 2 * H, 2 * W
    M = B * H2 * W2

    # One NCHW->NHWC boundary transpose; channels padded to the lane width.
    x = jnp.transpose(x_nchw, (0, 2, 3, 1))
    x = jnp.pad(x, ((0, 0), (0, 0), (0, 0), (0, cp - cin)))
    # Nearest 2x upsample of the raw input + zero spatial border (conv pad=1).
    x = jnp.repeat(jnp.repeat(x, 2, axis=1), 2, axis=2)
    xp = jnp.pad(x, ((0, 0), (1, 1), (1, 1), (0, 0)))

    out2d = pl.pallas_call(
        _genblock_kernel,
        out_shape=jax.ShapeDtypeStruct((M, cop), jnp.float32),
        grid=(1,),
        in_specs=[
            pl.BlockSpec((B, H2 + 2, W2 + 2, cp), lambda i: (0, 0, 0, 0)),
            pl.BlockSpec((2, cp), lambda i: (0, 0)),
            pl.BlockSpec((9, cp, cop), lambda i: (0, 0, 0)),
            pl.BlockSpec((3, cop), lambda i: (0, 0)),
            pl.BlockSpec((9, cop, cop), lambda i: (0, 0, 0)),
            pl.BlockSpec((cp, cop), lambda i: (0, 0)),
        ],
        out_specs=pl.BlockSpec((M, cop), lambda i: (0, 0)),
        scratch_shapes=[
            pltpu.VMEM((B, H2 + 2, W2 + 2, cp), jnp.float32),    # BN1+ReLU act (zero border)
            pltpu.VMEM((B, H2 + 2, W2 + 2, cop), jnp.float32),   # BN2+ReLU act (zero border)
            pltpu.VMEM((M, cop), jnp.float32),                   # matmul accumulator
        ],
        compiler_params=pltpu.CompilerParams(dimension_semantics=("arbitrary",)),
    )(xp, prepped['bn1'], prepped['w1'], prepped['bn2'], prepped['w2'], prepped['w0'])

    out = out2d.reshape(B, H2, W2, cop)[..., :cout]
    return jnp.transpose(out, (0, 3, 1, 2))                       # back to NCHW


def prep_params(p, cin, cout):
    """PyTorch-layout params -> lane-padded, tap-major kernel operands (run once)."""
    cp = _round_up(cin, LANE)
    cop = _round_up(cout, LANE)

    def padv(v, n):
        return jnp.pad(v.astype(jnp.float32), (0, n - v.shape[0]))

    def tap_major(w, ip, op):                 # [O, I, 3, 3] -> [9, Ip, Op] bf16
        o, i = w.shape[0], w.shape[1]
        w = jnp.transpose(w, (2, 3, 1, 0)).reshape(9, i, o)
        return jnp.pad(w, ((0, 0), (0, ip - i), (0, op - o))).astype(jnp.bfloat16)

    return {
        'bn1': jnp.stack([padv(p['bn1_g'], cp), padv(p['bn1_b'], cp)]),        # [2, Cp]
        'w1': tap_major(p['w1'], cp, cop),                                     # [9, Cp, Co]
        # rows: gamma2, beta2, (conv2d2 bias + conv2d0 bias).  conv2d1's bias is
        # dropped because train-mode BN2 cancels it exactly.
        'bn2': jnp.stack([padv(p['bn2_g'], cop), padv(p['bn2_b'], cop),
                          padv(p['b2'] + p['b0'], cop)]),                      # [3, Co]
        'w2': tap_major(p['w2'], cop, cop),                                    # [9, Co, Co]
        'w0': jnp.pad(jnp.transpose(p['w0'][:, :, 0, 0], (1, 0)),
                      ((0, cp - cin), (0, cop - cout))).astype(jnp.bfloat16),  # [Cp, Co]
    }


# --------------------------- deterministic params --------------------------- #
def init_raw_params(key, cin, cout):
    ks = jax.random.split(key, 10)

    def u(k, shape, fan_in):
        b = 1.0 / float(np.sqrt(fan_in))
        return jax.random.uniform(k, shape, jnp.float32, -b, b)

    p = {}
    p['bn1_g'] = 1.0 + 0.1 * jax.random.normal(ks[0], (cin,), jnp.float32)
    p['bn1_b'] = 0.1 * jax.random.normal(ks[1], (cin,), jnp.float32)
    p['bn2_g'] = 1.0 + 0.1 * jax.random.normal(ks[2], (cout,), jnp.float32)
    p['bn2_b'] = 0.1 * jax.random.normal(ks[3], (cout,), jnp.float32)
    p['w1'] = u(ks[4], (cout, cin, 3, 3), cin * 9)
    p['b1'] = u(ks[5], (cout,), cin * 9)
    p['w2'] = u(ks[6], (cout, cout, 3, 3), cout * 9)
    p['b2'] = u(ks[7], (cout,), cout * 9)
    p['w0'] = u(ks[8], (cout, cin, 1, 1), cin)
    p['b0'] = u(ks[9], (cout,), cin)
    return p


# ------------------------------ JAX reference -------------------------------- #
def _ref_bn(x, g, b):
    mean = jnp.mean(x, axis=(0, 2, 3), keepdims=True)
    var = jnp.mean(jnp.square(x - mean), axis=(0, 2, 3), keepdims=True)
    xn = (x - mean) * jax.lax.rsqrt(var + EPS)
    return xn * g.reshape(1, -1, 1, 1) + b.reshape(1, -1, 1, 1)


def _ref_conv(x, w, b, pad):
    y = jax.lax.conv_general_dilated(
        x, w, window_strides=(1, 1), padding=[(pad, pad), (pad, pad)],
        dimension_numbers=('NCHW', 'OIHW', 'NCHW'),
        precision=jax.lax.Precision.HIGHEST)
    return y + b.reshape(1, -1, 1, 1)


def _ref_up2(x):                                   # nearest, scale_factor=2, NCHW
    return jnp.repeat(jnp.repeat(x, 2, axis=2), 2, axis=3)


def ref_forward(p, x, label=None):
    del label
    x0 = x
    h = jnp.maximum(_ref_bn(x, p['bn1_g'], p['bn1_b']), 0.0)
    h = _ref_up2(h)
    h = _ref_conv(h, p['w1'], p['b1'], 1)          # reference keeps conv1 bias
    h = jnp.maximum(_ref_bn(h, p['bn2_g'], p['bn2_b']), 0.0)
    h = _ref_conv(h, p['w2'], p['b2'], 1)
    x0 = _ref_conv(_ref_up2(x0), p['w0'], p['b0'], 0)
    return h + x0


# ----------------------------------- main ------------------------------------ #
if __name__ == "__main__":
    key = jax.random.PRNGKey(0)
    pkey, xkey = jax.random.split(key)

    B, CIN, COUT, H, W = 2, 64, 128, 8, 8          # small GenBlock(64 -> 128), 8x8 -> 16x16
    raw = init_raw_params(pkey, CIN, COUT)
    prepped = prep_params(raw, CIN, COUT)

    x = jax.random.normal(xkey, (B, CIN, H, W), jnp.float32)
    label = jnp.zeros((B,), jnp.int32)             # unused: conditional_bn=False config

    out = genblock_forward(prepped, x, label, cout=COUT)
    out = jax.block_until_ready(out)
    assert out.shape == (B, COUT, 2 * H, 2 * W), out.shape

    out_ref = jax.block_until_ready(ref_forward(raw, x, label))
    # bf16 MXU operands (f32 accumulation) vs. f32-HIGHEST reference.
    np.testing.assert_allclose(np.asarray(out), np.asarray(out_ref),
                               atol=2e-2, rtol=2e-2)

    print("KERNEL_OK")
</pallas_src>

<mosaic_0001>
module attributes {stable_mosaic.version = 11 : i64} {
  func.func @_genblock_kernel(%arg0: i32, %arg1: memref<2x18x18x128xf32, #tpu.memory_space<vmem>>, %arg2: memref<2x128xf32, #tpu.memory_space<vmem>>, %arg3: memref<9x128x128xbf16, #tpu.memory_space<vmem>>, %arg4: memref<3x128xf32, #tpu.memory_space<vmem>>, %arg5: memref<9x128x128xbf16, #tpu.memory_space<vmem>>, %arg6: memref<128x128xbf16, #tpu.memory_space<vmem>>, %arg7: memref<512x128xf32, #tpu.memory_space<vmem>>, %arg8: memref<2x18x18x128xf32, #tpu.memory_space<vmem>>, %arg9: memref<2x18x18x128xf32, #tpu.memory_space<vmem>>, %arg10: memref<512x128xf32, #tpu.memory_space<vmem>>) attributes {dimension_semantics = [#tpu.dimension_semantics<arbitrary>], iteration_bounds = array<i64: 1>, scalar_prefetch = 0 : i64, scratch_operands = 3 : i64, tpu.core_type = #tpu.core_type<tc>, window_params = [{pipeline_mode = #tpu.pipeline_mode<synchronous>, transform_indices = @transform_0, window_bounds = array<i64: 2, 18, 18, 128>}, {pipeline_mode = #tpu.pipeline_mode<synchronous>, transform_indices = @transform_1, window_bounds = array<i64: 2, 128>}, {pipeline_mode = #tpu.pipeline_mode<synchronous>, transform_indices = @transform_2, window_bounds = array<i64: 9, 128, 128>}, {pipeline_mode = #tpu.pipeline_mode<synchronous>, transform_indices = @transform_3, window_bounds = array<i64: 3, 128>}, {pipeline_mode = #tpu.pipeline_mode<synchronous>, transform_indices = @transform_4, window_bounds = array<i64: 9, 128, 128>}, {pipeline_mode = #tpu.pipeline_mode<synchronous>, transform_indices = @transform_5, window_bounds = array<i64: 128, 128>}, {pipeline_mode = #tpu.pipeline_mode<synchronous>, transform_indices = @transform_6, window_bounds = array<i64: 512, 128>}]} {
    %c0 = arith.constant 0 : index
    %c1 = arith.constant 1 : index
    %c1_0 = arith.constant 1 : index
    %c0_1 = arith.constant 0 : index
    %0 = vector.load %arg1[%c0, %c1, %c1_0, %c0_1] : memref<2x18x18x128xf32, #tpu.memory_space<vmem>>, vector<2x16x16x128xf32>
    %1 = vector.shape_cast %0 : vector<2x16x16x128xf32> to vector<512x128xf32>
    %cst = arith.constant dense<0.000000e+00> : vector<128xf32>
    %2 = vector.multi_reduction <add>, %1, %cst [0] : vector<512x128xf32> to vector<128xf32>
    %3 = vector.shape_cast %2 : vector<128xf32> to vector<1x128xf32>
    %cst_2 = arith.constant 0.001953125 : f32
    %4 = vector.broadcast %cst_2 : f32 to vector<1x128xf32>
    %5 = arith.mulf %3, %4 : vector<1x128xf32>
    %6 = arith.mulf %1, %1 : vector<512x128xf32>
    %cst_3 = arith.constant dense<0.000000e+00> : vector<128xf32>
    %7 = vector.multi_reduction <add>, %6, %cst_3 [0] : vector<512x128xf32> to vector<128xf32>
    %8 = vector.shape_cast %7 : vector<128xf32> to vector<1x128xf32>
    %cst_4 = arith.constant 0.001953125 : f32
    %9 = vector.broadcast %cst_4 : f32 to vector<1x128xf32>
    %10 = arith.mulf %8, %9 : vector<1x128xf32>
    %11 = arith.mulf %5, %5 : vector<1x128xf32>
    %12 = arith.subf %10, %11 : vector<1x128xf32>
    %cst_5 = arith.constant 0.000000e+00 : f32
    %13 = vector.broadcast %cst_5 : f32 to vector<1x128xf32>
    %14 = arith.maximumf %12, %13 : vector<1x128xf32>
    %c0_6 = arith.constant 0 : index
    %c0_7 = arith.constant 0 : index
    %15 = vector.load %arg2[%c0_6, %c0_7] : memref<2x128xf32, #tpu.memory_space<vmem>>, vector<1x128xf32>
    %cst_8 = arith.constant 9.99999974E-5 : f32
    %16 = vector.broadcast %cst_8 : f32 to vector<1x128xf32>
    %17 = arith.addf %14, %16 : vector<1x128xf32>
    %18 = math.rsqrt %17 : vector<1x128xf32>
    %19 = arith.mulf %15, %18 : vector<1x128xf32>
    %c1_9 = arith.constant 1 : index
    %c0_10 = arith.constant 0 : index
    %20 = vector.load %arg2[%c1_9, %c0_10] : memref<2x128xf32, #tpu.memory_space<vmem>>, vector<1x128xf32>
    %21 = arith.mulf %5, %19 : vector<1x128xf32>
    %22 = arith.subf %20, %21 : vector<1x128xf32>
    %23 = vector.broadcast %19 : vector<1x128xf32> to vector<512x128xf32>
    %24 = arith.mulf %1, %23 : vector<512x128xf32>
    %25 = vector.broadcast %22 : vector<1x128xf32> to vector<512x128xf32>
    %26 = arith.addf %24, %25 : vector<512x128xf32>
    %cst_11 = arith.constant 0.000000e+00 : f32
    %27 = vector.broadcast %cst_11 : f32 to vector<512x128xf32>
    %28 = arith.maximumf %26, %27 : vector<512x128xf32>
    %cst_12 = arith.constant 0.000000e+00 : f32
    %29 = vector.broadcast %cst_12 : f32 to vector<2x18x18x128xf32>
    %c0_13 = arith.constant 0 : index
    %c0_14 = arith.constant 0 : index
    %c0_15 = arith.constant 0 : index
    %c0_16 = arith.constant 0 : index
    %30 = vector.load %arg8[%c0_13, %c0_14, %c0_15, %c0_16] : memref<2x18x18x128xf32, #tpu.memory_space<vmem>>, vector<2x18x18x128xf32>
    tpu.vector_store %arg8[%c0_13, %c0_14, %c0_15, %c0_16], %29 {strides = array<i32>} : memref<2x18x18x128xf32, #tpu.memory_space<vmem>>, vector<2x18x18x128xf32>,
    %31 = vector.shape_cast %28 : vector<512x128xf32> to vector<2x16x16x128xf32>
    %c0_17 = arith.constant 0 : index
    %c1_18 = arith.constant 1 : index
    %c1_19 = arith.constant 1 : index
    %c0_20 = arith.constant 0 : index
    %32 = vector.load %arg8[%c0_17, %c1_18, %c1_19, %c0_20] : memref<2x18x18x128xf32, #tpu.memory_space<vmem>>, vector<2x16x16x128xf32>
    tpu.vector_store %arg8[%c0_17, %c1_18, %c1_19, %c0_20], %31 {strides = array<i32>} : memref<2x18x18x128xf32, #tpu.memory_space<vmem>>, vector<2x16x16x128xf32>,
    %cst_21 = arith.constant 0.000000e+00 : f32
    %33 = vector.broadcast %cst_21 : f32 to vector<512x128xf32>
    %c0_22 = arith.constant 0 : index
    %c0_23 = arith.constant 0 : index
    %34 = vector.load %arg10[%c0_22, %c0_23] : memref<512x128xf32, #tpu.memory_space<vmem>>, vector<512x128xf32>
    tpu.vector_store %arg10[%c0_22, %c0_23], %33 {strides = array<i32>} : memref<512x128xf32, #tpu.memory_space<vmem>>, vector<512x128xf32>,
    %c0_24 = arith.constant 0 : index
    %c0_25 = arith.constant 0 : index
    %c0_26 = arith.constant 0 : index
    %c0_27 = arith.constant 0 : index
    %35 = vector.load %arg8[%c0_24, %c0_25, %c0_26, %c0_27] : memref<2x18x18x128xf32, #tpu.memory_space<vmem>>, vector<2x16x16x128xf32>
    %36 = vector.shape_cast %35 : vector<2x16x16x128xf32> to vector<512x128xf32>
    %c0_28 = arith.constant 0 : index
    %c0_29 = arith.constant 0 : index
    %37 = vector.load %arg10[%c0_28, %c0_29] : memref<512x128xf32, #tpu.memory_space<vmem>>, vector<512x128xf32>
    %38 = arith.truncf %36 : vector<512x128xf32> to vector<512x128xbf16>
    %c0_30 = arith.constant 0 : index
    %c0_31 = arith.constant 0 : index
    %c0_32 = arith.constant 0 : index
    %39 = vector.load %arg3[%c0_30, %c0_31, %c0_32] : memref<9x128x128xbf16, #tpu.memory_space<vmem>>, vector<1x128x128xbf16>
    %40 = vector.shape_cast %39 : vector<1x128x128xbf16> to vector<128x128xbf16>
    %cst_33 = arith.constant dense<0.000000e+00> : vector<512x128xf32>
    %41 = tpu.matmul %38, %40, %cst_33 {dimension_numbers = #tpu.dot_dimension_numbers<[1], [0], [0], [1], [0, 0, 1, 1], [], []>} : vector<512x128xbf16>, vector<128x128xbf16>, vector<512x128xf32> -> vector<512x128xf32>
    %42 = arith.addf %37, %41 : vector<512x128xf32>
    %c0_34 = arith.constant 0 : index
    %c0_35 = arith.constant 0 : index
    %43 = vector.load %arg10[%c0_34, %c0_35] : memref<512x128xf32, #tpu.memory_space<vmem>>, vector<512x128xf32>
    tpu.vector_store %arg10[%c0_34, %c0_35], %42 {strides = array<i32>} : memref<512x128xf32, #tpu.memory_space<vmem>>, vector<512x128xf32>,
    %c0_36 = arith.constant 0 : index
    %c0_37 = arith.constant 0 : index
    %c1_38 = arith.constant 1 : index
    %c0_39 = arith.constant 0 : index
    %44 = vector.load %arg8[%c0_36, %c0_37, %c1_38, %c0_39] : memref<2x18x18x128xf32, #tpu.memory_space<vmem>>, vector<2x16x16x128xf32>
    %45 = vector.shape_cast %44 : vector<2x16x16x128xf32> to vector<512x128xf32>
    %c0_40 = arith.constant 0 : index
    %c0_41 = arith.constant 0 : index
    %46 = vector.load %arg10[%c0_40, %c0_41] : memref<512x128xf32, #tpu.memory_space<vmem>>, vector<512x128xf32>
    %47 = arith.truncf %45 : vector<512x128xf32> to vector<512x128xbf16>
    %c1_42 = arith.constant 1 : index
    %c0_43 = arith.constant 0 : index
    %c0_44 = arith.constant 0 : index
    %48 = vector.load %arg3[%c1_42, %c0_43, %c0_44] : memref<9x128x128xbf16, #tpu.memory_space<vmem>>, vector<1x128x128xbf16>
    %49 = vector.shape_cast %48 : vector<1x128x128xbf16> to vector<128x128xbf16>
    %cst_45 = arith.constant dense<0.000000e+00> : vector<512x128xf32>
    %50 = tpu.matmul %47, %49, %cst_45 {dimension_numbers = #tpu.dot_dimension_numbers<[1], [0], [0], [1], [0, 0, 1, 1], [], []>} : vector<512x128xbf16>, vector<128x128xbf16>, vector<512x128xf32> -> vector<512x128xf32>
    %51 = arith.addf %46, %50 : vector<512x128xf32>
    %c0_46 = arith.constant 0 : index
    %c0_47 = arith.constant 0 : index
    %52 = vector.load %arg10[%c0_46, %c0_47] : memref<512x128xf32, #tpu.memory_space<vmem>>, vector<512x128xf32>
    tpu.vector_store %arg10[%c0_46, %c0_47], %51 {strides = array<i32>} : memref<512x128xf32, #tpu.memory_space<vmem>>, vector<512x128xf32>,
    %c0_48 = arith.constant 0 : index
    %c0_49 = arith.constant 0 : index
    %c2 = arith.constant 2 : index
    %c0_50 = arith.constant 0 : index
    %53 = vector.load %arg8[%c0_48, %c0_49, %c2, %c0_50] : memref<2x18x18x128xf32, #tpu.memory_space<vmem>>, vector<2x16x16x128xf32>
    %54 = vector.shape_cast %53 : vector<2x16x16x128xf32> to vector<512x128xf32>
    %c0_51 = arith.constant 0 : index
    %c0_52 = arith.constant 0 : index
    %55 = vector.load %arg10[%c0_51, %c0_52] : memref<512x128xf32, #tpu.memory_space<vmem>>, vector<512x128xf32>
    %56 = arith.truncf %54 : vector<512x128xf32> to vector<512x128xbf16>
    %c2_53 = arith.constant 2 : index
    %c0_54 = arith.constant 0 : index
    %c0_55 = arith.constant 0 : index
    %57 = vector.load %arg3[%c2_53, %c0_54, %c0_55] : memref<9x128x128xbf16, #tpu.memory_space<vmem>>, vector<1x128x128xbf16>
    %58 = vector.shape_cast %57 : vector<1x128x128xbf16> to vector<128x128xbf16>
    %cst_56 = arith.constant dense<0.000000e+00> : vector<512x128xf32>
    %59 = tpu.matmul %56, %58, %cst_56 {dimension_numbers = #tpu.dot_dimension_numbers<[1], [0], [0], [1], [0, 0, 1, 1], [], []>} : vector<512x128xbf16>, vector<128x128xbf16>, vector<512x128xf32> -> vector<512x128xf32>
    %60 = arith.addf %55, %59 : vector<512x128xf32>
    %c0_57 = arith.constant 0 : index
    %c0_58 = arith.constant 0 : index
    %61 = vector.load %arg10[%c0_57, %c0_58] : memref<512x128xf32, #tpu.memory_space<vmem>>, vector<512x128xf32>
    tpu.vector_store %arg10[%c0_57, %c0_58], %60 {strides = array<i32>} : memref<512x128xf32, #tpu.memory_space<vmem>>, vector<512x128xf32>,
    %c0_59 = arith.constant 0 : index
    %c1_60 = arith.constant 1 : index
    %c0_61 = arith.constant 0 : index
    %c0_62 = arith.constant 0 : index
    %62 = vector.load %arg8[%c0_59, %c1_60, %c0_61, %c0_62] : memref<2x18x18x128xf32, #tpu.memory_space<vmem>>, vector<2x16x16x128xf32>
    %63 = vector.shape_cast %62 : vector<2x16x16x128xf32> to vector<512x128xf32>
    %c0_63 = arith.constant 0 : index
    %c0_64 = arith.constant 0 : index
    %64 = vector.load %arg10[%c0_63, %c0_64] : memref<512x128xf32, #tpu.memory_space<vmem>>, vector<512x128xf32>
    %65 = arith.truncf %63 : vector<512x128xf32> to vector<512x128xbf16>
    %c3 = arith.constant 3 : index
    %c0_65 = arith.constant 0 : index
    %c0_66 = arith.constant 0 : index
    %66 = vector.load %arg3[%c3, %c0_65, %c0_66] : memref<9x128x128xbf16, #tpu.memory_space<vmem>>, vector<1x128x128xbf16>
    %67 = vector.shape_cast %66 : vector<1x128x128xbf16> to vector<128x128xbf16>
    %cst_67 = arith.constant dense<0.000000e+00> : vector<512x128xf32>
    %68 = tpu.matmul %65, %67, %cst_67 {dimension_numbers = #tpu.dot_dimension_numbers<[1], [0], [0], [1], [0, 0, 1, 1], [], []>} : vector<512x128xbf16>, vector<128x128xbf16>, vector<512x128xf32> -> vector<512x128xf32>
    %69 = arith.addf %64, %68 : vector<512x128xf32>
    %c0_68 = arith.constant 0 : index
    %c0_69 = arith.constant 0 : index
    %70 = vector.load %arg10[%c0_68, %c0_69] : memref<512x128xf32, #tpu.memory_space<vmem>>, vector<512x128xf32>
    tpu.vector_store %arg10[%c0_68, %c0_69], %69 {strides = array<i32>} : memref<512x128xf32, #tpu.memory_space<vmem>>, vector<512x128xf32>,
    %c0_70 = arith.constant 0 : index
    %c1_71 = arith.constant 1 : index
    %c1_72 = arith.constant 1 : index
    %c0_73 = arith.constant 0 : index
    %71 = vector.load %arg8[%c0_70, %c1_71, %c1_72, %c0_73] : memref<2x18x18x128xf32, #tpu.memory_space<vmem>>, vector<2x16x16x128xf32>
    %72 = vector.shape_cast %71 : vector<2x16x16x128xf32> to vector<512x128xf32>
    %c0_74 = arith.constant 0 : index
    %c0_75 = arith.constant 0 : index
    %73 = vector.load %arg10[%c0_74, %c0_75] : memref<512x128xf32, #tpu.memory_space<vmem>>, vector<512x128xf32>
    %74 = arith.truncf %72 : vector<512x128xf32> to vector<512x128xbf16>
    %c4 = arith.constant 4 : index
    %c0_76 = arith.constant 0 : index
    %c0_77 = arith.constant 0 : index
    %75 = vector.load %arg3[%c4, %c0_76, %c0_77] : memref<9x128x128xbf16, #tpu.memory_space<vmem>>, vector<1x128x128xbf16>
    %76 = vector.shape_cast %75 : vector<1x128x128xbf16> to vector<128x128xbf16>
    %cst_78 = arith.constant dense<0.000000e+00> : vector<512x128xf32>
    %77 = tpu.matmul %74, %76, %cst_78 {dimension_numbers = #tpu.dot_dimension_numbers<[1], [0], [0], [1], [0, 0, 1, 1], [], []>} : vector<512x128xbf16>, vector<128x128xbf16>, vector<512x128xf32> -> vector<512x128xf32>
    %78 = arith.addf %73, %77 : vector<512x128xf32>
    %c0_79 = arith.constant 0 : index
    %c0_80 = arith.constant 0 : index
    %79 = vector.load %arg10[%c0_79, %c0_80] : memref<512x128xf32, #tpu.memory_space<vmem>>, vector<512x128xf32>
    tpu.vector_store %arg10[%c0_79, %c0_80], %78 {strides = array<i32>} : memref<512x128xf32, #tpu.memory_space<vmem>>, vector<512x128xf32>,
    %c0_81 = arith.constant 0 : index
    %c1_82 = arith.constant 1 : index
    %c2_83 = arith.constant 2 : index
    %c0_84 = arith.constant 0 : index
    %80 = vector.load %arg8[%c0_81, %c1_82, %c2_83, %c0_84] : memref<2x18x18x128xf32, #tpu.memory_space<vmem>>, vector<2x16x16x128xf32>
    %81 = vector.shape_cast %80 : vector<2x16x16x128xf32> to vector<512x128xf32>
    %c0_85 = arith.constant 0 : index
    %c0_86 = arith.constant 0 : index
    %82 = vector.load %arg10[%c0_85, %c0_86] : memref<512x128xf32, #tpu.memory_space<vmem>>, vector<512x128xf32>
    %83 = arith.truncf %81 : vector<512x128xf32> to vector<512x128xbf16>
    %c5 = arith.constant 5 : index
    %c0_87 = arith.constant 0 : index
    %c0_88 = arith.constant 0 : index
    %84 = vector.load %arg3[%c5, %c0_87, %c0_88] : memref<9x128x128xbf16, #tpu.memory_space<vmem>>, vector<1x128x128xbf16>
    %85 = vector.shape_cast %84 : vector<1x128x128xbf16> to vector<128x128xbf16>
    %cst_89 = arith.constant dense<0.000000e+00> : vector<512x128xf32>
    %86 = tpu.matmul %83, %85, %cst_89 {dimension_numbers = #tpu.dot_dimension_numbers<[1], [0], [0], [1], [0, 0, 1, 1], [], []>} : vector<512x128xbf16>, vector<128x128xbf16>, vector<512x128xf32> -> vector<512x128xf32>
    %87 = arith.addf %82, %86 : vector<512x128xf32>
    %c0_90 = arith.constant 0 : index
    %c0_91 = arith.constant 0 : index
    %88 = vector.load %arg10[%c0_90, %c0_91] : memref<512x128xf32, #tpu.memory_space<vmem>>, vector<512x128xf32>
    tpu.vector_store %arg10[%c0_90, %c0_91], %87 {strides = array<i32>} : memref<512x128xf32, #tpu.memory_space<vmem>>, vector<512x128xf32>,
    %c0_92 = arith.constant 0 : index
    %c2_93 = arith.constant 2 : index
    %c0_94 = arith.constant 0 : index
    %c0_95 = arith.constant 0 : index
    %89 = vector.load %arg8[%c0_92, %c2_93, %c0_94, %c0_95] : memref<2x18x18x128xf32, #tpu.memory_space<vmem>>, vector<2x16x16x128xf32>
    %90 = vector.shape_cast %89 : vector<2x16x16x128xf32> to vector<512x128xf32>
    %c0_96 = arith.constant 0 : index
    %c0_97 = arith.constant 0 : index
    %91 = vector.load %arg10[%c0_96, %c0_97] : memref<512x128xf32, #tpu.memory_space<vmem>>, vector<512x128xf32>
    %92 = arith.truncf %90 : vector<512x128xf32> to vector<512x128xbf16>
    %c6 = arith.constant 6 : index
    %c0_98 = arith.constant 0 : index
    %c0_99 = arith.constant 0 : index
    %93 = vector.load %arg3[%c6, %c0_98, %c0_99] : memref<9x128x128xbf16, #tpu.memory_space<vmem>>, vector<1x128x128xbf16>
    %94 = vector.shape_cast %93 : vector<1x128x128xbf16> to vector<128x128xbf16>
    %cst_100 = arith.constant dense<0.000000e+00> : vector<512x128xf32>
    %95 = tpu.matmul %92, %94, %cst_100 {dimension_numbers = #tpu.dot_dimension_numbers<[1], [0], [0], [1], [0, 0, 1, 1], [], []>} : vector<512x128xbf16>, vector<128x128xbf16>, vector<512x128xf32> -> vector<512x128xf32>
    %96 = arith.addf %91, %95 : vector<512x128xf32>
    %c0_101 = arith.constant 0 : index
    %c0_102 = arith.constant 0 : index
    %97 = vector.load %arg10[%c0_101, %c0_102] : memref<512x128xf32, #tpu.memory_space<vmem>>, vector<512x128xf32>
    tpu.vector_store %arg10[%c0_101, %c0_102], %96 {strides = array<i32>} : memref<512x128xf32, #tpu.memory_space<vmem>>, vector<512x128xf32>,
    %c0_103 = arith.constant 0 : index
    %c2_104 = arith.constant 2 : index
    %c1_105 = arith.constant 1 : index
    %c0_106 = arith.constant 0 : index
    %98 = vector.load %arg8[%c0_103, %c2_104, %c1_105, %c0_106] : memref<2x18x18x128xf32, #tpu.memory_space<vmem>>, vector<2x16x16x128xf32>
    %99 = vector.shape_cast %98 : vector<2x16x16x128xf32> to vector<512x128xf32>
    %c0_107 = arith.constant 0 : index
    %c0_108 = arith.constant 0 : index
    %100 = vector.load %arg10[%c0_107, %c0_108] : memref<512x128xf32, #tpu.memory_space<vmem>>, vector<512x128xf32>
    %101 = arith.truncf %99 : vector<512x128xf32> to vector<512x128xbf16>
    %c7 = arith.constant 7 : index
    %c0_109 = arith.constant 0 : index
    %c0_110 = arith.constant 0 : index
    %102 = vector.load %arg3[%c7, %c0_109, %c0_110] : memref<9x128x128xbf16, #tpu.memory_space<vmem>>, vector<1x128x128xbf16>
    %103 = vector.shape_cast %102 : vector<1x128x128xbf16> to vector<128x128xbf16>
    %cst_111 = arith.constant dense<0.000000e+00> : vector<512x128xf32>
    %104 = tpu.matmul %101, %103, %cst_111 {dimension_numbers = #tpu.dot_dimension_numbers<[1], [0], [0], [1], [0, 0, 1, 1], [], []>} : vector<512x128xbf16>, vector<128x128xbf16>, vector<512x128xf32> -> vector<512x128xf32>
    %105 = arith.addf %100, %104 : vector<512x128xf32>
    %c0_112 = arith.constant 0 : index
    %c0_113 = arith.constant 0 : index
    %106 = vector.load %arg10[%c0_112, %c0_113] : memref<512x128xf32, #tpu.memory_space<vmem>>, vector<512x128xf32>
    tpu.vector_store %arg10[%c0_112, %c0_113], %105 {strides = array<i32>} : memref<512x128xf32, #tpu.memory_space<vmem>>, vector<512x128xf32>,
    %c0_114 = arith.constant 0 : index
    %c2_115 = arith.constant 2 : index
    %c2_116 = arith.constant 2 : index
    %c0_117 = arith.constant 0 : index
    %107 = vector.load %arg8[%c0_114, %c2_115, %c2_116, %c0_117] : memref<2x18x18x128xf32, #tpu.memory_space<vmem>>, vector<2x16x16x128xf32>
    %108 = vector.shape_cast %107 : vector<2x16x16x128xf32> to vector<512x128xf32>
    %c0_118 = arith.constant 0 : index
    %c0_119 = arith.constant 0 : index
    %109 = vector.load %arg10[%c0_118, %c0_119] : memref<512x128xf32, #tpu.memory_space<vmem>>, vector<512x128xf32>
    %110 = arith.truncf %108 : vector<512x128xf32> to vector<512x128xbf16>
    %c8 = arith.constant 8 : index
    %c0_120 = arith.constant 0 : index
    %c0_121 = arith.constant 0 : index
    %111 = vector.load %arg3[%c8, %c0_120, %c0_121] : memref<9x128x128xbf16, #tpu.memory_space<vmem>>, vector<1x128x128xbf16>
    %112 = vector.shape_cast %111 : vector<1x128x128xbf16> to vector<128x128xbf16>
    %cst_122 = arith.constant dense<0.000000e+00> : vector<512x128xf32>
    %113 = tpu.matmul %110, %112, %cst_122 {dimension_numbers = #tpu.dot_dimension_numbers<[1], [0], [0], [1], [0, 0, 1, 1], [], []>} : vector<512x128xbf16>, vector<128x128xbf16>, vector<512x128xf32> -> vector<512x128xf32>
    %114 = arith.addf %109, %113 : vector<512x128xf32>
    %c0_123 = arith.constant 0 : index
    %c0_124 = arith.constant 0 : index
    %115 = vector.load %arg10[%c0_123, %c0_124] : memref<512x128xf32, #tpu.memory_space<vmem>>, vector<512x128xf32>
    tpu.vector_store %arg10[%c0_123, %c0_124], %114 {strides = array<i32>} : memref<512x128xf32, #tpu.memory_space<vmem>>, vector<512x128xf32>,
    %c0_125 = arith.constant 0 : index
    %c0_126 = arith.constant 0 : index
    %116 = vector.load %arg10[%c0_125, %c0_126] : memref<512x128xf32, #tpu.memory_space<vmem>>, vector<512x128xf32>
    %cst_127 = arith.constant dense<0.000000e+00> : vector<128xf32>
    %117 = vector.multi_reduction <add>, %116, %cst_127 [0] : vector<512x128xf32> to vector<128xf32>
    %118 = vector.shape_cast %117 : vector<128xf32> to vector<1x128xf32>
    %cst_128 = arith.constant 0.001953125 : f32
    %119 = vector.broadcast %cst_128 : f32 to vector<1x128xf32>
    %120 = arith.mulf %118, %119 : vector<1x128xf32>
    %121 = arith.mulf %116, %116 : vector<512x128xf32>
    %cst_129 = arith.constant dense<0.000000e+00> : vector<128xf32>
    %122 = vector.multi_reduction <add>, %121, %cst_129 [0] : vector<512x128xf32> to vector<128xf32>
    %123 = vector.shape_cast %122 : vector<128xf32> to vector<1x128xf32>
    %cst_130 = arith.constant 0.001953125 : f32
    %124 = vector.broadcast %cst_130 : f32 to vector<1x128xf32>
    %125 = arith.mulf %123, %124 : vector<1x128xf32>
    %126 = arith.mulf %120, %120 : vector<1x128xf32>
    %127 = arith.subf %125, %126 : vector<1x128xf32>
    %cst_131 = arith.constant 0.000000e+00 : f32
    %128 = vector.broadcast %cst_131 : f32 to vector<1x128xf32>
    %129 = arith.maximumf %127, %128 : vector<1x128xf32>
    %c0_132 = arith.constant 0 : index
    %c0_133 = arith.constant 0 : index
    %130 = vector.load %arg4[%c0_132, %c0_133] : memref<3x128xf32, #tpu.memory_space<vmem>>, vector<1x128xf32>
    %cst_134 = arith.constant 9.99999974E-5 : f32
    %131 = vector.broadcast %cst_134 : f32 to vector<1x128xf32>
    %132 = arith.addf %129, %131 : vector<1x128xf32>
    %133 = math.rsqrt %132 : vector<1x128xf32>
    %134 = arith.mulf %130, %133 : vector<1x128xf32>
    %c1_135 = arith.constant 1 : index
    %c0_136 = arith.constant 0 : index
    %135 = vector.load %arg4[%c1_135, %c0_136] : memref<3x128xf32, #tpu.memory_space<vmem>>, vector<1x128xf32>
    %136 = arith.mulf %120, %134 : vector<1x128xf32>
    %137 = arith.subf %135, %136 : vector<1x128xf32>
    %138 = vector.broadcast %134 : vector<1x128xf32> to vector<512x128xf32>
    %139 = arith.mulf %116, %138 : vector<512x128xf32>
    %140 = vector.broadcast %137 : vector<1x128xf32> to vector<512x128xf32>
    %141 = arith.addf %139, %140 : vector<512x128xf32>
    %cst_137 = arith.constant 0.000000e+00 : f32
    %142 = vector.broadcast %cst_137 : f32 to vector<512x128xf32>
    %143 = arith.maximumf %141, %142 : vector<512x128xf32>
    %cst_138 = arith.constant 0.000000e+00 : f32
    %144 = vector.broadcast %cst_138 : f32 to vector<2x18x18x128xf32>
    %c0_139 = arith.constant 0 : index
    %c0_140 = arith.constant 0 : index
    %c0_141 = arith.constant 0 : index
    %c0_142 = arith.constant 0 : index
    %145 = vector.load %arg9[%c0_139, %c0_140, %c0_141, %c0_142] : memref<2x18x18x128xf32, #tpu.memory_space<vmem>>, vector<2x18x18x128xf32>
    tpu.vector_store %arg9[%c0_139, %c0_140, %c0_141, %c0_142], %144 {strides = array<i32>} : memref<2x18x18x128xf32, #tpu.memory_space<vmem>>, vector<2x18x18x128xf32>,
    %146 = vector.shape_cast %143 : vector<512x128xf32> to vector<2x16x16x128xf32>
    %c0_143 = arith.constant 0 : index
    %c1_144 = arith.constant 1 : index
    %c1_145 = arith.constant 1 : index
    %c0_146 = arith.constant 0 : index
    %147 = vector.load %arg9[%c0_143, %c1_144, %c1_145, %c0_146] : memref<2x18x18x128xf32, #tpu.memory_space<vmem>>, vector<2x16x16x128xf32>
    tpu.vector_store %arg9[%c0_143, %c1_144, %c1_145, %c0_146], %146 {strides = array<i32>} : memref<2x18x18x128xf32, #tpu.memory_space<vmem>>, vector<2x16x16x128xf32>,
    %cst_147 = arith.constant 0.000000e+00 : f32
    %148 = vector.broadcast %cst_147 : f32 to vector<512x128xf32>
    %c0_148 = arith.constant 0 : index
    %c0_149 = arith.constant 0 : index
    %149 = vector.load %arg10[%c0_148, %c0_149] : memref<512x128xf32, #tpu.memory_space<vmem>>, vector<512x128xf32>
    tpu.vector_store %arg10[%c0_148, %c0_149], %148 {strides = array<i32>} : memref<512x128xf32, #tpu.memory_space<vmem>>, vector<512x128xf32>,
    %c0_150 = arith.constant 0 : index
    %c0_151 = arith.constant 0 : index
    %c0_152 = arith.constant 0 : index
    %c0_153 = arith.constant 0 : index
    %150 = vector.load %arg9[%c0_150, %c0_151, %c0_152, %c0_153] : memref<2x18x18x128xf32, #tpu.memory_space<vmem>>, vector<2x16x16x128xf32>
    %151 = vector.shape_cast %150 : vector<2x16x16x128xf32> to vector<512x128xf32>
    %c0_154 = arith.constant 0 : index
    %c0_155 = arith.constant 0 : index
    %152 = vector.load %arg10[%c0_154, %c0_155] : memref<512x128xf32, #tpu.memory_space<vmem>>, vector<512x128xf32>
    %153 = arith.truncf %151 : vector<512x128xf32> to vector<512x128xbf16>
    %c0_156 = arith.constant 0 : index
    %c0_157 = arith.constant 0 : index
    %c0_158 = arith.constant 0 : index
    %154 = vector.load %arg5[%c0_156, %c0_157, %c0_158] : memref<9x128x128xbf16, #tpu.memory_space<vmem>>, vector<1x128x128xbf16>
    %155 = vector.shape_cast %154 : vector<1x128x128xbf16> to vector<128x128xbf16>
    %cst_159 = arith.constant dense<0.000000e+00> : vector<512x128xf32>
    %156 = tpu.matmul %153, %155, %cst_159 {dimension_numbers = #tpu.dot_dimension_numbers<[1], [0], [0], [1], [0, 0, 1, 1], [], []>} : vector<512x128xbf16>, vector<128x128xbf16>, vector<512x128xf32> -> vector<512x128xf32>
    %157 = arith.addf %152, %156 : vector<512x128xf32>
    %c0_160 = arith.constant 0 : index
    %c0_161 = arith.constant 0 : index
    %158 = vector.load %arg10[%c0_160, %c0_161] : memref<512x128xf32, #tpu.memory_space<vmem>>, vector<512x128xf32>
    tpu.vector_store %arg10[%c0_160, %c0_161], %157 {strides = array<i32>} : memref<512x128xf32, #tpu.memory_space<vmem>>, vector<512x128xf32>,
    %c0_162 = arith.constant 0 : index
    %c0_163 = arith.constant 0 : index
    %c1_164 = arith.constant 1 : index
    %c0_165 = arith.constant 0 : index
    %159 = vector.load %arg9[%c0_162, %c0_163, %c1_164, %c0_165] : memref<2x18x18x128xf32, #tpu.memory_space<vmem>>, vector<2x16x16x128xf32>
    %160 = vector.shape_cast %159 : vector<2x16x16x128xf32> to vector<512x128xf32>
    %c0_166 = arith.constant 0 : index
    %c0_167 = arith.constant 0 : index
    %161 = vector.load %arg10[%c0_166, %c0_167] : memref<512x128xf32, #tpu.memory_space<vmem>>, vector<512x128xf32>
    %162 = arith.truncf %160 : vector<512x128xf32> to vector<512x128xbf16>
    %c1_168 = arith.constant 1 : index
    %c0_169 = arith.constant 0 : index
    %c0_170 = arith.constant 0 : index
    %163 = vector.load %arg5[%c1_168, %c0_169, %c0_170] : memref<9x128x128xbf16, #tpu.memory_space<vmem>>, vector<1x128x128xbf16>
    %164 = vector.shape_cast %163 : vector<1x128x128xbf16> to vector<128x128xbf16>
    %cst_171 = arith.constant dense<0.000000e+00> : vector<512x128xf32>
    %165 = tpu.matmul %162, %164, %cst_171 {dimension_numbers = #tpu.dot_dimension_numbers<[1], [0], [0], [1], [0, 0, 1, 1], [], []>} : vector<512x128xbf16>, vector<128x128xbf16>, vector<512x128xf32> -> vector<512x128xf32>
    %166 = arith.addf %161, %165 : vector<512x128xf32>
    %c0_172 = arith.constant 0 : index
    %c0_173 = arith.constant 0 : index
    %167 = vector.load %arg10[%c0_172, %c0_173] : memref<512x128xf32, #tpu.memory_space<vmem>>, vector<512x128xf32>
    tpu.vector_store %arg10[%c0_172, %c0_173], %166 {strides = array<i32>} : memref<512x128xf32, #tpu.memory_space<vmem>>, vector<512x128xf32>,
    %c0_174 = arith.constant 0 : index
    %c0_175 = arith.constant 0 : index
    %c2_176 = arith.constant 2 : index
    %c0_177 = arith.constant 0 : index
    %168 = vector.load %arg9[%c0_174, %c0_175, %c2_176, %c0_177] : memref<2x18x18x128xf32, #tpu.memory_space<vmem>>, vector<2x16x16x128xf32>
    %169 = vector.shape_cast %168 : vector<2x16x16x128xf32> to vector<512x128xf32>
    %c0_178 = arith.constant 0 : index
    %c0_179 = arith.constant 0 : index
    %170 = vector.load %arg10[%c0_178, %c0_179] : memref<512x128xf32, #tpu.memory_space<vmem>>, vector<512x128xf32>
    %171 = arith.truncf %169 : vector<512x128xf32> to vector<512x128xbf16>
    %c2_180 = arith.constant 2 : index
    %c0_181 = arith.constant 0 : index
    %c0_182 = arith.constant 0 : index
    %172 = vector.load %arg5[%c2_180, %c0_181, %c0_182] : memref<9x128x128xbf16, #tpu.memory_space<vmem>>, vector<1x128x128xbf16>
    %173 = vector.shape_cast %172 : vector<1x128x128xbf16> to vector<128x128xbf16>
    %cst_183 = arith.constant dense<0.000000e+00> : vector<512x128xf32>
    %174 = tpu.matmul %171, %173, %cst_183 {dimension_numbers = #tpu.dot_dimension_numbers<[1], [0], [0], [1], [0, 0, 1, 1], [], []>} : vector<512x128xbf16>, vector<128x128xbf16>, vector<512x128xf32> -> vector<512x128xf32>
    %175 = arith.addf %170, %174 : vector<512x128xf32>
    %c0_184 = arith.constant 0 : index
    %c0_185 = arith.constant 0 : index
    %176 = vector.load %arg10[%c0_184, %c0_185] : memref<512x128xf32, #tpu.memory_space<vmem>>, vector<512x128xf32>
    tpu.vector_store %arg10[%c0_184, %c0_185], %175 {strides = array<i32>} : memref<512x128xf32, #tpu.memory_space<vmem>>, vector<512x128xf32>,
    %c0_186 = arith.constant 0 : index
    %c1_187 = arith.constant 1 : index
    %c0_188 = arith.constant 0 : index
    %c0_189 = arith.constant 0 : index
    %177 = vector.load %arg9[%c0_186, %c1_187, %c0_188, %c0_189] : memref<2x18x18x128xf32, #tpu.memory_space<vmem>>, vector<2x16x16x128xf32>
    %178 = vector.shape_cast %177 : vector<2x16x16x128xf32> to vector<512x128xf32>
    %c0_190 = arith.constant 0 : index
    %c0_191 = arith.constant 0 : index
    %179 = vector.load %arg10[%c0_190, %c0_191] : memref<512x128xf32, #tpu.memory_space<vmem>>, vector<512x128xf32>
    %180 = arith.truncf %178 : vector<512x128xf32> to vector<512x128xbf16>
    %c3_192 = arith.constant 3 : index
    %c0_193 = arith.constant 0 : index
    %c0_194 = arith.constant 0 : index
    %181 = vector.load %arg5[%c3_192, %c0_193, %c0_194] : memref<9x128x128xbf16, #tpu.memory_space<vmem>>, vector<1x128x128xbf16>
    %182 = vector.shape_cast %181 : vector<1x128x128xbf16> to vector<128x128xbf16>
    %cst_195 = arith.constant dense<0.000000e+00> : vector<512x128xf32>
    %183 = tpu.matmul %180, %182, %cst_195 {dimension_numbers = #tpu.dot_dimension_numbers<[1], [0], [0], [1], [0, 0, 1, 1], [], []>} : vector<512x128xbf16>, vector<128x128xbf16>, vector<512x128xf32> -> vector<512x128xf32>
    %184 = arith.addf %179, %183 : vector<512x128xf32>
    %c0_196 = arith.constant 0 : index
    %c0_197 = arith.constant 0 : index
    %185 = vector.load %arg10[%c0_196, %c0_197] : memref<512x128xf32, #tpu.memory_space<vmem>>, vector<512x128xf32>
    tpu.vector_store %arg10[%c0_196, %c0_197], %184 {strides = array<i32>} : memref<512x128xf32, #tpu.memory_space<vmem>>, vector<512x128xf32>,
    %c0_198 = arith.constant 0 : index
    %c1_199 = arith.constant 1 : index
    %c1_200 = arith.constant 1 : index
    %c0_201 = arith.constant 0 : index
    %186 = vector.load %arg9[%c0_198, %c1_199, %c1_200, %c0_201] : memref<2x18x18x128xf32, #tpu.memory_space<vmem>>, vector<2x16x16x128xf32>
    %187 = vector.shape_cast %186 : vector<2x16x16x128xf32> to vector<512x128xf32>
    %c0_202 = arith.constant 0 : index
    %c0_203 = arith.constant 0 : index
    %188 = vector.load %arg10[%c0_202, %c0_203] : memref<512x128xf32, #tpu.memory_space<vmem>>, vector<512x128xf32>
    %189 = arith.truncf %187 : vector<512x128xf32> to vector<512x128xbf16>
    %c4_204 = arith.constant 4 : index
    %c0_205 = arith.constant 0 : index
    %c0_206 = arith.constant 0 : index
    %190 = vector.load %arg5[%c4_204, %c0_205, %c0_206] : memref<9x128x128xbf16, #tpu.memory_space<vmem>>, vector<1x128x128xbf16>
    %191 = vector.shape_cast %190 : vector<1x128x128xbf16> to vector<128x128xbf16>
    %cst_207 = arith.constant dense<0.000000e+00> : vector<512x128xf32>
    %192 = tpu.matmul %189, %191, %cst_207 {dimension_numbers = #tpu.dot_dimension_numbers<[1], [0], [0], [1], [0, 0, 1, 1], [], []>} : vector<512x128xbf16>, vector<128x128xbf16>, vector<512x128xf32> -> vector<512x128xf32>
    %193 = arith.addf %188, %192 : vector<512x128xf32>
    %c0_208 = arith.constant 0 : index
    %c0_209 = arith.constant 0 : index
    %194 = vector.load %arg10[%c0_208, %c0_209] : memref<512x128xf32, #tpu.memory_space<vmem>>, vector<512x128xf32>
    tpu.vector_store %arg10[%c0_208, %c0_209], %193 {strides = array<i32>} : memref<512x128xf32, #tpu.memory_space<vmem>>, vector<512x128xf32>,
    %c0_210 = arith.constant 0 : index
    %c1_211 = arith.constant 1 : index
    %c2_212 = arith.constant 2 : index
    %c0_213 = arith.constant 0 : index
    %195 = vector.load %arg9[%c0_210, %c1_211, %c2_212, %c0_213] : memref<2x18x18x128xf32, #tpu.memory_space<vmem>>, vector<2x16x16x128xf32>
    %196 = vector.shape_cast %195 : vector<2x16x16x128xf32> to vector<512x128xf32>
    %c0_214 = arith.constant 0 : index
    %c0_215 = arith.constant 0 : index
    %197 = vector.load %arg10[%c0_214, %c0_215] : memref<512x128xf32, #tpu.memory_space<vmem>>, vector<512x128xf32>
    %198 = arith.truncf %196 : vector<512x128xf32> to vector<512x128xbf16>
    %c5_216 = arith.constant 5 : index
    %c0_217 = arith.constant 0 : index
    %c0_218 = arith.constant 0 : index
    %199 = vector.load %arg5[%c5_216, %c0_217, %c0_218] : memref<9x128x128xbf16, #tpu.memory_space<vmem>>, vector<1x128x128xbf16>
    %200 = vector.shape_cast %199 : vector<1x128x128xbf16> to vector<128x128xbf16>
    %cst_219 = arith.constant dense<0.000000e+00> : vector<512x128xf32>
    %201 = tpu.matmul %198, %200, %cst_219 {dimension_numbers = #tpu.dot_dimension_numbers<[1], [0], [0], [1], [0, 0, 1, 1], [], []>} : vector<512x128xbf16>, vector<128x128xbf16>, vector<512x128xf32> -> vector<512x128xf32>
    %202 = arith.addf %197, %201 : vector<512x128xf32>
    %c0_220 = arith.constant 0 : index
    %c0_221 = arith.constant 0 : index
    %203 = vector.load %arg10[%c0_220, %c0_221] : memref<512x128xf32, #tpu.memory_space<vmem>>, vector<512x128xf32>
    tpu.vector_store %arg10[%c0_220, %c0_221], %202 {strides = array<i32>} : memref<512x128xf32, #tpu.memory_space<vmem>>, vector<512x128xf32>,
    %c0_222 = arith.constant 0 : index
    %c2_223 = arith.constant 2 : index
    %c0_224 = arith.constant 0 : index
    %c0_225 = arith.constant 0 : index
    %204 = vector.load %arg9[%c0_222, %c2_223, %c0_224, %c0_225] : memref<2x18x18x128xf32, #tpu.memory_space<vmem>>, vector<2x16x16x128xf32>
    %205 = vector.shape_cast %204 : vector<2x16x16x128xf32> to vector<512x128xf32>
    %c0_226 = arith.constant 0 : index
    %c0_227 = arith.constant 0 : index
    %206 = vector.load %arg10[%c0_226, %c0_227] : memref<512x128xf32, #tpu.memory_space<vmem>>, vector<512x128xf32>
    %207 = arith.truncf %205 : vector<512x128xf32> to vector<512x128xbf16>
    %c6_228 = arith.constant 6 : index
    %c0_229 = arith.constant 0 : index
    %c0_230 = arith.constant 0 : index
    %208 = vector.load %arg5[%c6_228, %c0_229, %c0_230] : memref<9x128x128xbf16, #tpu.memory_space<vmem>>, vector<1x128x128xbf16>
    %209 = vector.shape_cast %208 : vector<1x128x128xbf16> to vector<128x128xbf16>
    %cst_231 = arith.constant dense<0.000000e+00> : vector<512x128xf32>
    %210 = tpu.matmul %207, %209, %cst_231 {dimension_numbers = #tpu.dot_dimension_numbers<[1], [0], [0], [1], [0, 0, 1, 1], [], []>} : vector<512x128xbf16>, vector<128x128xbf16>, vector<512x128xf32> -> vector<512x128xf32>
    %211 = arith.addf %206, %210 : vector<512x128xf32>
    %c0_232 = arith.constant 0 : index
    %c0_233 = arith.constant 0 : index
    %212 = vector.load %arg10[%c0_232, %c0_233] : memref<512x128xf32, #tpu.memory_space<vmem>>, vector<512x128xf32>
    tpu.vector_store %arg10[%c0_232, %c0_233], %211 {strides = array<i32>} : memref<512x128xf32, #tpu.memory_space<vmem>>, vector<512x128xf32>,
    %c0_234 = arith.constant 0 : index
    %c2_235 = arith.constant 2 : index
    %c1_236 = arith.constant 1 : index
    %c0_237 = arith.constant 0 : index
    %213 = vector.load %arg9[%c0_234, %c2_235, %c1_236, %c0_237] : memref<2x18x18x128xf32, #tpu.memory_space<vmem>>, vector<2x16x16x128xf32>
    %214 = vector.shape_cast %213 : vector<2x16x16x128xf32> to vector<512x128xf32>
    %c0_238 = arith.constant 0 : index
    %c0_239 = arith.constant 0 : index
    %215 = vector.load %arg10[%c0_238, %c0_239] : memref<512x128xf32, #tpu.memory_space<vmem>>, vector<512x128xf32>
    %216 = arith.truncf %214 : vector<512x128xf32> to vector<512x128xbf16>
    %c7_240 = arith.constant 7 : index
    %c0_241 = arith.constant 0 : index
    %c0_242 = arith.constant 0 : index
    %217 = vector.load %arg5[%c7_240, %c0_241, %c0_242] : memref<9x128x128xbf16, #tpu.memory_space<vmem>>, vector<1x128x128xbf16>
    %218 = vector.shape_cast %217 : vector<1x128x128xbf16> to vector<128x128xbf16>
    %cst_243 = arith.constant dense<0.000000e+00> : vector<512x128xf32>
    %219 = tpu.matmul %216, %218, %cst_243 {dimension_numbers = #tpu.dot_dimension_numbers<[1], [0], [0], [1], [0, 0, 1, 1], [], []>} : vector<512x128xbf16>, vector<128x128xbf16>, vector<512x128xf32> -> vector<512x128xf32>
    %220 = arith.addf %215, %219 : vector<512x128xf32>
    %c0_244 = arith.constant 0 : index
    %c0_245 = arith.constant 0 : index
    %221 = vector.load %arg10[%c0_244, %c0_245] : memref<512x128xf32, #tpu.memory_space<vmem>>, vector<512x128xf32>
    tpu.vector_store %arg10[%c0_244, %c0_245], %220 {strides = array<i32>} : memref<512x128xf32, #tpu.memory_space<vmem>>, vector<512x128xf32>,
    %c0_246 = arith.constant 0 : index
    %c2_247 = arith.constant 2 : index
    %c2_248 = arith.constant 2 : index
    %c0_249 = arith.constant 0 : index
    %222 = vector.load %arg9[%c0_246, %c2_247, %c2_248, %c0_249] : memref<2x18x18x128xf32, #tpu.memory_space<vmem>>, vector<2x16x16x128xf32>
    %223 = vector.shape_cast %222 : vector<2x16x16x128xf32> to vector<512x128xf32>
    %c0_250 = arith.constant 0 : index
    %c0_251 = arith.constant 0 : index
    %224 = vector.load %arg10[%c0_250, %c0_251] : memref<512x128xf32, #tpu.memory_space<vmem>>, vector<512x128xf32>
    %225 = arith.truncf %223 : vector<512x128xf32> to vector<512x128xbf16>
    %c8_252 = arith.constant 8 : index
    %c0_253 = arith.constant 0 : index
    %c0_254 = arith.constant 0 : index
    %226 = vector.load %arg5[%c8_252, %c0_253, %c0_254] : memref<9x128x128xbf16, #tpu.memory_space<vmem>>, vector<1x128x128xbf16>
    %227 = vector.shape_cast %226 : vector<1x128x128xbf16> to vector<128x128xbf16>
    %cst_255 = arith.constant dense<0.000000e+00> : vector<512x128xf32>
    %228 = tpu.matmul %225, %227, %cst_255 {dimension_numbers = #tpu.dot_dimension_numbers<[1], [0], [0], [1], [0, 0, 1, 1], [], []>} : vector<512x128xbf16>, vector<128x128xbf16>, vector<512x128xf32> -> vector<512x128xf32>
    %229 = arith.addf %224, %228 : vector<512x128xf32>
    %c0_256 = arith.constant 0 : index
    %c0_257 = arith.constant 0 : index
    %230 = vector.load %arg10[%c0_256, %c0_257] : memref<512x128xf32, #tpu.memory_space<vmem>>, vector<512x128xf32>
    tpu.vector_store %arg10[%c0_256, %c0_257], %229 {strides = array<i32>} : memref<512x128xf32, #tpu.memory_space<vmem>>, vector<512x128xf32>,
    %c0_258 = arith.constant 0 : index
    %c1_259 = arith.constant 1 : index
    %c1_260 = arith.constant 1 : index
    %c0_261 = arith.constant 0 : index
    %231 = vector.load %arg1[%c0_258, %c1_259, %c1_260, %c0_261] : memref<2x18x18x128xf32, #tpu.memory_space<vmem>>, vector<2x16x16x128xf32>
    %232 = vector.shape_cast %231 : vector<2x16x16x128xf32> to vector<512x128xf32>
    %233 = arith.truncf %232 : vector<512x128xf32> to vector<512x128xbf16>
    %c0_262 = arith.constant 0 : index
    %c0_263 = arith.constant 0 : index
    %234 = vector.load %arg6[%c0_262, %c0_263] : memref<128x128xbf16, #tpu.memory_space<vmem>>, vector<128x128xbf16>
    %cst_264 = arith.constant dense<0.000000e+00> : vector<512x128xf32>
    %235 = tpu.matmul %233, %234, %cst_264 {dimension_numbers = #tpu.dot_dimension_numbers<[1], [0], [0], [1], [0, 0, 1, 1], [], []>} : vector<512x128xbf16>, vector<128x128xbf16>, vector<512x128xf32> -> vector<512x128xf32>
    %c0_265 = arith.constant 0 : index
    %c0_266 = arith.constant 0 : index
    %236 = vector.load %arg10[%c0_265, %c0_266] : memref<512x128xf32, #tpu.memory_space<vmem>>, vector<512x128xf32>
    %237 = arith.addf %236, %235 : vector<512x128xf32>
    %c2_267 = arith.constant 2 : index
    %c0_268 = arith.constant 0 : index
    %238 = vector.load %arg4[%c2_267, %c0_268] : memref<3x128xf32, #tpu.memory_space<vmem>>, vector<1x128xf32>
    %239 = vector.broadcast %238 : vector<1x128xf32> to vector<512x128xf32>
    %240 = arith.addf %237, %239 : vector<512x128xf32>
    %c0_269 = arith.constant 0 : index
    %c0_270 = arith.constant 0 : index
    %241 = vector.load %arg7[%c0_269, %c0_270] : memref<512x128xf32, #tpu.memory_space<vmem>>, vector<512x128xf32>
    tpu.vector_store %arg7[%c0_269, %c0_270], %240 {strides = array<i32>} : memref<512x128xf32, #tpu.memory_space<vmem>>, vector<512x128xf32>,
    return
  }
  func.func @transform_0(%arg0: i32) -> (i32, i32, i32, i32) {
    %c0_i32 = arith.constant 0 : i32
    %c0_i32_0 = arith.constant 0 : i32
    %c0_i32_1 = arith.constant 0 : i32
    %c0_i32_2 = arith.constant 0 : i32
    %c0_i32_3 = arith.constant 0 : i32
    return %c0_i32, %c0_i32_0, %c0_i32_1, %c0_i32_2 : i32, i32, i32, i32
  }
  func.func @transform_1(%arg0: i32) -> (i32, i32) {
    %c0_i32 = arith.constant 0 : i32
    %c0_i32_0 = arith.constant 0 : i32
    %c0_i32_1 = arith.constant 0 : i32
    return %c0_i32, %c0_i32_0 : i32, i32
  }
  func.func @transform_2(%arg0: i32) -> (i32, i32, i32) {
    %c0_i32 = arith.constant 0 : i32
    %c0_i32_0 = arith.constant 0 : i32
    %c0_i32_1 = arith.constant 0 : i32
    %c0_i32_2 = arith.constant 0 : i32
    return %c0_i32, %c0_i32_0, %c0_i32_1 : i32, i32, i32
  }
  func.func @transform_3(%arg0: i32) -> (i32, i32) {
    %c0_i32 = arith.constant 0 : i32
    %c0_i32_0 = arith.constant 0 : i32
    %c0_i32_1 = arith.constant 0 : i32
    return %c0_i32, %c0_i32_0 : i32, i32
  }
  func.func @transform_4(%arg0: i32) -> (i32, i32, i32) {
    %c0_i32 = arith.constant 0 : i32
    %c0_i32_0 = arith.constant 0 : i32
    %c0_i32_1 = arith.constant 0 : i32
    %c0_i32_2 = arith.constant 0 : i32
    return %c0_i32, %c0_i32_0, %c0_i32_1 : i32, i32, i32
  }
  func.func @transform_5(%arg0: i32) -> (i32, i32) {
    %c0_i32 = arith.constant 0 : i32
    %c0_i32_0 = arith.constant 0 : i32
    %c0_i32_1 = arith.constant 0 : i32
    return %c0_i32, %c0_i32_0 : i32, i32
  }
  func.func @transform_6(%arg0: i32) -> (i32, i32) {
    %c0_i32 = arith.constant 0 : i32
    %c0_i32_0 = arith.constant 0 : i32
    %c0_i32_1 = arith.constant 0 : i32
    return %c0_i32, %c0_i32_0 : i32, i32
  }
}

</mosaic_0001>

<bundles_post_ra>
// kernel: genblock_forward.1
= control target key start
LH: loop header
LB: loop body
LE: loop exit
PB: predicated region body
PF: predicated region fallthrough
CT: control target
= control target key end

     0   :  { %v12727_v3 = vmov 0.0   ;;  %s16525_s0 = inlined_call_operand.vmem [shape: f32[2,18,18,128], index: 0, kind: input, shape index: {}]   ;;  %s16526_s1 = inlined_call_operand.vmem [shape: f32[2,128], index: 1, kind: input, shape index: {}]   ;;  %s16527_s2 = inlined_call_operand.vmem [shape: bf16[9,128,128], index: 2, kind: input, shape index: {}]   ;;  %s16528_s3 = inlined_call_operand.vmem [shape: f32[3,128], index: 3, kind: input, shape index: {}]   ;;  %s16529_s4 = inlined_call_operand.vmem [shape: bf16[9,128,128], index: 4, kind: input, shape index: {}]   ;;  %s16530_s5 = inlined_call_operand.vmem [shape: bf16[128,128], index: 5, kind: input, shape index: {}]   ;;  %s16531_s6 = inlined_call_operand.hbm [shape: f32[512,128], index: 6, kind: output, shape index: {}]  }
   0x1   :  { %v12477_v0 = vld [vmem:[%s16527_s2 + $0xb8] sm:$0xff]  ;;  %506 = vst [vmem:[#allocation2] sm:$0xff] %v12727_v3  ;;  %v12476_v4 = vld [vmem:[%s16527_s2 + $0xb0] sm:$0xff]  ;;  %v12475_v7 = vld [vmem:[%s16527_s2 + $0xa8] sm:$0xff] }
   0x2   :  { %v12461_v1 = vld [vmem:[%s16527_s2 + $0x38] sm:$0xff]  ;;  %2011 = vmatpush.bf16.msra.mxu2 %v12477_v0  ;;  %v12460_v5 = vld [vmem:[%s16527_s2 + $0x30] sm:$0xff]  ;;  %507 = vst [vmem:[#allocation2 + $0x8] sm:$0xff] %v12727_v3  ;;  %v12459_v8 = vld [vmem:[%s16527_s2 + $0x28] sm:$0xff] }
   0x3   :  { %v12776_v2 = vld [vmem:[%s16527_s2 + $0x78] sm:$0xff]  ;;  %967 = vmatpush.bf16.msra.mxu0 %v12461_v1  ;;  %12606 = vmatpush.bf16.msra.mxu3 %v12461_v1  ;;  %v12790_v6 = vld [vmem:[%s16527_s2 + $0x70] sm:$0xff]  ;;  %508 = vst [vmem:[#allocation2 + $0x10] sm:$0x3] %v12727_v3  ;;  %v12806_v9 = vld [vmem:[%s16527_s2 + $0x68] sm:$0xff] }
   0x4   :  { %1489 = vmatpush.bf16.msra.mxu1 %v12776_v2  ;;  %509 = vst [vmem:[#allocation2 + $0x18] sm:$0xff] %v12727_v3  ;;  %v11462_v10 = vld [vmem:[%s16525_s0 + $0x19] sm:$0xff]  ;;  %v11463_v11 = vld [vmem:[%s16525_s0 + $0x21] sm:$0xff]  ;;  %v11464_v12 = vld [vmem:[%s16525_s0 + $0x31] sm:$0xff] }
   0x5   :  { %510 = vst [vmem:[#allocation2 + $0x20] sm:$0xff] %v12727_v3  ;;  %v89_v13 = vadd.f32 %v11463_v11, %v11462_v10  ;;  %v11465_v14 = vld [vmem:[%s16525_s0 + $0x39] sm:$0xff]  ;;  %v159_v15 = vmul.f32 %v11462_v10, %v11462_v10  ;;  %v160_v16 = vmul.f32 %v11463_v11, %v11463_v11  ;;  %v11466_v21 = vld [vmem:[%s16525_s0 + $0x49] sm:$0xff]  ;;  %v161_v23 = vmul.f32 %v11464_v12, %v11464_v12  ;;  %v11467_v24 = vld [vmem:[%s16525_s0 + $0x51] sm:$0xff] }
   0x6   :  { %2012 = vmatpush.bf16.msra.mxu2 %v12476_v4  ;;  %511 = vst [vmem:[#allocation2 + $0x28] sm:$0x3] %v12727_v3  ;;  %v12474_v17 = vld [vmem:[%s16527_s2 + $0xa0] sm:$0xff]  ;;  %v12473_v26 = vld [vmem:[%s16527_s2 + $0x98] sm:$0xff]  ;;  %v162_v29 = vmul.f32 %v11465_v14, %v11465_v14  ;;  %v163_v33 = vmul.f32 %v11466_v21, %v11466_v21 }
   0x7   :  { %968 = vmatpush.bf16.msra.mxu0 %v12460_v5  ;;  %12607 = vmatpush.bf16.msra.mxu3 %v12460_v5  ;;  %512 = vst [vmem:[#allocation2 + $0x30] sm:$0xff] %v12727_v3  ;;  %v12458_v18 = vld [vmem:[%s16527_s2 + $0x20] sm:$0xff]  ;;  %v90_v19 = vadd.f32 %v11464_v12, %v89_v13  ;;  %v223_v25 = vadd.f32 %v160_v16, %v159_v15  ;;  %v12457_v27 = vld [vmem:[%s16527_s2 + $0x18] sm:$0xff] }
   0x8   :  { %1490 = vmatpush.bf16.msra.mxu1 %v12790_v6  ;;  %513 = vst [vmem:[#allocation2 + $0x38] sm:$0xff] %v12727_v3  ;;  %v12834_v20 = vld [vmem:[%s16527_s2 + $0x60] sm:$0xff]  ;;  %v12856_v30 = vld [vmem:[%s16527_s2 + $0x58] sm:$0xff] }
   0x9   :  { %514 = vst [vmem:[#allocation2 + $0x40] sm:$0x3] %v12727_v3  ;;  %v91_v22 = vadd.f32 %v11465_v14, %v90_v19  ;;  %v11468_v31 = vld [vmem:[%s16525_s0 + $0x61] sm:$0xff]  ;;  %v224_v34 = vadd.f32 %v223_v25, %v161_v23 }
   0xa   :  { %2013 = vmatpush.bf16.msra.mxu2 %v12475_v7  ;;  %515 = vst [vmem:[#allocation2 + $0x48] sm:$0xff] %v12727_v3 }
   0xb   :  { %969 = vmatpush.bf16.msra.mxu0 %v12459_v8  ;;  %12608 = vmatpush.bf16.msra.mxu3 %v12459_v8  ;;  %516 = vst [vmem:[#allocation2 + $0x50] sm:$0xff] %v12727_v3  ;;  %v92_v28 = vadd.f32 %v11466_v21, %v91_v22 }
   0xc   :  { %1491 = vmatpush.bf16.msra.mxu1 %v12806_v9  ;;  %517 = vst [vmem:[#allocation2 + $0x58] sm:$0x3] %v12727_v3 }
   0xd   :  { %518 = vst [vmem:[#allocation2 + $0x60] sm:$0xff] %v12727_v3  ;;  %v93_v32 = vadd.f32 %v11467_v24, %v92_v28 }
   0xe   :  { %2014 = vmatpush.bf16.msra.mxu2 %v12474_v17  ;;  %519 = vst [vmem:[#allocation2 + $0x68] sm:$0xff] %v12727_v3 }
   0xf   :  { %970 = vmatpush.bf16.msra.mxu0 %v12458_v18  ;;  %12609 = vmatpush.bf16.msra.mxu3 %v12458_v18  ;;  %520 = vst [vmem:[#allocation2 + $0x70] sm:$0x3] %v12727_v3 }
  0x10   :  { %1492 = vmatpush.bf16.msra.mxu1 %v12834_v20  ;;  %521 = vst [vmem:[#allocation2 + $0x78] sm:$0xff] %v12727_v3 }
  0x11   :  { %11 = vsyncpa [#allocation6], 0  ;;  %522 = vst [vmem:[#allocation2 + $0x80] sm:$0xff] %v12727_v3  ;;  %v11469_v35 = vld [vmem:[%s16525_s0 + $0x69] sm:$0xff]  ;;  %v94_v38 = vadd.f32 %v11468_v31, %v93_v32  ;;  %v164_v39 = vmul.f32 %v11467_v24, %v11467_v24  ;;  %v225_v40 = vadd.f32 %v224_v34, %v162_v29  ;;  %v11470_v42 = vld [vmem:[%s16525_s0 + $0x79] sm:$0xff]  ;;  %v165_v44 = vmul.f32 %v11468_v31, %v11468_v31  ;;  %s11450_s17 = sshll.u32 %s16531_s6, 4  ;;  %s11451_s17 = int_to_ptr.hbm [resolvable:$true] %s11450_s17 }
  0x12   :  { %2015 = vmatpush.bf16.msra.mxu2 %v12473_v26  ;;  %v12472_v36 = vld [vmem:[%s16527_s2 + $0x90] sm:$0xff]  ;;  %523 = vst [vmem:[#allocation2 + $0x88] sm:$0x3] %v12727_v3  ;;  %v11471_v46 = vld [vmem:[%s16525_s0 + $0x81] sm:$0xff]  ;;  %v166_v50 = vmul.f32 %v11469_v35, %v11469_v35  ;;  %v167_v55 = vmul.f32 %v11470_v42, %v11470_v42  ;;  %v11473_v57 = vld [vmem:[%s16525_s0 + $0x99] sm:$0xff]  ;;  %s12730_s18 = smov 128  }
  0x13   :  { %971 = vmatpush.bf16.msra.mxu0 %v12457_v27  ;;  %v12456_v37 = vld [vmem:[%s16527_s2 + $0x10] sm:$0xff]  ;;  %12610 = vmatpush.bf16.msra.mxu3 %v12457_v27  ;;  %524 = vst [vmem:[#allocation2 + $0x90] sm:$0xff] %v12727_v3  ;;  %v95_v43 = vadd.f32 %v11469_v35, %v94_v38  ;;  %v226_v45 = vadd.f32 %v225_v40, %v163_v33  ;;  %v12471_v47 = vld [vmem:[%s16527_s2 + $0x88] sm:$0xff]  ;;  %v12470_v58 = vld [vmem:[%s16527_s2 + $0x80] sm:$0xff]  ;;  %s12731_s19 = smov 8  }
  0x14   :  { %1493 = vmatpush.bf16.msra.mxu1 %v12856_v30  ;;  %v12878_v41 = vld [vmem:[%s16527_s2 + $0x50] sm:$0xff]  ;;  %525 = vst [vmem:[#allocation2 + $0x98] sm:$0xff] %v12727_v3  ;;  %v12455_v48 = vld [vmem:[%s16527_s2 + $0x8] sm:$0xff]  ;;  %v168_v62 = vmul.f32 %v11471_v46, %v11471_v46  ;;  %v170_v11 = vmul.f32 %v11473_v57, %v11473_v57  ;;  %v11478_v22 = vld [vmem:[%s16525_s0 + $0xd9] sm:$0xff] }
  0x15   :  { %526 = vst [vmem:[#allocation2 + $0xa0] sm:$0x3] %v12727_v3  ;;  %v96_v49 = vadd.f32 %v11470_v42, %v95_v43  ;;  %v227_v51 = vadd.f32 %v226_v45, %v164_v39  ;;  %v12900_v52 = vld [vmem:[%s16527_s2 + $0x48] sm:$0xff]  ;;  %v11472_v53 = vld [vmem:[%s16525_s0 + $0x91] sm:$0xff]  ;;  %v175_v33 = vmul.f32 %v11478_v22, %v11478_v22  ;;  %v11481_v35 = vld [vmem:[%s16525_s0 + $0xf9] sm:$0xff] }
  0x16   :  { %2016 = vmatpush.bf16.msra.mxu2 %v12472_v36  ;;  %527 = vst [vmem:[#allocation2 + $0xa8] sm:$0xff] %v12727_v3  ;;  %v1786_v59 = vld [vmem:[#allocation2 + $0x2] sm:$0xff]  ;;  %v1787_v60 = vld [vmem:[#allocation2 + $0xa] sm:$0xff]  ;;  %v169_v4 = vmul.f32 %v11472_v53, %v11472_v53 }
  0x17   :  { %972 = vmatpush.bf16.msra.mxu0 %v12456_v37  ;;  %12611 = vmatpush.bf16.msra.mxu3 %v12456_v37  ;;  %528 = vst [vmem:[#allocation2 + $0xb0] sm:$0xff] %v12727_v3  ;;  %v97_v54 = vadd.f32 %v11471_v46, %v96_v49  ;;  %v228_v56 = vadd.f32 %v227_v51, %v165_v44  ;;  %v11474_v0 = vld [vmem:[%s16525_s0 + $0xa9] sm:$0xff]  ;;  %v11475_v8 = vld [vmem:[%s16525_s0 + $0xb1] sm:$0xff]  ;;  %v11476_v13 = vld [vmem:[%s16525_s0 + $0xc1] sm:$0xff] }
  0x18   :  { %1494 = vmatpush.bf16.msra.mxu1 %v12878_v41  ;;  %529 = vst [vmem:[#allocation2 + $0xb8] sm:$0x3] %v12727_v3  ;;  %v1914_v7 = vpack.c.bf16 %v1787_v60, %v1786_v59  ;;  %v171_v15 = vmul.f32 %v11474_v0, %v11474_v0  ;;  %v11477_v17 = vld [vmem:[%s16525_s0 + $0xc9] sm:$0xff]  ;;  %v172_v19 = vmul.f32 %v11475_v8, %v11475_v8  ;;  %v11479_v26 = vld [vmem:[%s16525_s0 + $0xe1] sm:$0xff]  ;;  %v11480_v31 = vld [vmem:[%s16525_s0 + $0xf1] sm:$0xff] }
  0x19   :  { %530 = vst [vmem:[#allocation2 + $0xc0] sm:$0xff] %v12727_v3  ;;  %v98_v61 = vadd.f32 %v11472_v53, %v97_v54  ;;  %v229_v63 = vadd.f32 %v228_v56, %v166_v50  ;;  %v173_v24 = vmul.f32 %v11476_v13, %v11476_v13  ;;  %v174_v28 = vmul.f32 %v11477_v17, %v11477_v17  ;;  %v11482_v39 = vld [vmem:[%s16525_s0 + $0x109] sm:$0xff]  ;;  %v11483_v44 = vld [vmem:[%s16525_s0 + $0x111] sm:$0xff] }
  0x1a   :  { %2017 = vmatpush.bf16.msra.mxu2 %v12471_v47  ;;  %531 = vst [vmem:[#allocation2 + $0xc8] sm:$0xff] %v12727_v3  ;;  %v176_v37 = vmul.f32 %v11479_v26, %v11479_v26  ;;  %v177_v42 = vmul.f32 %v11480_v31, %v11480_v31  ;;  %v178_v46 = vmul.f32 %v11481_v35, %v11481_v35  ;;  %v11485_v53 = vld [vmem:[%s16525_s0 + $0x129] sm:$0xff] }
  0x1b   :  { %973 = vmatpush.bf16.msra.mxu0 %v12455_v48  ;;  %12612 = vmatpush.bf16.msra.mxu3 %v12455_v48  ;;  %532 = vst [vmem:[#allocation2 + $0xd0] sm:$0x3] %v12727_v3  ;;  %v99_v1 = vadd.f32 %v11473_v57, %v98_v61  ;;  %v230_v5 = vadd.f32 %v229_v63, %v167_v55  ;;  %v11484_v48 = vld [vmem:[%s16525_s0 + $0x121] sm:$0xff]  ;;  %v11486_v57 = vld [vmem:[%s16525_s0 + $0x139] sm:$0xff] }
  0x1c   :  { %1495 = vmatpush.bf16.msra.mxu1 %v12900_v52  ;;  %533 = vst [vmem:[#allocation2 + $0xd8] sm:$0xff] %v12727_v3  ;;  %v179_v50 = vmul.f32 %v11482_v39, %v11482_v39  ;;  %v180_v55 = vmul.f32 %v11483_v44, %v11483_v44  ;;  %v181_v59 = vmul.f32 %v11484_v48, %v11484_v48  ;;  %v11487_v61 = vld [vmem:[%s16525_s0 + $0x141] sm:$0xff] }
  0x1d   :  { %534 = vst [vmem:[#allocation2 + $0xe0] sm:$0xff] %v12727_v3  ;;  %v100_v10 = vadd.f32 %v11474_v0, %v99_v1  ;;  %v231_v12 = vadd.f32 %v230_v5, %v168_v62  ;;  %v12454_v0 = vld [vmem:[%s16527_s2] sm:$0xff]  ;;  %v182_v5 = vmul.f32 %v11485_v53, %v11485_v53 }
  0x1e   :  { %2018 = vmatpush.bf16.msra.mxu2 %v12470_v58  ;;  %535 = vst [vmem:[#allocation2 + $0xe8] sm:$0x3] %v12727_v3  ;;  %v12993_v1 = vld [vmem:[%s16527_s2 + $0x40] sm:$0xff] }
  0x1f   :  { %536 = vst [vmem:[#allocation2 + $0xf0] sm:$0xff] %v12727_v3  ;;  %v101_v14 = vadd.f32 %v11475_v8, %v100_v10  ;;  %v232_v16 = vadd.f32 %v231_v12, %v169_v4  ;;  %v11488_v4 = vld [vmem:[%s16525_s0 + $0x151] sm:$0xff]  ;;  %974 = vmatpush.bf16.msra.mxu0 %v12454_v0  ;;  %12613 = vmatpush.bf16.msra.mxu3 %v12454_v0  ;;  %v11489_v10 = vld [vmem:[%s16525_s0 + $0x159] sm:$0xff] }
  0x20   :  { %537 = vst [vmem:[#allocation2 + $0xf8] sm:$0xff] %v12727_v3  ;;  %1496 = vmatpush.bf16.msra.mxu1 %v12993_v1  ;;  %v11503_v0 = vld [vmem:[%s16525_s0 + $0x231] sm:$0xff] }
  0x21   :  { %2019 = vmatmul.bf16.vlgmr.msra.gmra.mxu2 %v1914_v7  ;;  %538 = vst [vmem:[#allocation2 + $0x100] sm:$0x3] %v12727_v3  ;;  %v102_v18 = vadd.f32 %v11476_v13, %v101_v14  ;;  %v233_v21 = vadd.f32 %v232_v16, %v170_v11  ;;  %v183_v11 = vmul.f32 %v11486_v57, %v11486_v57  ;;  %v11490_v13 = vld [vmem:[%s16525_s0 + $0x169] sm:$0xff]  ;;  %v12728_v16 = vmov 0.0|0.0  }
  0x22   :  { %539 = vst [vmem:[#allocation2 + $0x108] sm:$0xff] %v12727_v3  ;;  %v184_v14 = vmul.f32 %v11487_v61, %v11487_v61  ;;  %975 = vmatmul.bf16.vlgmr.msra.gmra.mxu0 %v12728_v16  ;;  %v200_v16 = vmul.f32 %v11503_v0, %v11503_v0 }
  0x23   :  { %540 = vst [vmem:[#allocation2 + $0x110] sm:$0xff] %v12727_v3  ;;  %v103_v23 = vadd.f32 %v11477_v17, %v102_v18  ;;  %v234_v25 = vadd.f32 %v233_v21, %v171_v15  ;;  %12614 = vmatpush.bf16.msrb.mxu3 %v12776_v2  ;;  %v11491_v18 = vld [vmem:[%s16525_s0 + $0x171] sm:$0xff]  ;;  %v185_v2 = vmul.f32 %v11488_v4, %v11488_v4 }
  0x24   :  { %541 = vst [vmem:[#allocation2 + $0x118] sm:$0x3] %v12727_v3 }
  0x25   :  { %542 = vst [vmem:[#allocation2 + $0x120] sm:$0xff] %v12727_v3  ;;  %v104_v27 = vadd.f32 %v11478_v22, %v103_v23  ;;  %v235_v29 = vadd.f32 %v234_v25, %v172_v19  ;;  %v11492_v22 = vld [vmem:[%s16525_s0 + $0x181] sm:$0xff]  ;;  %v186_v23 = vmul.f32 %v11489_v10, %v11489_v10 }
  0x26   :  { %543 = vst [vmem:[#allocation2 + $0x128] sm:$0xff] %v12727_v3 }
  0x27   :  { %544 = vst [vmem:[#allocation2 + $0x130] sm:$0x3] %v12727_v3  ;;  %v105_v32 = vadd.f32 %v11479_v26, %v104_v27  ;;  %v236_v34 = vadd.f32 %v235_v29, %v173_v24  ;;  %12615 = vmatpush.bf16.msrb.mxu3 %v12790_v6  ;;  %v11493_v26 = vld [vmem:[%s16525_s0 + $0x189] sm:$0xff]  ;;  %v187_v27 = vmul.f32 %v11490_v13, %v11490_v13 }
  0x28   :  { %545 = vst [vmem:[#allocation2 + $0x138] sm:$0xff] %v12727_v3  ;;  %v11494_v29 = vld [vmem:[%s16525_s0 + $0x1c9] sm:$0xff] }
  0x29   :  { %546 = vst [vmem:[#allocation2 + $0x140] sm:$0xff] %v12727_v3  ;;  %v106_v36 = vadd.f32 %v11480_v31, %v105_v32  ;;  %v237_v38 = vadd.f32 %v236_v34, %v174_v28  ;;  %v188_v31 = vmul.f32 %v11491_v18, %v11491_v18  ;;  %v11495_v34 = vld [vmem:[%s16525_s0 + $0x1d1] sm:$0xff] }
  0x2a   :  { %547 = vst [vmem:[#allocation2 + $0x148] sm:$0x3] %v12727_v3 }
  0x2b   :  { %548 = vst [vmem:[#allocation2 + $0x150] sm:$0xff] %v12727_v3  ;;  %v107_v40 = vadd.f32 %v11481_v35, %v106_v36  ;;  %v238_v43 = vadd.f32 %v237_v38, %v175_v33  ;;  %12616 = vmatpush.bf16.msrb.mxu3 %v12806_v9  ;;  %v189_v35 = vmul.f32 %v11492_v22, %v11492_v22 }
  0x2c   :  { %549 = vst [vmem:[#allocation2 + $0x158] sm:$0xff] %v12727_v3  ;;  %v190_v38 = vmul.f32 %v11493_v26, %v11493_v26 }
  0x2d   :  { %550 = vst [vmem:[#allocation2 + $0x160] sm:$0x3] %v12727_v3  ;;  %v108_v45 = vadd.f32 %v11482_v39, %v107_v40  ;;  %v239_v47 = vadd.f32 %v238_v43, %v176_v37  ;;  %v11496_v37 = vld [vmem:[%s16525_s0 + $0x1e1] sm:$0xff]  ;;  %v191_v43 = vmul.f32 %v11494_v29, %v11494_v29 }
  0x2e   :  { %551 = vst [vmem:[#allocation2 + $0x168] sm:$0xff] %v12727_v3 }
  0x2f   :  { %552 = vst [vmem:[#allocation2 + $0x170] sm:$0xff] %v12727_v3  ;;  %v109_v49 = vadd.f32 %v11483_v44, %v108_v45  ;;  %v240_v51 = vadd.f32 %v239_v47, %v177_v42  ;;  %12617 = vmatpush.bf16.msrb.mxu3 %v12834_v20  ;;  %v11497_v42 = vld [vmem:[%s16525_s0 + $0x1e9] sm:$0xff]  ;;  %v11498_v45 = vld [vmem:[%s16525_s0 + $0x1f9] sm:$0xff] }
  0x30   :  { %553 = vst [vmem:[#allocation2 + $0x178] sm:$0x3] %v12727_v3 }
  0x31   :  { %554 = vst [vmem:[#allocation2 + $0x180] sm:$0xff] %v12727_v3  ;;  %v110_v54 = vadd.f32 %v11484_v48, %v109_v49  ;;  %v241_v56 = vadd.f32 %v240_v51, %v178_v46  ;;  %v192_v46 = vmul.f32 %v11495_v34, %v11495_v34  ;;  %v11499_v49 = vld [vmem:[%s16525_s0 + $0x201] sm:$0xff] }
  0x32   :  { %555 = vst [vmem:[#allocation2 + $0x188] sm:$0xff] %v12727_v3 }
  0x33   :  { %556 = vst [vmem:[#allocation2 + $0x190] sm:$0x3] %v12727_v3  ;;  %v111_v58 = vadd.f32 %v11485_v53, %v110_v54  ;;  %v242_v60 = vadd.f32 %v241_v56, %v179_v50  ;;  %12618 = vmatpush.bf16.msrb.mxu3 %v12856_v30  ;;  %v193_v50 = vmul.f32 %v11496_v37, %v11496_v37  ;;  %v11500_v53 = vld [vmem:[%s16525_s0 + $0x211] sm:$0xff] }
  0x34   :  { %557 = vst [vmem:[#allocation2 + $0x198] sm:$0xff] %v12727_v3  ;;  %v194_v54 = vmul.f32 %v11497_v42, %v11497_v42 }
  0x35   :  { %558 = vst [vmem:[#allocation2 + $0x1a0] sm:$0xff] %v12727_v3  ;;  %v112_v62 = vadd.f32 %v11486_v57, %v111_v58  ;;  %v243_v63 = vadd.f32 %v242_v60, %v180_v55  ;;  %v11501_v57 = vld [vmem:[%s16525_s0 + $0x219] sm:$0xff]  ;;  %v195_v58 = vmul.f32 %v11498_v45, %v11498_v45  ;;  %v11502_v60 = vld [vmem:[%s16525_s0 + $0x229] sm:$0xff] }
  0x36   :  { %559 = vst [vmem:[#allocation2 + $0x1a8] sm:$0x3] %v12727_v3 }
  0x37   :  { %560 = vst [vmem:[#allocation2 + $0x1b0] sm:$0xff] %v12727_v3  ;;  %v113_v7 = vadd.f32 %v11487_v61, %v112_v62  ;;  %v244_v8 = vadd.f32 %v243_v63, %v181_v59  ;;  %12619 = vmatpush.bf16.msrb.mxu3 %v12878_v41  ;;  %v196_v61 = vmul.f32 %v11499_v49, %v11499_v49 }
  0x38   :  { %561 = vst [vmem:[#allocation2 + $0x1b8] sm:$0xff] %v12727_v3 }
  0x39   :  { %562 = vst [vmem:[#allocation2 + $0x1c0] sm:$0x3] %v12727_v3  ;;  %v114_v12 = vadd.f32 %v11488_v4, %v113_v7  ;;  %v245_v15 = vadd.f32 %v244_v8, %v182_v5  ;;  %v197_v4 = vmul.f32 %v11500_v53, %v11500_v53  ;;  %v11504_v7 = vld [vmem:[%s16525_s0 + $0x241] sm:$0xff]  ;;  %v198_v8 = vmul.f32 %v11501_v57, %v11501_v57 }
  0x3a   :  { %563 = vst [vmem:[#allocation2 + $0x1c8] sm:$0xff] %v12727_v3 }
  0x3b   :  { %564 = vst [vmem:[#allocation2 + $0x1d0] sm:$0xff] %v12727_v3  ;;  %v115_v17 = vadd.f32 %v11489_v10, %v114_v12  ;;  %v246_v19 = vadd.f32 %v245_v15, %v183_v11  ;;  %12620 = vmatpush.bf16.msrb.mxu3 %v12900_v52  ;;  %v11505_v12 = vld [vmem:[%s16525_s0 + $0x249] sm:$0xff]  ;;  %v11506_v15 = vld [vmem:[%s16525_s0 + $0x259] sm:$0xff] }
  0x3c   :  { %565 = vst [vmem:[#allocation2 + $0x1d8] sm:$0x3] %v12727_v3 }
  0x3d   :  { %566 = vst [vmem:[#allocation2 + $0x1e0] sm:$0xff] %v12727_v3  ;;  %v116_v21 = vadd.f32 %v11490_v13, %v115_v17  ;;  %v247_v24 = vadd.f32 %v246_v19, %v184_v14  ;;  %v199_v13 = vmul.f32 %v11502_v60, %v11502_v60  ;;  %v201_v19 = vmul.f32 %v11504_v7, %v11504_v7 }
  0x3e   :  { %567 = vst [vmem:[#allocation2 + $0x1e8] sm:$0xff] %v12727_v3 }
  0x3f   :  { %568 = vst [vmem:[#allocation2 + $0x1f0] sm:$0x3] %v12727_v3  ;;  %v117_v25 = vadd.f32 %v11491_v18, %v116_v21  ;;  %v248_v28 = vadd.f32 %v247_v24, %v185_v2  ;;  %12621 = vmatpush.bf16.msrb.mxu3 %v12993_v1  ;;  %v11507_v2 = vld [vmem:[%s16525_s0 + $0x261] sm:$0xff]  ;;  %v202_v24 = vmul.f32 %v11505_v12, %v11505_v12 }
  0x40   :  { %569 = vst [vmem:[#allocation2 + $0x1f8] sm:$0xff] %v12727_v3 }
  0x41   :  { %570 = vst [vmem:[#allocation2 + $0x200] sm:$0xff] %v12727_v3  ;;  %v118_v6 = vadd.f32 %v11492_v22, %v117_v25  ;;  %v249_v32 = vadd.f32 %v248_v28, %v186_v23  ;;  %v13107_v23 = vld [vmem:[%s16525_s0 + $0x271] sm:$0xff]  ;;  %v203_v28 = vmul.f32 %v11506_v15, %v11506_v15 }
  0x42   :  { %571 = vst [vmem:[#allocation2 + $0x208] sm:$0x3] %v12727_v3 }
  0x43   :  { %572 = vst [vmem:[#allocation2 + $0x210] sm:$0xff] %v12727_v3  ;;  %v119_v33 = vadd.f32 %v11493_v26, %v118_v6  ;;  %v250_v36 = vadd.f32 %v249_v32, %v187_v27  ;;  %v13114_v27 = vld [vmem:[%s16525_s0 + $0x279] sm:$0xff]  ;;  %v204_v32 = vmul.f32 %v11507_v2, %v11507_v2 }
  0x44   :  { %573 = vst [vmem:[#allocation2 + $0x218] sm:$0xff] %v12727_v3 }
  0x45   :  { %574 = vst [vmem:[#allocation2 + $0x220] sm:$0x3] %v12727_v3  ;;  %v120_v9 = vadd.f32 %v11494_v29, %v119_v33  ;;  %v251_v39 = vadd.f32 %v250_v36, %v188_v31  ;;  %v13122_v31 = vld [vmem:[%s16525_s0 + $0x289] sm:$0xff]  ;;  %v205_v36 = vmul.f32 %v13107_v23, %v13107_v23 }
  0x46   :  { %575 = vst [vmem:[#allocation2 + $0x228] sm:$0xff] %v12727_v3 }
  0x47   :  { %576 = vst [vmem:[#allocation2 + $0x230] sm:$0xff] %v12727_v3  ;;  %v121_v40 = vadd.f32 %v11495_v34, %v120_v9  ;;  %v252_v44 = vadd.f32 %v251_v39, %v189_v35  ;;  %v13130_v35 = vld [vmem:[%s16525_s0 + $0x291] sm:$0xff]  ;;  %v206_v39 = vmul.f32 %v13114_v27, %v13114_v27 }
  0x48   :  { %577 = vst [vmem:[#allocation2 + $0x238] sm:$0x3] %v12727_v3 }
  0x49   :  { %578 = vst [vmem:[#allocation2 + $0x240] sm:$0xff] %v12727_v3  ;;  %v122_v20 = vadd.f32 %v11496_v37, %v121_v40  ;;  %v253_v47 = vadd.f32 %v252_v44, %v190_v38  ;;  %v13140_v38 = vld [vmem:[%s16525_s0 + $0x2a1] sm:$0xff]  ;;  %v207_v44 = vmul.f32 %v13122_v31, %v13122_v31 }
  0x4a   :  { %579 = vst [vmem:[#allocation2 + $0x248] sm:$0xff] %v12727_v3 }
  0x4b   :  { %580 = vst [vmem:[#allocation2 + $0x250] sm:$0x3] %v12727_v3  ;;  %v123_v48 = vadd.f32 %v11497_v42, %v122_v20  ;;  %v254_v51 = vadd.f32 %v253_v47, %v191_v43  ;;  %v13150_v43 = vld [vmem:[%s16525_s0 + $0x2a9] sm:$0xff]  ;;  %v208_v47 = vmul.f32 %v13130_v35, %v13130_v35 }
  0x4c   :  { %581 = vst [vmem:[#allocation2 + $0x258] sm:$0xff] %v12727_v3 }
  0x4d   :  { %582 = vst [vmem:[#allocation2 + $0x260] sm:$0xff] %v12727_v3  ;;  %v124_v30 = vadd.f32 %v11498_v45, %v123_v48  ;;  %v255_v55 = vadd.f32 %v254_v51, %v192_v46  ;;  %v13160_v46 = vld [vmem:[%s16525_s0 + $0x2b9] sm:$0xff]  ;;  %v209_v51 = vmul.f32 %v13140_v38, %v13140_v38 }
  0x4e   :  { %583 = vst [vmem:[#allocation2 + $0x268] sm:$0x3] %v12727_v3 }
  0x4f   :  { %584 = vst [vmem:[#allocation2 + $0x270] sm:$0xff] %v12727_v3  ;;  %v125_v56 = vadd.f32 %v11499_v49, %v124_v30  ;;  %v256_v59 = vadd.f32 %v255_v55, %v193_v50  ;;  %v13170_v50 = vld [vmem:[%s16525_s0 + $0x2c1] sm:$0xff]  ;;  %v210_v55 = vmul.f32 %v13150_v43, %v13150_v43 }
  0x50   :  { %585 = vst [vmem:[#allocation2 + $0x278] sm:$0xff] %v12727_v3 }
  0x51   :  { %586 = vst [vmem:[#allocation2 + $0x280] sm:$0x3] %v12727_v3  ;;  %v126_v41 = vadd.f32 %v11500_v53, %v125_v56  ;;  %v257_v62 = vadd.f32 %v256_v59, %v194_v54  ;;  %v13180_v54 = vld [vmem:[%s16525_s0 + $0x2d1] sm:$0xff]  ;;  %v211_v59 = vmul.f32 %v13160_v46, %v13160_v46 }
  0x52   :  { %587 = vst [vmem:[#allocation2 + $0x288] sm:$0xff] %v12727_v3 }
  0x53   :  { %588 = vst [vmem:[#allocation2 + $0x290] sm:$0xff] %v12727_v3  ;;  %v127_v63 = vadd.f32 %v11501_v57, %v126_v41  ;;  %v258_v5 = vadd.f32 %v257_v62, %v195_v58  ;;  %v13190_v58 = vld [vmem:[%s16525_s0 + $0x2d9] sm:$0xff]  ;;  %v212_v62 = vmul.f32 %v13170_v50, %v13170_v50 }
  0x54   :  { %589 = vst [vmem:[#allocation2 + $0x298] sm:$0x3] %v12727_v3 }
  0x55   :  { %590 = vst [vmem:[#allocation2 + $0x2a0] sm:$0xff] %v12727_v3  ;;  %v128_v52 = vadd.f32 %v11502_v60, %v127_v63  ;;  %v259_v10 = vadd.f32 %v258_v5, %v196_v61  ;;  %v13200_v61 = vld [vmem:[%s16525_s0 + $0x2e9] sm:$0xff]  ;;  %v213_v5 = vmul.f32 %v13180_v54, %v13180_v54 }
  0x56   :  { %591 = vst [vmem:[#allocation2 + $0x2a8] sm:$0xff] %v12727_v3 }
  0x57   :  { %592 = vst [vmem:[#allocation2 + $0x2b0] sm:$0x3] %v12727_v3  ;;  %v129_v11 = vadd.f32 %v11503_v0, %v128_v52  ;;  %v260_v14 = vadd.f32 %v259_v10, %v197_v4  ;;  %v13210_v4 = vld [vmem:[%s16525_s0 + $0x2f1] sm:$0xff]  ;;  %v214_v10 = vmul.f32 %v13190_v58, %v13190_v58 }
  0x58   :  { %593 = vst [vmem:[#allocation2 + $0x2b8] sm:$0xff] %v12727_v3 }
  0x59   :  { %594 = vst [vmem:[#allocation2 + $0x2c0] sm:$0xff] %v12727_v3  ;;  %v130_v1 = vadd.f32 %v11504_v7, %v129_v11  ;;  %v261_v17 = vadd.f32 %v260_v14, %v198_v8  ;;  %v13220_v8 = vld [vmem:[%s16525_s0 + $0x301] sm:$0xff]  ;;  %v215_v14 = vmul.f32 %v13200_v61, %v13200_v61 }
  0x5a   :  { %595 = vst [vmem:[#allocation2 + $0x2c8] sm:$0x3] %v12727_v3 }
  0x5b   :  { %596 = vst [vmem:[#allocation2 + $0x2d0] sm:$0xff] %v12727_v3  ;;  %v131_v18 = vadd.f32 %v11505_v12, %v130_v1  ;;  %v262_v21 = vadd.f32 %v261_v17, %v199_v13  ;;  %v13230_v13 = vld [vmem:[%s16525_s0 + $0x309] sm:$0xff]  ;;  %v216_v17 = vmul.f32 %v13210_v4, %v13210_v4 }
  0x5c   :  { %597 = vst [vmem:[#allocation2 + $0x2d8] sm:$0xff] %v12727_v3 }
  0x5d   :  { %598 = vst [vmem:[#allocation2 + $0x2e0] sm:$0x3] %v12727_v3  ;;  %v132_v22 = vadd.f32 %v11506_v15, %v131_v18  ;;  %v263_v25 = vadd.f32 %v262_v21, %v200_v16  ;;  %v13240_v16 = vld [vmem:[%s16525_s0 + $0x319] sm:$0xff]  ;;  %v217_v21 = vmul.f32 %v13220_v8, %v13220_v8 }
  0x5e   :  { %599 = vst [vmem:[#allocation2 + $0x2e8] sm:$0xff] %v12727_v3 }
  0x5f   :  { %600 = vst [vmem:[#allocation2 + $0x2f0] sm:$0xff] %v12727_v3  ;;  %v133_v26 = vadd.f32 %v11507_v2, %v132_v22  ;;  %v264_v6 = vadd.f32 %v263_v25, %v201_v19  ;;  %v13250_v19 = vld [vmem:[%s16525_s0 + $0x321] sm:$0xff]  ;;  %v11524_v25 = vld [vmem:[%s16525_s0 + $0x331] sm:$0xff] }
  0x60   :  { %601 = vst [vmem:[#allocation2 + $0x2f8] sm:$0x3] %v12727_v3 }
  0x61   :  { %602 = vst [vmem:[#allocation2 + $0x300] sm:$0xff] %v12727_v3  ;;  %v134_v29 = vadd.f32 %v13107_v23, %v133_v26  ;;  %v265_v33 = vadd.f32 %v264_v6, %v202_v24  ;;  %v218_v26 = vmul.f32 %v13230_v13, %v13230_v13 }
  0x62   :  { %603 = vst [vmem:[#allocation2 + $0x308] sm:$0xff] %v12727_v3 }
  0x63   :  { %604 = vst [vmem:[#allocation2 + $0x310] sm:$0x3] %v12727_v3  ;;  %v135_v34 = vadd.f32 %v13114_v27, %v134_v29  ;;  %v266_v9 = vadd.f32 %v265_v33, %v203_v28  ;;  %v11525_v29 = vld [vmem:[%s16525_s0 + $0x339] sm:$0xff] }
  0x64   :  { %605 = vst [vmem:[#allocation2 + $0x318] sm:$0xff] %v12727_v3 }
  0x65   :  { %606 = vst [vmem:[#allocation2 + $0x320] sm:$0xff] %v12727_v3  ;;  %v136_v37 = vadd.f32 %v13122_v31, %v135_v34  ;;  %v267_v40 = vadd.f32 %v266_v9, %v204_v32  ;;  %v219_v32 = vmul.f32 %v13240_v16, %v13240_v16 }
  0x66   :  { %607 = vst [vmem:[#allocation2 + $0x328] sm:$0x3] %v12727_v3 }
  0x67   :  { %608 = vst [vmem:[#allocation2 + $0x330] sm:$0xff] %v12727_v3  ;;  %v137_v42 = vadd.f32 %v13130_v35, %v136_v37  ;;  %v268_v20 = vadd.f32 %v267_v40, %v205_v36  ;;  %v220_v36 = vmul.f32 %v13250_v19, %v13250_v19 }
  0x68   :  { %609 = vst [vmem:[#allocation2 + $0x338] sm:$0xff] %v12727_v3 }
  0x69   :  { %610 = vst [vmem:[#allocation2 + $0x340] sm:$0x3] %v12727_v3  ;;  %v138_v45 = vadd.f32 %v13140_v38, %v137_v42  ;;  %v269_v48 = vadd.f32 %v268_v20, %v206_v39  ;;  %v221_v39 = vmul.f32 %v11524_v25, %v11524_v25 }
  0x6a   :  { %611 = vst [vmem:[#allocation2 + $0x348] sm:$0xff] %v12727_v3 }
  0x6b   :  { %612 = vst [vmem:[#allocation2 + $0x350] sm:$0xff] %v12727_v3  ;;  %v139_v49 = vadd.f32 %v13150_v43, %v138_v45  ;;  %v270_v30 = vadd.f32 %v269_v48, %v207_v44  ;;  %v222_v44 = vmul.f32 %v11525_v29, %v11525_v29 }
  0x6c   :  { %613 = vst [vmem:[#allocation2 + $0x358] sm:$0x3] %v12727_v3 }
  0x6d   :  { %5922 = vst [vmem:[#allocation3] sm:$0xff] %v12727_v3  ;;  %v140_v53 = vadd.f32 %v13160_v46, %v139_v49  ;;  %v271_v56 = vadd.f32 %v270_v30, %v208_v47 }
  0x6e   :  { %5923 = vst [vmem:[#allocation3 + $0x8] sm:$0xff] %v12727_v3 }
  0x6f   :  { %5924 = vst [vmem:[#allocation3 + $0x10] sm:$0x3] %v12727_v3  ;;  %v141_v57 = vadd.f32 %v13170_v50, %v140_v53  ;;  %v272_v41 = vadd.f32 %v271_v56, %v209_v51 }
  0x70   :  { %5925 = vst [vmem:[#allocation3 + $0x18] sm:$0xff] %v12727_v3 }
  0x71   :  { %5926 = vst [vmem:[#allocation3 + $0x20] sm:$0xff] %v12727_v3  ;;  %v142_v60 = vadd.f32 %v13180_v54, %v141_v57  ;;  %v273_v63 = vadd.f32 %v272_v41, %v210_v55 }
  0x72   :  { %5927 = vst [vmem:[#allocation3 + $0x28] sm:$0x3] %v12727_v3 }
  0x73   :  { %5928 = vst [vmem:[#allocation3 + $0x30] sm:$0xff] %v12727_v3  ;;  %v143_v0 = vadd.f32 %v13190_v58, %v142_v60  ;;  %v274_v52 = vadd.f32 %v273_v63, %v211_v59 }
  0x74   :  { %5929 = vst [vmem:[#allocation3 + $0x38] sm:$0xff] %v12727_v3 }
  0x75   :  { %5930 = vst [vmem:[#allocation3 + $0x40] sm:$0x3] %v12727_v3  ;;  %v144_v7 = vadd.f32 %v13200_v61, %v143_v0  ;;  %v275_v11 = vadd.f32 %v274_v52, %v212_v62 }
  0x76   :  { %5931 = vst [vmem:[#allocation3 + $0x48] sm:$0xff] %v12727_v3 }
  0x77   :  { %5932 = vst [vmem:[#allocation3 + $0x50] sm:$0xff] %v12727_v3  ;;  %v145_v12 = vadd.f32 %v13210_v4, %v144_v7  ;;  %v276_v1 = vadd.f32 %v275_v11, %v213_v5 }
  0x78   :  { %5933 = vst [vmem:[#allocation3 + $0x58] sm:$0x3] %v12727_v3 }
  0x79   :  { %5934 = vst [vmem:[#allocation3 + $0x60] sm:$0xff] %v12727_v3  ;;  %v146_v15 = vadd.f32 %v13220_v8, %v145_v12  ;;  %v277_v18 = vadd.f32 %v276_v1, %v214_v10  ;;  %v13315_v12 = vld [vmem:[#allocation2] sm:$0xff] }
  0x7a   :  { %5935 = vst [vmem:[#allocation3 + $0x68] sm:$0xff] %v12727_v3 }
  0x7b   :  { %5936 = vst [vmem:[#allocation3 + $0x70] sm:$0x3] %v12727_v3  ;;  %v147_v2 = vadd.f32 %v13230_v13, %v146_v15  ;;  %v278_v22 = vadd.f32 %v277_v18, %v215_v14 }
  0x7c   :  { %5937 = vst [vmem:[#allocation3 + $0x78] sm:$0xff] %v12727_v3 }
  0x7d   :  { %5938 = vst [vmem:[#allocation3 + $0x80] sm:$0xff] %v12727_v3  ;;  %v148_v24 = vadd.f32 %v13240_v16, %v147_v2  ;;  %v279_v28 = vadd.f32 %v278_v22, %v216_v17  ;;  %v296_v17 = vld [vmem:[%s16526_s1] sm:$0x1]  ;;  %v1265_v22 = vld [vmem:[#allocation2 + $0x9] sm:$0xff] }
  0x7e   :  { %5939 = vst [vmem:[#allocation3 + $0x88] sm:$0x3] %v12727_v3 }
  0x7f   :  { %5940 = vst [vmem:[#allocation3 + $0x90] sm:$0xff] %v12727_v3  ;;  %v149_v6 = vadd.f32 %v13250_v19, %v148_v24  ;;  %v280_v33 = vadd.f32 %v279_v28, %v217_v21  ;;  %v1264_v21 = vld [vmem:[#allocation2 + $0x1] sm:$0xff]  ;;  %v12493_v28 = vld [vmem:[%s16527_s2 + $0x138] sm:$0xff] }
  0x80   :  { %5941 = vst [vmem:[#allocation3 + $0x98] sm:$0xff] %v12727_v3  ;;  %3055 = vmatpush.bf16.msrb.mxu0 %v12493_v28 }
  0x81   :  { %5942 = vst [vmem:[#allocation3 + $0xa0] sm:$0x3] %v12727_v3  ;;  %v150_v34 = vadd.f32 %v11524_v25, %v149_v6  ;;  %v281_v9 = vadd.f32 %v280_v33, %v218_v26  ;;  %v1392_v25 = vpack.c.bf16 %v1265_v22, %v1264_v21  ;;  %v309_v26 = vld [vmem:[%s16526_s1 + $0x1] sm:$0x1] }
  0x82   :  { %5943 = vst [vmem:[#allocation3 + $0xa8] sm:$0xff] %v12727_v3 }
  0x83   :  { %5944 = vst [vmem:[#allocation3 + $0xb0] sm:$0xff] %v12727_v3  ;;  %v151_v37 = vadd.f32 %v11525_v29, %v150_v34  ;;  %v282_v40 = vadd.f32 %v281_v9, %v219_v32  ;;  %1497 = vmatmul.bf16.vlgmr.msra.gmra.mxu1 %v1392_v25  ;;  %v12640_v32 = vld [vmem:[%s16525_s0 + $0x19] sm:$0xff]  ;;  %v12641_v34 = vld [vmem:[%s16525_s0 + $0x21] sm:$0xff] }
  0x84   :  { %5945 = vst [vmem:[#allocation3 + $0xb8] sm:$0x3] %v12727_v3 }
  0x85   :  { %5946 = vst [vmem:[#allocation3 + $0xc0] sm:$0xff] %v12727_v3  ;;  %v152_v42 = vrot.slane %v151_v37, 4  ;;  %v283_v20 = vadd.f32 %v282_v40, %v220_v36 }
  0x86   :  { %5947 = vst [vmem:[#allocation3 + $0xc8] sm:$0xff] %v12727_v3 }
  0x87   :  { %5948 = vst [vmem:[#allocation3 + $0xd0] sm:$0x3] %v12727_v3  ;;  %v153_v45 = vadd.f32 %v152_v42, %v151_v37  ;;  %v284_v47 = vadd.f32 %v283_v20, %v221_v39 }
  0x88   :  { %5949 = vst [vmem:[#allocation3 + $0xd8] sm:$0xff] %v12727_v3 }
  0x89   :  { %5950 = vst [vmem:[#allocation3 + $0xe0] sm:$0xff] %v12727_v3  ;;  %v154_v48 = vrot.slane %v153_v45, 2  ;;  %v285_v49 = vadd.f32 %v284_v47, %v222_v44 }
  0x8a   :  { %5951 = vst [vmem:[#allocation3 + $0xe8] sm:$0x3] %v12727_v3 }
  0x8b   :  { %5952 = vst [vmem:[#allocation3 + $0xf0] sm:$0xff] %v12727_v3  ;;  %v155_v51 = vadd.f32 %v154_v48, %v153_v45  ;;  %v286_v30 = vrot.slane %v285_v49, 4 }
  0x8c   :  { %5953 = vst [vmem:[#allocation3 + $0xf8] sm:$0xff] %v12727_v3 }
  0x8d   :  { %5954 = vst [vmem:[#allocation3 + $0x100] sm:$0x3] %v12727_v3  ;;  %v156_v53 = vrot.slane %v155_v51, 1  ;;  %v287_v55 = vadd.f32 %v286_v30, %v285_v49  ;;  %v12642_v49 = vld [vmem:[%s16525_s0 + $0x31] sm:$0xff] }
  0x8e   :  { %5955 = vst [vmem:[#allocation3 + $0x108] sm:$0xff] %v12727_v3 }
  0x8f   :  { %5956 = vst [vmem:[#allocation3 + $0x110] sm:$0xff] %v12727_v3  ;;  %v157_v56 = vadd.f32 %v156_v53, %v155_v51  ;;  %v288_v57 = vrot.slane %v287_v55, 2 }
  0x90   :  { %5957 = vst [vmem:[#allocation3 + $0x118] sm:$0x3] %v12727_v3 }
  0x91   :  { %5958 = vst [vmem:[#allocation3 + $0x120] sm:$0xff] %v12727_v3  ;;  %v13290_v59 = vmul.f32 0.001953125, %v157_v56  ;;  %v289_v41 = vadd.f32 %v288_v57, %v287_v55 }
  0x92   :  { %5959 = vst [vmem:[#allocation3 + $0x128] sm:$0xff] %v12727_v3 }
  0x93   :  { %5960 = vst [vmem:[#allocation3 + $0x130] sm:$0x3] %v12727_v3  ;;  %v290_v60 = vrot.slane %v289_v41, 1  ;;  %v293_v63 = vmul.f32 %v13290_v59, %v13290_v59 }
  0x94   :  { %5961 = vst [vmem:[#allocation3 + $0x138] sm:$0xff] %v12727_v3 }
  0x95   :  { %5962 = vst [vmem:[#allocation3 + $0x140] sm:$0xff] %v12727_v3  ;;  %v291_v62 = vadd.f32 %v290_v60, %v289_v41 }
  0x96   :  { %5963 = vst [vmem:[#allocation3 + $0x148] sm:$0x3] %v12727_v3 }
  0x97   :  { %5964 = vst [vmem:[#allocation3 + $0x150] sm:$0xff] %v12727_v3  ;;  %v292_v0 = vmul.f32 0.001953125, %v291_v62 }
  0x98   :  { %5965 = vst [vmem:[#allocation3 + $0x158] sm:$0xff] %v12727_v3 }
  0x99   :  { %5966 = vst [vmem:[#allocation3 + $0x160] sm:$0x3] %v12727_v3  ;;  %v294_v5 = vsub.f32 %v292_v0, %v293_v63 }
  0x9a   :  { %5967 = vst [vmem:[#allocation3 + $0x168] sm:$0xff] %v12727_v3 }
  0x9b   :  { %5968 = vst [vmem:[#allocation3 + $0x170] sm:$0xff] %v12727_v3  ;;  %v295_v52 = vmax.f32 %v294_v5, 0.0 }
  0x9c   :  { %5969 = vst [vmem:[#allocation3 + $0x178] sm:$0x3] %v12727_v3 }
  0x9d   :  { %5970 = vst [vmem:[#allocation3 + $0x180] sm:$0xff] %v12727_v3  ;;  %v297_v7 = vadd.f32 0.0001, %v295_v52 }
  0x9e   :  { %5971 = vst [vmem:[#allocation3 + $0x188] sm:$0xff] %v12727_v3 }
  0x9f   :  { %5972 = vst [vmem:[#allocation3 + $0x190] sm:$0x3] %v12727_v3  ;;  %12635 = vrsqrt.f32 %v297_v7  ;;  %vm304_vm0 = vweird.f32 %v297_v7 }
  0xa0   :  { %5973 = vst [vmem:[#allocation3 + $0x198] sm:$0xff] %v12727_v3 }
  0xa1   :  { %5974 = vst [vmem:[#allocation3 + $0x1a0] sm:$0xff] %v12727_v3 }
  0xa2   :  { %5975 = vst [vmem:[#allocation3 + $0x1a8] sm:$0x3] %v12727_v3 }
  0xa3   :  { %5976 = vst [vmem:[#allocation3 + $0x1b0] sm:$0xff] %v12727_v3 }
  0xa4   :  { %5977 = vst [vmem:[#allocation3 + $0x1b8] sm:$0xff] %v12727_v3 }
  0xa5   :  { %5978 = vst [vmem:[#allocation3 + $0x1c0] sm:$0x3] %v12727_v3  ;;  %v12636_v10 = vpop.eup %12635 }
  0xa6   :  { %5979 = vst [vmem:[#allocation3 + $0x1c8] sm:$0xff] %v12727_v3  ;;  %v299_v11 = vmul.f32 %v12636_v10, %v297_v7  ;;  %vm305_vm1 = vweird.f32 %v12636_v10 }
  0xa7   :  { %5980 = vst [vmem:[#allocation3 + $0x1d0] sm:$0xff] %v12727_v3  ;;  %vm306_vm2 = vmor %vm304_vm0, %vm305_vm1 }
  0xa8   :  { %5981 = vst [vmem:[#allocation3 + $0x1d8] sm:$0x3] %v12727_v3  ;;  %v300_v14 = vmul.f32 %v12636_v10, %v299_v11  ;;  %v12644_v11 = vld [vmem:[%s16525_s0 + $0x49] sm:$0xff] }
  0xa9   :  { %5982 = vst [vmem:[#allocation3 + $0x1e0] sm:$0xff] %v13315_v12 }
  0xaa   :  { %5983 = vst [vmem:[#allocation3 + $0x1e8] sm:$0xff] %v13315_v12  ;;  %v301_v1 = vmul.f32 0.5, %v300_v14  ;;  %v12645_v14 = vld [vmem:[%s16525_s0 + $0x51] sm:$0xff] }
  0xab   :  { %5984 = vst [vmem:[#allocation3 + $0x1f0] sm:$0x3] %v13315_v12 }
  0xac   :  { %5985 = vst [vmem:[#allocation3 + $0x1f8] sm:$0xff] %v13315_v12  ;;  %v302_v3 = vsub.f32 1.5, %v301_v1 }
  0xad   :  { %5986 = vst [vmem:[#allocation3 + $0x200] sm:$0xff] %v13315_v12 }
  0xae   :  { %5987 = vst [vmem:[#allocation3 + $0x208] sm:$0x3] %v13315_v12  ;;  %v303_v15 = vmul.f32 %v12636_v10, %v302_v3 }
  0xaf   :  { %5988 = vst [vmem:[#allocation3 + $0x210] sm:$0xff] %v13315_v12 }
  0xb0   :  { %5989 = vst [vmem:[#allocation3 + $0x218] sm:$0xff] %v13315_v12  ;;  %v307_v18 = vsel %vm306_vm2, %v12636_v10, %v303_v15 }
  0xb1   :  { %5990 = vst [vmem:[#allocation3 + $0x220] sm:$0x3] %v13315_v12  ;;  %v308_v2 = vmul.f32 %v307_v18, %v296_v17 }
  0xb2   :  { %5991 = vst [vmem:[#allocation3 + $0x228] sm:$0xff] %v13315_v12 }
  0xb3   :  { %5992 = vst [vmem:[#allocation3 + $0x230] sm:$0xff] %v13315_v12  ;;  %v310_v24 = vmul.f32 %v308_v2, %v13290_v59  ;;  %v13357_v29 = vperm.slane %v308_v2, 0 }
  0xb4   :  { %5993 = vst [vmem:[#allocation3 + $0x238] sm:$0x3] %v13315_v12 }
  0xb5   :  { %5994 = vst [vmem:[#allocation3 + $0x240] sm:$0xff] %v13315_v12  ;;  %v311_v6 = vsub.f32 %v309_v26, %v310_v24  ;;  %v313_v33 = vmul.f32 %v12640_v32, %v13357_v29  ;;  %v314_v36 = vmul.f32 %v12641_v34, %v13357_v29  ;;  %v359_v40 = vmul.f32 %v13107_v23, %v13357_v29 }
  0xb6   :  { %5995 = vst [vmem:[#allocation3 + $0x248] sm:$0xff] %v13315_v12  ;;  %v360_v42 = vmul.f32 %v13114_v27, %v13357_v29  ;;  %v361_v47 = vmul.f32 %v13122_v31, %v13357_v29  ;;  %v362_v27 = vmul.f32 %v13130_v35, %v13357_v29  ;;  %v315_v51 = vmul.f32 %v12642_v49, %v13357_v29  ;;  %v12643_v31 = vld [vmem:[%s16525_s0 + $0x39] sm:$0xff] }
  0xb7   :  { %5996 = vst [vmem:[#allocation3 + $0x250] sm:$0x3] %v13315_v12  ;;  %v13371_v9 = vperm.slane %v311_v6, 0  ;;  %v316_v30 = vmul.f32 %v12643_v31, %v13357_v29  ;;  %v363_v55 = vmul.f32 %v13140_v38, %v13357_v29  ;;  %v364_v59 = vmul.f32 %v13150_v43, %v13357_v29  ;;  %v12649_v31 = vld [vmem:[%s16525_s0 + $0x61] sm:$0xff] }
  0xb8   :  { %5997 = vst [vmem:[#allocation3 + $0x258] sm:$0xff] %v13315_v12  ;;  %v318_v1 = vmul.f32 %v12645_v14, %v13357_v29  ;;  %v366_v34 = vmul.f32 %v13170_v50, %v13357_v29  ;;  %v12647_v50 = vld [vmem:[%s16527_s2 + $0xb0] sm:$0xff] }
  0xb9   :  { %5998 = vst [vmem:[#allocation3 + $0x260] sm:$0xff] %v13315_v12  ;;  %v378_v37 = vadd.f32 %v13371_v9, %v313_v33  ;;  %v379_v39 = vadd.f32 %v13371_v9, %v314_v36  ;;  %v13387_v45 = vadd.f32 %v13371_v9, %v359_v40  ;;  %v13393_v23 = vadd.f32 %v13371_v9, %v360_v42  ;;  %v12646_v36 = vld [vmem:[%s16527_s2 + $0xb8] sm:$0xff] }
  0xba   :  { %5999 = vst [vmem:[#allocation3 + $0x268] sm:$0x3] %v13315_v12  ;;  %v13410_v53 = vadd.f32 %v13371_v9, %v361_v47  ;;  %v13417_v57 = vadd.f32 %v13371_v9, %v362_v27  ;;  %v380_v41 = vadd.f32 %v13371_v9, %v315_v51  ;;  %v381_v60 = vadd.f32 %v13371_v9, %v316_v30 }
  0xbb   :  { %6000 = vst [vmem:[#allocation3 + $0x270] sm:$0xff] %v13315_v12  ;;  %v442_v44 = vmax.f32 %v378_v37, 0.0  ;;  %v443_v20 = vmax.f32 %v379_v39, 0.0  ;;  %v488_v35 = vmax.f32 %v13387_v45, 0.0  ;;  %v489_v56 = vmax.f32 %v13393_v23, 0.0 }
  0xbc   :  { %6001 = vst [vmem:[#allocation3 + $0x278] sm:$0xff] %v13315_v12  ;;  %v490_v38 = vmax.f32 %v13410_v53, 0.0  ;;  %v13429_v62 = vadd.f32 %v13371_v9, %v363_v55  ;;  %v491_v43 = vmax.f32 %v13417_v57, 0.0  ;;  %v13435_v63 = vadd.f32 %v13371_v9, %v364_v59  ;;  %v12650_v55 = vld [vmem:[%s16525_s0 + $0x69] sm:$0xff] }
  0xbd   :  { %6002 = vst [vmem:[#allocation3 + $0x280] sm:$0x3] %v13315_v12  ;;  %v1393_v48 = vpack.c.bf16 %v443_v20, %v442_v44  ;;  %v444_v0 = vmax.f32 %v380_v41, 0.0  ;;  %v445_v5 = vmax.f32 %v381_v60, 0.0  ;;  %v383_v21 = vadd.f32 %v13371_v9, %v318_v1  ;;  %v12651_v60 = vld [vmem:[%s16527_s2 + $0xa0] sm:$0xff] }
  0xbe   :  { %6003 = vst [vmem:[#allocation3 + $0x288] sm:$0xff] %v13315_v12  ;;  %v492_v52 = vmax.f32 %v13429_v62, 0.0  ;;  %v493_v7 = vmax.f32 %v13435_v63, 0.0  ;;  %v365_v33 = vmul.f32 %v13160_v46, %v13357_v29  ;;  %v13468_v39 = vadd.f32 %v13371_v9, %v366_v34  ;;  %v12655_v34 = vld [vmem:[%s16525_s0 + $0x79] sm:$0xff] }
  0xbf   :  { %6004 = vst [vmem:[#allocation3 + $0x290] sm:$0xff] %v13315_v12  ;;  %1502 = vmatmul.bf16.gmra.mxu1 %v1393_v48  ;;  %v1394_v18 = vpack.c.bf16 %v445_v5, %v444_v0  ;;  %v447_v32 = vmax.f32 %v383_v21, 0.0  ;;  %v319_v30 = vmul.f32 %v12649_v31, %v13357_v29  ;;  %v320_v59 = vmul.f32 %v12650_v55, %v13357_v29  ;;  %v12653_v21 = vld [vmem:[%s16527_s2 + $0x90] sm:$0xff] }
  0xc0   :  { %6005 = vst [vmem:[#allocation3 + $0x298] sm:$0x3] %v13315_v12  ;;  %v13465_v37 = vadd.f32 %v13371_v9, %v365_v33  ;;  %v495_v40 = vmax.f32 %v13468_v39, 0.0  ;;  %v370_v55 = vmul.f32 %v13210_v4, %v13357_v29 }
  0xc1   :  { %6006 = vst [vmem:[#allocation3 + $0x2a0] sm:$0xff] %v13315_v12 }
  0xc2   :  { %6007 = vst [vmem:[#allocation3 + $0x2a8] sm:$0xff] %v13315_v12  ;;  %v494_v46 = vmax.f32 %v13465_v37, 0.0 }
  0xc3   :  { %6008 = vst [vmem:[#allocation3 + $0x2b0] sm:$0x3] %v13315_v12 }
  0xc4   :  { %6009 = vst [vmem:[#allocation3 + $0x2b8] sm:$0xff] %v13315_v12 }
  0xc5   :  { %6010 = vst [vmem:[#allocation3 + $0x2c0] sm:$0xff] %v13315_v12 }
  0xc6   :  { %6011 = vst [vmem:[#allocation3 + $0x2c8] sm:$0x3] %v13315_v12 }
  0xc7   :  { %16600 = vst [vmem:[#allocation8_spill] sm:$0xff] %v13357_v29 }
  0xc8   :  { %6012 = vst [vmem:[#allocation3 + $0x2d0] sm:$0xff] %v13315_v12 }
  0xc9   :  { %6013 = vst [vmem:[#allocation3 + $0x2d8] sm:$0xff] %v13315_v12 }
  0xca   :  { %6014 = vst [vmem:[#allocation3 + $0x2e0] sm:$0x3] %v13315_v12 }
  0xcb   :  { %6015 = vst [vmem:[#allocation3 + $0x2e8] sm:$0xff] %v13315_v12 }
  0xcc   :  { %16601 = vst [vmem:[#allocation9_spill] sm:$0xff] %v13371_v9 }
  0xcd   :  { %6016 = vst [vmem:[#allocation3 + $0x2f0] sm:$0xff] %v13315_v12 }
  0xce   :  { %6017 = vst [vmem:[#allocation3 + $0x2f8] sm:$0x3] %v13315_v12 }
  0xcf   :  { %6018 = vst [vmem:[#allocation3 + $0x300] sm:$0xff] %v13315_v12  ;;  %1507 = vmatmul.bf16.gmra.mxu1 %v1394_v18 }
  0xd0   :  { %6019 = vst [vmem:[#allocation3 + $0x308] sm:$0xff] %v13315_v12 }
  0xd1   :  { %6020 = vst [vmem:[#allocation3 + $0x310] sm:$0x3] %v13315_v12 }
  0xd2   :  { %6021 = vst [vmem:[#allocation3 + $0x318] sm:$0xff] %v13315_v12 }
  0xd3   :  { %6022 = vst [vmem:[#allocation3 + $0x320] sm:$0xff] %v13315_v12 }
  0xd4   :  { %6023 = vst [vmem:[#allocation3 + $0x328] sm:$0x3] %v13315_v12 }
  0xd5   :  { %6024 = vst [vmem:[#allocation3 + $0x330] sm:$0xff] %v13315_v12 }
  0xd6   :  { %6025 = vst [vmem:[#allocation3 + $0x338] sm:$0xff] %v13315_v12 }
  0xd7   :  { %6026 = vst [vmem:[#allocation3 + $0x340] sm:$0x3] %v13315_v12 }
  0xd8   :  { %6027 = vst [vmem:[#allocation3 + $0x348] sm:$0xff] %v13315_v12 }
  0xd9   :  { %6028 = vst [vmem:[#allocation3 + $0x350] sm:$0xff] %v13315_v12 }
  0xda   :  { %6029 = vst [vmem:[#allocation3 + $0x358] sm:$0x3] %v13315_v12  ;;  %v317_v12 = vmul.f32 %v12644_v11, %v13357_v29  ;;  %v385_v11 = vadd.f32 %v13371_v9, %v320_v59 }
  0xdb   :  { %661 = vst [vmem:[#allocation2 + $0x271] sm:$0xff] %v488_v35 }
  0xdc   :  { %662 = vst [vmem:[#allocation2 + $0x279] sm:$0xff] %v489_v56  ;;  %v382_v2 = vadd.f32 %v13371_v9, %v317_v12  ;;  %v12492_v12 = vld [vmem:[%s16527_s2 + $0x130] sm:$0xff]  ;;  %v449_v1 = vmax.f32 %v385_v11, 0.0 }
  0xdd   :  { %615 = vst [vmem:[#allocation2 + $0x19] sm:$0xff] %v442_v44  ;;  %3056 = vmatpush.bf16.msrb.mxu0 %v12492_v12 }
  0xde   :  { %616 = vst [vmem:[#allocation2 + $0x21] sm:$0xff] %v443_v20  ;;  %v446_v6 = vmax.f32 %v382_v2, 0.0  ;;  %v12648_v20 = vld [vmem:[%s16527_s2 + $0xa8] sm:$0xff] }
  0xdf   :  { %663 = vst [vmem:[#allocation2 + $0x289] sm:$0xff] %v490_v38 }
  0xe0   :  { %664 = vst [vmem:[#allocation2 + $0x291] sm:$0xff] %v491_v43 }
  0xe1   :  { %617 = vst [vmem:[#allocation2 + $0x31] sm:$0xff] %v444_v0 }
  0xe2   :  { %v791_v10 = vld [vmem:[#allocation2 + $0x270] sm:$0xff]  ;;  %618 = vst [vmem:[#allocation2 + $0x39] sm:$0xff] %v445_v5  ;;  %v1395_v5 = vpack.c.bf16 %v447_v32, %v446_v6 }
  0xe3   :  { %v792_v3 = vld [vmem:[#allocation2 + $0x278] sm:$0xff]  ;;  %665 = vst [vmem:[#allocation2 + $0x2a1] sm:$0xff] %v492_v52 }
  0xe4   :  { %v895_v15 = vpack.c.bf16 %v792_v3, %v791_v10  ;;  %v745_v17 = vld [vmem:[#allocation2 + $0x18] sm:$0xff]  ;;  %666 = vst [vmem:[#allocation2 + $0x2a9] sm:$0xff] %v493_v7  ;;  %v384_v10 = vadd.f32 %v13371_v9, %v319_v30  ;;  %1512 = vmatmul.bf16.gmra.mxu1 %v1395_v5  ;;  %v367_v3 = vmul.f32 %v13180_v54, %v13357_v29 }
  0xe5   :  { %v1788_v22 = vld [vmem:[#allocation2 + $0x1a] sm:$0xff]  ;;  %v1789_v24 = vld [vmem:[#allocation2 + $0x22] sm:$0xff]  ;;  %619 = vst [vmem:[#allocation2 + $0x49] sm:$0xff] %v446_v6  ;;  %v369_v30 = vmul.f32 %v13200_v61, %v13357_v29 }
  0xe6   :  { %v746_v25 = vld [vmem:[#allocation2 + $0x20] sm:$0xff]  ;;  %1095 = vmatmul.bf16.vlgmr.msra.gmra.mxu3 %v895_v15  ;;  %v1915_v26 = vpack.c.bf16 %v1789_v24, %v1788_v22  ;;  %620 = vst [vmem:[#allocation2 + $0x51] sm:$0xff] %v447_v32  ;;  %v793_v42 = vld [vmem:[#allocation2 + $0x288] sm:$0xff]  ;;  %v448_v14 = vmax.f32 %v384_v10, 0.0  ;;  %v368_v15 = vmul.f32 %v13190_v58, %v13357_v29  ;;  %v13506_v18 = vadd.f32 %v13371_v9, %v367_v3 }
  0xe7   :  { %v872_v28 = vpack.c.bf16 %v746_v25, %v745_v17  ;;  %12622 = vmatpush.bf16.msra.mxu3 %v12646_v36  ;;  %667 = vst [vmem:[#allocation2 + $0x2b9] sm:$0xff] %v494_v46  ;;  %v794_v44 = vld [vmem:[#allocation2 + $0x290] sm:$0xff]  ;;  %v12652_v17 = vld [vmem:[%s16527_s2 + $0x98] sm:$0xff]  ;;  %v12654_v25 = vld [vmem:[%s16527_s2 + $0x88] sm:$0xff]  ;;  %v321_v36 = vmul.f32 %v12655_v34, %v13357_v29  ;;  %v13541_v59 = vadd.f32 %v13371_v9, %v369_v30 }
  0xe8   :  { %2024 = vmatmul.bf16.gmra.mxu2 %v1915_v26  ;;  %668 = vst [vmem:[#allocation2 + $0x2c1] sm:$0xff] %v495_v40  ;;  %v747_v48 = vld [vmem:[#allocation2 + $0x30] sm:$0xff]  ;;  %v896_v51 = vpack.c.bf16 %v794_v44, %v793_v42  ;;  %v13509_v2 = vadd.f32 %v13371_v9, %v368_v15  ;;  %v496_v54 = vmax.f32 %v13506_v18, 0.0  ;;  %v12659_v15 = vld [vmem:[%s16525_s0 + $0x99] sm:$0xff] }
  0xe9   :  { %980 = vmatmul.bf16.gmra.mxu0 %v872_v28  ;;  %v1790_v47 = vld [vmem:[#allocation2 + $0x32] sm:$0xff]  ;;  %v1791_v27 = vld [vmem:[#allocation2 + $0x3a] sm:$0xff]  ;;  %621 = vst [vmem:[#allocation2 + $0x61] sm:$0xff] %v448_v14 }
  0xea   :  { %v748_v49 = vld [vmem:[#allocation2 + $0x38] sm:$0xff]  ;;  %v1916_v41 = vpack.c.bf16 %v1791_v27, %v1790_v47  ;;  %622 = vst [vmem:[#allocation2 + $0x69] sm:$0xff] %v449_v1  ;;  %v497_v58 = vmax.f32 %v13509_v2, 0.0  ;;  %v795_v22 = vld [vmem:[#allocation2 + $0x2a0] sm:$0xff]  ;;  %v1396_v27 = vpack.c.bf16 %v449_v1, %v448_v14 }
  0xeb   :  { %12623 = vmatpush.bf16.msra.mxu3 %v12647_v50  ;;  %v873_v0 = vpack.c.bf16 %v748_v49, %v747_v48  ;;  %669 = vst [vmem:[#allocation2 + $0x2d1] sm:$0xff] %v496_v54  ;;  %v796_v24 = vld [vmem:[#allocation2 + $0x2a8] sm:$0xff]  ;;  %v386_v48 = vadd.f32 %v13371_v9, %v321_v36  ;;  %v12658_v1 = vld [vmem:[%s16525_s0 + $0x91] sm:$0xff] }
  0xec   :  { %670 = vst [vmem:[#allocation2 + $0x2d9] sm:$0xff] %v497_v58  ;;  %v749_v6 = vld [vmem:[#allocation2 + $0x48] sm:$0xff]  ;;  %v897_v33 = vpack.c.bf16 %v796_v24, %v795_v22  ;;  %v323_v3 = vmul.f32 %v12658_v1, %v13357_v29  ;;  %v373_v1 = vmul.f32 %v13240_v16, %v13357_v29 }
  0xed   :  { %v1792_v26 = vld [vmem:[#allocation2 + $0x4a] sm:$0xff]  ;;  %v1793_v28 = vld [vmem:[#allocation2 + $0x52] sm:$0xff]  ;;  %v12656_v50 = vld [vmem:[%s16525_s0 + $0x81] sm:$0xff] }
  0xee   :  { %v750_v32 = vld [vmem:[#allocation2 + $0x50] sm:$0xff]  ;;  %v322_v42 = vmul.f32 %v12656_v50, %v13357_v29  ;;  %v1917_v44 = vpack.c.bf16 %v1793_v28, %v1792_v26  ;;  %v797_v61 = vld [vmem:[#allocation2 + $0x2b8] sm:$0xff] }
  0xef   :  { %12624 = vmatpush.bf16.msra.mxu3 %v12648_v20  ;;  %v12657_v20 = vld [vmem:[%s16527_s2 + $0x80] sm:$0xff]  ;;  %v874_v47 = vpack.c.bf16 %v750_v32, %v749_v6  ;;  %v371_v32 = vmul.f32 %v13220_v8, %v13357_v29 }
  0xf0   :  { %v387_v49 = vadd.f32 %v13371_v9, %v322_v42  ;;  %v798_v4 = vld [vmem:[#allocation2 + $0x2c0] sm:$0xff] }
  0xf1   :  { %v1794_v5 = vld [vmem:[#allocation2 + $0x62] sm:$0xff]  ;;  %v1795_v10 = vld [vmem:[#allocation2 + $0x6a] sm:$0xff]  ;;  %v898_v14 = vpack.c.bf16 %v798_v4, %v797_v61  ;;  %v13567_v34 = vadd.f32 %v13371_v9, %v371_v32 }
  0xf2   :  { %v451_v31 = vmax.f32 %v387_v49, 0.0  ;;  %v751_v11 = vld [vmem:[#allocation2 + $0x60] sm:$0xff]  ;;  %v752_v12 = vld [vmem:[#allocation2 + $0x68] sm:$0xff]  ;;  %v799_v8 = vld [vmem:[#allocation2 + $0x2d0] sm:$0xff] }
  0xf3   :  { %12625 = vmatpush.bf16.msra.mxu3 %v12651_v60  ;;  %v498_v60 = vmax.f32 %v13541_v59, 0.0  ;;  %v875_v22 = vpack.c.bf16 %v752_v12, %v751_v11  ;;  %v500_v50 = vmax.f32 %v13567_v34, 0.0  ;;  %v12660_v49 = vld [vmem:[%s16525_s0 + $0xa9] sm:$0xff]  ;;  %v12662_v32 = vld [vmem:[%s16525_s0 + $0xc1] sm:$0xff] }
  0xf4   :  { %1517 = vmatmul.bf16.gmra.mxu1 %v1396_v27  ;;  %624 = vst [vmem:[#allocation2 + $0x81] sm:$0xff] %v451_v31  ;;  %v12491_v11 = vld [vmem:[%s16527_s2 + $0x128] sm:$0xff]  ;;  %v12488_v59 = vld [vmem:[%s16527_s2 + $0x110] sm:$0xff] }
  0xf5   :  { %671 = vst [vmem:[#allocation2 + $0x2e9] sm:$0xff] %v498_v60  ;;  %3057 = vmatpush.bf16.msrb.mxu0 %v12491_v11 }
  0xf6   :  { %1100 = vmatmul.bf16.gmra.mxu3 %v896_v51  ;;  %v450_v51 = vmax.f32 %v386_v48, 0.0  ;;  %673 = vst [vmem:[#allocation2 + $0x301] sm:$0xff] %v500_v50 }
  0xf7   :  { %12626 = vmatpush.bf16.msra.mxu3 %v12652_v17  ;;  %v324_v17 = vmul.f32 %v12659_v15, %v13357_v29  ;;  %v13596_v15 = vadd.f32 %v13371_v9, %v373_v1  ;;  %v12665_v1 = vld [vmem:[%s16525_s0 + $0xe1] sm:$0xff] }
  0xf8   :  { %2029 = vmatmul.bf16.gmra.mxu2 %v1916_v41  ;;  %623 = vst [vmem:[#allocation2 + $0x79] sm:$0xff] %v450_v51  ;;  %v13544_v41 = vadd.f32 %v13371_v9, %v370_v55  ;;  %v1397_v24 = vpack.c.bf16 %v451_v31, %v450_v51  ;;  %v325_v51 = vmul.f32 %v12660_v49, %v13357_v29  ;;  %v12661_v31 = vld [vmem:[%s16525_s0 + $0xb1] sm:$0xff] }
  0xf9   :  { %985 = vmatmul.bf16.gmra.mxu0 %v873_v0  ;;  %v389_v26 = vadd.f32 %v13371_v9, %v324_v17  ;;  %v326_v30 = vmul.f32 %v12661_v31, %v13357_v29 }
  0xfa   :  { %v499_v0 = vmax.f32 %v13544_v41, 0.0 }
  0xfb   :  { %12627 = vmatpush.bf16.msra.mxu3 %v12653_v21  ;;  %v1918_v21 = vpack.c.bf16 %v1795_v10, %v1794_v5  ;;  %v453_v6 = vmax.f32 %v389_v26, 0.0  ;;  %v390_v5 = vadd.f32 %v13371_v9, %v325_v51  ;;  %v391_v10 = vadd.f32 %v13371_v9, %v326_v30 }
  0xfc   :  { %672 = vst [vmem:[#allocation2 + $0x2f1] sm:$0xff] %v499_v0  ;;  %v801_v16 = vld [vmem:[#allocation2 + $0x2e8] sm:$0xff] }
  0xfd   :  { %626 = vst [vmem:[#allocation2 + $0x99] sm:$0xff] %v453_v6  ;;  %v454_v12 = vmax.f32 %v390_v5, 0.0  ;;  %v803_v31 = vld [vmem:[#allocation2 + $0x300] sm:$0xff] }
  0xff   :  { %12628 = vmatpush.bf16.msra.mxu3 %v12654_v25  ;;  %v388_v25 = vadd.f32 %v13371_v9, %v323_v3  ;;  %v754_v27 = vld [vmem:[#allocation2 + $0x80] sm:$0xff]  ;;  %v374_v3 = vmul.f32 %v13250_v19, %v13357_v29  ;;  %627 = vst [vmem:[#allocation2 + $0xa9] sm:$0xff] %v454_v12 }
 0x101   :  { %v452_v28 = vmax.f32 %v388_v25, 0.0  ;;  %v13599_v17 = vadd.f32 %v13371_v9, %v374_v3  ;;  %v330_v3 = vmul.f32 %v12665_v1, %v13357_v29 }
 0x103   :  { %12629 = vmatpush.bf16.msra.mxu3 %v12657_v20  ;;  %625 = vst [vmem:[#allocation2 + $0x91] sm:$0xff] %v452_v28  ;;  %v1797_v20 = vld [vmem:[#allocation2 + $0x82] sm:$0xff]  ;;  %v1398_v4 = vpack.c.bf16 %v453_v6, %v452_v28  ;;  %v802_v19 = vld [vmem:[#allocation2 + $0x2f0] sm:$0xff] }
 0x104   :  { %1522 = vmatmul.bf16.gmra.mxu1 %v1397_v24  ;;  %v1799_v25 = vld [vmem:[#allocation2 + $0x9a] sm:$0xff]  ;;  %v900_v6 = vpack.c.bf16 %v802_v19, %v801_v16  ;;  %v976_v19 = vpop.f32.mrf.mxu0 }
 0x106   :  { %1105 = vmatmul.bf16.gmra.mxu3 %v897_v33  ;;  %v372_v33 = vmul.f32 %v13230_v13, %v13357_v29  ;;  %v800_v13 = vld [vmem:[#allocation2 + $0x2d8] sm:$0xff] }
 0x107   :  { %v899_v48 = vpack.c.bf16 %v800_v13, %v799_v8  ;;  %v12663_v8 = vld [vmem:[%s16525_s0 + $0xc9] sm:$0xff] }
 0x108   :  { %2034 = vmatmul.bf16.gmra.mxu2 %v1917_v44  ;;  %v13570_v36 = vadd.f32 %v13371_v9, %v372_v33  ;;  %v1796_v44 = vld [vmem:[#allocation2 + $0x7a] sm:$0xff]  ;;  %v327_v33 = vmul.f32 %v12662_v32, %v13357_v29  ;;  %v328_v13 = vmul.f32 %v12663_v8, %v13357_v29  ;;  %v2020_v32 = vpop.f32.mrf.mxu2 }
 0x109   :  { %990 = vmatmul.bf16.gmra.mxu0 %v874_v47  ;;  %v753_v47 = vld [vmem:[#allocation2 + $0x78] sm:$0xff]  ;;  %v1919_v55 = vpack.c.bf16 %v1797_v20, %v1796_v44 }
 0x10a   :  { %v501_v42 = vmax.f32 %v13570_v36, 0.0  ;;  %v876_v61 = vpack.c.bf16 %v754_v27, %v753_v47  ;;  %v1798_v24 = vld [vmem:[#allocation2 + $0x92] sm:$0xff]  ;;  %v392_v27 = vadd.f32 %v13371_v9, %v327_v33 }
 0x10b   :  { %v755_v26 = vld [vmem:[#allocation2 + $0x90] sm:$0xff]  ;;  %v756_v28 = vld [vmem:[#allocation2 + $0x98] sm:$0xff]  ;;  %v1920_v44 = vpack.c.bf16 %v1799_v25, %v1798_v24  ;;  %v1498_v24 = vpop.f32.mrf.mxu1 }
 0x10c   :  { %674 = vst [vmem:[#allocation2 + $0x309] sm:$0xff] %v501_v42  ;;  %v877_v20 = vpack.c.bf16 %v756_v28, %v755_v26  ;;  %v456_v49 = vmax.f32 %v392_v27, 0.0  ;;  %v1658_v26 = vadd.f32 %v1498_v24, %v976_v19  ;;  %v12490_v19 = vld [vmem:[%s16527_s2 + $0x120] sm:$0xff]  ;;  %v13644_v24 = vpop.f32.mrf.mxu0 }
 0x10d   :  { %3058 = vmatpush.bf16.msrb.mxu0 %v12490_v19 }
 0x10e   :  { %629 = vst [vmem:[#allocation2 + $0xc1] sm:$0xff] %v456_v49  ;;  %v13627_v33 = vadd.f32 %v2020_v32, %v1658_v26 }
 0x113   :  { %v804_v30 = vld [vmem:[#allocation2 + $0x308] sm:$0xff] }
 0x114   :  { %1527 = vmatmul.bf16.gmra.mxu1 %v1398_v4  ;;  %v757_v4 = vld [vmem:[#allocation2 + $0xa8] sm:$0xff] }
 0x115   :  { %v759_v27 = vld [vmem:[#allocation2 + $0xc0] sm:$0xff] }
 0x116   :  { %1110 = vmatmul.bf16.gmra.mxu3 %v898_v14  ;;  %v455_v14 = vmax.f32 %v391_v10, 0.0  ;;  %v901_v10 = vpack.c.bf16 %v804_v30, %v803_v31 }
 0x118   :  { %2039 = vmatmul.bf16.gmra.mxu2 %v1918_v21  ;;  %628 = vst [vmem:[#allocation2 + $0xb1] sm:$0xff] %v455_v14  ;;  %v502_v21 = vmax.f32 %v13596_v15, 0.0  ;;  %v1399_v47 = vpack.c.bf16 %v455_v14, %v454_v12  ;;  %v12664_v12 = vld [vmem:[%s16525_s0 + $0xd9] sm:$0xff] }
 0x119   :  { %995 = vmatmul.bf16.gmra.mxu0 %v875_v22  ;;  %v503_v22 = vmax.f32 %v13599_v17, 0.0  ;;  %v329_v14 = vmul.f32 %v12664_v12, %v13357_v29  ;;  %v12682_v17 = vld [vmem:[#allocation2] sm:$0xff] }
 0x11a   :  { %675 = vst [vmem:[#allocation2 + $0x319] sm:$0xff] %v502_v21 }
 0x11b   :  { %676 = vst [vmem:[#allocation2 + $0x321] sm:$0xff] %v503_v22  ;;  %v394_v28 = vadd.f32 %v13371_v9, %v329_v14 }
 0x11d   :  { %v458_v8 = vmax.f32 %v394_v28, 0.0  ;;  %v13646_v28 = vpop.f32.mrf.mxu2 }
 0x11f   :  { %v758_v5 = vld [vmem:[#allocation2 + $0xb0] sm:$0xff]  ;;  %631 = vst [vmem:[#allocation2 + $0xd9] sm:$0xff] %v458_v8 }
 0x120   :  { %v878_v25 = vpack.c.bf16 %v758_v5, %v757_v4  ;;  %v12667_v4 = vld [vmem:[%s16525_s0 + $0xf9] sm:$0xff] }
 0x121   :  { %v332_v5 = vmul.f32 %v12667_v4, %v13357_v29 }
 0x123   :  { %v397_v1 = vadd.f32 %v13371_v9, %v332_v5 }
 0x124   :  { %1532 = vmatmul.bf16.gmra.mxu1 %v1399_v47  ;;  %v806_v47 = vld [vmem:[#allocation2 + $0x320] sm:$0xff] }
 0x126   :  { %1115 = vmatmul.bf16.gmra.mxu3 %v899_v48  ;;  %v393_v48 = vadd.f32 %v13371_v9, %v328_v13  ;;  %v761_v32 = vld [vmem:[#allocation2 + $0xd8] sm:$0xff] }
 0x128   :  { %2044 = vmatmul.bf16.gmra.mxu2 %v1919_v55  ;;  %v457_v51 = vmax.f32 %v393_v48, 0.0  ;;  %v1800_v55 = vld [vmem:[#allocation2 + $0xaa] sm:$0xff] }
 0x129   :  { %1000 = vmatmul.bf16.gmra.mxu0 %v876_v61  ;;  %v1801_v61 = vld [vmem:[#allocation2 + $0xb2] sm:$0xff] }
 0x12a   :  { %630 = vst [vmem:[#allocation2 + $0xc9] sm:$0xff] %v457_v51  ;;  %v1400_v11 = vpack.c.bf16 %v457_v51, %v456_v49  ;;  %v1921_v16 = vpack.c.bf16 %v1801_v61, %v1800_v55  ;;  %v12666_v55 = vld [vmem:[%s16525_s0 + $0xf1] sm:$0xff] }
 0x12b   :  { %v331_v61 = vmul.f32 %v12666_v55, %v13357_v29 }
 0x12d   :  { %v396_v14 = vadd.f32 %v13371_v9, %v331_v61 }
 0x131   :  { %v1802_v48 = vld [vmem:[#allocation2 + $0xc2] sm:$0xff]  ;;  %v1803_v49 = vld [vmem:[#allocation2 + $0xca] sm:$0xff] }
 0x132   :  { %v760_v51 = vld [vmem:[#allocation2 + $0xc8] sm:$0xff] }
 0x133   :  { %v879_v12 = vpack.c.bf16 %v760_v51, %v759_v27 }
 0x134   :  { %1537 = vmatmul.bf16.gmra.mxu1 %v1400_v11  ;;  %v1922_v11 = vpack.c.bf16 %v1803_v49, %v1802_v48  ;;  %v12669_v48 = vld [vmem:[%s16525_s0 + $0x111] sm:$0xff] }
 0x135   :  { %v334_v49 = vmul.f32 %v12669_v48, %v13357_v29 }
 0x136   :  { %1120 = vmatmul.bf16.gmra.mxu3 %v900_v6  ;;  %v395_v6 = vadd.f32 %v13371_v9, %v330_v3  ;;  %v460_v3 = vmax.f32 %v396_v14, 0.0 }
 0x137   :  { %v399_v23 = vadd.f32 %v13371_v9, %v334_v49 }
 0x138   :  { %2049 = vmatmul.bf16.gmra.mxu2 %v1920_v44  ;;  %v459_v13 = vmax.f32 %v395_v6, 0.0  ;;  %v13629_v44 = vpop.f32.mrf.mxu1  ;;  %633 = vst [vmem:[#allocation2 + $0xf1] sm:$0xff] %v460_v3 }
 0x139   :  { %1005 = vmatmul.bf16.gmra.mxu0 %v877_v20  ;;  %v805_v20 = vld [vmem:[#allocation2 + $0x318] sm:$0xff]  ;;  %v463_v61 = vmax.f32 %v399_v23, 0.0 }
 0x13a   :  { %632 = vst [vmem:[#allocation2 + $0xe1] sm:$0xff] %v459_v13  ;;  %v902_v31 = vpack.c.bf16 %v806_v47, %v805_v20  ;;  %v1401_v30 = vpack.c.bf16 %v459_v13, %v458_v8  ;;  %v1416_v13 = vpack.c.bf16 %v489_v56, %v488_v35  ;;  %v12668_v47 = vld [vmem:[%s16525_s0 + $0x109] sm:$0xff] }
 0x13b   :  { %v333_v27 = vmul.f32 %v12668_v47, %v13357_v29  ;;  %636 = vst [vmem:[#allocation2 + $0x111] sm:$0xff] %v463_v61 }
 0x13d   :  { %v398_v45 = vadd.f32 %v13371_v9, %v333_v27 }
 0x13f   :  { %v462_v55 = vmax.f32 %v398_v45, 0.0 }
 0x141   :  { %v1804_v26 = vld [vmem:[#allocation2 + $0xda] sm:$0xff]  ;;  %v1805_v6 = vld [vmem:[#allocation2 + $0xe2] sm:$0xff]  ;;  %635 = vst [vmem:[#allocation2 + $0x109] sm:$0xff] %v462_v55 }
 0x142   :  { %v762_v8 = vld [vmem:[#allocation2 + $0xe0] sm:$0xff] }
 0x144   :  { %1542 = vmatmul.bf16.gmra.mxu1 %v1401_v30  ;;  %v880_v30 = vpack.c.bf16 %v762_v8, %v761_v32  ;;  %v1403_v32 = vpack.c.bf16 %v463_v61, %v462_v55  ;;  %v12670_v8 = vld [vmem:[%s16525_s0 + $0x121] sm:$0xff] }
 0x146   :  { %1125 = vmatmul.bf16.gmra.mxu3 %v901_v10  ;;  %v1503_v10 = vpop.f32.mrf.mxu1 }
 0x148   :  { %2054 = vmatmul.bf16.gmra.mxu2 %v1921_v16  ;;  %v461_v16 = vmax.f32 %v397_v1, 0.0 }
 0x149   :  { %1010 = vmatmul.bf16.gmra.mxu0 %v878_v25 }
 0x14a   :  { %634 = vst [vmem:[#allocation2 + $0xf9] sm:$0xff] %v461_v16  ;;  %v1402_v20 = vpack.c.bf16 %v461_v16, %v460_v3 }
 0x14e   :  { %v1505_v25 = vpop.f32.mrf.mxu1 }
 0x151   :  { %v1806_v3 = vld [vmem:[#allocation2 + $0xf2] sm:$0xff]  ;;  %v1807_v16 = vld [vmem:[#allocation2 + $0xfa] sm:$0xff] }
 0x152   :  { %v1924_v27 = vpack.c.bf16 %v1807_v16, %v1806_v3  ;;  %v766_v16 = vld [vmem:[#allocation2 + $0x110] sm:$0xff] }
 0x154   :  { %1547 = vmatmul.bf16.gmra.mxu1 %v1402_v20 }
 0x156   :  { %1130 = vmatmul.bf16.gmra.mxu3 %v902_v31  ;;  %v1508_v51 = vpop.f32.mrf.mxu1  ;;  %v1923_v31 = vpack.c.bf16 %v1805_v6, %v1804_v26  ;;  %v764_v26 = vld [vmem:[#allocation2 + $0xf8] sm:$0xff]  ;;  %v1417_v6 = vpack.c.bf16 %v491_v43, %v490_v38 }
 0x158   :  { %2059 = vmatmul.bf16.gmra.mxu2 %v1922_v11 }
 0x159   :  { %1015 = vmatmul.bf16.gmra.mxu0 %v879_v12 }
 0x15e   :  { %v1510_v11 = vpop.f32.mrf.mxu1 }
 0x164   :  { %1552 = vmatmul.bf16.gmra.mxu1 %v1403_v32 }
 0x166   :  { %v981_v35 = vpop.f32.mrf.mxu0  ;;  %1617 = vmatmul.bf16.vlgmr.msrb.gmra.mxu3 %v1416_v13  ;;  %v335_v13 = vmul.f32 %v12670_v8, %v13357_v29  ;;  %v1513_v48 = vpop.f32.mrf.mxu1 }
 0x167   :  { %v1660_v56 = vadd.f32 %v1503_v10, %v981_v35  ;;  %v763_v10 = vld [vmem:[#allocation2 + $0xf0] sm:$0xff] }
 0x168   :  { %2064 = vmatmul.bf16.gmra.mxu2 %v1923_v31  ;;  %v881_v57 = vpack.c.bf16 %v764_v26, %v763_v10  ;;  %v400_v38 = vadd.f32 %v13371_v9, %v335_v13  ;;  %v1418_v10 = vpack.c.bf16 %v493_v7, %v492_v52 }
 0x169   :  { %1020 = vmatmul.bf16.gmra.mxu0 %v880_v30  ;;  %v13662_v4 = vpop.f32.mrf.mxu3 }
 0x16a   :  { %v464_v30 = vmax.f32 %v400_v38, 0.0 }
 0x16b   :  { %v2025_v5 = vpop.f32.mrf.mxu2 }
 0x16c   :  { %v13664_v12 = vadd.f32 %v2025_v5, %v1660_v56  ;;  %637 = vst [vmem:[#allocation2 + $0x121] sm:$0xff] %v464_v30 }
 0x16e   :  { %v983_v14 = vpop.f32.mrf.mxu0  ;;  %v1515_v56 = vpop.f32.mrf.mxu1 }
 0x16f   :  { %v1661_v1 = vadd.f32 %v1505_v25, %v983_v14  ;;  %v12671_v25 = vld [vmem:[%s16525_s0 + $0x129] sm:$0xff] }
 0x170   :  { %v336_v20 = vmul.f32 %v12671_v25, %v13357_v29  ;;  %v1808_v14 = vld [vmem:[#allocation2 + $0x10a] sm:$0xff] }
 0x171   :  { %v13666_v19 = vpop.f32.mrf.mxu3 }
 0x172   :  { %v401_v43 = vadd.f32 %v13371_v9, %v336_v20 }
 0x173   :  { %v2027_v47 = vpop.f32.mrf.mxu2 }
 0x174   :  { %v13680_v53 = vadd.f32 %v2027_v47, %v1661_v1  ;;  %v465_v45 = vmax.f32 %v401_v43, 0.0  ;;  %v1809_v1 = vld [vmem:[#allocation2 + $0x112] sm:$0xff] }
 0x175   :  { %v1925_v25 = vpack.c.bf16 %v1809_v1, %v1808_v14  ;;  %v767_v1 = vld [vmem:[#allocation2 + $0x120] sm:$0xff] }
 0x176   :  { %v986_v49 = vpop.f32.mrf.mxu0  ;;  %1622 = vmatmul.bf16.gmra.mxu3 %v1417_v6  ;;  %638 = vst [vmem:[#allocation2 + $0x129] sm:$0xff] %v465_v45  ;;  %v1404_v26 = vpack.c.bf16 %v465_v45, %v464_v30  ;;  %v12672_v6 = vld [vmem:[%s16525_s0 + $0x139] sm:$0xff]  ;;  %v1518_v20 = vpop.f32.mrf.mxu1 }
 0x177   :  { %v1662_v31 = vadd.f32 %v1508_v51, %v986_v49  ;;  %v765_v51 = vld [vmem:[#allocation2 + $0x108] sm:$0xff]  ;;  %v337_v32 = vmul.f32 %v12672_v6, %v13357_v29  ;;  %v12489_v49 = vld [vmem:[%s16527_s2 + $0x118] sm:$0xff] }
 0x178   :  { %2069 = vmatmul.bf16.gmra.mxu2 %v1924_v27  ;;  %v882_v63 = vpack.c.bf16 %v766_v16, %v765_v51  ;;  %1557 = vmatmul.bf16.gmra.mxu1 %v1404_v26  ;;  %v1419_v16 = vpack.c.bf16 %v495_v40, %v494_v46  ;;  %v12674_v26 = vld [vmem:[%s16525_s0 + $0x151] sm:$0xff] }
 0x179   :  { %1025 = vmatmul.bf16.gmra.mxu0 %v881_v57  ;;  %v13684_v23 = vpop.f32.mrf.mxu3  ;;  %v402_v52 = vadd.f32 %v13371_v9, %v337_v32  ;;  %v339_v6 = vmul.f32 %v12674_v26, %v13357_v29 }
 0x17a   :  { %3059 = vmatpush.bf16.msrb.mxu0 %v12489_v49 }
 0x17b   :  { %v2030_v35 = vpop.f32.mrf.mxu2  ;;  %v466_v57 = vmax.f32 %v402_v52, 0.0  ;;  %v404_v46 = vadd.f32 %v13371_v9, %v339_v6 }
 0x17c   :  { %v13686_v55 = vadd.f32 %v2030_v35, %v1662_v31 }
 0x17d   :  { %639 = vst [vmem:[#allocation2 + $0x139] sm:$0xff] %v466_v57  ;;  %v768_v51 = vld [vmem:[#allocation2 + $0x128] sm:$0xff]  ;;  %v468_v52 = vmax.f32 %v404_v46, 0.0 }
 0x17e   :  { %v988_v61 = vpop.f32.mrf.mxu0  ;;  %v1520_v30 = vpop.f32.mrf.mxu1  ;;  %v883_v39 = vpack.c.bf16 %v768_v51, %v767_v1  ;;  %v1420_v1 = vpack.c.bf16 %v497_v58, %v496_v54  ;;  %3060 = vmatpush.bf16.msrb.mxu0 %v12488_v59 }
 0x17f   :  { %v1663_v5 = vadd.f32 %v1510_v11, %v988_v61  ;;  %v12673_v11 = vld [vmem:[%s16525_s0 + $0x141] sm:$0xff]  ;;  %641 = vst [vmem:[#allocation2 + $0x151] sm:$0xff] %v468_v52 }
 0x180   :  { %v338_v8 = vmul.f32 %v12673_v11, %v13357_v29  ;;  %v1810_v61 = vld [vmem:[#allocation2 + $0x122] sm:$0xff] }
 0x181   :  { %v13688_v3 = vpop.f32.mrf.mxu3 }
 0x182   :  { %v403_v7 = vadd.f32 %v13371_v9, %v338_v8 }
 0x183   :  { %v2032_v13 = vpop.f32.mrf.mxu2 }
 0x184   :  { %v13702_v62 = vadd.f32 %v2032_v13, %v1663_v5  ;;  %v467_v38 = vmax.f32 %v403_v7, 0.0  ;;  %v1811_v5 = vld [vmem:[#allocation2 + $0x12a] sm:$0xff] }
 0x185   :  { %v1926_v8 = vpack.c.bf16 %v1811_v5, %v1810_v61 }
 0x186   :  { %v991_v47 = vpop.f32.mrf.mxu0  ;;  %1627 = vmatmul.bf16.gmra.mxu3 %v1418_v10  ;;  %640 = vst [vmem:[#allocation2 + $0x141] sm:$0xff] %v467_v38  ;;  %v1405_v10 = vpack.c.bf16 %v467_v38, %v466_v57  ;;  %v1523_v13 = vpop.f32.mrf.mxu1 }
 0x187   :  { %v1664_v27 = vadd.f32 %v1513_v48, %v991_v47 }
 0x188   :  { %2074 = vmatmul.bf16.gmra.mxu2 %v1925_v25  ;;  %1562 = vmatmul.bf16.gmra.mxu1 %v1405_v10 }
 0x189   :  { %1030 = vmatmul.bf16.gmra.mxu0 %v882_v63  ;;  %v13706_v43 = vpop.f32.mrf.mxu3 }
 0x18b   :  { %v2035_v31 = vpop.f32.mrf.mxu2 }
 0x18c   :  { %v13711_v45 = vadd.f32 %v2035_v31, %v1664_v27 }
 0x18d   :  { %v770_v5 = vld [vmem:[#allocation2 + $0x140] sm:$0xff] }
 0x18e   :  { %16602 = vst [vmem:[#allocation10_spill] sm:$0xff] %v13711_v45  ;;  %v993_v35 = vpop.f32.mrf.mxu0  ;;  %v1525_v57 = vpop.f32.mrf.mxu1 }
 0x18f   :  { %v1665_v48 = vadd.f32 %v1515_v56, %v993_v35  ;;  %v12675_v56 = vld [vmem:[%s16525_s0 + $0x159] sm:$0xff] }
 0x190   :  { %v340_v32 = vmul.f32 %v12675_v56, %v13357_v29  ;;  %v1812_v35 = vld [vmem:[#allocation2 + $0x13a] sm:$0xff] }
 0x191   :  { %v13713_v14 = vpop.f32.mrf.mxu3 }
 0x192   :  { %v405_v40 = vadd.f32 %v13371_v9, %v340_v32 }
 0x193   :  { %v2037_v11 = vpop.f32.mrf.mxu2 }
 0x194   :  { %v13727_v37 = vadd.f32 %v2037_v11, %v1665_v48  ;;  %v469_v7 = vmax.f32 %v405_v40, 0.0  ;;  %v1813_v48 = vld [vmem:[#allocation2 + $0x142] sm:$0xff] }
 0x195   :  { %v1927_v56 = vpack.c.bf16 %v1813_v48, %v1812_v35 }
 0x196   :  { %16603 = vst [vmem:[#allocation11_spill] sm:$0xff] %v13727_v37  ;;  %v996_v25 = vpop.f32.mrf.mxu0  ;;  %1632 = vmatmul.bf16.gmra.mxu3 %v1419_v16  ;;  %v1406_v51 = vpack.c.bf16 %v469_v7, %v468_v52  ;;  %v12676_v16 = vld [vmem:[%s16525_s0 + $0x169] sm:$0xff]  ;;  %v1528_v32 = vpop.f32.mrf.mxu1 }
 0x197   :  { %v1666_v63 = vadd.f32 %v1518_v20, %v996_v25  ;;  %642 = vst [vmem:[#allocation2 + $0x159] sm:$0xff] %v469_v7  ;;  %v769_v20 = vld [vmem:[#allocation2 + $0x138] sm:$0xff]  ;;  %v341_v10 = vmul.f32 %v12676_v16, %v13357_v29 }
 0x198   :  { %2079 = vmatmul.bf16.gmra.mxu2 %v1926_v8  ;;  %v884_v2 = vpack.c.bf16 %v770_v5, %v769_v20  ;;  %1567 = vmatmul.bf16.gmra.mxu1 %v1406_v51  ;;  %v1421_v20 = vpack.c.bf16 %v499_v0, %v498_v60 }
 0x199   :  { %1035 = vmatmul.bf16.gmra.mxu0 %v883_v39  ;;  %v13731_v47 = vpop.f32.mrf.mxu3  ;;  %v406_v54 = vadd.f32 %v13371_v9, %v341_v10 }
 0x19b   :  { %v2040_v27 = vpop.f32.mrf.mxu2  ;;  %v470_v39 = vmax.f32 %v406_v54, 0.0 }
 0x19c   :  { %v13733_v38 = vadd.f32 %v2040_v27, %v1666_v63 }
 0x19d   :  { %643 = vst [vmem:[#allocation2 + $0x169] sm:$0xff] %v470_v39 }
 0x19e   :  { %16604 = vst [vmem:[#allocation12_spill] sm:$0xff] %v13733_v38  ;;  %v998_v49 = vpop.f32.mrf.mxu0  ;;  %v1530_v63 = vpop.f32.mrf.mxu1  ;;  %v1815_v35 = vld [vmem:[#allocation2 + $0x15a] sm:$0xff] }
 0x19f   :  { %v1667_v31 = vadd.f32 %v1520_v30, %v998_v49  ;;  %v12677_v30 = vld [vmem:[%s16525_s0 + $0x171] sm:$0xff] }
 0x1a0   :  { %v342_v26 = vmul.f32 %v12677_v30, %v13357_v29  ;;  %v1814_v49 = vld [vmem:[#allocation2 + $0x152] sm:$0xff] }
 0x1a1   :  { %v13735_v61 = vpop.f32.mrf.mxu3  ;;  %v772_v48 = vld [vmem:[#allocation2 + $0x158] sm:$0xff]  ;;  %v1928_v10 = vpack.c.bf16 %v1815_v35, %v1814_v49 }
 0x1a2   :  { %v407_v58 = vadd.f32 %v13371_v9, %v342_v26  ;;  %v12679_v49 = vld [vmem:[%s16525_s0 + $0x1d1] sm:$0xff] }
 0x1a3   :  { %v2042_v6 = vpop.f32.mrf.mxu2  ;;  %v346_v35 = vmul.f32 %v12679_v49, %v13357_v29 }
 0x1a4   :  { %v13749_v18 = vadd.f32 %v2042_v6, %v1667_v31  ;;  %v471_v46 = vmax.f32 %v407_v58, 0.0 }
 0x1a6   :  { %16605 = vst [vmem:[#allocation13_spill] sm:$0xff] %v13749_v18  ;;  %v1001_v11 = vpop.f32.mrf.mxu0  ;;  %1637 = vmatmul.bf16.gmra.mxu3 %v1420_v1  ;;  %v1407_v5 = vpack.c.bf16 %v471_v46, %v470_v39  ;;  %v1533_v51 = vpop.f32.mrf.mxu1  ;;  %v1296_v39 = vld [vmem:[#allocation2 + $0x1b1] sm:$0xff] }
 0x1a7   :  { %v1668_v8 = vadd.f32 %v1523_v13, %v1001_v11  ;;  %644 = vst [vmem:[#allocation2 + $0x171] sm:$0xff] %v471_v46  ;;  %v771_v13 = vld [vmem:[#allocation2 + $0x150] sm:$0xff]  ;;  %v773_v11 = vld [vmem:[#allocation2 + $0x168] sm:$0xff]  ;;  %v1297_v46 = vld [vmem:[#allocation2 + $0x1b9] sm:$0xff] }
 0x1a8   :  { %2084 = vmatmul.bf16.gmra.mxu2 %v1927_v56  ;;  %v885_v30 = vpack.c.bf16 %v772_v48, %v771_v13  ;;  %1572 = vmatmul.bf16.gmra.mxu1 %v1407_v5 }
 0x1a9   :  { %1040 = vmatmul.bf16.gmra.mxu0 %v884_v2  ;;  %v13753_v40 = vpop.f32.mrf.mxu3 }
 0x1ab   :  { %v2045_v25 = vpop.f32.mrf.mxu2 }
 0x1ac   :  { %v13755_v52 = vadd.f32 %v2045_v25, %v1668_v8  ;;  %v1422_v25 = vpack.c.bf16 %v501_v42, %v500_v50  ;;  %v411_v42 = vadd.f32 %v13371_v9, %v346_v35 }
 0x1ae   :  { %16606 = vst [vmem:[#allocation14_spill] sm:$0xff] %v13755_v52  ;;  %v1003_v7 = vpop.f32.mrf.mxu0  ;;  %v1535_v60 = vpop.f32.mrf.mxu1  ;;  %v1816_v54 = vld [vmem:[#allocation2 + $0x16a] sm:$0xff]  ;;  %v1817_v58 = vld [vmem:[#allocation2 + $0x172] sm:$0xff] }
 0x1af   :  { %v1669_v27 = vadd.f32 %v1525_v57, %v1003_v7  ;;  %v774_v8 = vld [vmem:[#allocation2 + $0x170] sm:$0xff]  ;;  %v1408_v7 = vpack.c.bf16 %v1297_v46, %v1296_v39  ;;  %v1929_v48 = vpack.c.bf16 %v1817_v58, %v1816_v54  ;;  %v1819_v58 = vld [vmem:[#allocation2 + $0x1ba] sm:$0xff] }
 0x1b0   :  { %v886_v36 = vpack.c.bf16 %v774_v8, %v773_v11  ;;  %v1818_v54 = vld [vmem:[#allocation2 + $0x1b2] sm:$0xff]  ;;  %v1423_v8 = vpack.c.bf16 %v503_v22, %v502_v21  ;;  %v12680_v46 = vld [vmem:[%s16525_s0 + $0x1e1] sm:$0xff]  ;;  %v887_v21 = vpack.c.bf16 %v12682_v17, %v12682_v17 }
 0x1b1   :  { %v13757_v31 = vpop.f32.mrf.mxu3 }
 0x1b3   :  { %v2047_v1 = vpop.f32.mrf.mxu2 }
 0x1b4   :  { %v13763_v16 = vadd.f32 %v2047_v1, %v1669_v27  ;;  %v12678_v27 = vld [vmem:[%s16525_s0 + $0x1c9] sm:$0xff] }
 0x1b6   :  { %16607 = vst [vmem:[#allocation15_spill] sm:$0xff] %v13763_v16  ;;  %v1006_v26 = vpop.f32.mrf.mxu0  ;;  %1642 = vmatmul.bf16.gmra.mxu3 %v1421_v20  ;;  %v1538_v20 = vpop.f32.mrf.mxu1 }
 0x1b7   :  { %v1670_v57 = vadd.f32 %v1528_v32, %v1006_v26  ;;  %v475_v26 = vmax.f32 %v411_v42, 0.0 }
 0x1b8   :  { %2089 = vmatmul.bf16.gmra.mxu2 %v1928_v10  ;;  %1577 = vmatmul.bf16.gmra.mxu1 %v1408_v7  ;;  %v12485_v10 = vld [vmem:[%s16527_s2 + $0xf8] sm:$0xff] }
 0x1b9   :  { %1045 = vmatmul.bf16.gmra.mxu0 %v885_v30  ;;  %v13765_v6 = vpop.f32.mrf.mxu3  ;;  %2533 = vmatpush.bf16.msrb.mxu3 %v12485_v10  ;;  %648 = vst [vmem:[#allocation2 + $0x1d1] sm:$0xff] %v475_v26 }
 0x1bb   :  { %v2050_v41 = vpop.f32.mrf.mxu2 }
 0x1bc   :  { %v13770_v0 = vadd.f32 %v2050_v41, %v1670_v57 }
 0x1be   :  { %16608 = vst [vmem:[#allocation16_spill] sm:$0xff] %v13770_v0  ;;  %v1008_v56 = vpop.f32.mrf.mxu0  ;;  %v1540_v41 = vpop.f32.mrf.mxu1 }
 0x1bf   :  { %v1671_v2 = vadd.f32 %v1530_v63, %v1008_v56  ;;  %v345_v63 = vmul.f32 %v12678_v27, %v13357_v29 }
 0x1c1   :  { %v13772_v32 = vpop.f32.mrf.mxu3  ;;  %v410_v50 = vadd.f32 %v13371_v9, %v345_v63  ;;  %v1930_v63 = vpack.c.bf16 %v1819_v58, %v1818_v54  ;;  %v1821_v54 = vld [vmem:[#allocation2 + $0x1d2] sm:$0xff] }
 0x1c3   :  { %v2052_v13 = vpop.f32.mrf.mxu2  ;;  %v474_v30 = vmax.f32 %v410_v50, 0.0 }
 0x1c4   :  { %v13786_v34 = vadd.f32 %v2052_v13, %v1671_v2 }
 0x1c5   :  { %647 = vst [vmem:[#allocation2 + $0x1c9] sm:$0xff] %v474_v30  ;;  %v1409_v39 = vpack.c.bf16 %v475_v26, %v474_v30 }
 0x1c6   :  { %16609 = vst [vmem:[#allocation17_spill] sm:$0xff] %v13786_v34  ;;  %v1011_v5 = vpop.f32.mrf.mxu0  ;;  %1647 = vmatmul.bf16.gmra.mxu3 %v1422_v25  ;;  %v347_v25 = vmul.f32 %v12680_v46, %v13357_v29  ;;  %v1543_v49 = vpop.f32.mrf.mxu1 }
 0x1c7   :  { %v1672_v1 = vadd.f32 %v1533_v51, %v1011_v5 }
 0x1c8   :  { %2094 = vmatmul.bf16.gmra.mxu2 %v1929_v48  ;;  %v412_v22 = vadd.f32 %v13371_v9, %v347_v25  ;;  %1582 = vmatmul.bf16.gmra.mxu1 %v1409_v39 }
 0x1c9   :  { %1050 = vmatmul.bf16.gmra.mxu0 %v886_v36  ;;  %v13793_v57 = vpop.f32.mrf.mxu3  ;;  %v12484_v36 = vld [vmem:[%s16527_s2 + $0xf0] sm:$0xff] }
 0x1ca   :  { %v476_v50 = vmax.f32 %v412_v22, 0.0  ;;  %2534 = vmatpush.bf16.msrb.mxu3 %v12484_v36 }
 0x1cb   :  { %v2055_v59 = vpop.f32.mrf.mxu2 }
 0x1cc   :  { %v13795_v56 = vadd.f32 %v2055_v59, %v1672_v1  ;;  %649 = vst [vmem:[#allocation2 + $0x1e1] sm:$0xff] %v476_v50  ;;  %v1834_v59 = vld [vmem:[#allocation2 + $0x272] sm:$0xff] }
 0x1cd   :  { %v778_v39 = vld [vmem:[#allocation2 + $0x1d0] sm:$0xff] }
 0x1ce   :  { %16610 = vst [vmem:[#allocation18_spill] sm:$0xff] %v13795_v56  ;;  %v1013_v2 = vpop.f32.mrf.mxu0  ;;  %v1545_v10 = vpop.f32.mrf.mxu1 }
 0x1cf   :  { %v1673_v51 = vadd.f32 %v1535_v60, %v1013_v2  ;;  %v12681_v60 = vld [vmem:[%s16525_s0 + $0x1e9] sm:$0xff]  ;;  %v1835_v2 = vld [vmem:[#allocation2 + $0x27a] sm:$0xff] }
 0x1d0   :  { %v348_v7 = vmul.f32 %v12681_v60, %v13357_v29  ;;  %v1938_v46 = vpack.c.bf16 %v1835_v2, %v1834_v59  ;;  %v12683_v60 = vld [vmem:[%s16525_s0 + $0x1f9] sm:$0xff]  ;;  %v12487_v59 = vld [vmem:[%s16527_s2 + $0x108] sm:$0xff] }
 0x1d1   :  { %v13797_v11 = vpop.f32.mrf.mxu3  ;;  %3061 = vmatpush.bf16.msrb.mxu0 %v12487_v59 }
 0x1d2   :  { %v413_v35 = vadd.f32 %v13371_v9, %v348_v7  ;;  %v349_v7 = vmul.f32 %v12683_v60, %v13357_v29 }
 0x1d3   :  { %v2057_v27 = vpop.f32.mrf.mxu2 }
 0x1d4   :  { %v13811_v15 = vadd.f32 %v2057_v27, %v1673_v51  ;;  %v477_v42 = vmax.f32 %v413_v35, 0.0  ;;  %v1820_v51 = vld [vmem:[#allocation2 + $0x1ca] sm:$0xff] }
 0x1d5   :  { %v1931_v17 = vpack.c.bf16 %v1821_v54, %v1820_v51 }
 0x1d6   :  { %16611 = vst [vmem:[#allocation19_spill] sm:$0xff] %v13811_v15  ;;  %v1016_v13 = vpop.f32.mrf.mxu0  ;;  %1652 = vmatmul.bf16.gmra.mxu3 %v1423_v8  ;;  %v777_v8 = vld [vmem:[#allocation2 + $0x1c8] sm:$0xff]  ;;  %v1410_v25 = vpack.c.bf16 %v477_v42, %v476_v50 }
 0x1d7   :  { %v1674_v48 = vadd.f32 %v1538_v20, %v1016_v13  ;;  %650 = vst [vmem:[#allocation2 + $0x1e9] sm:$0xff] %v477_v42  ;;  %v888_v35 = vpack.c.bf16 %v778_v39, %v777_v8  ;;  %v414_v13 = vadd.f32 %v13371_v9, %v349_v7  ;;  %v12483_v42 = vld [vmem:[%s16527_s2 + $0xe8] sm:$0xff] }
 0x1d8   :  { %2099 = vmatmul.bf16.gmra.mxu2 %v1930_v63  ;;  %1587 = vmatmul.bf16.gmra.mxu1 %v1410_v25  ;;  %v1836_v39 = vld [vmem:[#allocation2 + $0x28a] sm:$0xff] }
 0x1d9   :  { %1055 = vmatmul.bf16.gmra.mxu0 %v887_v21  ;;  %v13818_v5 = vpop.f32.mrf.mxu3  ;;  %v1548_v21 = vpop.f32.mrf.mxu1  ;;  %2535 = vmatpush.bf16.msrb.mxu3 %v12483_v42 }
 0x1db   :  { %v2060_v1 = vpop.f32.mrf.mxu2 }
 0x1dc   :  { %v13820_v30 = vadd.f32 %v2060_v1, %v1674_v48  ;;  %v478_v1 = vmax.f32 %v414_v13, 0.0 }
 0x1de   :  { %16612 = vst [vmem:[#allocation20_spill] sm:$0xff] %v13820_v30  ;;  %v1018_v26 = vpop.f32.mrf.mxu0  ;;  %v1822_v25 = vld [vmem:[#allocation2 + $0x1e2] sm:$0xff]  ;;  %v1823_v60 = vld [vmem:[#allocation2 + $0x1ea] sm:$0xff] }
 0x1df   :  { %v1675_v20 = vadd.f32 %v1540_v41, %v1018_v26  ;;  %v12684_v41 = vld [vmem:[%s16525_s0 + $0x201] sm:$0xff]  ;;  %651 = vst [vmem:[#allocation2 + $0x1f9] sm:$0xff] %v478_v1 }
 0x1e0   :  { %v350_v27 = vmul.f32 %v12684_v41, %v13357_v29  ;;  %v779_v41 = vld [vmem:[#allocation2 + $0x1e0] sm:$0xff] }
 0x1e1   :  { %v13822_v58 = vpop.f32.mrf.mxu3 }
 0x1e2   :  { %v415_v48 = vadd.f32 %v13371_v9, %v350_v27  ;;  %v780_v27 = vld [vmem:[#allocation2 + $0x1e8] sm:$0xff] }
 0x1e3   :  { %v2062_v63 = vpop.f32.mrf.mxu2 }
 0x1e4   :  { %v13832_v22 = vadd.f32 %v2062_v63, %v1675_v20  ;;  %v479_v26 = vmax.f32 %v415_v48, 0.0 }
 0x1e6   :  { %16613 = vst [vmem:[#allocation21_spill] sm:$0xff] %v13832_v22  ;;  %v1021_v36 = vpop.f32.mrf.mxu0  ;;  %2139 = vmatmul.bf16.vlgmr.msra.gmra.mxu3 %v1938_v46  ;;  %v1837_v46 = vld [vmem:[#allocation2 + $0x292] sm:$0xff] }
 0x1e7   :  { %v1676_v50 = vadd.f32 %v1543_v49, %v1021_v36  ;;  %652 = vst [vmem:[#allocation2 + $0x201] sm:$0xff] %v479_v26  ;;  %v1550_v49 = vpop.f32.mrf.mxu1  ;;  %v1939_v63 = vpack.c.bf16 %v1837_v46, %v1836_v39  ;;  %v12482_v46 = vld [vmem:[%s16527_s2 + $0xe0] sm:$0xff] }
 0x1e8   :  { %2104 = vmatmul.bf16.gmra.mxu2 %v1931_v17  ;;  %v1411_v17 = vpack.c.bf16 %v479_v26, %v478_v1  ;;  %2536 = vmatpush.bf16.msrb.mxu3 %v12482_v46 }
 0x1e9   :  { %1060 = vmatmul.bf16.gmra.mxu0 %v888_v35  ;;  %v13839_v20 = vpop.f32.mrf.mxu3  ;;  %v12685_v35 = vld [vmem:[%s16525_s0 + $0x211] sm:$0xff] }
 0x1ea   :  { %v351_v13 = vmul.f32 %v12685_v35, %v13357_v29  ;;  %1592 = vmatmul.bf16.gmra.mxu1 %v1411_v17  ;;  %v1839_v17 = vld [vmem:[#allocation2 + $0x2aa] sm:$0xff] }
 0x1eb   :  { %v2065_v2 = vpop.f32.mrf.mxu2 }
 0x1ec   :  { %v13844_v51 = vadd.f32 %v2065_v2, %v1676_v50  ;;  %v1932_v50 = vpack.c.bf16 %v1823_v60, %v1822_v25  ;;  %v889_v2 = vpack.c.bf16 %v780_v27, %v779_v41  ;;  %v416_v1 = vadd.f32 %v13371_v9, %v351_v13 }
 0x1ee   :  { %16614 = vst [vmem:[#allocation22_spill] sm:$0xff] %v13844_v51  ;;  %v1023_v54 = vpop.f32.mrf.mxu0  ;;  %v480_v35 = vmax.f32 %v416_v1, 0.0  ;;  %v1824_v13 = vld [vmem:[#allocation2 + $0x1fa] sm:$0xff] }
 0x1ef   :  { %v1677_v8 = vadd.f32 %v1545_v10, %v1023_v54  ;;  %v12686_v10 = vld [vmem:[%s16525_s0 + $0x219] sm:$0xff]  ;;  %v1553_v42 = vpop.f32.mrf.mxu1 }
 0x1f0   :  { %v352_v48 = vmul.f32 %v12686_v10, %v13357_v29  ;;  %653 = vst [vmem:[#allocation2 + $0x211] sm:$0xff] %v480_v35  ;;  %v781_v1 = vld [vmem:[#allocation2 + $0x1f8] sm:$0xff] }
 0x1f1   :  { %v13846_v7 = vpop.f32.mrf.mxu3 }
 0x1f2   :  { %v417_v26 = vadd.f32 %v13371_v9, %v352_v48  ;;  %v1825_v48 = vld [vmem:[#allocation2 + $0x202] sm:$0xff] }
 0x1f3   :  { %v2067_v36 = vpop.f32.mrf.mxu2 }
 0x1f4   :  { %v13856_v59 = vadd.f32 %v2067_v36, %v1677_v8  ;;  %v481_v10 = vmax.f32 %v417_v26, 0.0 }
 0x1f6   :  { %16615 = vst [vmem:[#allocation23_spill] sm:$0xff] %v13856_v59  ;;  %v1026_v54 = vpop.f32.mrf.mxu0  ;;  %2144 = vmatmul.bf16.gmra.mxu3 %v1939_v63  ;;  %v1838_v63 = vld [vmem:[#allocation2 + $0x2a2] sm:$0xff]  ;;  %v1412_v26 = vpack.c.bf16 %v481_v10, %v480_v35 }
 0x1f7   :  { %v1678_v39 = vadd.f32 %v1548_v21, %v1026_v54  ;;  %654 = vst [vmem:[#allocation2 + $0x219] sm:$0xff] %v481_v10  ;;  %v1555_v60 = vpop.f32.mrf.mxu1  ;;  %v12687_v54 = vld [vmem:[%s16525_s0 + $0x229] sm:$0xff] }
 0x1f8   :  { %2109 = vmatmul.bf16.gmra.mxu2 %v1932_v50  ;;  %v782_v50 = vld [vmem:[#allocation2 + $0x200] sm:$0xff]  ;;  %v353_v46 = vmul.f32 %v12687_v54, %v13357_v29  ;;  %v12481_v54 = vld [vmem:[%s16527_s2 + $0xd8] sm:$0xff] }
 0x1f9   :  { %1065 = vmatmul.bf16.gmra.mxu0 %v889_v2  ;;  %v13863_v8 = vpop.f32.mrf.mxu3  ;;  %v1940_v2 = vpack.c.bf16 %v1839_v17, %v1838_v63  ;;  %v890_v51 = vpack.c.bf16 %v782_v50, %v781_v1  ;;  %2537 = vmatpush.bf16.msrb.mxu3 %v12481_v54 }
 0x1fa   :  { %v418_v35 = vadd.f32 %v13371_v9, %v353_v46  ;;  %1597 = vmatmul.bf16.gmra.mxu1 %v1412_v26  ;;  %v1841_v26 = vld [vmem:[#allocation2 + $0x2c2] sm:$0xff] }
 0x1fb   :  { %v2070_v25 = vpop.f32.mrf.mxu2 }
 0x1fc   :  { %v13865_v41 = vadd.f32 %v2070_v25, %v1678_v39  ;;  %v482_v22 = vmax.f32 %v418_v35, 0.0  ;;  %v783_v35 = vld [vmem:[#allocation2 + $0x210] sm:$0xff] }
 0x1fe   :  { %16616 = vst [vmem:[#allocation24_spill] sm:$0xff] %v13865_v41  ;;  %v1028_v27 = vpop.f32.mrf.mxu0  ;;  %v1826_v46 = vld [vmem:[#allocation2 + $0x212] sm:$0xff] }
 0x1ff   :  { %v1679_v21 = vadd.f32 %v1550_v49, %v1028_v27  ;;  %v12688_v49 = vld [vmem:[%s16525_s0 + $0x231] sm:$0xff]  ;;  %v1933_v27 = vpack.c.bf16 %v1825_v48, %v1824_v13  ;;  %v1558_v41 = vpop.f32.mrf.mxu1  ;;  %655 = vst [vmem:[#allocation2 + $0x229] sm:$0xff] %v482_v22 }
 0x200   :  { %v354_v39 = vmul.f32 %v12688_v49, %v13357_v29 }
 0x201   :  { %v13867_v36 = vpop.f32.mrf.mxu3 }
 0x202   :  { %v419_v10 = vadd.f32 %v13371_v9, %v354_v39  ;;  %v1827_v39 = vld [vmem:[#allocation2 + $0x21a] sm:$0xff] }
 0x203   :  { %v2072_v25 = vpop.f32.mrf.mxu2 }
 0x204   :  { %v13877_v59 = vadd.f32 %v2072_v25, %v1679_v21  ;;  %v483_v49 = vmax.f32 %v419_v10, 0.0 }
 0x206   :  { %16617 = vst [vmem:[#allocation25_spill] sm:$0xff] %v13877_v59  ;;  %v1031_v63 = vpop.f32.mrf.mxu0  ;;  %2149 = vmatmul.bf16.gmra.mxu3 %v1940_v2  ;;  %v1840_v2 = vld [vmem:[#allocation2 + $0x2ba] sm:$0xff]  ;;  %v1413_v10 = vpack.c.bf16 %v483_v49, %v482_v22 }
 0x207   :  { %v1680_v17 = vadd.f32 %v1553_v42, %v1031_v63  ;;  %656 = vst [vmem:[#allocation2 + $0x231] sm:$0xff] %v483_v49  ;;  %v1560_v48 = vpop.f32.mrf.mxu1  ;;  %v12689_v63 = vld [vmem:[%s16525_s0 + $0x241] sm:$0xff] }
 0x208   :  { %2114 = vmatmul.bf16.gmra.mxu2 %v1933_v27  ;;  %v784_v27 = vld [vmem:[#allocation2 + $0x218] sm:$0xff]  ;;  %v355_v54 = vmul.f32 %v12689_v63, %v13357_v29  ;;  %v12480_v63 = vld [vmem:[%s16527_s2 + $0xd0] sm:$0xff] }
 0x209   :  { %1070 = vmatmul.bf16.gmra.mxu0 %v890_v51  ;;  %v13884_v21 = vpop.f32.mrf.mxu3  ;;  %v1941_v51 = vpack.c.bf16 %v1841_v26, %v1840_v2  ;;  %v891_v30 = vpack.c.bf16 %v784_v27, %v783_v35  ;;  %2538 = vmatpush.bf16.msrb.mxu3 %v12480_v63  ;;  %v12691_v63 = vld [vmem:[%s16525_s0 + $0x259] sm:$0xff] }
 0x20a   :  { %v420_v22 = vadd.f32 %v13371_v9, %v355_v54  ;;  %1602 = vmatmul.bf16.gmra.mxu1 %v1413_v10  ;;  %v1842_v10 = vld [vmem:[#allocation2 + $0x2d2] sm:$0xff]  ;;  %v1843_v54 = vld [vmem:[#allocation2 + $0x2da] sm:$0xff] }
 0x20b   :  { %v2075_v13 = vpop.f32.mrf.mxu2 }
 0x20c   :  { %v13886_v1 = vadd.f32 %v2075_v13, %v1680_v17  ;;  %v484_v15 = vmax.f32 %v420_v22, 0.0 }
 0x20e   :  { %16618 = vst [vmem:[#allocation26_spill] sm:$0xff] %v13886_v1  ;;  %v1033_v50 = vpop.f32.mrf.mxu0  ;;  %v786_v22 = vld [vmem:[#allocation2 + $0x230] sm:$0xff] }
 0x20f   :  { %v1681_v42 = vadd.f32 %v1555_v60, %v1033_v50  ;;  %v12690_v60 = vld [vmem:[%s16525_s0 + $0x249] sm:$0xff]  ;;  %v1934_v50 = vpack.c.bf16 %v1827_v39, %v1826_v46  ;;  %v1563_v1 = vpop.f32.mrf.mxu1  ;;  %657 = vst [vmem:[#allocation2 + $0x241] sm:$0xff] %v484_v15  ;;  %v12486_v46 = vld [vmem:[%s16527_s2 + $0x100] sm:$0xff] }
 0x210   :  { %v356_v17 = vmul.f32 %v12690_v60, %v13357_v29  ;;  %3062 = vmatpush.bf16.msrb.mxu0 %v12486_v46 }
 0x211   :  { %v13888_v25 = vpop.f32.mrf.mxu3 }
 0x212   :  { %v421_v49 = vadd.f32 %v13371_v9, %v356_v17  ;;  %v1828_v17 = vld [vmem:[#allocation2 + $0x22a] sm:$0xff] }
 0x213   :  { %v2077_v13 = vpop.f32.mrf.mxu2 }
 0x214   :  { %v13898_v59 = vadd.f32 %v2077_v13, %v1681_v42  ;;  %v485_v60 = vmax.f32 %v421_v49, 0.0  ;;  %v1942_v49 = vpack.c.bf16 %v1843_v54, %v1842_v10 }
 0x216   :  { %16619 = vst [vmem:[#allocation27_spill] sm:$0xff] %v13898_v59  ;;  %v1036_v2 = vpop.f32.mrf.mxu0  ;;  %2154 = vmatmul.bf16.gmra.mxu3 %v1941_v51 }
 0x217   :  { %v1682_v26 = vadd.f32 %v1558_v41, %v1036_v2  ;;  %658 = vst [vmem:[#allocation2 + $0x249] sm:$0xff] %v485_v60  ;;  %v1565_v41 = vpop.f32.mrf.mxu1  ;;  %v1414_v2 = vpack.c.bf16 %v485_v60, %v484_v15 }
 0x218   :  { %2119 = vmatmul.bf16.gmra.mxu2 %v1934_v50  ;;  %v785_v50 = vld [vmem:[#allocation2 + $0x228] sm:$0xff] }
 0x219   :  { %1075 = vmatmul.bf16.gmra.mxu0 %v891_v30  ;;  %v13905_v42 = vpop.f32.mrf.mxu3  ;;  %v1829_v30 = vld [vmem:[#allocation2 + $0x232] sm:$0xff]  ;;  %v892_v56 = vpack.c.bf16 %v786_v22, %v785_v50 }
 0x21a   :  { %1607 = vmatmul.bf16.gmra.mxu1 %v1414_v2 }
 0x21b   :  { %v2080_v39 = vpop.f32.mrf.mxu2 }
 0x21c   :  { %v13910_v35 = vadd.f32 %v2080_v39, %v1682_v26  ;;  %v357_v26 = vmul.f32 %v12691_v63, %v13357_v29  ;;  %v12479_v63 = vld [vmem:[%s16527_s2 + $0xc8] sm:$0xff] }
 0x21d   :  { %2539 = vmatpush.bf16.msrb.mxu3 %v12479_v63  ;;  %v12507_v63 = vld [vmem:[%s16527_s2 + $0x1a8] sm:$0xff] }
 0x21e   :  { %16620 = vst [vmem:[#allocation28_spill] sm:$0xff] %v13910_v35  ;;  %v1038_v27 = vpop.f32.mrf.mxu0  ;;  %v422_v15 = vadd.f32 %v13371_v9, %v357_v26  ;;  %v1845_v26 = vld [vmem:[#allocation2 + $0x2f2] sm:$0xff] }
 0x21f   :  { %v1683_v51 = vadd.f32 %v1560_v48, %v1038_v27  ;;  %v12692_v48 = vld [vmem:[%s16525_s0 + $0x261] sm:$0xff]  ;;  %v1935_v27 = vpack.c.bf16 %v1829_v30, %v1828_v17  ;;  %v1568_v35 = vpop.f32.mrf.mxu1  ;;  %v12509_v17 = vld [vmem:[%s16527_s2 + $0x1b8] sm:$0xff] }
 0x220   :  { %v358_v46 = vmul.f32 %v12692_v48, %v13357_v29  ;;  %v486_v34 = vmax.f32 %v422_v15, 0.0  ;;  %4100 = vmatpush.bf16.msrb.mxu2 %v12509_v17  ;;  %v1831_v15 = vld [vmem:[#allocation2 + $0x24a] sm:$0xff] }
 0x221   :  { %v13912_v13 = vpop.f32.mrf.mxu3 }
 0x222   :  { %v423_v60 = vadd.f32 %v13371_v9, %v358_v46  ;;  %659 = vst [vmem:[#allocation2 + $0x259] sm:$0xff] %v486_v34  ;;  %v12508_v46 = vld [vmem:[%s16527_s2 + $0x1b0] sm:$0xff] }
 0x223   :  { %v2082_v39 = vpop.f32.mrf.mxu2 }
 0x224   :  { %v13922_v59 = vadd.f32 %v2082_v39, %v1683_v51  ;;  %v487_v48 = vmax.f32 %v423_v60, 0.0  ;;  %v1830_v39 = vld [vmem:[#allocation2 + $0x242] sm:$0xff]  ;;  %4101 = vmatpush.bf16.msrb.mxu2 %v12508_v46 }
 0x225   :  { %v787_v60 = vld [vmem:[#allocation2 + $0x240] sm:$0xff] }
 0x226   :  { %16621 = vst [vmem:[#allocation29_spill] sm:$0xff] %v13922_v59  ;;  %v1041_v10 = vpop.f32.mrf.mxu0  ;;  %2159 = vmatmul.bf16.gmra.mxu3 %v1942_v49  ;;  %v1844_v49 = vld [vmem:[#allocation2 + $0x2ea] sm:$0xff]  ;;  %v1415_v17 = vpack.c.bf16 %v487_v48, %v486_v34  ;;  %v1936_v59 = vpack.c.bf16 %v1831_v15, %v1830_v39 }
 0x227   :  { %v1684_v54 = vadd.f32 %v1563_v1, %v1041_v10  ;;  %660 = vst [vmem:[#allocation2 + $0x261] sm:$0xff] %v487_v48  ;;  %v1570_v1 = vpop.f32.mrf.mxu1  ;;  %v788_v10 = vld [vmem:[#allocation2 + $0x248] sm:$0xff]  ;;  %v12506_v48 = vld [vmem:[%s16527_s2 + $0x1a0] sm:$0xff] }
 0x228   :  { %2124 = vmatmul.bf16.gmra.mxu2 %v1935_v27  ;;  %v893_v0 = vpack.c.bf16 %v788_v10, %v787_v60  ;;  %v12499_v34 = vld [vmem:[%s16527_s2 + $0x168] sm:$0xff]  ;;  %v12497_v10 = vld [vmem:[%s16527_s2 + $0x158] sm:$0xff] }
 0x229   :  { %1080 = vmatmul.bf16.gmra.mxu0 %v892_v56  ;;  %v13929_v51 = vpop.f32.mrf.mxu3  ;;  %v12501_v56 = vld [vmem:[%s16527_s2 + $0x178] sm:$0xff]  ;;  %4102 = vmatpush.bf16.msrb.mxu2 %v12507_v63  ;;  %v1847_v60 = vld [vmem:[#allocation2 + $0x30a] sm:$0xff] }
 0x22a   :  { %3577 = vmatpush.bf16.msrb.mxu1 %v12501_v56 }
 0x22b   :  { %v2085_v30 = vpop.f32.mrf.mxu2  ;;  %1612 = vmatmul.bf16.gmra.mxu1 %v1415_v17 }
 0x22c   :  { %v13934_v50 = vadd.f32 %v2085_v30, %v1684_v54  ;;  %v1943_v54 = vpack.c.bf16 %v1845_v26, %v1844_v49  ;;  %v12478_v26 = vld [vmem:[%s16527_s2 + $0xc0] sm:$0xff] }
 0x22d   :  { %2540 = vmatpush.bf16.msrb.mxu3 %v12478_v26  ;;  %4103 = vmatpush.bf16.msrb.mxu2 %v12506_v48 }
 0x22e   :  { %16622 = vst [vmem:[#allocation30_spill] sm:$0xff] %v13934_v50  ;;  %v1043_v22 = vpop.f32.mrf.mxu0  ;;  %v1833_v17 = vld [vmem:[#allocation2 + $0x262] sm:$0xff] }
 0x22f   :  { %v1685_v2 = vadd.f32 %v1565_v41, %v1043_v22  ;;  %v12500_v41 = vld [vmem:[%s16527_s2 + $0x170] sm:$0xff]  ;;  %v1573_v22 = vpop.f32.mrf.mxu1 }
 0x230   :  { %3578 = vmatpush.bf16.msrb.mxu1 %v12500_v41  ;;  %v1832_v41 = vld [vmem:[#allocation2 + $0x25a] sm:$0xff] }
 0x231   :  { %v13942_v27 = vpop.f32.mrf.mxu3 }
 0x233   :  { %v2087_v30 = vpop.f32.mrf.mxu2 }
 0x234   :  { %v13950_v50 = vadd.f32 %v2087_v30, %v1685_v2  ;;  %3579 = vmatpush.bf16.msrb.mxu1 %v12499_v34  ;;  %v789_v30 = vld [vmem:[#allocation2 + $0x258] sm:$0xff]  ;;  %v12503_v34 = vld [vmem:[%s16527_s2 + $0x188] sm:$0xff] }
 0x236   :  { %16623 = vst [vmem:[#allocation31_spill] sm:$0xff] %v13950_v50  ;;  %v1046_v16 = vpop.f32.mrf.mxu0  ;;  %2164 = vmatmul.bf16.gmra.mxu3 %v1943_v54  ;;  %v12504_v54 = vld [vmem:[%s16527_s2 + $0x190] sm:$0xff]  ;;  %v3876_v50 = vld [vmem:[#allocation2 + $0x38] sm:$0xff] }
 0x237   :  { %v1686_v49 = vadd.f32 %v1568_v35, %v1046_v16  ;;  %v12498_v16 = vld [vmem:[%s16527_s2 + $0x160] sm:$0xff]  ;;  %v12505_v35 = vld [vmem:[%s16527_s2 + $0x198] sm:$0xff]  ;;  %v1575_v46 = vpop.f32.mrf.mxu1 }
 0x238   :  { %2129 = vmatmul.bf16.gmra.mxu2 %v1936_v59  ;;  %3580 = vmatpush.bf16.msrb.mxu1 %v12498_v16 }
 0x239   :  { %1085 = vmatmul.bf16.gmra.mxu0 %v893_v0  ;;  %v13961_v2 = vpop.f32.mrf.mxu3  ;;  %v1846_v0 = vld [vmem:[#allocation2 + $0x302] sm:$0xff]  ;;  %4104 = vmatpush.bf16.msrb.mxu2 %v12505_v35 }
 0x23a   :  { %v1944_v26 = vpack.c.bf16 %v1847_v60, %v1846_v0  ;;  %v12517_v0 = vld [vmem:[%s16527_s2 + $0x1f8] sm:$0xff]  ;;  %v12495_v60 = vld [vmem:[%s16527_s2 + $0x148] sm:$0xff] }
 0x23b   :  { %v2090_v56 = vpop.f32.mrf.mxu2  ;;  %4622 = vmatpush.bf16.msra.mxu3 %v12517_v0  ;;  %v2830_v0 = vld [vmem:[#allocation2 + $0x19] sm:$0xff] }
 0x23c   :  { %v13969_v39 = vadd.f32 %v2090_v56, %v1686_v49  ;;  %v790_v49 = vld [vmem:[#allocation2 + $0x260] sm:$0xff]  ;;  %3581 = vmatpush.bf16.msrb.mxu1 %v12497_v10  ;;  %v1937_v56 = vpack.c.bf16 %v1833_v17, %v1832_v41 }
 0x23d   :  { %4105 = vmatpush.bf16.msrb.mxu2 %v12504_v54  ;;  %v3352_v41 = vld [vmem:[#allocation2 + $0x1a] sm:$0xff] }
 0x23e   :  { %16624 = vst [vmem:[#allocation32_spill] sm:$0xff] %v13969_v39  ;;  %v1048_v15 = vpop.f32.mrf.mxu0 }
 0x23f   :  { %v1687_v59 = vadd.f32 %v1570_v1, %v1048_v15  ;;  %v12496_v1 = vld [vmem:[%s16527_s2 + $0x150] sm:$0xff]  ;;  %v1578_v16 = vpop.f32.mrf.mxu1  ;;  %v894_v15 = vpack.c.bf16 %v790_v49, %v789_v30  ;;  %v3353_v49 = vld [vmem:[#allocation2 + $0x22] sm:$0xff] }
 0x240   :  { %3582 = vmatpush.bf16.msrb.mxu1 %v12496_v1  ;;  %v3480_v1 = vpack.c.bf16 %v3353_v49, %v3352_v41  ;;  %v3355_v49 = vld [vmem:[#allocation2 + $0x3a] sm:$0xff] }
 0x241   :  { %v13977_v63 = vpop.f32.mrf.mxu3  ;;  %4106 = vmatpush.bf16.msrb.mxu2 %v12503_v34 }
 0x243   :  { %v2092_v48 = vpop.f32.mrf.mxu2 }
 0x244   :  { %v13985_v35 = vadd.f32 %v2092_v48, %v1687_v59  ;;  %v12502_v59 = vld [vmem:[%s16527_s2 + $0x180] sm:$0xff]  ;;  %3583 = vmatpush.bf16.msrb.mxu1 %v12495_v60 }
 0x245   :  { %4107 = vmatpush.bf16.msrb.mxu2 %v12502_v59  ;;  %v2831_v59 = vld [vmem:[#allocation2 + $0x21] sm:$0xff] }
 0x246   :  { %16625 = vst [vmem:[#allocation33_spill] sm:$0xff] %v13985_v35  ;;  %v1051_v39 = vpop.f32.mrf.mxu0  ;;  %2169 = vmatmul.bf16.gmra.mxu3 %v1944_v26  ;;  %v3875_v35 = vld [vmem:[#allocation2 + $0x30] sm:$0xff] }
 0x247   :  { %v1688_v10 = vadd.f32 %v1573_v22, %v1051_v39  ;;  %v12494_v22 = vld [vmem:[%s16527_s2 + $0x140] sm:$0xff]  ;;  %v12525_v39 = vld [vmem:[%s16527_s2 + $0x238] sm:$0xff]  ;;  %v1580_v30 = vpop.f32.mrf.mxu1 }
 0x248   :  { %2134 = vmatmul.bf16.gmra.mxu2 %v1937_v56  ;;  %5144 = vmatpush.bf16.msra.mxu0 %v12525_v39  ;;  %v1848_v56 = vld [vmem:[#allocation2 + $0x31a] sm:$0xff]  ;;  %v4003_v39 = vpack.c.bf16 %v3876_v50, %v3875_v35  ;;  %v3878_v35 = vld [vmem:[#allocation2 + $0x50] sm:$0xff] }
 0x249   :  { %1090 = vmatmul.bf16.gmra.mxu0 %v894_v15  ;;  %v13996_v54 = vpop.f32.mrf.mxu3  ;;  %3584 = vmatpush.bf16.msrb.mxu1 %v12494_v22  ;;  %v1849_v15 = vld [vmem:[#allocation2 + $0x322] sm:$0xff] }
 0x24a   :  { %v1945_v52 = vpack.c.bf16 %v1849_v15, %v1848_v56 }
 0x24b   :  { %v2095_v17 = vpop.f32.mrf.mxu2 }
 0x24c   :  { %v14004_v26 = vadd.f32 %v2095_v17, %v1688_v10  ;;  %3585 = vmatmul.bf16.vlgmr.msrb.gmra.mxu1 %v3480_v1  ;;  %v2958_v10 = vpack.c.bf16 %v2831_v59, %v2830_v0  ;;  %v3354_v17 = vld [vmem:[#allocation2 + $0x32] sm:$0xff] }
 0x24d   :  { %v3481_v56 = vpack.c.bf16 %v3355_v49, %v3354_v17  ;;  %v2832_v0 = vld [vmem:[#allocation2 + $0x31] sm:$0xff] }
 0x24e   :  { %16626 = vst [vmem:[#allocation34_spill] sm:$0xff] %v14004_v26  ;;  %v1053_v34 = vpop.f32.mrf.mxu0 }
 0x24f   :  { %v1689_v48 = vadd.f32 %v1575_v46, %v1053_v34  ;;  %v1583_v38 = vpop.f32.mrf.mxu1 }
 0x251   :  { %v14006_v60 = vpop.f32.mrf.mxu3 }
 0x253   :  { %v2097_v18 = vpop.f32.mrf.mxu2 }
 0x254   :  { %v14008_v37 = vadd.f32 %v2097_v18, %v1689_v48  ;;  %v2308_v18 = vld [vmem:[#allocation2 + $0x18] sm:$0xff]  ;;  %v2309_v48 = vld [vmem:[#allocation2 + $0x20] sm:$0xff] }
 0x255   :  { %v2436_v59 = vpack.c.bf16 %v2309_v48, %v2308_v18 }
 0x256   :  { %16627 = vst [vmem:[#allocation35_spill] sm:$0xff] %v14008_v37  ;;  %v1056_v41 = vpop.f32.mrf.mxu0  ;;  %2174 = vmatmul.bf16.gmra.mxu3 %v1945_v52  ;;  %v2833_v52 = vld [vmem:[#allocation2 + $0x39] sm:$0xff] }
 0x257   :  { %v1690_v22 = vadd.f32 %v1578_v16, %v1056_v41  ;;  %v1585_v34 = vpop.f32.mrf.mxu1  ;;  %v3877_v16 = vld [vmem:[#allocation2 + $0x48] sm:$0xff]  ;;  %v2959_v29 = vpack.c.bf16 %v2833_v52, %v2832_v0 }
 0x258   :  { %4108 = vmatmul.bf16.vlgmr.msrb.gmra.mxu2 %v4003_v39 }
 0x259   :  { %3063 = vmatmul.bf16.vlgmr.msrb.gmra.mxu0 %v2958_v10  ;;  %v14010_v46 = vpop.f32.mrf.mxu3 }
 0x25b   :  { %v2100_v1 = vpop.f32.mrf.mxu2 }
 0x25c   :  { %v14012_v26 = vadd.f32 %v2100_v1, %v1690_v22  ;;  %3590 = vmatmul.bf16.gmra.mxu1 %v3481_v56  ;;  %v4004_v22 = vpack.c.bf16 %v3878_v35, %v3877_v16  ;;  %v2834_v16 = vld [vmem:[#allocation2 + $0x49] sm:$0xff] }
 0x25d   :  { %v3880_v35 = vld [vmem:[#allocation2 + $0x68] sm:$0xff] }
 0x25e   :  { %16628 = vst [vmem:[#allocation36_spill] sm:$0xff] %v14012_v26  ;;  %v1058_v15 = vpop.f32.mrf.mxu0  ;;  %v3357_v26 = vld [vmem:[#allocation2 + $0x52] sm:$0xff] }
 0x25f   :  { %v1691_v9 = vadd.f32 %v1580_v30, %v1058_v15  ;;  %v1588_v41 = vpop.f32.mrf.mxu1  ;;  %v1706_v30 = vadd.f32 %v13839_v20, %v13662_v4  ;;  %v3356_v15 = vld [vmem:[#allocation2 + $0x4a] sm:$0xff]  ;;  %v3879_v20 = vld [vmem:[#allocation2 + $0x60] sm:$0xff] }
 0x261   :  { %v14014_v50 = vpop.f32.mrf.mxu3 }
 0x263   :  { %v2102_v10 = vpop.f32.mrf.mxu2 }
 0x264   :  { %v14016_v37 = vadd.f32 %v2102_v10, %v1691_v9  ;;  %v3482_v9 = vpack.c.bf16 %v3357_v26, %v3356_v15 }
 0x266   :  { %v1061_v1 = vpop.f32.mrf.mxu0  ;;  %2541 = vmatmul.bf16.vlgmr.msrb.gmra.mxu3 %v2436_v59 }
 0x267   :  { %v1692_v17 = vadd.f32 %v1583_v38, %v1061_v1  ;;  %v1590_v48 = vpop.f32.mrf.mxu1  ;;  %v1707_v38 = vadd.f32 %v13846_v7, %v13666_v19  ;;  %v1708_v19 = vadd.f32 %v13863_v8, %v13684_v23  ;;  %v2837_v8 = vld [vmem:[#allocation2 + $0x69] sm:$0xff] }
 0x268   :  { %4113 = vmatmul.bf16.gmra.mxu2 %v4004_v22 }
 0x269   :  { %3068 = vmatmul.bf16.gmra.mxu0 %v2959_v29  ;;  %v2140_v49 = vpop.f32.mrf.mxu3  ;;  %v2835_v29 = vld [vmem:[#allocation2 + $0x51] sm:$0xff] }
 0x26a   :  { %v14020_v56 = vadd.f32 %v2140_v49, %v1706_v30  ;;  %v14030_v49 = vpack.c.bf16 %v3880_v35, %v3879_v20  ;;  %v3881_v20 = vld [vmem:[#allocation2 + $0x78] sm:$0xff]  ;;  %v3882_v35 = vld [vmem:[#allocation2 + $0x80] sm:$0xff] }
 0x26b   :  { %v2105_v18 = vpop.f32.mrf.mxu2 }
 0x26c   :  { %v14022_v45 = vadd.f32 %v2105_v18, %v1692_v17  ;;  %3595 = vmatmul.bf16.gmra.mxu1 %v3482_v9  ;;  %v2960_v17 = vpack.c.bf16 %v2835_v29, %v2834_v16  ;;  %v3358_v18 = vld [vmem:[#allocation2 + $0x62] sm:$0xff]  ;;  %v3359_v9 = vld [vmem:[#allocation2 + $0x6a] sm:$0xff] }
 0x26d   :  { %v3483_v16 = vpack.c.bf16 %v3359_v9, %v3358_v18 }
 0x26e   :  { %v1063_v0 = vpop.f32.mrf.mxu0 }
 0x26f   :  { %v1693_v52 = vadd.f32 %v1585_v34, %v1063_v0  ;;  %v1593_v1 = vpop.f32.mrf.mxu1 }
 0x271   :  { %v2142_v4 = vpop.f32.mrf.mxu3 }
 0x272   :  { %v14026_v59 = vadd.f32 %v2142_v4, %v1707_v38 }
 0x273   :  { %v2107_v10 = vpop.f32.mrf.mxu2 }
 0x274   :  { %v14028_v30 = vadd.f32 %v2107_v10, %v1693_v52 }
 0x276   :  { %v1066_v26 = vpop.f32.mrf.mxu0  ;;  %2546 = vmatmul.bf16.gmra.mxu3 %v4003_v39  ;;  %v1709_v39 = vadd.f32 %v13867_v36, %v13688_v3  ;;  %v12516_v3 = vld [vmem:[%s16527_s2 + $0x1f0] sm:$0xff]  ;;  %v1710_v36 = vadd.f32 %v13884_v21, %v13706_v43  ;;  %v1711_v21 = vadd.f32 %v13888_v25, %v13713_v14  ;;  %v1712_v14 = vadd.f32 %v13905_v42, %v13731_v47  ;;  %v2841_v42 = vld [vmem:[#allocation2 + $0x99] sm:$0xff] }
 0x277   :  { %v1694_v34 = vadd.f32 %v1588_v41, %v1066_v26  ;;  %v1595_v52 = vpop.f32.mrf.mxu1  ;;  %v2836_v41 = vld [vmem:[#allocation2 + $0x61] sm:$0xff]  ;;  %4623 = vmatpush.bf16.msra.mxu3 %v12516_v3 }
 0x278   :  { %4118 = vmatmul.bf16.gmra.mxu2 %v14030_v49 }
 0x279   :  { %3073 = vmatmul.bf16.gmra.mxu0 %v2960_v17  ;;  %v2145_v7 = vpop.f32.mrf.mxu3 }
 0x27a   :  { %v14035_v15 = vadd.f32 %v2145_v7, %v1708_v19  ;;  %v4006_v7 = vpack.c.bf16 %v3882_v35, %v3881_v20  ;;  %v2839_v35 = vld [vmem:[#allocation2 + $0x81] sm:$0xff] }
 0x27b   :  { %v2110_v0 = vpop.f32.mrf.mxu2 }
 0x27c   :  { %v14037_v38 = vadd.f32 %v2110_v0, %v1694_v34  ;;  %3600 = vmatmul.bf16.gmra.mxu1 %v3483_v16  ;;  %v2961_v34 = vpack.c.bf16 %v2837_v8, %v2836_v41  ;;  %v12524_v16 = vld [vmem:[%s16527_s2 + $0x230] sm:$0xff]  ;;  %v2838_v8 = vld [vmem:[#allocation2 + $0x79] sm:$0xff] }
 0x27d   :  { %5145 = vmatpush.bf16.msra.mxu0 %v12524_v16 }
 0x27e   :  { %v1068_v4 = vpop.f32.mrf.mxu0 }
 0x27f   :  { %v1695_v29 = vadd.f32 %v1590_v48, %v1068_v4  ;;  %v1598_v26 = vpop.f32.mrf.mxu1  ;;  %v3360_v4 = vld [vmem:[#allocation2 + $0x7a] sm:$0xff] }
 0x281   :  { %v2147_v23 = vpop.f32.mrf.mxu3 }
 0x282   :  { %v14041_v10 = vadd.f32 %v2147_v23, %v1709_v39 }
 0x283   :  { %v2112_v17 = vpop.f32.mrf.mxu2 }
 0x284   :  { %v14043_v19 = vadd.f32 %v2112_v17, %v1695_v29  ;;  %v3883_v17 = vld [vmem:[#allocation2 + $0x90] sm:$0xff] }
 0x286   :  { %v1071_v18 = vpop.f32.mrf.mxu0  ;;  %2551 = vmatmul.bf16.gmra.mxu3 %v4004_v22  ;;  %v3361_v22 = vld [vmem:[#allocation2 + $0x82] sm:$0xff] }
 0x287   :  { %v1696_v48 = vadd.f32 %v1593_v1, %v1071_v18  ;;  %v1600_v29 = vpop.f32.mrf.mxu1  ;;  %v3484_v41 = vpack.c.bf16 %v3361_v22, %v3360_v4 }
 0x288   :  { %4123 = vmatmul.bf16.gmra.mxu2 %v4006_v7 }
 0x289   :  { %3078 = vmatmul.bf16.gmra.mxu0 %v2961_v34  ;;  %v2150_v9 = vpop.f32.mrf.mxu3  ;;  %v3884_v34 = vld [vmem:[#allocation2 + $0x98] sm:$0xff] }
 0x28a   :  { %v14050_v0 = vadd.f32 %v2150_v9, %v1710_v36  ;;  %v4007_v16 = vpack.c.bf16 %v3884_v34, %v3883_v17  ;;  %v3885_v17 = vld [vmem:[#allocation2 + $0xa8] sm:$0xff]  ;;  %v3886_v34 = vld [vmem:[#allocation2 + $0xb0] sm:$0xff] }
 0x28b   :  { %v2115_v1 = vpop.f32.mrf.mxu2 }
 0x28c   :  { %v14055_v39 = vadd.f32 %v2115_v1, %v1696_v48  ;;  %3605 = vmatmul.bf16.gmra.mxu1 %v3484_v41  ;;  %v2962_v48 = vpack.c.bf16 %v2839_v35, %v2838_v8  ;;  %v3362_v1 = vld [vmem:[#allocation2 + $0x92] sm:$0xff]  ;;  %v3363_v41 = vld [vmem:[#allocation2 + $0x9a] sm:$0xff] }
 0x28e   :  { %v1073_v23 = vpop.f32.mrf.mxu0 }
 0x28f   :  { %v1697_v43 = vadd.f32 %v1595_v52, %v1073_v23  ;;  %v1603_v36 = vpop.f32.mrf.mxu1 }
 0x291   :  { %v2152_v20 = vpop.f32.mrf.mxu3 }
 0x292   :  { %v14059_v18 = vadd.f32 %v2152_v20, %v1711_v21 }
 0x293   :  { %v2117_v3 = vpop.f32.mrf.mxu2 }
 0x294   :  { %v14061_v9 = vadd.f32 %v2117_v3, %v1697_v43  ;;  %v3485_v43 = vpack.c.bf16 %v3363_v41, %v3362_v1 }
 0x296   :  { %v1076_v4 = vpop.f32.mrf.mxu0  ;;  %2556 = vmatmul.bf16.gmra.mxu3 %v14030_v49  ;;  %v1713_v49 = vadd.f32 %v13912_v13, %v13735_v61  ;;  %v1714_v61 = vadd.f32 %v13929_v51, %v13753_v40  ;;  %v2843_v40 = vld [vmem:[#allocation2 + $0xb1] sm:$0xff] }
 0x297   :  { %v1698_v52 = vadd.f32 %v1598_v26, %v1076_v4  ;;  %v1605_v20 = vpop.f32.mrf.mxu1  ;;  %v2840_v26 = vld [vmem:[#allocation2 + $0x91] sm:$0xff] }
 0x298   :  { %4128 = vmatmul.bf16.gmra.mxu2 %v4007_v16 }
 0x299   :  { %3083 = vmatmul.bf16.gmra.mxu0 %v2962_v48  ;;  %v2155_v25 = vpop.f32.mrf.mxu3 }
 0x29a   :  { %v14066_v22 = vadd.f32 %v2155_v25, %v1712_v14  ;;  %v4008_v14 = vpack.c.bf16 %v3886_v34, %v3885_v17  ;;  %v3887_v17 = vld [vmem:[#allocation2 + $0xc0] sm:$0xff]  ;;  %v3888_v34 = vld [vmem:[#allocation2 + $0xc8] sm:$0xff] }
 0x29b   :  { %v2120_v23 = vpop.f32.mrf.mxu2 }
 0x29c   :  { %v14068_v21 = vadd.f32 %v2120_v23, %v1698_v52  ;;  %3610 = vmatmul.bf16.gmra.mxu1 %v3485_v43  ;;  %v2963_v52 = vpack.c.bf16 %v2841_v42, %v2840_v26  ;;  %v3364_v23 = vld [vmem:[#allocation2 + $0xaa] sm:$0xff]  ;;  %v3365_v43 = vld [vmem:[#allocation2 + $0xb2] sm:$0xff] }
 0x29e   :  { %v1078_v8 = vpop.f32.mrf.mxu0 }
 0x29f   :  { %v1699_v35 = vadd.f32 %v1600_v29, %v1078_v8  ;;  %v1608_v29 = vpop.f32.mrf.mxu1 }
 0x2a1   :  { %v2157_v47 = vpop.f32.mrf.mxu3 }
 0x2a2   :  { %v14072_v3 = vadd.f32 %v2157_v47, %v1713_v49 }
 0x2a3   :  { %v2122_v48 = vpop.f32.mrf.mxu2 }
 0x2a4   :  { %v14074_v4 = vadd.f32 %v2122_v48, %v1699_v35  ;;  %v3486_v35 = vpack.c.bf16 %v3365_v43, %v3364_v23  ;;  %v3366_v43 = vld [vmem:[#allocation2 + $0xc2] sm:$0xff] }
 0x2a6   :  { %v1081_v25 = vpop.f32.mrf.mxu0  ;;  %2561 = vmatmul.bf16.gmra.mxu3 %v4006_v7  ;;  %v1715_v7 = vadd.f32 %v13942_v27, %v13757_v31  ;;  %v1716_v31 = vadd.f32 %v13961_v2, %v13765_v6  ;;  %v2845_v2 = vld [vmem:[#allocation2 + $0xc9] sm:$0xff] }
 0x2a7   :  { %v1700_v1 = vadd.f32 %v1603_v36, %v1081_v25  ;;  %v2842_v36 = vld [vmem:[#allocation2 + $0xa9] sm:$0xff]  ;;  %v1610_v51 = vpop.f32.mrf.mxu1 }
 0x2a8   :  { %4133 = vmatmul.bf16.gmra.mxu2 %v4008_v14 }
 0x2a9   :  { %3088 = vmatmul.bf16.gmra.mxu0 %v2963_v52  ;;  %v2160_v13 = vpop.f32.mrf.mxu3 }
 0x2aa   :  { %v14078_v41 = vadd.f32 %v2160_v13, %v1714_v61  ;;  %v14088_v61 = vpack.c.bf16 %v3888_v34, %v3887_v17  ;;  %v3890_v17 = vld [vmem:[#allocation2 + $0xe0] sm:$0xff] }
 0x2ab   :  { %v2125_v8 = vpop.f32.mrf.mxu2 }
 0x2ac   :  { %v14080_v49 = vadd.f32 %v2125_v8, %v1700_v1  ;;  %3615 = vmatmul.bf16.gmra.mxu1 %v3486_v35  ;;  %v2964_v1 = vpack.c.bf16 %v2843_v40, %v2842_v36  ;;  %v3367_v8 = vld [vmem:[#allocation2 + $0xca] sm:$0xff]  ;;  %v3889_v40 = vld [vmem:[#allocation2 + $0xd8] sm:$0xff] }
 0x2ae   :  { %v1083_v26 = vpop.f32.mrf.mxu0 }
 0x2af   :  { %v1701_v47 = vadd.f32 %v1605_v20, %v1083_v26  ;;  %v1613_v26 = vpop.f32.mrf.mxu1 }
 0x2b1   :  { %v2162_v42 = vpop.f32.mrf.mxu3 }
 0x2b2   :  { %v14084_v48 = vadd.f32 %v2162_v42, %v1715_v7  ;;  %v3487_v7 = vpack.c.bf16 %v3367_v8, %v3366_v43 }
 0x2b3   :  { %v2127_v52 = vpop.f32.mrf.mxu2 }
 0x2b4   :  { %v14086_v25 = vadd.f32 %v2127_v52, %v1701_v47 }
 0x2b6   :  { %v1086_v13 = vpop.f32.mrf.mxu0  ;;  %2566 = vmatmul.bf16.gmra.mxu3 %v4007_v16  ;;  %v1717_v16 = vadd.f32 %v13977_v63, %v13772_v32  ;;  %v12515_v32 = vld [vmem:[%s16527_s2 + $0x1e8] sm:$0xff]  ;;  %v1718_v63 = vadd.f32 %v13996_v54, %v13793_v57  ;;  %v1719_v57 = vadd.f32 %v14006_v60, %v13797_v11  ;;  %v2846_v54 = vld [vmem:[#allocation2 + $0xd9] sm:$0xff]  ;;  %v1720_v11 = vadd.f32 %v14010_v46, %v13818_v5  ;;  %v3894_v5 = vld [vmem:[#allocation2 + $0x110] sm:$0xff] }
 0x2b7   :  { %v1702_v20 = vadd.f32 %v1608_v29, %v1086_v13  ;;  %v2844_v29 = vld [vmem:[#allocation2 + $0xc1] sm:$0xff]  ;;  %4624 = vmatpush.bf16.msra.mxu3 %v12515_v32 }
 0x2b8   :  { %4138 = vmatmul.bf16.gmra.mxu2 %v14088_v61  ;;  %v2965_v13 = vpack.c.bf16 %v2845_v2, %v2844_v29  ;;  %v12523_v29 = vld [vmem:[%s16527_s2 + $0x228] sm:$0xff] }
 0x2b9   :  { %3093 = vmatmul.bf16.gmra.mxu0 %v2964_v1  ;;  %v2165_v27 = vpop.f32.mrf.mxu3 }
 0x2ba   :  { %v14093_v23 = vadd.f32 %v2165_v27, %v1716_v31  ;;  %v1615_v27 = vpop.f32.mrf.mxu1  ;;  %5146 = vmatpush.bf16.msra.mxu0 %v12523_v29  ;;  %v3370_v29 = vld [vmem:[#allocation2 + $0xf2] sm:$0xff] }
 0x2bb   :  { %v2130_v35 = vpop.f32.mrf.mxu2 }
 0x2bc   :  { %v14095_v47 = vadd.f32 %v2130_v35, %v1702_v20  ;;  %3620 = vmatmul.bf16.gmra.mxu1 %v3487_v7  ;;  %v4010_v20 = vpack.c.bf16 %v3890_v17, %v3889_v40  ;;  %v2847_v40 = vld [vmem:[#allocation2 + $0xe1] sm:$0xff]  ;;  %v3891_v17 = vld [vmem:[#allocation2 + $0xf0] sm:$0xff] }
 0x2be   :  { %v1088_v36 = vpop.f32.mrf.mxu0 }
 0x2bf   :  { %v1703_v42 = vadd.f32 %v1610_v51, %v1088_v36 }
 0x2c1   :  { %v2167_v6 = vpop.f32.mrf.mxu3 }
 0x2c2   :  { %v14099_v34 = vadd.f32 %v2167_v6, %v1717_v16 }
 0x2c3   :  { %v2132_v52 = vpop.f32.mrf.mxu2 }
 0x2c4   :  { %16629 = vst [vmem:[#allocation37_spill] sm:$0xff] %v14099_v34  ;;  %v14101_v1 = vadd.f32 %v2132_v52, %v1703_v42  ;;  %v3892_v52 = vld [vmem:[#allocation2 + $0xf8] sm:$0xff] }
 0x2c5   :  { %v4011_v32 = vpack.c.bf16 %v3892_v52, %v3891_v17 }
 0x2c6   :  { %v1091_v31 = vpop.f32.mrf.mxu0  ;;  %2571 = vmatmul.bf16.gmra.mxu3 %v4008_v14  ;;  %v3368_v14 = vld [vmem:[#allocation2 + $0xda] sm:$0xff] }
 0x2c7   :  { %v1704_v51 = vadd.f32 %v1613_v26, %v1091_v31  ;;  %v3369_v26 = vld [vmem:[#allocation2 + $0xe2] sm:$0xff] }
 0x2c8   :  { %4143 = vmatmul.bf16.gmra.mxu2 %v4010_v20  ;;  %v3488_v6 = vpack.c.bf16 %v3369_v26, %v3368_v14 }
 0x2c9   :  { %3098 = vmatmul.bf16.gmra.mxu0 %v2965_v13  ;;  %v2170_v43 = vpop.f32.mrf.mxu3  ;;  %v3586_v42 = vpop.f32.mrf.mxu1 }
 0x2ca   :  { %v14108_v8 = vadd.f32 %v2170_v43, %v1718_v63 }
 0x2cb   :  { %v2135_v35 = vpop.f32.mrf.mxu2 }
 0x2cc   :  { %16630 = vst [vmem:[#allocation38_spill] sm:$0xff] %v14108_v8  ;;  %v14110_v7 = vadd.f32 %v2135_v35, %v1704_v51  ;;  %3625 = vmatmul.bf16.gmra.mxu1 %v3488_v6 }
 0x2ce   :  { %v1093_v36 = vpop.f32.mrf.mxu0 }
 0x2cf   :  { %v1705_v16 = vadd.f32 %v1615_v27, %v1093_v36  ;;  %v2966_v27 = vpack.c.bf16 %v2847_v40, %v2846_v54  ;;  %v2848_v54 = vld [vmem:[#allocation2 + $0xf1] sm:$0xff]  ;;  %v3893_v40 = vld [vmem:[#allocation2 + $0x108] sm:$0xff] }
 0x2d1   :  { %v2172_v2 = vpop.f32.mrf.mxu3  ;;  %v3588_v43 = vpop.f32.mrf.mxu1 }
 0x2d2   :  { %v14117_v13 = vadd.f32 %v2172_v2, %v1719_v57  ;;  %v1721_v57 = vadd.f32 %v14014_v50, %v13822_v58  ;;  %v2849_v2 = vld [vmem:[#allocation2 + $0xf9] sm:$0xff]  ;;  %v1659_v50 = vadd.f32 %v13629_v44, %v13644_v24 }
 0x2d3   :  { %v2137_v31 = vpop.f32.mrf.mxu2  ;;  %v2967_v52 = vpack.c.bf16 %v2849_v2, %v2848_v54 }
 0x2d4   :  { %16631 = vst [vmem:[#allocation39_spill] sm:$0xff] %v14117_v13  ;;  %v14119_v51 = vadd.f32 %v2137_v31, %v1705_v16  ;;  %v3371_v16 = vld [vmem:[#allocation2 + $0xfa] sm:$0xff]  ;;  %v4012_v31 = vpack.c.bf16 %v3894_v5, %v3893_v40  ;;  %v2181_v40 = vadd.f32 %v13646_v28, %v1659_v50  ;;  %v2850_v5 = vld [vmem:[#allocation2 + $0x109] sm:$0xff] }
 0x2d5   :  { %v3489_v6 = vpack.c.bf16 %v3371_v16, %v3370_v29 }
 0x2d6   :  { %v3064_v63 = vpop.f32.mrf.mxu0  ;;  %2576 = vmatmul.bf16.gmra.mxu3 %v14088_v61 }
 0x2d8   :  { %4148 = vmatmul.bf16.gmra.mxu2 %v4011_v32 }
 0x2d9   :  { %3103 = vmatmul.bf16.gmra.mxu0 %v2966_v27  ;;  %v2175_v60 = vpop.f32.mrf.mxu3  ;;  %v3591_v26 = vpop.f32.mrf.mxu1 }
 0x2da   :  { %v14124_v35 = vadd.f32 %v2175_v60, %v1720_v11 }
 0x2db   :  { %v4109_v36 = vpop.f32.mrf.mxu2 }
 0x2dc   :  { %16632 = vst [vmem:[#allocation40_spill] sm:$0xff] %v14124_v35  ;;  %3630 = vmatmul.bf16.gmra.mxu1 %v3489_v6 }
 0x2de   :  { %v3066_v14 = vpop.f32.mrf.mxu0 }
 0x2e1   :  { %v2177_v61 = vpop.f32.mrf.mxu3  ;;  %v3593_v11 = vpop.f32.mrf.mxu1 }
 0x2e2   :  { %v14128_v46 = vadd.f32 %v2177_v61, %v1721_v57  ;;  %v3372_v57 = vld [vmem:[#allocation2 + $0x10a] sm:$0xff]  ;;  %v3373_v61 = vld [vmem:[#allocation2 + $0x112] sm:$0xff] }
 0x2e3   :  { %v4111_v17 = vpop.f32.mrf.mxu2  ;;  %v3490_v2 = vpack.c.bf16 %v3373_v61, %v3372_v57 }
 0x2e4   :  { %16633 = vst [vmem:[#allocation41_spill] sm:$0xff] %v14128_v46  ;;  %v3896_v46 = vld [vmem:[#allocation2 + $0x128] sm:$0xff] }
 0x2e6   :  { %v3069_v27 = vpop.f32.mrf.mxu0  ;;  %2581 = vmatmul.bf16.gmra.mxu3 %v4010_v20 }
 0x2e8   :  { %4153 = vmatmul.bf16.gmra.mxu2 %v4012_v31 }
 0x2e9   :  { %3108 = vmatmul.bf16.gmra.mxu0 %v2967_v52  ;;  %v2542_v60 = vpop.f32.mrf.mxu3  ;;  %v14133_v35 = vpop.f32.mrf.mxu1 }
 0x2ea   :  { %v2702_v29 = vadd.f32 %v2542_v60, %v13627_v33  ;;  %v2851_v33 = vld [vmem:[#allocation2 + $0x111] sm:$0xff]  ;;  %v3895_v60 = vld [vmem:[#allocation2 + $0x120] sm:$0xff] }
 0x2eb   :  { %v4114_v58 = vpop.f32.mrf.mxu2 }
 0x2ec   :  { %v3224_v16 = vadd.f32 %v3064_v63, %v2702_v29  ;;  %3635 = vmatmul.bf16.gmra.mxu1 %v3490_v2  ;;  %v2968_v63 = vpack.c.bf16 %v2851_v33, %v2850_v5  ;;  %v14138_v29 = vpack.c.bf16 %v3896_v46, %v3895_v60  ;;  %v3375_v46 = vld [vmem:[#allocation2 + $0x12a] sm:$0xff]  ;;  %v3897_v5 = vld [vmem:[#allocation2 + $0x138] sm:$0xff] }
 0x2ee   :  { %v3071_v6 = vpop.f32.mrf.mxu0  ;;  %v3746_v54 = vadd.f32 %v3586_v42, %v3224_v16 }
 0x2f0   :  { %v14136_v20 = vadd.f32 %v4109_v36, %v3746_v54 }
 0x2f1   :  { %v2544_v52 = vpop.f32.mrf.mxu3  ;;  %v14140_v34 = vpop.f32.mrf.mxu1 }
 0x2f2   :  { %v2703_v13 = vadd.f32 %v2544_v52, %v2181_v40  ;;  %v3898_v52 = vld [vmem:[#allocation2 + $0x140] sm:$0xff] }
 0x2f3   :  { %v4116_v44 = vpop.f32.mrf.mxu2 }
 0x2f4   :  { %v3225_v24 = vadd.f32 %v3066_v14, %v2703_v13  ;;  %v3374_v14 = vld [vmem:[#allocation2 + $0x122] sm:$0xff] }
 0x2f5   :  { %v3491_v2 = vpack.c.bf16 %v3375_v46, %v3374_v14 }
 0x2f6   :  { %v3074_v8 = vpop.f32.mrf.mxu0  ;;  %v3747_v42 = vadd.f32 %v3588_v43, %v3225_v24  ;;  %2586 = vmatmul.bf16.gmra.mxu3 %v4011_v32  ;;  %v2852_v32 = vld [vmem:[#allocation2 + $0x121] sm:$0xff]  ;;  %v14151_v24 = vpack.c.bf16 %v3898_v52, %v3897_v5  ;;  %v3900_v5 = vld [vmem:[#allocation2 + $0x158] sm:$0xff] }
 0x2f8   :  { %v14142_v28 = vadd.f32 %v4111_v17, %v3747_v42  ;;  %4158 = vmatmul.bf16.gmra.mxu2 %v14138_v29  ;;  %v2853_v17 = vld [vmem:[#allocation2 + $0x129] sm:$0xff] }
 0x2f9   :  { %3113 = vmatmul.bf16.gmra.mxu0 %v2968_v63  ;;  %v2547_v36 = vpop.f32.mrf.mxu3  ;;  %v14146_v13 = vpop.f32.mrf.mxu1 }
 0x2fa   :  { %v2704_v50 = vadd.f32 %v2547_v36, %v13664_v12 }
 0x2fb   :  { %v4119_v16 = vpop.f32.mrf.mxu2 }
 0x2fc   :  { %v3226_v57 = vadd.f32 %v3069_v27, %v2704_v50  ;;  %3640 = vmatmul.bf16.gmra.mxu1 %v3491_v2  ;;  %v2969_v27 = vpack.c.bf16 %v2853_v17, %v2852_v32  ;;  %v2855_v17 = vld [vmem:[#allocation2 + $0x141] sm:$0xff] }
 0x2fe   :  { %v3076_v61 = vpop.f32.mrf.mxu0  ;;  %v3748_v54 = vadd.f32 %v3591_v26, %v3226_v57 }
 0x300   :  { %v14148_v40 = vadd.f32 %v4114_v58, %v3748_v54  ;;  %v12514_v58 = vld [vmem:[%s16527_s2 + $0x1e0] sm:$0xff] }
 0x301   :  { %v2549_v43 = vpop.f32.mrf.mxu3  ;;  %v14153_v42 = vpop.f32.mrf.mxu1  ;;  %4625 = vmatpush.bf16.msra.mxu3 %v12514_v58 }
 0x302   :  { %16634 = vst [vmem:[#allocation42_spill] sm:$0xff] %v14148_v40  ;;  %v2705_v33 = vadd.f32 %v2549_v43, %v13680_v53  ;;  %v2854_v43 = vld [vmem:[#allocation2 + $0x139] sm:$0xff] }
 0x303   :  { %v4121_v12 = vpop.f32.mrf.mxu2 }
 0x304   :  { %v3227_v60 = vadd.f32 %v3071_v6, %v2705_v33 }
 0x306   :  { %v3079_v63 = vpop.f32.mrf.mxu0  ;;  %v3749_v26 = vadd.f32 %v3593_v11, %v3227_v60  ;;  %2591 = vmatmul.bf16.gmra.mxu3 %v4012_v31  ;;  %v3376_v11 = vld [vmem:[#allocation2 + $0x13a] sm:$0xff]  ;;  %v3377_v31 = vld [vmem:[#allocation2 + $0x142] sm:$0xff] }
 0x307   :  { %v3492_v2 = vpack.c.bf16 %v3377_v31, %v3376_v11  ;;  %v12693_v31 = vld [vmem:[%s16525_s0 + $0x181] sm:$0xff] }
 0x308   :  { %v14158_v36 = vadd.f32 %v4116_v44, %v3749_v26  ;;  %4163 = vmatmul.bf16.gmra.mxu2 %v14151_v24  ;;  %v12522_v44 = vld [vmem:[%s16527_s2 + $0x220] sm:$0xff] }
 0x309   :  { %3118 = vmatmul.bf16.gmra.mxu0 %v2969_v27  ;;  %v2552_v53 = vpop.f32.mrf.mxu3  ;;  %v14162_v46 = vpop.f32.mrf.mxu1  ;;  %v2970_v27 = vpack.c.bf16 %v2855_v17, %v2854_v43  ;;  %v3378_v43 = vld [vmem:[#allocation2 + $0x152] sm:$0xff] }
 0x30a   :  { %16635 = vst [vmem:[#allocation43_spill] sm:$0xff] %v14158_v36  ;;  %v2706_v6 = vadd.f32 %v2552_v53, %v13686_v55  ;;  %5147 = vmatpush.bf16.msra.mxu0 %v12522_v44 }
 0x30b   :  { %v4124_v50 = vpop.f32.mrf.mxu2 }
 0x30c   :  { %v3228_v57 = vadd.f32 %v3074_v8, %v2706_v6  ;;  %3645 = vmatmul.bf16.gmra.mxu1 %v3492_v2  ;;  %v3899_v8 = vld [vmem:[#allocation2 + $0x150] sm:$0xff] }
 0x30e   :  { %v3081_v14 = vpop.f32.mrf.mxu0  ;;  %v3750_v54 = vadd.f32 %v14133_v35, %v3228_v57  ;;  %v14171_v35 = vpack.c.bf16 %v3900_v5, %v3899_v8  ;;  %v16638_v57 = vld [vmem:[#allocation10_spill] sm:$0xff]  ;;  %v16640_v8 = vld [vmem:[#allocation9_spill] sm:$0xff] }
 0x310   :  { %v14168_v32 = vadd.f32 %v4119_v16, %v3750_v54  ;;  %v16639_v54 = vld [vmem:[#allocation8_spill] sm:$0xff] }
 0x311   :  { %v2554_v55 = vpop.f32.mrf.mxu3  ;;  %v14173_v58 = vpop.f32.mrf.mxu1  ;;  %v343_v44 = vmul.f32 %v12693_v31, %v16639_v54  ;;  %v3901_v31 = vld [vmem:[#allocation2 + $0x168] sm:$0xff] }
 0x312   :  { %16636 = vst [vmem:[#allocation44_spill] sm:$0xff] %v14168_v32  ;;  %v2707_v52 = vadd.f32 %v2554_v55, %v13702_v62  ;;  %v3379_v55 = vld [vmem:[#allocation2 + $0x15a] sm:$0xff] }
 0x313   :  { %v4126_v33 = vpop.f32.mrf.mxu2  ;;  %v14193_v5 = vadd.f32 %v16640_v8, %v343_v44 }
 0x314   :  { %v3229_v60 = vadd.f32 %v3076_v61, %v2707_v52 }
 0x316   :  { %v3084_v26 = vpop.f32.mrf.mxu0  ;;  %v3751_v16 = vadd.f32 %v14140_v34, %v3229_v60  ;;  %2596 = vmatmul.bf16.gmra.mxu3 %v14138_v29  ;;  %v12694_v34 = vld [vmem:[%s16525_s0 + $0x189] sm:$0xff] }
 0x317   :  { %v344_v29 = vmul.f32 %v12694_v34, %v16639_v54  ;;  %v3902_v34 = vld [vmem:[#allocation2 + $0x170] sm:$0xff] }
 0x318   :  { %v14177_v53 = vadd.f32 %v4121_v12, %v3751_v16  ;;  %4168 = vmatmul.bf16.gmra.mxu2 %v14171_v35  ;;  %v16536_v16 = vmax.f32 %v14193_v5, 0.0 }
 0x319   :  { %3123 = vmatmul.bf16.gmra.mxu0 %v2970_v27  ;;  %v2557_v6 = vpop.f32.mrf.mxu3  ;;  %v14189_v2 = vpop.f32.mrf.mxu1  ;;  %v14196_v52 = vadd.f32 %v16640_v8, %v344_v29  ;;  %v2856_v27 = vld [vmem:[#allocation2 + $0x151] sm:$0xff] }
 0x31a   :  { %16637 = vst [vmem:[#allocation45_spill] sm:$0xff] %v14177_v53  ;;  %v2708_v62 = vadd.f32 %v2557_v6, %v16638_v57 }
 0x31b   :  { %v4129_v11 = vpop.f32.mrf.mxu2  ;;  %v16537_v6 = vmax.f32 %v14196_v52, 0.0  ;;  %645 = vst [vmem:[#allocation2 + $0x181] sm:$0xff] %v16536_v16 }
 0x31c   :  { %v3230_v61 = vadd.f32 %v3079_v63, %v2708_v62  ;;  %v3493_v63 = vpack.c.bf16 %v3379_v55, %v3378_v43  ;;  %v2857_v62 = vld [vmem:[#allocation2 + $0x159] sm:$0xff]  ;;  %v4016_v43 = vpack.c.bf16 %v3902_v34, %v3901_v31 }
 0x31d   :  { %646 = vst [vmem:[#allocation2 + $0x189] sm:$0xff] %v16537_v6  ;;  %v2971_v29 = vpack.c.bf16 %v2857_v62, %v2856_v27  ;;  %v3381_v27 = vld [vmem:[#allocation2 + $0x172] sm:$0xff] }
 0x31e   :  { %v3086_v12 = vpop.f32.mrf.mxu0  ;;  %v3752_v17 = vadd.f32 %v14146_v13, %v3230_v61  ;;  %3650 = vmatmul.bf16.gmra.mxu1 %v3493_v63  ;;  %v16642_v13 = vld [vmem:[#allocation11_spill] sm:$0xff] }
 0x320   :  { %v14198_v60 = vadd.f32 %v4124_v50, %v3752_v17 }
 0x321   :  { %v2559_v57 = vpop.f32.mrf.mxu3  ;;  %v3613_v17 = vpop.f32.mrf.mxu1 }
 0x322   :  { %16641 = vst [vmem:[#allocation10_spill] sm:$0xff] %v14198_v60  ;;  %v2709_v61 = vadd.f32 %v2559_v57, %v16642_v13  ;;  %v16644_v13 = vld [vmem:[#allocation12_spill] sm:$0xff] }
 0x323   :  { %v4131_v44 = vpop.f32.mrf.mxu2 }
 0x324   :  { %v3231_v50 = vadd.f32 %v3081_v14, %v2709_v61  ;;  %v3380_v14 = vld [vmem:[#allocation2 + $0x16a] sm:$0xff]  ;;  %v3903_v61 = vld [vmem:[#allocation2 + $0x180] sm:$0xff] }
 0x325   :  { %v3494_v31 = vpack.c.bf16 %v3381_v27, %v3380_v14  ;;  %v16648_v14 = vld [vmem:[#allocation14_spill] sm:$0xff] }
 0x326   :  { %v3089_v55 = vpop.f32.mrf.mxu0  ;;  %v3753_v63 = vadd.f32 %v14153_v42, %v3231_v50  ;;  %2601 = vmatmul.bf16.gmra.mxu3 %v14151_v24  ;;  %v2858_v42 = vld [vmem:[#allocation2 + $0x169] sm:$0xff] }
 0x327   :  { %v3904_v50 = vld [vmem:[#allocation2 + $0x188] sm:$0xff] }
 0x328   :  { %v14209_v60 = vadd.f32 %v4126_v33, %v3753_v63  ;;  %4173 = vmatmul.bf16.gmra.mxu2 %v4016_v43  ;;  %v2859_v33 = vld [vmem:[#allocation2 + $0x171] sm:$0xff] }
 0x329   :  { %3128 = vmatmul.bf16.gmra.mxu0 %v2971_v29  ;;  %v2562_v57 = vpop.f32.mrf.mxu3  ;;  %v3616_v6 = vpop.f32.mrf.mxu1  ;;  %v16646_v29 = vld [vmem:[#allocation13_spill] sm:$0xff] }
 0x32a   :  { %16643 = vst [vmem:[#allocation8_spill] sm:$0xff] %v14209_v60  ;;  %v2710_v16 = vadd.f32 %v2562_v57, %v16644_v13 }
 0x32b   :  { %v4134_v53 = vpop.f32.mrf.mxu2 }
 0x32c   :  { %v3232_v32 = vadd.f32 %v3084_v26, %v2710_v16  ;;  %v2972_v26 = vpack.c.bf16 %v2859_v33, %v2858_v42  ;;  %v14216_v16 = vpack.c.bf16 %v3904_v50, %v3903_v61  ;;  %v3383_v33 = vld [vmem:[#allocation2 + $0x18a] sm:$0xff] }
 0x32e   :  { %v3091_v36 = vpop.f32.mrf.mxu0  ;;  %v3754_v62 = vadd.f32 %v14162_v46, %v3232_v32  ;;  %3655 = vmatmul.bf16.gmra.mxu1 %v3494_v31 }
 0x330   :  { %v14213_v34 = vadd.f32 %v4129_v11, %v3754_v62 }
 0x331   :  { %v2564_v24 = vpop.f32.mrf.mxu3  ;;  %v3618_v40 = vpop.f32.mrf.mxu1 }
 0x332   :  { %16645 = vst [vmem:[#allocation9_spill] sm:$0xff] %v14213_v34  ;;  %v2711_v63 = vadd.f32 %v2564_v24, %v16646_v29  ;;  %v3382_v24 = vld [vmem:[#allocation2 + $0x182] sm:$0xff] }
 0x333   :  { %v4136_v57 = vpop.f32.mrf.mxu2  ;;  %v3495_v50 = vpack.c.bf16 %v3383_v33, %v3382_v24 }
 0x334   :  { %v3233_v13 = vadd.f32 %v3086_v12, %v2711_v63 }
 0x336   :  { %v3094_v60 = vpop.f32.mrf.mxu0  ;;  %v3755_v46 = vadd.f32 %v14173_v58, %v3233_v13  ;;  %2606 = vmatmul.bf16.gmra.mxu3 %v14171_v35 }
 0x338   :  { %v14220_v32 = vadd.f32 %v4131_v44, %v3755_v46  ;;  %4178 = vmatmul.bf16.gmra.mxu2 %v14216_v16  ;;  %v16650_v44 = vld [vmem:[#allocation15_spill] sm:$0xff]  ;;  %v16652_v46 = vmax.f32 %v14196_v52, 0.0 }
 0x339   :  { %3133 = vmatmul.bf16.gmra.mxu0 %v2972_v26  ;;  %v2567_v11 = vpop.f32.mrf.mxu3  ;;  %v3621_v42 = vpop.f32.mrf.mxu1  ;;  %v16651_v26 = vmax.f32 %v14193_v5, 0.0  ;;  %v16654_v5 = vld [vmem:[#allocation16_spill] sm:$0xff] }
 0x33a   :  { %16647 = vst [vmem:[#allocation11_spill] sm:$0xff] %v14220_v32  ;;  %v2712_v27 = vadd.f32 %v2567_v11, %v16648_v14  ;;  %v12695_v11 = vld [vmem:[#allocation2] sm:$0xff] }
 0x33b   :  { %v4139_v62 = vpop.f32.mrf.mxu2  ;;  %v14232_v14 = vpack.c.bf16 %v12695_v11, %v12695_v11  ;;  %v16656_v11 = vld [vmem:[#allocation17_spill] sm:$0xff] }
 0x33c   :  { %v3234_v31 = vadd.f32 %v3089_v55, %v2712_v27  ;;  %v2973_v55 = vpack.c.bf16 %v16652_v46, %v16651_v26  ;;  %v2863_v46 = vld [vmem:[#allocation2 + $0x1d1] sm:$0xff] }
 0x33e   :  { %v3096_v12 = vpop.f32.mrf.mxu0  ;;  %v3756_v61 = vadd.f32 %v14189_v2, %v3234_v31  ;;  %3660 = vmatmul.bf16.gmra.mxu1 %v3495_v50 }
 0x340   :  { %v14225_v58 = vadd.f32 %v4134_v53, %v3756_v61  ;;  %v12513_v53 = vld [vmem:[%s16527_s2 + $0x1d8] sm:$0xff] }
 0x341   :  { %v2569_v35 = vpop.f32.mrf.mxu3  ;;  %v14234_v32 = vpop.f32.mrf.mxu1  ;;  %4626 = vmatpush.bf16.msra.mxu3 %v12513_v53 }
 0x342   :  { %16649 = vst [vmem:[#allocation12_spill] sm:$0xff] %v14225_v58  ;;  %v2713_v29 = vadd.f32 %v2569_v35, %v16650_v44 }
 0x343   :  { %v4141_v63 = vpop.f32.mrf.mxu2 }
 0x344   :  { %v3235_v13 = vadd.f32 %v3091_v36, %v2713_v29 }
 0x346   :  { %v3099_v27 = vpop.f32.mrf.mxu0  ;;  %v3757_v2 = vadd.f32 %v3613_v17, %v3235_v13  ;;  %2611 = vmatmul.bf16.gmra.mxu3 %v4016_v43  ;;  %v3384_v17 = vld [vmem:[#allocation2 + $0x1ca] sm:$0xff]  ;;  %v3385_v43 = vld [vmem:[#allocation2 + $0x1d2] sm:$0xff] }
 0x347   :  { %v3496_v44 = vpack.c.bf16 %v3385_v43, %v3384_v17  ;;  %v2862_v13 = vld [vmem:[#allocation2 + $0x1c9] sm:$0xff] }
 0x348   :  { %v14239_v31 = vadd.f32 %v4136_v57, %v3757_v2  ;;  %4183 = vmatmul.bf16.gmra.mxu2 %v14232_v14  ;;  %v12521_v57 = vld [vmem:[%s16527_s2 + $0x218] sm:$0xff]  ;;  %v16658_v43 = vld [vmem:[#allocation18_spill] sm:$0xff] }
 0x349   :  { %3138 = vmatmul.bf16.gmra.mxu0 %v2973_v55  ;;  %v2572_v36 = vpop.f32.mrf.mxu3  ;;  %v14243_v50 = vpop.f32.mrf.mxu1  ;;  %v3907_v55 = vld [vmem:[#allocation2 + $0x1e0] sm:$0xff] }
 0x34a   :  { %16653 = vst [vmem:[#allocation13_spill] sm:$0xff] %v14239_v31  ;;  %v2714_v52 = vadd.f32 %v2572_v36, %v16654_v5  ;;  %5148 = vmatpush.bf16.msra.mxu0 %v12521_v57  ;;  %v2974_v5 = vpack.c.bf16 %v2863_v46, %v2862_v13  ;;  %v3386_v13 = vld [vmem:[#allocation2 + $0x1e2] sm:$0xff]  ;;  %v3387_v46 = vld [vmem:[#allocation2 + $0x1ea] sm:$0xff] }
 0x34b   :  { %v4144_v24 = vpop.f32.mrf.mxu2 }
 0x34c   :  { %v3236_v33 = vadd.f32 %v3094_v60, %v2714_v52  ;;  %v3908_v60 = vld [vmem:[#allocation2 + $0x1e8] sm:$0xff] }
 0x34e   :  { %v3101_v61 = vpop.f32.mrf.mxu0  ;;  %v3758_v35 = vadd.f32 %v3616_v6, %v3236_v33  ;;  %3665 = vmatmul.bf16.gmra.mxu1 %v3496_v44  ;;  %v14251_v6 = vpack.c.bf16 %v3908_v60, %v3907_v55  ;;  %v3497_v60 = vpack.c.bf16 %v3387_v46, %v3386_v13  ;;  %v16662_v46 = vld [vmem:[#allocation20_spill] sm:$0xff] }
 0x350   :  { %v14248_v29 = vadd.f32 %v4139_v62, %v3758_v35 }
 0x351   :  { %v2574_v26 = vpop.f32.mrf.mxu3  ;;  %v3628_v33 = vpop.f32.mrf.mxu1 }
 0x352   :  { %16655 = vst [vmem:[#allocation14_spill] sm:$0xff] %v14248_v29  ;;  %v2715_v2 = vadd.f32 %v2574_v26, %v16656_v11  ;;  %v2341_v11 = vld [vmem:[#allocation2 + $0x1d0] sm:$0xff] }
 0x353   :  { %v4146_v53 = vpop.f32.mrf.mxu2 }
 0x354   :  { %v3237_v36 = vadd.f32 %v3096_v12, %v2715_v2  ;;  %v2865_v2 = vld [vmem:[#allocation2 + $0x1e9] sm:$0xff] }
 0x356   :  { %v3104_v52 = vpop.f32.mrf.mxu0  ;;  %v3759_v31 = vadd.f32 %v3618_v40, %v3237_v36  ;;  %2616 = vmatmul.bf16.gmra.mxu3 %v14216_v16  ;;  %v2340_v40 = vld [vmem:[#allocation2 + $0x1c8] sm:$0xff]  ;;  %v3909_v36 = vld [vmem:[#allocation2 + $0x1f8] sm:$0xff] }
 0x358   :  { %v14254_v62 = vadd.f32 %v4141_v63, %v3759_v31  ;;  %4188 = vmatmul.bf16.gmra.mxu2 %v14251_v6  ;;  %v2864_v63 = vld [vmem:[#allocation2 + $0x1e1] sm:$0xff] }
 0x359   :  { %3143 = vmatmul.bf16.gmra.mxu0 %v2974_v5  ;;  %v2577_v17 = vpop.f32.mrf.mxu3  ;;  %v14258_v12 = vpop.f32.mrf.mxu1  ;;  %v3910_v5 = vld [vmem:[#allocation2 + $0x200] sm:$0xff]  ;;  %v2975_v29 = vpack.c.bf16 %v2865_v2, %v2864_v63 }
 0x35a   :  { %16657 = vst [vmem:[#allocation15_spill] sm:$0xff] %v14254_v62  ;;  %v2716_v35 = vadd.f32 %v2577_v17, %v16658_v43  ;;  %v16660_v17 = vld [vmem:[#allocation19_spill] sm:$0xff]  ;;  %v4020_v58 = vpack.c.bf16 %v3910_v5, %v3909_v36 }
 0x35b   :  { %v4149_v57 = vpop.f32.mrf.mxu2  ;;  %v3912_v5 = vld [vmem:[#allocation2 + $0x218] sm:$0xff] }
 0x35c   :  { %v3238_v44 = vadd.f32 %v3099_v27, %v2716_v35  ;;  %v2452_v27 = vpack.c.bf16 %v2341_v11, %v2340_v40  ;;  %v3389_v11 = vld [vmem:[#allocation2 + $0x202] sm:$0xff] }
 0x35e   :  { %v3106_v26 = vpop.f32.mrf.mxu0  ;;  %v3760_v55 = vadd.f32 %v3621_v42, %v3238_v44  ;;  %3670 = vmatmul.bf16.gmra.mxu1 %v3497_v60 }
 0x360   :  { %v14260_v16 = vadd.f32 %v4144_v24, %v3760_v55 }
 0x361   :  { %v2579_v31 = vpop.f32.mrf.mxu3  ;;  %v3633_v42 = vpop.f32.mrf.mxu1 }
 0x362   :  { %16659 = vst [vmem:[#allocation16_spill] sm:$0xff] %v14260_v16  ;;  %v2717_v43 = vadd.f32 %v2579_v31, %v16660_v17  ;;  %v16664_v17 = vld [vmem:[#allocation21_spill] sm:$0xff] }
 0x363   :  { %v4151_v35 = vpop.f32.mrf.mxu2 }
 0x364   :  { %v3239_v62 = vadd.f32 %v3101_v61, %v2717_v43  ;;  %v3388_v61 = vld [vmem:[#allocation2 + $0x1fa] sm:$0xff] }
 0x365   :  { %v3498_v2 = vpack.c.bf16 %v3389_v11, %v3388_v61  ;;  %v16666_v61 = vld [vmem:[#allocation22_spill] sm:$0xff] }
 0x366   :  { %v3109_v34 = vpop.f32.mrf.mxu0  ;;  %v3761_v44 = vadd.f32 %v14234_v32, %v3239_v62  ;;  %2621 = vmatmul.bf16.gmra.mxu3 %v2452_v27  ;;  %v2866_v32 = vld [vmem:[#allocation2 + $0x1f9] sm:$0xff]  ;;  %v3911_v62 = vld [vmem:[#allocation2 + $0x210] sm:$0xff] }
 0x368   :  { %v14264_v24 = vadd.f32 %v4146_v53, %v3761_v44  ;;  %4193 = vmatmul.bf16.gmra.mxu2 %v4020_v58 }
 0x369   :  { %3148 = vmatmul.bf16.gmra.mxu0 %v2975_v29  ;;  %v2582_v13 = vpop.f32.mrf.mxu3  ;;  %v14267_v40 = vpop.f32.mrf.mxu1  ;;  %v2867_v29 = vld [vmem:[#allocation2 + $0x201] sm:$0xff] }
 0x36a   :  { %16661 = vst [vmem:[#allocation17_spill] sm:$0xff] %v14264_v24  ;;  %v2718_v55 = vadd.f32 %v2582_v13, %v16662_v46  ;;  %v2976_v44 = vpack.c.bf16 %v2867_v29, %v2866_v32  ;;  %v14273_v13 = vpack.c.bf16 %v3912_v5, %v3911_v62  ;;  %v3391_v29 = vld [vmem:[#allocation2 + $0x21a] sm:$0xff] }
 0x36b   :  { %v4154_v60 = vpop.f32.mrf.mxu2 }
 0x36c   :  { %v3240_v16 = vadd.f32 %v3104_v52, %v2718_v55 }
 0x36e   :  { %v3111_v31 = vpop.f32.mrf.mxu0  ;;  %v3762_v63 = vadd.f32 %v14243_v50, %v3240_v16  ;;  %3675 = vmatmul.bf16.gmra.mxu1 %v3498_v2 }
 0x370   :  { %v14270_v36 = vadd.f32 %v4149_v57, %v3762_v63 }
 0x371   :  { %v2584_v53 = vpop.f32.mrf.mxu3  ;;  %v14275_v55 = vpop.f32.mrf.mxu1 }
 0x372   :  { %16663 = vst [vmem:[#allocation18_spill] sm:$0xff] %v14270_v36  ;;  %v2719_v43 = vadd.f32 %v2584_v53, %v16664_v17  ;;  %v3390_v53 = vld [vmem:[#allocation2 + $0x212] sm:$0xff] }
 0x373   :  { %v4156_v27 = vpop.f32.mrf.mxu2  ;;  %v2869_v17 = vld [vmem:[#allocation2 + $0x219] sm:$0xff] }
 0x374   :  { %v3241_v52 = vadd.f32 %v3106_v26, %v2719_v43  ;;  %v3913_v43 = vld [vmem:[#allocation2 + $0x228] sm:$0xff] }
 0x376   :  { %v3114_v46 = vpop.f32.mrf.mxu0  ;;  %v3763_v50 = vadd.f32 %v3628_v33, %v3241_v52  ;;  %2626 = vmatmul.bf16.gmra.mxu3 %v14251_v6  ;;  %v3499_v33 = vpack.c.bf16 %v3391_v29, %v3390_v53  ;;  %v2868_v6 = vld [vmem:[#allocation2 + $0x211] sm:$0xff] }
 0x377   :  { %v3914_v52 = vld [vmem:[#allocation2 + $0x230] sm:$0xff] }
 0x378   :  { %v14278_v57 = vadd.f32 %v4151_v35, %v3763_v50  ;;  %4198 = vmatmul.bf16.gmra.mxu2 %v14273_v13 }
 0x379   :  { %3153 = vmatmul.bf16.gmra.mxu0 %v2976_v44  ;;  %v2587_v16 = vpop.f32.mrf.mxu3  ;;  %v14282_v32 = vpop.f32.mrf.mxu1  ;;  %v16668_v44 = vld [vmem:[#allocation23_spill] sm:$0xff] }
 0x37a   :  { %16665 = vst [vmem:[#allocation19_spill] sm:$0xff] %v14278_v57  ;;  %v2720_v11 = vadd.f32 %v2587_v16, %v16666_v61  ;;  %v2977_v61 = vpack.c.bf16 %v2869_v17, %v2868_v6 }
 0x37b   :  { %v4159_v63 = vpop.f32.mrf.mxu2 }
 0x37c   :  { %v3242_v2 = vadd.f32 %v3109_v34, %v2720_v11  ;;  %v14288_v11 = vpack.c.bf16 %v3914_v52, %v3913_v43 }
 0x37e   :  { %v3116_v26 = vpop.f32.mrf.mxu0  ;;  %v3764_v62 = vadd.f32 %v14258_v12, %v3242_v2  ;;  %3680 = vmatmul.bf16.gmra.mxu1 %v3499_v33 }
 0x380   :  { %v14285_v5 = vadd.f32 %v4154_v60, %v3764_v62  ;;  %v12512_v60 = vld [vmem:[%s16527_s2 + $0x1d0] sm:$0xff] }
 0x381   :  { %v2589_v35 = vpop.f32.mrf.mxu3  ;;  %v14290_v36 = vpop.f32.mrf.mxu1  ;;  %4627 = vmatpush.bf16.msra.mxu3 %v12512_v60 }
 0x382   :  { %16667 = vst [vmem:[#allocation20_spill] sm:$0xff] %v14285_v5  ;;  %v2721_v50 = vadd.f32 %v2589_v35, %v16668_v44  ;;  %v2870_v44 = vld [vmem:[#allocation2 + $0x229] sm:$0xff] }
 0x383   :  { %v4161_v16 = vpop.f32.mrf.mxu2 }
 0x384   :  { %v3243_v34 = vadd.f32 %v3111_v31, %v2721_v50  ;;  %v16670_v31 = vld [vmem:[#allocation24_spill] sm:$0xff] }
 0x386   :  { %v3119_v57 = vpop.f32.mrf.mxu0  ;;  %v3765_v12 = vadd.f32 %v3633_v42, %v3243_v34  ;;  %2631 = vmatmul.bf16.gmra.mxu3 %v4020_v58  ;;  %v3392_v42 = vld [vmem:[#allocation2 + $0x22a] sm:$0xff]  ;;  %v3393_v58 = vld [vmem:[#allocation2 + $0x232] sm:$0xff] }
 0x387   :  { %v3500_v43 = vpack.c.bf16 %v3393_v58, %v3392_v42  ;;  %v2871_v34 = vld [vmem:[#allocation2 + $0x231] sm:$0xff] }
 0x388   :  { %v14295_v2 = vadd.f32 %v4156_v27, %v3765_v12  ;;  %4203 = vmatmul.bf16.gmra.mxu2 %v14288_v11  ;;  %v12520_v27 = vld [vmem:[%s16527_s2 + $0x210] sm:$0xff]  ;;  %v16672_v12 = vld [vmem:[#allocation25_spill] sm:$0xff] }
 0x389   :  { %3158 = vmatmul.bf16.gmra.mxu0 %v2977_v61  ;;  %v2592_v53 = vpop.f32.mrf.mxu3  ;;  %v14299_v35 = vpop.f32.mrf.mxu1  ;;  %v3916_v61 = vld [vmem:[#allocation2 + $0x248] sm:$0xff]  ;;  %v16674_v58 = vld [vmem:[#allocation26_spill] sm:$0xff] }
 0x38a   :  { %16669 = vst [vmem:[#allocation21_spill] sm:$0xff] %v14295_v2  ;;  %v2722_v29 = vadd.f32 %v2592_v53, %v16670_v31  ;;  %5149 = vmatpush.bf16.msra.mxu0 %v12520_v27 }
 0x38b   :  { %v4164_v62 = vpop.f32.mrf.mxu2 }
 0x38c   :  { %v3244_v33 = vadd.f32 %v3114_v46, %v2722_v29  ;;  %v3915_v46 = vld [vmem:[#allocation2 + $0x240] sm:$0xff]  ;;  %v2978_v29 = vpack.c.bf16 %v2871_v34, %v2870_v44  ;;  %v3395_v44 = vld [vmem:[#allocation2 + $0x24a] sm:$0xff] }
 0x38e   :  { %v3121_v6 = vpop.f32.mrf.mxu0  ;;  %v3766_v17 = vadd.f32 %v14267_v40, %v3244_v33  ;;  %3685 = vmatmul.bf16.gmra.mxu1 %v3500_v43  ;;  %v4023_v40 = vpack.c.bf16 %v3916_v61, %v3915_v46 }
 0x390   :  { %v14305_v52 = vadd.f32 %v4159_v63, %v3766_v17 }
 0x391   :  { %v2594_v50 = vpop.f32.mrf.mxu3  ;;  %v3648_v2 = vpop.f32.mrf.mxu1 }
 0x392   :  { %16671 = vst [vmem:[#allocation22_spill] sm:$0xff] %v14305_v52  ;;  %v2723_v60 = vadd.f32 %v2594_v50, %v16672_v12 }
 0x393   :  { %v4166_v53 = vpop.f32.mrf.mxu2 }
 0x394   :  { %v3245_v31 = vadd.f32 %v3116_v26, %v2723_v60  ;;  %v3394_v26 = vld [vmem:[#allocation2 + $0x242] sm:$0xff] }
 0x395   :  { %v3501_v46 = vpack.c.bf16 %v3395_v44, %v3394_v26  ;;  %v3918_v60 = vld [vmem:[#allocation2 + $0x260] sm:$0xff] }
 0x396   :  { %v3124_v33 = vpop.f32.mrf.mxu0  ;;  %v3767_v5 = vadd.f32 %v14275_v55, %v3245_v31  ;;  %2636 = vmatmul.bf16.gmra.mxu3 %v14273_v13  ;;  %v2872_v55 = vld [vmem:[#allocation2 + $0x241] sm:$0xff]  ;;  %v16676_v31 = vld [vmem:[#allocation27_spill] sm:$0xff] }
 0x398   :  { %v14310_v63 = vadd.f32 %v4161_v16, %v3767_v5  ;;  %4208 = vmatmul.bf16.gmra.mxu2 %v4023_v40  ;;  %v2873_v5 = vld [vmem:[#allocation2 + $0x249] sm:$0xff]  ;;  %v3917_v16 = vld [vmem:[#allocation2 + $0x258] sm:$0xff] }
 0x399   :  { %3163 = vmatmul.bf16.gmra.mxu0 %v2978_v29  ;;  %v2597_v42 = vpop.f32.mrf.mxu3 }
 0x39a   :  { %16673 = vst [vmem:[#allocation23_spill] sm:$0xff] %v14310_v63  ;;  %v2724_v17 = vadd.f32 %v2597_v42, %v16674_v58 }
 0x39b   :  { %v4169_v27 = vpop.f32.mrf.mxu2  ;;  %v3651_v12 = vpop.f32.mrf.mxu1 }
 0x39c   :  { %v3246_v43 = vadd.f32 %v3119_v57, %v2724_v17  ;;  %v2979_v57 = vpack.c.bf16 %v2873_v5, %v2872_v55  ;;  %v4024_v17 = vpack.c.bf16 %v3918_v60, %v3917_v16  ;;  %v3397_v55 = vld [vmem:[#allocation2 + $0x262] sm:$0xff]  ;;  %v3919_v60 = vld [vmem:[#allocation2 + $0x270] sm:$0xff] }
 0x39e   :  { %v3126_v50 = vpop.f32.mrf.mxu0  ;;  %v3768_v34 = vadd.f32 %v14282_v32, %v3246_v43  ;;  %3690 = vmatmul.bf16.gmra.mxu1 %v3501_v46  ;;  %v16678_v43 = vld [vmem:[#allocation28_spill] sm:$0xff] }
 0x3a0   :  { %v14314_v61 = vadd.f32 %v4164_v62, %v3768_v34 }
 0x3a1   :  { %v2599_v13 = vpop.f32.mrf.mxu3 }
 0x3a2   :  { %16675 = vst [vmem:[#allocation24_spill] sm:$0xff] %v14314_v61  ;;  %v2725_v29 = vadd.f32 %v2599_v13, %v16676_v31  ;;  %v3920_v31 = vld [vmem:[#allocation2 + $0x278] sm:$0xff] }
 0x3a3   :  { %v4171_v42 = vpop.f32.mrf.mxu2  ;;  %v3653_v52 = vpop.f32.mrf.mxu1 }
 0x3a4   :  { %v3247_v58 = vadd.f32 %v3121_v6, %v2725_v29  ;;  %v3396_v6 = vld [vmem:[#allocation2 + $0x25a] sm:$0xff]  ;;  %v16680_v29 = vld [vmem:[#allocation29_spill] sm:$0xff] }
 0x3a5   :  { %v3502_v16 = vpack.c.bf16 %v3397_v55, %v3396_v6  ;;  %v16682_v6 = vld [vmem:[#allocation30_spill] sm:$0xff] }
 0x3a6   :  { %v3129_v63 = vpop.f32.mrf.mxu0  ;;  %v3769_v24 = vadd.f32 %v14290_v36, %v3247_v58  ;;  %2641 = vmatmul.bf16.gmra.mxu3 %v14288_v11  ;;  %v2874_v11 = vld [vmem:[#allocation2 + $0x259] sm:$0xff] }
 0x3a8   :  { %v14319_v32 = vadd.f32 %v4166_v53, %v3769_v24  ;;  %4213 = vmatmul.bf16.gmra.mxu2 %v4024_v17  ;;  %v2875_v53 = vld [vmem:[#allocation2 + $0x261] sm:$0xff] }
 0x3a9   :  { %3168 = vmatmul.bf16.gmra.mxu0 %v2979_v57  ;;  %v2602_v62 = vpop.f32.mrf.mxu3 }
 0x3aa   :  { %16677 = vst [vmem:[#allocation25_spill] sm:$0xff] %v14319_v32  ;;  %v2726_v26 = vadd.f32 %v2602_v62, %v16678_v43  ;;  %v2980_v62 = vpack.c.bf16 %v2875_v53, %v2874_v11  ;;  %v14328_v43 = vpack.c.bf16 %v3920_v31, %v3919_v60  ;;  %v3398_v11 = vld [vmem:[#allocation2 + $0x272] sm:$0xff]  ;;  %v3399_v53 = vld [vmem:[#allocation2 + $0x27a] sm:$0xff] }
 0x3ab   :  { %v4174_v44 = vpop.f32.mrf.mxu2  ;;  %v14322_v13 = vpop.f32.mrf.mxu1  ;;  %v3503_v31 = vpack.c.bf16 %v3399_v53, %v3398_v11 }
 0x3ac   :  { %v3248_v34 = vadd.f32 %v3124_v33, %v2726_v26 }
 0x3ae   :  { %v3131_v46 = vpop.f32.mrf.mxu0  ;;  %v3770_v5 = vadd.f32 %v14299_v35, %v3248_v34  ;;  %3695 = vmatmul.bf16.gmra.mxu1 %v3502_v16 }
 0x3b0   :  { %v14325_v36 = vadd.f32 %v4169_v27, %v3770_v5 }
 0x3b1   :  { %v2604_v24 = vpop.f32.mrf.mxu3 }
 0x3b2   :  { %16679 = vst [vmem:[#allocation26_spill] sm:$0xff] %v14325_v36  ;;  %v2727_v58 = vadd.f32 %v2604_v24, %v16680_v29 }
 0x3b3   :  { %v4176_v57 = vpop.f32.mrf.mxu2  ;;  %v14330_v32 = vpop.f32.mrf.mxu1 }
 0x3b4   :  { %v3249_v33 = vadd.f32 %v3126_v50, %v2727_v58  ;;  %v3921_v58 = vld [vmem:[#allocation2 + $0x288] sm:$0xff] }
 0x3b6   :  { %v3134_v26 = vpop.f32.mrf.mxu0  ;;  %v3771_v35 = vadd.f32 %v3648_v2, %v3249_v33  ;;  %2646 = vmatmul.bf16.gmra.mxu3 %v4023_v40  ;;  %v2876_v2 = vld [vmem:[#allocation2 + $0x271] sm:$0xff] }
 0x3b7   :  { %v3922_v33 = vld [vmem:[#allocation2 + $0x290] sm:$0xff] }
 0x3b8   :  { %v14332_v27 = vadd.f32 %v4171_v42, %v3771_v35  ;;  %4218 = vmatmul.bf16.gmra.mxu2 %v14328_v43  ;;  %v2877_v42 = vld [vmem:[#allocation2 + $0x279] sm:$0xff] }
 0x3b9   :  { %3173 = vmatmul.bf16.gmra.mxu0 %v2980_v62  ;;  %v2607_v34 = vpop.f32.mrf.mxu3  ;;  %v16684_v62 = vld [vmem:[#allocation31_spill] sm:$0xff] }
 0x3ba   :  { %16681 = vst [vmem:[#allocation27_spill] sm:$0xff] %v14332_v27  ;;  %v2728_v55 = vadd.f32 %v2607_v34, %v16682_v6 }
 0x3bb   :  { %v4179_v5 = vpop.f32.mrf.mxu2  ;;  %v14336_v50 = vpop.f32.mrf.mxu1 }
 0x3bc   :  { %v3250_v16 = vadd.f32 %v3129_v63, %v2728_v55  ;;  %v2981_v63 = vpack.c.bf16 %v2877_v42, %v2876_v2  ;;  %v14341_v55 = vpack.c.bf16 %v3922_v33, %v3921_v58 }
 0x3be   :  { %v3136_v24 = vpop.f32.mrf.mxu0  ;;  %v3772_v60 = vadd.f32 %v3651_v12, %v3250_v16  ;;  %3700 = vmatmul.bf16.gmra.mxu1 %v3503_v31 }
 0x3c0   :  { %v14338_v29 = vadd.f32 %v4174_v44, %v3772_v60  ;;  %v12511_v44 = vld [vmem:[%s16527_s2 + $0x1c8] sm:$0xff] }
 0x3c1   :  { %v2609_v40 = vpop.f32.mrf.mxu3  ;;  %4628 = vmatpush.bf16.msra.mxu3 %v12511_v44 }
 0x3c2   :  { %16683 = vst [vmem:[#allocation28_spill] sm:$0xff] %v14338_v29  ;;  %v2729_v35 = vadd.f32 %v2609_v40, %v16684_v62  ;;  %v2878_v62 = vld [vmem:[#allocation2 + $0x289] sm:$0xff] }
 0x3c3   :  { %v4181_v34 = vpop.f32.mrf.mxu2  ;;  %v14343_v36 = vpop.f32.mrf.mxu1 }
 0x3c4   :  { %v3251_v6 = vadd.f32 %v3131_v46, %v2729_v35  ;;  %v16686_v46 = vld [vmem:[#allocation32_spill] sm:$0xff] }
 0x3c6   :  { %v3139_v27 = vpop.f32.mrf.mxu0  ;;  %v3773_v12 = vadd.f32 %v3653_v52, %v3251_v6  ;;  %2651 = vmatmul.bf16.gmra.mxu3 %v4024_v17  ;;  %v3400_v52 = vld [vmem:[#allocation2 + $0x28a] sm:$0xff]  ;;  %v3401_v17 = vld [vmem:[#allocation2 + $0x292] sm:$0xff] }
 0x3c7   :  { %v3504_v58 = vpack.c.bf16 %v3401_v17, %v3400_v52  ;;  %v2879_v6 = vld [vmem:[#allocation2 + $0x291] sm:$0xff] }
 0x3c8   :  { %v14348_v16 = vadd.f32 %v4176_v57, %v3773_v12  ;;  %4223 = vmatmul.bf16.gmra.mxu2 %v14341_v55  ;;  %v12519_v57 = vld [vmem:[%s16527_s2 + $0x208] sm:$0xff]  ;;  %v16690_v17 = vld [vmem:[#allocation34_spill] sm:$0xff] }
 0x3c9   :  { %3178 = vmatmul.bf16.gmra.mxu0 %v2981_v63  ;;  %v2612_v11 = vpop.f32.mrf.mxu3  ;;  %v3924_v63 = vld [vmem:[#allocation2 + $0x2a8] sm:$0xff] }
 0x3ca   :  { %16685 = vst [vmem:[#allocation29_spill] sm:$0xff] %v14348_v16  ;;  %v2730_v53 = vadd.f32 %v2612_v11, %v16686_v46  ;;  %5150 = vmatpush.bf16.msra.mxu0 %v12519_v57  ;;  %v16688_v12 = vld [vmem:[#allocation33_spill] sm:$0xff] }
 0x3cb   :  { %v4184_v60 = vpop.f32.mrf.mxu2  ;;  %v14352_v40 = vpop.f32.mrf.mxu1 }
 0x3cc   :  { %v3252_v31 = vadd.f32 %v3134_v26, %v2730_v53  ;;  %v3923_v26 = vld [vmem:[#allocation2 + $0x2a0] sm:$0xff]  ;;  %v2982_v53 = vpack.c.bf16 %v2879_v6, %v2878_v62  ;;  %v3403_v62 = vld [vmem:[#allocation2 + $0x2aa] sm:$0xff] }
 0x3ce   :  { %v3141_v2 = vpop.f32.mrf.mxu0  ;;  %v3774_v42 = vadd.f32 %v14322_v13, %v3252_v31  ;;  %3705 = vmatmul.bf16.gmra.mxu1 %v3504_v58  ;;  %v4027_v13 = vpack.c.bf16 %v3924_v63, %v3923_v26 }
 0x3d0   :  { %v14358_v33 = vadd.f32 %v4179_v5, %v3774_v42 }
 0x3d1   :  { %v2614_v35 = vpop.f32.mrf.mxu3 }
 0x3d2   :  { %16687 = vst [vmem:[#allocation30_spill] sm:$0xff] %v14358_v33  ;;  %v2731_v44 = vadd.f32 %v2614_v35, %v16688_v12 }
 0x3d3   :  { %v4186_v11 = vpop.f32.mrf.mxu2  ;;  %v3668_v16 = vpop.f32.mrf.mxu1 }
 0x3d4   :  { %v3253_v46 = vadd.f32 %v3136_v24, %v2731_v44  ;;  %v3402_v24 = vld [vmem:[#allocation2 + $0x2a2] sm:$0xff] }
 0x3d5   :  { %v3505_v26 = vpack.c.bf16 %v3403_v62, %v3402_v24  ;;  %v3926_v44 = vld [vmem:[#allocation2 + $0x2c0] sm:$0xff] }
 0x3d6   :  { %v3144_v31 = vpop.f32.mrf.mxu0  ;;  %v3775_v29 = vadd.f32 %v14330_v32, %v3253_v46  ;;  %2656 = vmatmul.bf16.gmra.mxu3 %v14328_v43  ;;  %v2880_v32 = vld [vmem:[#allocation2 + $0x2a1] sm:$0xff]  ;;  %v16691_v46 = vld [vmem:[#allocation35_spill] sm:$0xff] }
 0x3d8   :  { %v14363_v5 = vadd.f32 %v4181_v34, %v3775_v29  ;;  %4228 = vmatmul.bf16.gmra.mxu2 %v4027_v13  ;;  %v2881_v29 = vld [vmem:[#allocation2 + $0x2a9] sm:$0xff]  ;;  %v3925_v34 = vld [vmem:[#allocation2 + $0x2b8] sm:$0xff] }
 0x3d9   :  { %3183 = vmatmul.bf16.gmra.mxu0 %v2982_v53  ;;  %v2617_v52 = vpop.f32.mrf.mxu3 }
 0x3da   :  { %16689 = vst [vmem:[#allocation31_spill] sm:$0xff] %v14363_v5  ;;  %v2732_v42 = vadd.f32 %v2617_v52, %v16690_v17 }
 0x3db   :  { %v4189_v57 = vpop.f32.mrf.mxu2  ;;  %v3671_v12 = vpop.f32.mrf.mxu1 }
 0x3dc   :  { %v3254_v58 = vadd.f32 %v3139_v27, %v2732_v42  ;;  %v2983_v27 = vpack.c.bf16 %v2881_v29, %v2880_v32  ;;  %v4028_v42 = vpack.c.bf16 %v3926_v44, %v3925_v34  ;;  %v3405_v32 = vld [vmem:[#allocation2 + $0x2c2] sm:$0xff] }
 0x3de   :  { %v3146_v35 = vpop.f32.mrf.mxu0  ;;  %v3776_v6 = vadd.f32 %v14336_v50, %v3254_v58  ;;  %3710 = vmatmul.bf16.gmra.mxu1 %v3505_v26  ;;  %v16693_v58 = vld [vmem:[#allocation36_spill] sm:$0xff] }
 0x3e0   :  { %v14367_v63 = vadd.f32 %v4184_v60, %v3776_v6 }
 0x3e1   :  { %v2619_v43 = vpop.f32.mrf.mxu3 }
 0x3e2   :  { %v2733_v53 = vadd.f32 %v2619_v43, %v16691_v46  ;;  %v3928_v46 = vld [vmem:[#allocation2 + $0x2d8] sm:$0xff] }
 0x3e3   :  { %v4191_v52 = vpop.f32.mrf.mxu2  ;;  %v3673_v33 = vpop.f32.mrf.mxu1 }
 0x3e4   :  { %v3255_v17 = vadd.f32 %v3141_v2, %v2733_v53  ;;  %v3404_v2 = vld [vmem:[#allocation2 + $0x2ba] sm:$0xff] }
 0x3e5   :  { %v3506_v34 = vpack.c.bf16 %v3405_v32, %v3404_v2 }
 0x3e6   :  { %v3149_v5 = vpop.f32.mrf.mxu0  ;;  %v3777_v61 = vadd.f32 %v14343_v36, %v3255_v17  ;;  %2661 = vmatmul.bf16.gmra.mxu3 %v14341_v55  ;;  %v2882_v36 = vld [vmem:[#allocation2 + $0x2b9] sm:$0xff]  ;;  %v2883_v55 = vld [vmem:[#allocation2 + $0x2c1] sm:$0xff] }
 0x3e8   :  { %v14372_v50 = vadd.f32 %v4186_v11, %v3777_v61  ;;  %4233 = vmatmul.bf16.gmra.mxu2 %v4028_v42  ;;  %v3927_v11 = vld [vmem:[#allocation2 + $0x2d0] sm:$0xff] }
 0x3e9   :  { %3188 = vmatmul.bf16.gmra.mxu0 %v2983_v27  ;;  %v2622_v60 = vpop.f32.mrf.mxu3 }
 0x3ea   :  { %16692 = vst [vmem:[#allocation32_spill] sm:$0xff] %v14372_v50  ;;  %v2734_v24 = vadd.f32 %v2622_v60, %v16693_v58  ;;  %v14379_v60 = vpack.c.bf16 %v3928_v46, %v3927_v11  ;;  %v3930_v11 = vld [vmem:[#allocation2 + $0x2f0] sm:$0xff] }
 0x3eb   :  { %v4194_v62 = vpop.f32.mrf.mxu2  ;;  %v3676_v43 = vpop.f32.mrf.mxu1 }
 0x3ec   :  { %v3256_v6 = vadd.f32 %v3144_v31, %v2734_v24  ;;  %v2984_v31 = vpack.c.bf16 %v2883_v55, %v2882_v36 }
 0x3ee   :  { %v3151_v26 = vpop.f32.mrf.mxu0  ;;  %v3778_v29 = vadd.f32 %v14352_v40, %v3256_v6  ;;  %3715 = vmatmul.bf16.gmra.mxu1 %v3506_v34 }
 0x3f0   :  { %v14376_v44 = vadd.f32 %v4189_v57, %v3778_v29  ;;  %v3406_v29 = vld [vmem:[#allocation2 + $0x2d2] sm:$0xff] }
 0x3f1   :  { %v2624_v61 = vpop.f32.mrf.mxu3 }
 0x3f2   :  { %v2735_v53 = vadd.f32 %v2624_v61, %v14016_v37 }
 0x3f3   :  { %v4196_v17 = vpop.f32.mrf.mxu2  ;;  %v3678_v24 = vpop.f32.mrf.mxu1 }
 0x3f4   :  { %v3257_v27 = vadd.f32 %v3146_v35, %v2735_v53  ;;  %v3407_v35 = vld [vmem:[#allocation2 + $0x2da] sm:$0xff] }
 0x3f5   :  { %v3507_v36 = vpack.c.bf16 %v3407_v35, %v3406_v29 }
 0x3f6   :  { %v3154_v58 = vpop.f32.mrf.mxu0  ;;  %v3779_v50 = vadd.f32 %v3668_v16, %v3257_v27  ;;  %2666 = vmatmul.bf16.gmra.mxu3 %v4027_v13  ;;  %v2884_v16 = vld [vmem:[#allocation2 + $0x2d1] sm:$0xff] }
 0x3f8   :  { %v14381_v40 = vadd.f32 %v4191_v52, %v3779_v50  ;;  %4238 = vmatmul.bf16.gmra.mxu2 %v14379_v60  ;;  %v2885_v52 = vld [vmem:[#allocation2 + $0x2d9] sm:$0xff]  ;;  %v3929_v50 = vld [vmem:[#allocation2 + $0x2e8] sm:$0xff] }
 0x3f9   :  { %3193 = vmatmul.bf16.gmra.mxu0 %v2984_v31  ;;  %v2627_v57 = vpop.f32.mrf.mxu3  ;;  %v14390_v27 = vpack.c.bf16 %v3930_v11, %v3929_v50  ;;  %v2887_v50 = vld [vmem:[#allocation2 + $0x2f1] sm:$0xff]  ;;  %v3931_v11 = vld [vmem:[#allocation2 + $0x300] sm:$0xff] }
 0x3fa   :  { %v2736_v6 = vadd.f32 %v2627_v57, %v14022_v45 }
 0x3fb   :  { %v4199_v2 = vpop.f32.mrf.mxu2  ;;  %v14385_v61 = vpop.f32.mrf.mxu1 }
 0x3fc   :  { %v3258_v32 = vadd.f32 %v3149_v5, %v2736_v6  ;;  %v2985_v5 = vpack.c.bf16 %v2885_v52, %v2884_v16 }
 0x3fe   :  { %v3156_v37 = vpop.f32.mrf.mxu0  ;;  %v3780_v34 = vadd.f32 %v3671_v12, %v3258_v32  ;;  %3720 = vmatmul.bf16.gmra.mxu1 %v3507_v36 }
 0x400   :  { %v14387_v55 = vadd.f32 %v4194_v62, %v3780_v34  ;;  %v12510_v62 = vld [vmem:[%s16527_s2 + $0x1c0] sm:$0xff] }
 0x401   :  { %v2629_v13 = vpop.f32.mrf.mxu3  ;;  %4629 = vmatpush.bf16.msra.mxu3 %v12510_v62 }
 0x402   :  { %v2737_v46 = vadd.f32 %v2629_v13, %v14028_v30  ;;  %v2886_v13 = vld [vmem:[#allocation2 + $0x2e9] sm:$0xff] }
 0x403   :  { %v4201_v45 = vpop.f32.mrf.mxu2  ;;  %v14398_v32 = vpop.f32.mrf.mxu1 }
 0x404   :  { %v3259_v53 = vadd.f32 %v3151_v26, %v2737_v46 }
 0x406   :  { %v3159_v31 = vpop.f32.mrf.mxu0  ;;  %v3781_v12 = vadd.f32 %v3673_v33, %v3259_v53  ;;  %2671 = vmatmul.bf16.gmra.mxu3 %v4028_v42  ;;  %v3408_v33 = vld [vmem:[#allocation2 + $0x2ea] sm:$0xff]  ;;  %v3409_v42 = vld [vmem:[#allocation2 + $0x2f2] sm:$0xff] }
 0x407   :  { %v3508_v36 = vpack.c.bf16 %v3409_v42, %v3408_v33 }
 0x408   :  { %v14395_v57 = vadd.f32 %v4196_v17, %v3781_v12  ;;  %4243 = vmatmul.bf16.gmra.mxu2 %v14390_v27  ;;  %v12518_v17 = vld [vmem:[%s16527_s2 + $0x200] sm:$0xff] }
 0x409   :  { %3198 = vmatmul.bf16.gmra.mxu0 %v2985_v5  ;;  %v2632_v6 = vpop.f32.mrf.mxu3 }
 0x40a   :  { %v2738_v30 = vadd.f32 %v2632_v6, %v14037_v38  ;;  %5151 = vmatpush.bf16.msra.mxu0 %v12518_v17  ;;  %v3932_v38 = vld [vmem:[#allocation2 + $0x308] sm:$0xff] }
 0x40b   :  { %v4204_v26 = vpop.f32.mrf.mxu2  ;;  %v3686_v53 = vpop.f32.mrf.mxu1  ;;  %v14407_v12 = vpack.c.bf16 %v3932_v38, %v3931_v11  ;;  %v3410_v17 = vld [vmem:[#allocation2 + $0x302] sm:$0xff] }
 0x40c   :  { %v3260_v29 = vadd.f32 %v3154_v58, %v2738_v30  ;;  %v2888_v11 = vld [vmem:[#allocation2 + $0x301] sm:$0xff] }
 0x40e   :  { %v3161_v35 = vpop.f32.mrf.mxu0  ;;  %v3782_v34 = vadd.f32 %v3676_v43, %v3260_v29  ;;  %3725 = vmatmul.bf16.gmra.mxu1 %v3508_v36  ;;  %v2986_v43 = vpack.c.bf16 %v2887_v50, %v2886_v13  ;;  %v3411_v36 = vld [vmem:[#allocation2 + $0x30a] sm:$0xff] }
 0x410   :  { %v14404_v16 = vadd.f32 %v4199_v2, %v3782_v34 }
 0x411   :  { %v2634_v52 = vpop.f32.mrf.mxu3 }
 0x412   :  { %v2739_v58 = vadd.f32 %v2634_v52, %v14043_v19 }
 0x413   :  { %v4206_v46 = vpop.f32.mrf.mxu2  ;;  %v14422_v34 = vpop.f32.mrf.mxu1 }
 0x414   :  { %v3261_v5 = vadd.f32 %v3156_v37, %v2739_v58  ;;  %v12696_v37 = vld [vmem:[%s16525_s0 + $0x331] sm:$0xff]  ;;  %16694 = vst [vmem:[#allocation33_spill] sm:$0xff] %v14422_v34  ;;  %v4964_v34 = vld [vmem:[#allocation2 + $0x27a] sm:$0xff] }
 0x415   :  { %v375_v42 = vmul.f32 %v12696_v37, %v16639_v54 }
 0x416   :  { %v3164_v62 = vpop.f32.mrf.mxu0  ;;  %v3783_v6 = vadd.f32 %v3678_v24, %v3261_v5  ;;  %2676 = vmatmul.bf16.gmra.mxu3 %v14379_v60  ;;  %v12697_v60 = vld [vmem:[%s16525_s0 + $0x339] sm:$0xff]  ;;  %v2889_v5 = vld [vmem:[#allocation2 + $0x309] sm:$0xff] }
 0x417   :  { %v376_v24 = vmul.f32 %v12697_v60, %v16639_v54  ;;  %v14426_v13 = vadd.f32 %v16640_v8, %v375_v42 }
 0x418   :  { %v14410_v2 = vadd.f32 %v4201_v45, %v3783_v6  ;;  %4248 = vmatmul.bf16.gmra.mxu2 %v14407_v12  ;;  %v3934_v6 = vld [vmem:[#allocation2 + $0x320] sm:$0xff] }
 0x419   :  { %3203 = vmatmul.bf16.gmra.mxu0 %v2986_v43  ;;  %v2637_v30 = vpop.f32.mrf.mxu3  ;;  %v14429_v52 = vadd.f32 %v16640_v8, %v376_v24  ;;  %v504_v54 = vmax.f32 %v14426_v13, 0.0  ;;  %v3933_v43 = vld [vmem:[#allocation2 + $0x318] sm:$0xff] }
 0x41a   :  { %v2740_v29 = vadd.f32 %v2637_v30, %v14055_v39 }
 0x41b   :  { %v4209_v33 = vpop.f32.mrf.mxu2  ;;  %v505_v38 = vmax.f32 %v14429_v52, 0.0  ;;  %677 = vst [vmem:[#allocation2 + $0x331] sm:$0xff] %v504_v54  ;;  %v3691_v42 = vpop.f32.mrf.mxu1 }
 0x41c   :  { %v3262_v19 = vadd.f32 %v3159_v31, %v2740_v29  ;;  %v3509_v31 = vpack.c.bf16 %v3411_v36, %v3410_v17  ;;  %v2987_v29 = vpack.c.bf16 %v2889_v5, %v2888_v11 }
 0x41d   :  { %678 = vst [vmem:[#allocation2 + $0x339] sm:$0xff] %v505_v38 }
 0x41e   :  { %v3166_v45 = vpop.f32.mrf.mxu0  ;;  %v3784_v39 = vadd.f32 %v14385_v61, %v3262_v19  ;;  %3730 = vmatmul.bf16.gmra.mxu1 %v3509_v31  ;;  %v3412_v31 = vld [vmem:[#allocation2 + $0x31a] sm:$0xff] }
 0x420   :  { %v14431_v50 = vadd.f32 %v4204_v26, %v3784_v39  ;;  %v4032_v26 = vpack.c.bf16 %v3934_v6, %v3933_v43 }
 0x421   :  { %v2639_v58 = vpop.f32.mrf.mxu3 }
 0x422   :  { %v2741_v61 = vadd.f32 %v2639_v58, %v14061_v9  ;;  %v3935_v5 = vld [vmem:[#allocation2 + $0x330] sm:$0xff] }
 0x423   :  { %v14436_v30 = vpop.f32.mrf.mxu2  ;;  %v14445_v58 = vpop.f32.mrf.mxu1 }
 0x424   :  { %16695 = vst [vmem:[#allocation34_spill] sm:$0xff] %v14436_v30  ;;  %v3263_v8 = vadd.f32 %v3161_v35, %v2741_v61  ;;  %v3413_v35 = vld [vmem:[#allocation2 + $0x322] sm:$0xff]  ;;  %v3936_v43 = vld [vmem:[#allocation2 + $0x338] sm:$0xff] }
 0x425   :  { %v3510_v52 = vpack.c.bf16 %v3413_v35, %v3412_v31  ;;  %16696 = vst [vmem:[#allocation35_spill] sm:$0xff] %v14445_v58  ;;  %v3414_v31 = vld [vmem:[#allocation2 + $0x332] sm:$0xff]  ;;  %v4960_v58 = vld [vmem:[#allocation2 + $0x24a] sm:$0xff] }
 0x426   :  { %v3169_v19 = vpop.f32.mrf.mxu0  ;;  %v3785_v37 = vadd.f32 %v14398_v32, %v3263_v8  ;;  %2681 = vmatmul.bf16.gmra.mxu3 %v14390_v27  ;;  %v2890_v32 = vld [vmem:[#allocation2 + $0x319] sm:$0xff]  ;;  %v4033_v8 = vpack.c.bf16 %v3936_v43, %v3935_v5  ;;  %v16770_v30 = vld [vmem:[#allocation25_spill] sm:$0xff] }
 0x428   :  { %v14440_v60 = vadd.f32 %v4206_v46, %v3785_v37  ;;  %4253 = vmatmul.bf16.gmra.mxu2 %v4032_v26  ;;  %v2891_v46 = vld [vmem:[#allocation2 + $0x321] sm:$0xff] }
 0x429   :  { %3208 = vmatmul.bf16.gmra.mxu0 %v2987_v29  ;;  %v2642_v24 = vpop.f32.mrf.mxu3  ;;  %v2988_v61 = vpack.c.bf16 %v2891_v46, %v2890_v32 }
 0x42a   :  { %v2742_v9 = vadd.f32 %v2642_v24, %v14068_v21 }
 0x42b   :  { %v4214_v17 = vpop.f32.mrf.mxu2  ;;  %v3696_v37 = vpop.f32.mrf.mxu1 }
 0x42c   :  { %v3264_v36 = vadd.f32 %v3164_v62, %v2742_v9 }
 0x42e   :  { %v3171_v39 = vpop.f32.mrf.mxu0  ;;  %v3786_v13 = vadd.f32 %v3686_v53, %v3264_v36  ;;  %3735 = vmatmul.bf16.gmra.mxu1 %v3510_v52 }
 0x430   :  { %v14443_v11 = vadd.f32 %v4209_v33, %v3786_v13 }
 0x431   :  { %v2644_v27 = vpop.f32.mrf.mxu3 }
 0x432   :  { %v2743_v6 = vadd.f32 %v2644_v27, %v14074_v4  ;;  %v3415_v4 = vld [vmem:[#allocation2 + $0x33a] sm:$0xff]  ;;  %v2989_v27 = vpack.c.bf16 %v505_v38, %v504_v54  ;;  %v4919_v38 = vld [vmem:[#allocation2 + $0x32] sm:$0xff] }
 0x433   :  { %v14448_v21 = vpop.f32.mrf.mxu2  ;;  %v3511_v13 = vpack.c.bf16 %v3415_v4, %v3414_v31  ;;  %v14459_v5 = vpop.f32.mrf.mxu1 }
 0x434   :  { %16697 = vst [vmem:[#allocation36_spill] sm:$0xff] %v14448_v21  ;;  %v14450_v62 = vadd.f32 %v3166_v45, %v2743_v6  ;;  %v4959_v21 = vld [vmem:[#allocation2 + $0x242] sm:$0xff] }
 0x435   :  { %16700 = vst [vmem:[#allocation48_spill] sm:$0xff] %v14459_v5  ;;  %v4436_v5 = vld [vmem:[#allocation2 + $0x231] sm:$0xff] }
 0x436   :  { %16698 = vst [vmem:[#allocation46_spill] sm:$0xff] %v14450_v62  ;;  %v3174_v53 = vpop.f32.mrf.mxu0  ;;  %2686 = vmatmul.bf16.gmra.mxu3 %v14407_v12  ;;  %v16774_v62 = vld [vmem:[#allocation27_spill] sm:$0xff] }
 0x438   :  { %4258 = vmatmul.bf16.gmra.mxu2 %v4033_v8 }
 0x439   :  { %3213 = vmatmul.bf16.gmra.mxu0 %v2988_v61  ;;  %v2647_v33 = vpop.f32.mrf.mxu3 }
 0x43a   :  { %v2744_v29 = vadd.f32 %v2647_v33, %v14080_v49  ;;  %v4920_v33 = vld [vmem:[#allocation2 + $0x3a] sm:$0xff] }
 0x43b   :  { %v4219_v36 = vpop.f32.mrf.mxu2  ;;  %v3701_v61 = vpop.f32.mrf.mxu1 }
 0x43c   :  { %v3266_v24 = vadd.f32 %v3169_v19, %v2744_v29 }
 0x43e   :  { %v3176_v9 = vpop.f32.mrf.mxu0  ;;  %v3788_v35 = vadd.f32 %v3691_v42, %v3266_v24  ;;  %3740 = vmatmul.bf16.gmra.mxu1 %v3511_v13  ;;  %v5047_v24 = vpack.c.bf16 %v4920_v33, %v4919_v38  ;;  %v4397_v13 = vld [vmem:[#allocation2 + $0x31] sm:$0xff] }
 0x440   :  { %v14454_v45 = vadd.f32 %v4214_v17, %v3788_v35 }
 0x441   :  { %v2649_v52 = vpop.f32.mrf.mxu3 }
 0x442   :  { %v2745_v32 = vadd.f32 %v2649_v52, %v14086_v25  ;;  %v4398_v52 = vld [vmem:[#allocation2 + $0x39] sm:$0xff] }
 0x443   :  { %v14461_v49 = vpop.f32.mrf.mxu2 }
 0x444   :  { %v14457_v12 = vadd.f32 %v3171_v39, %v2745_v32  ;;  %16701 = vst [vmem:[#allocation49_spill] sm:$0xff] %v14461_v49  ;;  %v16758_v49 = vld [vmem:[#allocation19_spill] sm:$0xff] }
 0x446   :  { %16699 = vst [vmem:[#allocation47_spill] sm:$0xff] %v14457_v12  ;;  %v3179_v46 = vpop.f32.mrf.mxu0  ;;  %2691 = vmatmul.bf16.gmra.mxu3 %v4032_v26  ;;  %v4962_v12 = vld [vmem:[#allocation2 + $0x262] sm:$0xff] }
 0x448   :  { %4263 = vmatmul.bf16.gmra.mxu2 %v14232_v14 }
 0x449   :  { %3218 = vmatmul.bf16.gmra.mxu0 %v2989_v27  ;;  %v2652_v19 = vpop.f32.mrf.mxu3  ;;  %v4922_v27 = vld [vmem:[#allocation2 + $0x52] sm:$0xff] }
 0x44a   :  { %v2746_v42 = vadd.f32 %v2652_v19, %v14095_v47  ;;  %v14470_v47 = vpop.f32.mrf.mxu1  ;;  %v4525_v19 = vpack.c.bf16 %v4398_v52, %v4397_v13 }
 0x44b   :  { %v4224_v54 = vpop.f32.mrf.mxu2  ;;  %16703 = vst [vmem:[#allocation51_spill] sm:$0xff] %v14470_v47  ;;  %v16754_v47 = vld [vmem:[#allocation17_spill] sm:$0xff] }
 0x44c   :  { %v3268_v17 = vadd.f32 %v3174_v53, %v2746_v42 }
 0x44e   :  { %v3181_v43 = vpop.f32.mrf.mxu0  ;;  %v3790_v6 = vadd.f32 %v3696_v37, %v3268_v17 }
 0x450   :  { %v14465_v25 = vadd.f32 %v4219_v36, %v3790_v6 }
 0x451   :  { %v2654_v39 = vpop.f32.mrf.mxu3 }
 0x452   :  { %v2747_v26 = vadd.f32 %v2654_v39, %v14101_v1  ;;  %v3706_v42 = vpop.f32.mrf.mxu1 }
 0x453   :  { %v14473_v37 = vpop.f32.mrf.mxu2 }
 0x454   :  { %v14468_v29 = vadd.f32 %v3176_v9, %v2747_v26  ;;  %16704 = vst [vmem:[#allocation52_spill] sm:$0xff] %v14473_v37  ;;  %v4921_v9 = vld [vmem:[#allocation2 + $0x4a] sm:$0xff]  ;;  %v4954_v37 = vld [vmem:[#allocation2 + $0x202] sm:$0xff] }
 0x455   :  { %v5048_v6 = vpack.c.bf16 %v4922_v27, %v4921_v9 }
 0x456   :  { %16702 = vst [vmem:[#allocation50_spill] sm:$0xff] %v14468_v29  ;;  %v3184_v31 = vpop.f32.mrf.mxu0  ;;  %2696 = vmatmul.bf16.gmra.mxu3 %v4033_v8 }
 0x459   :  { %5152 = vmatmul.bf16.vlgmr.msra.gmra.mxu0 %v5047_v24  ;;  %v2657_v14 = vpop.f32.mrf.mxu3  ;;  %v4399_v24 = vld [vmem:[#allocation2 + $0x49] sm:$0xff] }
 0x45a   :  { %v2748_v53 = vadd.f32 %v2657_v14, %v14110_v7  ;;  %v4400_v14 = vld [vmem:[#allocation2 + $0x51] sm:$0xff] }
 0x45b   :  { %v4229_v7 = vpop.f32.mrf.mxu2  ;;  %v4526_v52 = vpack.c.bf16 %v4400_v14, %v4399_v24  ;;  %v4926_v24 = vld [vmem:[#allocation2 + $0x82] sm:$0xff] }
 0x45c   :  { %v3270_v36 = vadd.f32 %v3179_v46, %v2748_v53 }
 0x45e   :  { %v3186_v4 = vpop.f32.mrf.mxu0  ;;  %v3792_v35 = vadd.f32 %v3701_v61, %v3270_v36  ;;  %v4923_v36 = vld [vmem:[#allocation2 + $0x62] sm:$0xff] }
 0x460   :  { %v14475_v32 = vadd.f32 %v4224_v54, %v3792_v35  ;;  %v14481_v54 = vpop.f32.mrf.mxu1  ;;  %v4924_v35 = vld [vmem:[#allocation2 + $0x6a] sm:$0xff] }
 0x461   :  { %v2659_v1 = vpop.f32.mrf.mxu3  ;;  %16706 = vst [vmem:[#allocation54_spill] sm:$0xff] %v14481_v54  ;;  %v4951_v54 = vld [vmem:[#allocation2 + $0x1e2] sm:$0xff] }
 0x462   :  { %v2749_v8 = vadd.f32 %v2659_v1, %v14119_v51 }
 0x463   :  { %v14483_v51 = vpop.f32.mrf.mxu2 }
 0x464   :  { %v14478_v17 = vadd.f32 %v3181_v43, %v2749_v8  ;;  %16707 = vst [vmem:[#allocation55_spill] sm:$0xff] %v14483_v51 }
 0x466   :  { %16705 = vst [vmem:[#allocation53_spill] sm:$0xff] %v14478_v17  ;;  %v3189_v39 = vpop.f32.mrf.mxu0  ;;  %4630 = vmatmul.bf16.vlgmr.msra.gmra.mxu3 %v4525_v19  ;;  %v4956_v17 = vld [vmem:[#allocation2 + $0x21a] sm:$0xff] }
 0x468   :  { %v3711_v9 = vpop.f32.mrf.mxu1 }
 0x469   :  { %5157 = vmatmul.bf16.gmra.mxu0 %v5048_v6  ;;  %v2662_v46 = vpop.f32.mrf.mxu3 }
 0x46a   :  { %v2750_v61 = vadd.f32 %v2662_v46, %v14020_v56  ;;  %v5049_v56 = vpack.c.bf16 %v4924_v35, %v4923_v36  ;;  %v4401_v46 = vld [vmem:[#allocation2 + $0x61] sm:$0xff] }
 0x46b   :  { %v4234_v8 = vpop.f32.mrf.mxu2 }
 0x46c   :  { %v3272_v38 = vadd.f32 %v3184_v31, %v2750_v61  ;;  %v4402_v61 = vld [vmem:[#allocation2 + $0x69] sm:$0xff] }
 0x46e   :  { %v3191_v33 = vpop.f32.mrf.mxu0  ;;  %v3794_v26 = vadd.f32 %v3706_v42, %v3272_v38 }
 0x470   :  { %v14485_v53 = vadd.f32 %v4229_v7, %v3794_v26  ;;  %v14493_v26 = vpop.f32.mrf.mxu1 }
 0x471   :  { %v2664_v43 = vpop.f32.mrf.mxu3  ;;  %16709 = vst [vmem:[#allocation57_spill] sm:$0xff] %v14493_v26  ;;  %v16742_v26 = vld [vmem:[#allocation11_spill] sm:$0xff] }
 0x472   :  { %v2751_v13 = vadd.f32 %v2664_v43, %v14026_v59  ;;  %v4527_v43 = vpack.c.bf16 %v4402_v61, %v4401_v46  ;;  %v4927_v61 = vld [vmem:[#allocation2 + $0x92] sm:$0xff] }
 0x473   :  { %v14496_v36 = vpop.f32.mrf.mxu2 }
 0x474   :  { %v14488_v1 = vadd.f32 %v3186_v4, %v2751_v13  ;;  %v4925_v4 = vld [vmem:[#allocation2 + $0x7a] sm:$0xff]  ;;  %16710 = vst [vmem:[#allocation58_spill] sm:$0xff] %v14496_v36  ;;  %v4948_v36 = vld [vmem:[#allocation2 + $0x18a] sm:$0xff] }
 0x476   :  { %16708 = vst [vmem:[#allocation56_spill] sm:$0xff] %v14488_v1  ;;  %v3194_v31 = vpop.f32.mrf.mxu0  ;;  %4635 = vmatmul.bf16.gmra.mxu3 %v4526_v52  ;;  %v4952_v1 = vld [vmem:[#allocation2 + $0x1ea] sm:$0xff] }
 0x479   :  { %5162 = vmatmul.bf16.gmra.mxu0 %v5049_v56  ;;  %v2667_v27 = vpop.f32.mrf.mxu3  ;;  %v3716_v56 = vpop.f32.mrf.mxu1 }
 0x47a   :  { %v2752_v19 = vadd.f32 %v2667_v27, %v14035_v15  ;;  %v5050_v15 = vpack.c.bf16 %v4926_v24, %v4925_v4 }
 0x47b   :  { %v4239_v27 = vpop.f32.mrf.mxu2 }
 0x47c   :  { %v3274_v42 = vadd.f32 %v3189_v39, %v2752_v19 }
 0x47e   :  { %v3196_v6 = vpop.f32.mrf.mxu0  ;;  %v3796_v7 = vadd.f32 %v3711_v9, %v3274_v42  ;;  %v4403_v42 = vld [vmem:[#allocation2 + $0x79] sm:$0xff] }
 0x480   :  { %v14491_v38 = vadd.f32 %v4234_v8, %v3796_v7  ;;  %v4404_v7 = vld [vmem:[#allocation2 + $0x81] sm:$0xff] }
 0x481   :  { %v2669_v59 = vpop.f32.mrf.mxu3  ;;  %v4528_v4 = vpack.c.bf16 %v4404_v7, %v4403_v42 }
 0x482   :  { %v2753_v14 = vadd.f32 %v2669_v59, %v14041_v10 }
 0x484   :  { %v14498_v35 = vadd.f32 %v3191_v33, %v2753_v14  ;;  %v4928_v33 = vld [vmem:[#allocation2 + $0x9a] sm:$0xff] }
 0x485   :  { %v5051_v14 = vpack.c.bf16 %v4928_v33, %v4927_v61 }
 0x486   :  { %16711 = vst [vmem:[#allocation59_spill] sm:$0xff] %v14498_v35  ;;  %v3199_v39 = vpop.f32.mrf.mxu0  ;;  %4640 = vmatmul.bf16.gmra.mxu3 %v4527_v43  ;;  %v4428_v35 = vld [vmem:[#allocation2 + $0x1a1] sm:$0xff] }
 0x489   :  { %5167 = vmatmul.bf16.gmra.mxu0 %v5050_v15  ;;  %v2672_v13 = vpop.f32.mrf.mxu3 }
 0x48a   :  { %v2754_v52 = vadd.f32 %v2672_v13, %v14050_v0 }
 0x48c   :  { %v3276_v9 = vadd.f32 %v3194_v31, %v2754_v52  ;;  %v4405_v52 = vld [vmem:[#allocation2 + $0x91] sm:$0xff] }
 0x48e   :  { %v3201_v8 = vpop.f32.mrf.mxu0  ;;  %v3798_v19 = vadd.f32 %v3716_v56, %v3276_v9  ;;  %v4406_v56 = vld [vmem:[#allocation2 + $0x99] sm:$0xff] }
 0x48f   :  { %v4529_v42 = vpack.c.bf16 %v4406_v56, %v4405_v52 }
 0x490   :  { %v14501_v10 = vadd.f32 %v4239_v27, %v3798_v19  ;;  %v4929_v27 = vld [vmem:[#allocation2 + $0xaa] sm:$0xff]  ;;  %v4930_v19 = vld [vmem:[#allocation2 + $0xb2] sm:$0xff] }
 0x491   :  { %v2674_v46 = vpop.f32.mrf.mxu3  ;;  %v5052_v7 = vpack.c.bf16 %v4930_v19, %v4929_v27 }
 0x492   :  { %v2755_v59 = vadd.f32 %v2674_v46, %v14059_v18 }
 0x494   :  { %v14504_v24 = vadd.f32 %v3196_v6, %v2755_v59  ;;  %v4407_v59 = vld [vmem:[#allocation2 + $0xa9] sm:$0xff] }
 0x496   :  { %16712 = vst [vmem:[#allocation60_spill] sm:$0xff] %v14504_v24  ;;  %v3204_v43 = vpop.f32.mrf.mxu0  ;;  %4645 = vmatmul.bf16.gmra.mxu3 %v4528_v4  ;;  %v4408_v4 = vld [vmem:[#allocation2 + $0xb1] sm:$0xff]  ;;  %v16738_v24 = vld [vmem:[#allocation8_spill] sm:$0xff] }
 0x497   :  { %v4530_v52 = vpack.c.bf16 %v4408_v4, %v4407_v59 }
 0x499   :  { %5172 = vmatmul.bf16.gmra.mxu0 %v5051_v14  ;;  %v2677_v0 = vpop.f32.mrf.mxu3 }
 0x49a   :  { %v2756_v31 = vadd.f32 %v2677_v0, %v14066_v22  ;;  %v4931_v0 = vld [vmem:[#allocation2 + $0xc2] sm:$0xff] }
 0x49c   :  { %v14507_v15 = vadd.f32 %v3199_v39, %v2756_v31  ;;  %v4932_v31 = vld [vmem:[#allocation2 + $0xca] sm:$0xff] }
 0x49d   :  { %v5053_v56 = vpack.c.bf16 %v4932_v31, %v4931_v0  ;;  %v16720_v31 = vld [vmem:[#allocation38_spill] sm:$0xff] }
 0x49e   :  { %16713 = vst [vmem:[#allocation61_spill] sm:$0xff] %v14507_v15  ;;  %v3206_v13 = vpop.f32.mrf.mxu0  ;;  %v4946_v15 = vld [vmem:[#allocation2 + $0x172] sm:$0xff] }
 0x4a1   :  { %v2679_v9 = vpop.f32.mrf.mxu3 }
 0x4a2   :  { %v2757_v18 = vadd.f32 %v2679_v9, %v14072_v3 }
 0x4a4   :  { %v14510_v6 = vadd.f32 %v3201_v8, %v2757_v18  ;;  %v4409_v18 = vld [vmem:[#allocation2 + $0xc1] sm:$0xff] }
 0x4a6   :  { %16714 = vst [vmem:[#allocation62_spill] sm:$0xff] %v14510_v6  ;;  %v3209_v46 = vpop.f32.mrf.mxu0  ;;  %4650 = vmatmul.bf16.gmra.mxu3 %v4529_v42  ;;  %v4410_v42 = vld [vmem:[#allocation2 + $0xc9] sm:$0xff]  ;;  %v4944_v6 = vld [vmem:[#allocation2 + $0x15a] sm:$0xff] }
 0x4a7   :  { %v4531_v59 = vpack.c.bf16 %v4410_v42, %v4409_v18 }
 0x4a9   :  { %5177 = vmatmul.bf16.gmra.mxu0 %v5052_v7  ;;  %v2682_v61 = vpop.f32.mrf.mxu3 }
 0x4aa   :  { %v2758_v22 = vadd.f32 %v2682_v61, %v14078_v41  ;;  %v4933_v61 = vld [vmem:[#allocation2 + $0xda] sm:$0xff] }
 0x4ac   :  { %v14513_v39 = vadd.f32 %v3204_v43, %v2758_v22  ;;  %v4934_v22 = vld [vmem:[#allocation2 + $0xe2] sm:$0xff] }
 0x4ad   :  { %v5054_v4 = vpack.c.bf16 %v4934_v22, %v4933_v61  ;;  %v16724_v22 = vld [vmem:[#allocation40_spill] sm:$0xff] }
 0x4ae   :  { %16715 = vst [vmem:[#allocation63_spill] sm:$0xff] %v14513_v39  ;;  %v3211_v33 = vpop.f32.mrf.mxu0  ;;  %v16718_v39 = vld [vmem:[#allocation37_spill] sm:$0xff] }
 0x4b1   :  { %v2684_v14 = vpop.f32.mrf.mxu3 }
 0x4b2   :  { %v2759_v3 = vadd.f32 %v2684_v14, %v14084_v48 }
 0x4b4   :  { %v14516_v8 = vadd.f32 %v3206_v13, %v2759_v3 }
 0x4b6   :  { %16716 = vst [vmem:[#allocation64_spill] sm:$0xff] %v14516_v8  ;;  %v3214_v9 = vpop.f32.mrf.mxu0  ;;  %4655 = vmatmul.bf16.gmra.mxu3 %v4530_v52  ;;  %v4411_v52 = vld [vmem:[#allocation2 + $0xd9] sm:$0xff] }
 0x4b7   :  { %v16722_v8 = vld [vmem:[#allocation39_spill] sm:$0xff] }
 0x4b9   :  { %5182 = vmatmul.bf16.gmra.mxu0 %v5053_v56  ;;  %v2687_v27 = vpop.f32.mrf.mxu3  ;;  %v4412_v56 = vld [vmem:[#allocation2 + $0xe1] sm:$0xff] }
 0x4ba   :  { %v2760_v41 = vadd.f32 %v2687_v27, %v14093_v23  ;;  %v4532_v18 = vpack.c.bf16 %v4412_v56, %v4411_v52 }
 0x4bc   :  { %v14519_v43 = vadd.f32 %v3209_v46, %v2760_v41  ;;  %v4935_v41 = vld [vmem:[#allocation2 + $0xf2] sm:$0xff] }
 0x4be   :  { %16717 = vst [vmem:[#allocation65_spill] sm:$0xff] %v14519_v43  ;;  %v3216_v19 = vpop.f32.mrf.mxu0  ;;  %v4936_v43 = vld [vmem:[#allocation2 + $0xfa] sm:$0xff] }
 0x4bf   :  { %v5055_v42 = vpack.c.bf16 %v4936_v43, %v4935_v41 }
 0x4c1   :  { %v2689_v7 = vpop.f32.mrf.mxu3 }
 0x4c2   :  { %v2761_v48 = vadd.f32 %v2689_v7, %v16718_v39 }
 0x4c4   :  { %v14522_v13 = vadd.f32 %v3211_v33, %v2761_v48 }
 0x4c6   :  { %16719 = vst [vmem:[#allocation37_spill] sm:$0xff] %v14522_v13  ;;  %v3219_v14 = vpop.f32.mrf.mxu0  ;;  %4660 = vmatmul.bf16.gmra.mxu3 %v4531_v59  ;;  %v16726_v13 = vld [vmem:[#allocation41_spill] sm:$0xff] }
 0x4c9   :  { %5187 = vmatmul.bf16.gmra.mxu0 %v5054_v4  ;;  %v2692_v0 = vpop.f32.mrf.mxu3  ;;  %v4413_v4 = vld [vmem:[#allocation2 + $0xf1] sm:$0xff] }
 0x4ca   :  { %v2762_v23 = vadd.f32 %v2692_v0, %v16720_v31  ;;  %v4414_v0 = vld [vmem:[#allocation2 + $0xf9] sm:$0xff] }
 0x4cb   :  { %v4533_v52 = vpack.c.bf16 %v4414_v0, %v4413_v4 }
 0x4cc   :  { %v14525_v46 = vadd.f32 %v3214_v9, %v2762_v23  ;;  %v4937_v23 = vld [vmem:[#allocation2 + $0x10a] sm:$0xff] }
 0x4ce   :  { %16721 = vst [vmem:[#allocation38_spill] sm:$0xff] %v14525_v46  ;;  %v3221_v3 = vpop.f32.mrf.mxu0  ;;  %v4938_v46 = vld [vmem:[#allocation2 + $0x112] sm:$0xff] }
 0x4cf   :  { %v5056_v43 = vpack.c.bf16 %v4938_v46, %v4937_v23 }
 0x4d1   :  { %v2694_v27 = vpop.f32.mrf.mxu3 }
 0x4d2   :  { %v2763_v39 = vadd.f32 %v2694_v27, %v16722_v8 }
 0x4d4   :  { %v14528_v33 = vadd.f32 %v3216_v19, %v2763_v39 }
 0x4d6   :  { %16723 = vst [vmem:[#allocation39_spill] sm:$0xff] %v14528_v33  ;;  %v5153_v7 = vpop.f32.mrf.mxu0  ;;  %4665 = vmatmul.bf16.gmra.mxu3 %v4532_v18  ;;  %v4415_v18 = vld [vmem:[#allocation2 + $0x109] sm:$0xff]  ;;  %v4943_v33 = vld [vmem:[#allocation2 + $0x152] sm:$0xff] }
 0x4d9   :  { %5192 = vmatmul.bf16.gmra.mxu0 %v5055_v42  ;;  %v2697_v61 = vpop.f32.mrf.mxu3  ;;  %v4416_v42 = vld [vmem:[#allocation2 + $0x111] sm:$0xff] }
 0x4da   :  { %v2764_v48 = vadd.f32 %v2697_v61, %v16724_v22  ;;  %v4939_v22 = vld [vmem:[#allocation2 + $0x122] sm:$0xff]  ;;  %v4534_v4 = vpack.c.bf16 %v4416_v42, %v4415_v18  ;;  %v16730_v42 = vld [vmem:[#allocation43_spill] sm:$0xff] }
 0x4db   :  { %v4942_v18 = vld [vmem:[#allocation2 + $0x142] sm:$0xff] }
 0x4dc   :  { %v14531_v9 = vadd.f32 %v3219_v14, %v2764_v48  ;;  %v4940_v48 = vld [vmem:[#allocation2 + $0x12a] sm:$0xff] }
 0x4dd   :  { %v5057_v46 = vpack.c.bf16 %v4940_v48, %v4939_v22 }
 0x4de   :  { %16725 = vst [vmem:[#allocation40_spill] sm:$0xff] %v14531_v9  ;;  %v5155_v59 = vpop.f32.mrf.mxu0 }
 0x4e1   :  { %v2699_v31 = vpop.f32.mrf.mxu3 }
 0x4e2   :  { %v2765_v8 = vadd.f32 %v2699_v31, %v16726_v13  ;;  %v16728_v31 = vld [vmem:[#allocation42_spill] sm:$0xff] }
 0x4e4   :  { %v14534_v19 = vadd.f32 %v3221_v3, %v2765_v8 }
 0x4e6   :  { %16727 = vst [vmem:[#allocation41_spill] sm:$0xff] %v14534_v19  ;;  %v5158_v56 = vpop.f32.mrf.mxu0  ;;  %4670 = vmatmul.bf16.gmra.mxu3 %v4533_v52  ;;  %v4420_v19 = vld [vmem:[#allocation2 + $0x141] sm:$0xff] }
 0x4e9   :  { %5197 = vmatmul.bf16.gmra.mxu0 %v5056_v43  ;;  %v4631_v27 = vpop.f32.mrf.mxu3  ;;  %v4417_v43 = vld [vmem:[#allocation2 + $0x121] sm:$0xff] }
 0x4ea   :  { %v4791_v41 = vadd.f32 %v4631_v27, %v14136_v20  ;;  %v12541_v20 = vld [vmem:[%s16529_s4 + $0x78] sm:$0xff] }
 0x4eb   :  { %6905 = vmatpush.bf16.msra.mxu2 %v12541_v20 }
 0x4ec   :  { %v14537_v14 = vadd.f32 %v5153_v7, %v4791_v41  ;;  %v4941_v41 = vld [vmem:[#allocation2 + $0x13a] sm:$0xff] }
 0x4ee   :  { %v5160_v39 = vpop.f32.mrf.mxu0 }
 0x4f1   :  { %v4633_v61 = vpop.f32.mrf.mxu3 }
 0x4f2   :  { %v4792_v13 = vadd.f32 %v4633_v61, %v14142_v28  ;;  %v4418_v28 = vld [vmem:[#allocation2 + $0x129] sm:$0xff] }
 0x4f3   :  { %v4535_v22 = vpack.c.bf16 %v4418_v28, %v4417_v43 }
 0x4f4   :  { %v14540_v3 = vadd.f32 %v5155_v59, %v4792_v13  ;;  %v12533_v59 = vld [vmem:[%s16529_s4 + $0x38] sm:$0xff]  ;;  %v5058_v13 = vpack.c.bf16 %v4942_v18, %v4941_v41 }
 0x4f5   :  { %6383 = vmatpush.bf16.msra.mxu1 %v12533_v59  ;;  %v5059_v59 = vpack.c.bf16 %v4944_v6, %v4943_v33 }
 0x4f6   :  { %v5163_v0 = vpop.f32.mrf.mxu0  ;;  %4675 = vmatmul.bf16.gmra.mxu3 %v4534_v4 }
 0x4f9   :  { %5202 = vmatmul.bf16.gmra.mxu0 %v5057_v46  ;;  %v4636_v7 = vpop.f32.mrf.mxu3  ;;  %v16732_v46 = vld [vmem:[#allocation44_spill] sm:$0xff] }
 0x4fa   :  { %v4793_v23 = vadd.f32 %v4636_v7, %v16728_v31 }
 0x4fc   :  { %v14546_v8 = vadd.f32 %v5158_v56, %v4793_v23  ;;  %v4419_v23 = vld [vmem:[#allocation2 + $0x139] sm:$0xff] }
 0x4fd   :  { %v4536_v28 = vpack.c.bf16 %v4420_v19, %v4419_v23 }
 0x4fe   :  { %16729 = vst [vmem:[#allocation42_spill] sm:$0xff] %v14546_v8  ;;  %v5165_v52 = vpop.f32.mrf.mxu0 }
 0x501   :  { %v4638_v27 = vpop.f32.mrf.mxu3 }
 0x502   :  { %v4794_v61 = vadd.f32 %v4638_v27, %v16730_v42  ;;  %v16734_v27 = vld [vmem:[#allocation45_spill] sm:$0xff]  ;;  %v16736_v42 = vld [vmem:[#allocation10_spill] sm:$0xff] }
 0x504   :  { %v14552_v48 = vadd.f32 %v5160_v39, %v4794_v61 }
 0x506   :  { %16731 = vst [vmem:[#allocation43_spill] sm:$0xff] %v14552_v48  ;;  %v5168_v4 = vpop.f32.mrf.mxu0  ;;  %4680 = vmatmul.bf16.gmra.mxu3 %v4535_v22 }
 0x509   :  { %5207 = vmatmul.bf16.gmra.mxu0 %v5058_v13  ;;  %v4641_v56 = vpop.f32.mrf.mxu3  ;;  %v4421_v13 = vld [vmem:[#allocation2 + $0x151] sm:$0xff] }
 0x50a   :  { %v4795_v20 = vadd.f32 %v4641_v56, %v16732_v46  ;;  %v4422_v56 = vld [vmem:[#allocation2 + $0x159] sm:$0xff] }
 0x50b   :  { %v4537_v19 = vpack.c.bf16 %v4422_v56, %v4421_v13 }
 0x50c   :  { %v14555_v7 = vadd.f32 %v5163_v0, %v4795_v20  ;;  %v4945_v20 = vld [vmem:[#allocation2 + $0x16a] sm:$0xff] }
 0x50d   :  { %v5060_v6 = vpack.c.bf16 %v4946_v15, %v4945_v20  ;;  %v16744_v20 = vld [vmem:[#allocation12_spill] sm:$0xff] }
 0x50e   :  { %16733 = vst [vmem:[#allocation44_spill] sm:$0xff] %v14555_v7  ;;  %v5170_v31 = vpop.f32.mrf.mxu0 }
 0x511   :  { %v4643_v9 = vpop.f32.mrf.mxu3 }
 0x512   :  { %v4796_v43 = vadd.f32 %v4643_v9, %v16734_v27  ;;  %v16740_v27 = vld [vmem:[#allocation9_spill] sm:$0xff] }
 0x514   :  { %v14558_v39 = vadd.f32 %v5165_v52, %v4796_v43 }
 0x516   :  { %16735 = vst [vmem:[#allocation45_spill] sm:$0xff] %v14558_v39  ;;  %v5173_v41 = vpop.f32.mrf.mxu0  ;;  %4685 = vmatmul.bf16.gmra.mxu3 %v4536_v28 }
 0x519   :  { %5212 = vmatmul.bf16.gmra.mxu0 %v5059_v59  ;;  %v4646_v18 = vpop.f32.mrf.mxu3  ;;  %v4423_v59 = vld [vmem:[#allocation2 + $0x169] sm:$0xff] }
 0x51a   :  { %v4797_v61 = vadd.f32 %v4646_v18, %v16736_v42  ;;  %v4424_v18 = vld [vmem:[#allocation2 + $0x171] sm:$0xff] }
 0x51b   :  { %v4538_v13 = vpack.c.bf16 %v4424_v18, %v4423_v59  ;;  %v16746_v59 = vld [vmem:[#allocation13_spill] sm:$0xff] }
 0x51c   :  { %v14561_v0 = vadd.f32 %v5168_v4, %v4797_v61  ;;  %v4947_v61 = vld [vmem:[#allocation2 + $0x182] sm:$0xff] }
 0x51d   :  { %v5061_v15 = vpack.c.bf16 %v4948_v36, %v4947_v61  ;;  %v12532_v36 = vld [vmem:[%s16529_s4 + $0x30] sm:$0xff] }
 0x51e   :  { %16737 = vst [vmem:[#allocation10_spill] sm:$0xff] %v14561_v0  ;;  %v5175_v22 = vpop.f32.mrf.mxu0  ;;  %6384 = vmatpush.bf16.msra.mxu1 %v12532_v36  ;;  %v5063_v36 = vpack.c.bf16 %v4952_v1, %v4951_v54 }
 0x521   :  { %v4648_v46 = vpop.f32.mrf.mxu3 }
 0x522   :  { %v4798_v9 = vadd.f32 %v4648_v46, %v16738_v24 }
 0x524   :  { %v14564_v52 = vadd.f32 %v5170_v31, %v4798_v9 }
 0x526   :  { %16739 = vst [vmem:[#allocation8_spill] sm:$0xff] %v14564_v52  ;;  %v5178_v33 = vpop.f32.mrf.mxu0  ;;  %4690 = vmatmul.bf16.gmra.mxu3 %v4537_v19 }
 0x529   :  { %5217 = vmatmul.bf16.gmra.mxu0 %v5060_v6  ;;  %v4651_v23 = vpop.f32.mrf.mxu3 }
 0x52a   :  { %v4799_v43 = vadd.f32 %v4651_v23, %v16740_v27  ;;  %v4425_v23 = vld [vmem:[#allocation2 + $0x181] sm:$0xff] }
 0x52b   :  { %v4949_v27 = vld [vmem:[#allocation2 + $0x19a] sm:$0xff] }
 0x52c   :  { %v14567_v4 = vadd.f32 %v5173_v41, %v4799_v43  ;;  %v12540_v41 = vld [vmem:[%s16529_s4 + $0x70] sm:$0xff]  ;;  %v4950_v43 = vld [vmem:[#allocation2 + $0x1a2] sm:$0xff] }
 0x52d   :  { %6906 = vmatpush.bf16.msra.mxu2 %v12540_v41 }
 0x52e   :  { %16741 = vst [vmem:[#allocation9_spill] sm:$0xff] %v14567_v4  ;;  %v5180_v28 = vpop.f32.mrf.mxu0 }
 0x531   :  { %v4653_v42 = vpop.f32.mrf.mxu3 }
 0x532   :  { %v4800_v24 = vadd.f32 %v4653_v42, %v16742_v26  ;;  %v4426_v26 = vld [vmem:[#allocation2 + $0x189] sm:$0xff] }
 0x533   :  { %v4539_v42 = vpack.c.bf16 %v4426_v26, %v4425_v23 }
 0x534   :  { %v14570_v31 = vadd.f32 %v5175_v22, %v4800_v24  ;;  %v5062_v24 = vpack.c.bf16 %v4950_v43, %v4949_v27 }
 0x536   :  { %16743 = vst [vmem:[#allocation11_spill] sm:$0xff] %v14570_v31  ;;  %v5183_v56 = vpop.f32.mrf.mxu0  ;;  %4695 = vmatmul.bf16.gmra.mxu3 %v4538_v13 }
 0x539   :  { %5222 = vmatmul.bf16.gmra.mxu0 %v5061_v15  ;;  %v4656_v46 = vpop.f32.mrf.mxu3  ;;  %v16748_v15 = vld [vmem:[#allocation14_spill] sm:$0xff] }
 0x53a   :  { %v4801_v9 = vadd.f32 %v4656_v46, %v16744_v20 }
 0x53c   :  { %v14576_v19 = vadd.f32 %v5178_v33, %v4801_v9  ;;  %v4427_v9 = vld [vmem:[#allocation2 + $0x199] sm:$0xff] }
 0x53d   :  { %v4540_v26 = vpack.c.bf16 %v4428_v35, %v4427_v9 }
 0x53e   :  { %16745 = vst [vmem:[#allocation12_spill] sm:$0xff] %v14576_v19  ;;  %v5185_v6 = vpop.f32.mrf.mxu0 }
 0x541   :  { %v4658_v22 = vpop.f32.mrf.mxu3 }
 0x542   :  { %v4802_v18 = vadd.f32 %v4658_v22, %v16746_v59  ;;  %v16750_v22 = vld [vmem:[#allocation15_spill] sm:$0xff]  ;;  %v16752_v59 = vld [vmem:[#allocation16_spill] sm:$0xff] }
 0x544   :  { %v14582_v61 = vadd.f32 %v5180_v28, %v4802_v18 }
 0x546   :  { %16747 = vst [vmem:[#allocation13_spill] sm:$0xff] %v14582_v61  ;;  %v5188_v13 = vpop.f32.mrf.mxu0  ;;  %4700 = vmatmul.bf16.gmra.mxu3 %v4539_v42 }
 0x549   :  { %5227 = vmatmul.bf16.gmra.mxu0 %v5062_v24  ;;  %v4661_v33 = vpop.f32.mrf.mxu3  ;;  %v4429_v24 = vld [vmem:[#allocation2 + $0x1e1] sm:$0xff] }
 0x54a   :  { %v4803_v41 = vadd.f32 %v4661_v33, %v16748_v15  ;;  %v4430_v33 = vld [vmem:[#allocation2 + $0x1e9] sm:$0xff] }
 0x54b   :  { %v4541_v35 = vpack.c.bf16 %v4430_v33, %v4429_v24 }
 0x54c   :  { %v14585_v46 = vadd.f32 %v5183_v56, %v4803_v41  ;;  %v4953_v41 = vld [vmem:[#allocation2 + $0x1fa] sm:$0xff] }
 0x54d   :  { %v5064_v54 = vpack.c.bf16 %v4954_v37, %v4953_v41  ;;  %v16760_v41 = vld [vmem:[#allocation20_spill] sm:$0xff] }
 0x54e   :  { %16749 = vst [vmem:[#allocation14_spill] sm:$0xff] %v14585_v46  ;;  %v5190_v20 = vpop.f32.mrf.mxu0 }
 0x551   :  { %v4663_v51 = vpop.f32.mrf.mxu3 }
 0x552   :  { %v4804_v23 = vadd.f32 %v4663_v51, %v16750_v22  ;;  %v16756_v22 = vld [vmem:[#allocation18_spill] sm:$0xff] }
 0x554   :  { %v14588_v28 = vadd.f32 %v5185_v6, %v4804_v23 }
 0x556   :  { %16751 = vst [vmem:[#allocation15_spill] sm:$0xff] %v14588_v28  ;;  %v5193_v27 = vpop.f32.mrf.mxu0  ;;  %4705 = vmatmul.bf16.gmra.mxu3 %v4540_v26 }
 0x559   :  { %5232 = vmatmul.bf16.gmra.mxu0 %v5063_v36  ;;  %v4666_v43 = vpop.f32.mrf.mxu3  ;;  %v4431_v36 = vld [vmem:[#allocation2 + $0x1f9] sm:$0xff] }
 0x55a   :  { %v4805_v18 = vadd.f32 %v4666_v43, %v16752_v59  ;;  %v4432_v43 = vld [vmem:[#allocation2 + $0x201] sm:$0xff] }
 0x55b   :  { %v4542_v24 = vpack.c.bf16 %v4432_v43, %v4431_v36  ;;  %v16762_v36 = vld [vmem:[#allocation21_spill] sm:$0xff] }
 0x55c   :  { %v14591_v56 = vadd.f32 %v5188_v13, %v4805_v18  ;;  %v4955_v18 = vld [vmem:[#allocation2 + $0x212] sm:$0xff] }
 0x55d   :  { %v5065_v37 = vpack.c.bf16 %v4956_v17, %v4955_v18  ;;  %v12531_v17 = vld [vmem:[%s16529_s4 + $0x28] sm:$0xff] }
 0x55e   :  { %16753 = vst [vmem:[#allocation16_spill] sm:$0xff] %v14591_v56  ;;  %v5195_v42 = vpop.f32.mrf.mxu0  ;;  %6385 = vmatpush.bf16.msra.mxu1 %v12531_v17  ;;  %v5067_v17 = vpack.c.bf16 %v4960_v58, %v4959_v21 }
 0x561   :  { %v4668_v15 = vpop.f32.mrf.mxu3 }
 0x562   :  { %v4806_v51 = vadd.f32 %v4668_v15, %v16754_v47 }
 0x564   :  { %v14594_v6 = vadd.f32 %v5190_v20, %v4806_v51 }
 0x566   :  { %16755 = vst [vmem:[#allocation17_spill] sm:$0xff] %v14594_v6  ;;  %v5198_v1 = vpop.f32.mrf.mxu0  ;;  %4710 = vmatmul.bf16.gmra.mxu3 %v4541_v35 }
 0x569   :  { %5237 = vmatmul.bf16.gmra.mxu0 %v5064_v54  ;;  %v4671_v9 = vpop.f32.mrf.mxu3 }
 0x56a   :  { %v4807_v23 = vadd.f32 %v4671_v9, %v16756_v22  ;;  %v4433_v9 = vld [vmem:[#allocation2 + $0x211] sm:$0xff] }
 0x56b   :  { %v4957_v22 = vld [vmem:[#allocation2 + $0x22a] sm:$0xff] }
 0x56c   :  { %v14597_v13 = vadd.f32 %v5193_v27, %v4807_v23  ;;  %v12539_v27 = vld [vmem:[%s16529_s4 + $0x68] sm:$0xff]  ;;  %v4958_v23 = vld [vmem:[#allocation2 + $0x232] sm:$0xff] }
 0x56d   :  { %6907 = vmatpush.bf16.msra.mxu2 %v12539_v27 }
 0x56e   :  { %16757 = vst [vmem:[#allocation18_spill] sm:$0xff] %v14597_v13  ;;  %v5200_v26 = vpop.f32.mrf.mxu0 }
 0x571   :  { %v4673_v59 = vpop.f32.mrf.mxu3 }
 0x572   :  { %v4808_v47 = vadd.f32 %v4673_v59, %v16758_v49  ;;  %v4434_v49 = vld [vmem:[#allocation2 + $0x219] sm:$0xff] }
 0x573   :  { %v4543_v59 = vpack.c.bf16 %v4434_v49, %v4433_v9 }
 0x574   :  { %v14600_v20 = vadd.f32 %v5195_v42, %v4808_v47  ;;  %v5066_v47 = vpack.c.bf16 %v4958_v23, %v4957_v22 }
 0x576   :  { %16759 = vst [vmem:[#allocation19_spill] sm:$0xff] %v14600_v20  ;;  %v5203_v33 = vpop.f32.mrf.mxu0  ;;  %4715 = vmatmul.bf16.gmra.mxu3 %v4542_v24 }
 0x579   :  { %5242 = vmatmul.bf16.gmra.mxu0 %v5065_v37  ;;  %v4676_v15 = vpop.f32.mrf.mxu3  ;;  %v16764_v37 = vld [vmem:[#allocation22_spill] sm:$0xff] }
 0x57a   :  { %v4809_v51 = vadd.f32 %v4676_v15, %v16760_v41 }
 0x57c   :  { %v14606_v35 = vadd.f32 %v5198_v1, %v4809_v51  ;;  %v4435_v51 = vld [vmem:[#allocation2 + $0x229] sm:$0xff] }
 0x57d   :  { %v4544_v49 = vpack.c.bf16 %v4436_v5, %v4435_v51 }
 0x57e   :  { %16761 = vst [vmem:[#allocation20_spill] sm:$0xff] %v14606_v35  ;;  %v5205_v54 = vpop.f32.mrf.mxu0 }
 0x581   :  { %v4678_v42 = vpop.f32.mrf.mxu3 }
 0x582   :  { %v4810_v43 = vadd.f32 %v4678_v42, %v16762_v36  ;;  %v16766_v42 = vld [vmem:[#allocation23_spill] sm:$0xff]  ;;  %v16768_v36 = vld [vmem:[#allocation24_spill] sm:$0xff] }
 0x584   :  { %v14612_v18 = vadd.f32 %v5200_v26, %v4810_v43 }
 0x586   :  { %16763 = vst [vmem:[#allocation21_spill] sm:$0xff] %v14612_v18  ;;  %v5208_v24 = vpop.f32.mrf.mxu0  ;;  %4720 = vmatmul.bf16.gmra.mxu3 %v4543_v59 }
 0x589   :  { %5247 = vmatmul.bf16.gmra.mxu0 %v5066_v47  ;;  %v4681_v1 = vpop.f32.mrf.mxu3  ;;  %v4437_v47 = vld [vmem:[#allocation2 + $0x241] sm:$0xff] }
 0x58a   :  { %v4811_v27 = vadd.f32 %v4681_v1, %v16764_v37  ;;  %v4438_v1 = vld [vmem:[#allocation2 + $0x249] sm:$0xff] }
 0x58b   :  { %v4545_v5 = vpack.c.bf16 %v4438_v1, %v4437_v47 }
 0x58c   :  { %v14615_v15 = vadd.f32 %v5203_v33, %v4811_v27  ;;  %v4961_v27 = vld [vmem:[#allocation2 + $0x25a] sm:$0xff] }
 0x58d   :  { %v5068_v58 = vpack.c.bf16 %v4962_v12, %v4961_v27  ;;  %v16776_v27 = vld [vmem:[#allocation28_spill] sm:$0xff] }
 0x58e   :  { %16765 = vst [vmem:[#allocation22_spill] sm:$0xff] %v14615_v15  ;;  %v5210_v41 = vpop.f32.mrf.mxu0 }
 0x591   :  { %v4683_v29 = vpop.f32.mrf.mxu3 }
 0x592   :  { %v4812_v9 = vadd.f32 %v4683_v29, %v16766_v42  ;;  %v16772_v42 = vld [vmem:[#allocation26_spill] sm:$0xff] }
 0x594   :  { %v14618_v26 = vadd.f32 %v5205_v54, %v4812_v9 }
 0x596   :  { %16767 = vst [vmem:[#allocation23_spill] sm:$0xff] %v14618_v26  ;;  %v5213_v22 = vpop.f32.mrf.mxu0  ;;  %4725 = vmatmul.bf16.gmra.mxu3 %v4544_v49 }
 0x599   :  { %5252 = vmatmul.bf16.gmra.mxu0 %v5067_v17  ;;  %v4686_v23 = vpop.f32.mrf.mxu3  ;;  %v4439_v17 = vld [vmem:[#allocation2 + $0x259] sm:$0xff] }
 0x59a   :  { %v4813_v43 = vadd.f32 %v4686_v23, %v16768_v36  ;;  %v4440_v23 = vld [vmem:[#allocation2 + $0x261] sm:$0xff] }
 0x59b   :  { %v4546_v47 = vpack.c.bf16 %v4440_v23, %v4439_v17  ;;  %v16778_v17 = vld [vmem:[#allocation29_spill] sm:$0xff] }
 0x59c   :  { %v14621_v33 = vadd.f32 %v5208_v24, %v4813_v43  ;;  %v4963_v43 = vld [vmem:[#allocation2 + $0x272] sm:$0xff] }
 0x59d   :  { %v5069_v12 = vpack.c.bf16 %v4964_v34, %v4963_v43  ;;  %v12530_v34 = vld [vmem:[%s16529_s4 + $0x20] sm:$0xff] }
 0x59e   :  { %16769 = vst [vmem:[#allocation24_spill] sm:$0xff] %v14621_v33  ;;  %v5215_v59 = vpop.f32.mrf.mxu0  ;;  %6386 = vmatpush.bf16.msra.mxu1 %v12530_v34 }
 0x5a1   :  { %v4688_v37 = vpop.f32.mrf.mxu3 }
 0x5a2   :  { %v4814_v29 = vadd.f32 %v4688_v37, %v16770_v30 }
 0x5a4   :  { %v14624_v54 = vadd.f32 %v5210_v41, %v4814_v29 }
 0x5a6   :  { %16771 = vst [vmem:[#allocation25_spill] sm:$0xff] %v14624_v54  ;;  %v5218_v21 = vpop.f32.mrf.mxu0  ;;  %4730 = vmatmul.bf16.gmra.mxu3 %v4545_v5  ;;  %v4968_v54 = vld [vmem:[#allocation2 + $0x2aa] sm:$0xff] }
 0x5a9   :  { %5257 = vmatmul.bf16.gmra.mxu0 %v5068_v58  ;;  %v4691_v51 = vpop.f32.mrf.mxu3 }
 0x5aa   :  { %v4815_v9 = vadd.f32 %v4691_v51, %v16772_v42  ;;  %v4441_v51 = vld [vmem:[#allocation2 + $0x271] sm:$0xff] }
 0x5ab   :  { %v4965_v42 = vld [vmem:[#allocation2 + $0x28a] sm:$0xff] }
 0x5ac   :  { %v14627_v24 = vadd.f32 %v5213_v22, %v4815_v9  ;;  %v12538_v22 = vld [vmem:[%s16529_s4 + $0x60] sm:$0xff]  ;;  %v4966_v9 = vld [vmem:[#allocation2 + $0x292] sm:$0xff] }
 0x5ad   :  { %6908 = vmatpush.bf16.msra.mxu2 %v12538_v22 }
 0x5ae   :  { %16773 = vst [vmem:[#allocation26_spill] sm:$0xff] %v14627_v24  ;;  %v5220_v49 = vpop.f32.mrf.mxu0  ;;  %v4967_v24 = vld [vmem:[#allocation2 + $0x2a2] sm:$0xff] }
 0x5af   :  { %v5071_v34 = vpack.c.bf16 %v4968_v54, %v4967_v24 }
 0x5b1   :  { %v4693_v36 = vpop.f32.mrf.mxu3 }
 0x5b2   :  { %v4816_v30 = vadd.f32 %v4693_v36, %v16774_v62  ;;  %v4442_v62 = vld [vmem:[#allocation2 + $0x279] sm:$0xff] }
 0x5b3   :  { %v4547_v36 = vpack.c.bf16 %v4442_v62, %v4441_v51 }
 0x5b4   :  { %v14630_v41 = vadd.f32 %v5215_v59, %v4816_v30  ;;  %v5070_v30 = vpack.c.bf16 %v4966_v9, %v4965_v42 }
 0x5b6   :  { %16775 = vst [vmem:[#allocation27_spill] sm:$0xff] %v14630_v41  ;;  %v5223_v1 = vpop.f32.mrf.mxu0  ;;  %4735 = vmatmul.bf16.gmra.mxu3 %v4546_v47 }
 0x5b9   :  { %5262 = vmatmul.bf16.gmra.mxu0 %v5069_v12  ;;  %v4696_v37 = vpop.f32.mrf.mxu3  ;;  %v16780_v12 = vld [vmem:[#allocation30_spill] sm:$0xff] }
 0x5ba   :  { %v4817_v29 = vadd.f32 %v4696_v37, %v16776_v27 }
 0x5bc   :  { %v14636_v5 = vadd.f32 %v5218_v21, %v4817_v29  ;;  %v4443_v29 = vld [vmem:[#allocation2 + $0x289] sm:$0xff] }
 0x5be   :  { %16777 = vst [vmem:[#allocation28_spill] sm:$0xff] %v14636_v5  ;;  %v5225_v58 = vpop.f32.mrf.mxu0  ;;  %v4444_v5 = vld [vmem:[#allocation2 + $0x291] sm:$0xff] }
 0x5bf   :  { %v4548_v62 = vpack.c.bf16 %v4444_v5, %v4443_v29 }
 0x5c1   :  { %v4698_v59 = vpop.f32.mrf.mxu3 }
 0x5c2   :  { %v4818_v23 = vadd.f32 %v4698_v59, %v16778_v17  ;;  %v16782_v59 = vld [vmem:[#allocation31_spill] sm:$0xff] }
 0x5c4   :  { %v14642_v43 = vadd.f32 %v5220_v49, %v4818_v23 }
 0x5c6   :  { %16779 = vst [vmem:[#allocation29_spill] sm:$0xff] %v14642_v43  ;;  %v5228_v47 = vpop.f32.mrf.mxu0  ;;  %4740 = vmatmul.bf16.gmra.mxu3 %v4547_v36  ;;  %v4445_v36 = vld [vmem:[#allocation2 + $0x2a1] sm:$0xff] }
 0x5c9   :  { %5267 = vmatmul.bf16.gmra.mxu0 %v5070_v30  ;;  %v4701_v21 = vpop.f32.mrf.mxu3  ;;  %v4446_v30 = vld [vmem:[#allocation2 + $0x2a9] sm:$0xff] }
 0x5ca   :  { %v4819_v22 = vadd.f32 %v4701_v21, %v16780_v12  ;;  %v4969_v12 = vld [vmem:[#allocation2 + $0x2ba] sm:$0xff]  ;;  %v4549_v5 = vpack.c.bf16 %v4446_v30, %v4445_v36 }
 0x5cc   :  { %v14645_v37 = vadd.f32 %v5223_v1, %v4819_v22  ;;  %v4970_v22 = vld [vmem:[#allocation2 + $0x2c2] sm:$0xff] }
 0x5cd   :  { %v5072_v54 = vpack.c.bf16 %v4970_v22, %v4969_v12 }
 0x5ce   :  { %16781 = vst [vmem:[#allocation30_spill] sm:$0xff] %v14645_v37  ;;  %v5230_v27 = vpop.f32.mrf.mxu0  ;;  %v16785_v37 = vld [vmem:[#allocation32_spill] sm:$0xff] }
 0x5d1   :  { %v4703_v41 = vpop.f32.mrf.mxu3 }
 0x5d2   :  { %v4820_v51 = vadd.f32 %v4703_v41, %v16782_v59 }
 0x5d4   :  { %v14648_v49 = vadd.f32 %v5225_v58, %v4820_v51  ;;  %v4447_v51 = vld [vmem:[#allocation2 + $0x2b9] sm:$0xff] }
 0x5d6   :  { %16783 = vst [vmem:[#allocation31_spill] sm:$0xff] %v14648_v49  ;;  %v5233_v42 = vpop.f32.mrf.mxu0  ;;  %4745 = vmatmul.bf16.gmra.mxu3 %v4548_v62  ;;  %v4448_v62 = vld [vmem:[#allocation2 + $0x2c1] sm:$0xff] }
 0x5d7   :  { %v4550_v36 = vpack.c.bf16 %v4448_v62, %v4447_v51 }
 0x5d9   :  { %5272 = vmatmul.bf16.gmra.mxu0 %v5071_v34  ;;  %v4706_v9 = vpop.f32.mrf.mxu3 }
 0x5da   :  { %v4821_v17 = vadd.f32 %v4706_v9, %v14367_v63  ;;  %v4971_v9 = vld [vmem:[#allocation2 + $0x2d2] sm:$0xff] }
 0x5dc   :  { %v14651_v1 = vadd.f32 %v5228_v47, %v4821_v17  ;;  %v4972_v17 = vld [vmem:[#allocation2 + $0x2da] sm:$0xff] }
 0x5dd   :  { %v5073_v30 = vpack.c.bf16 %v4972_v17, %v4971_v9 }
 0x5de   :  { %16784 = vst [vmem:[#allocation66_spill] sm:$0xff] %v14651_v1  ;;  %v5235_v23 = vpop.f32.mrf.mxu0 }
 0x5e1   :  { %v4708_v21 = vpop.f32.mrf.mxu3 }
 0x5e2   :  { %v4822_v41 = vadd.f32 %v4708_v21, %v16785_v37 }
 0x5e4   :  { %v14654_v58 = vadd.f32 %v5230_v27, %v4822_v41 }
 0x5e6   :  { %16786 = vst [vmem:[#allocation32_spill] sm:$0xff] %v14654_v58  ;;  %v5238_v24 = vpop.f32.mrf.mxu0  ;;  %4750 = vmatmul.bf16.gmra.mxu3 %v4549_v5  ;;  %v4449_v5 = vld [vmem:[#allocation2 + $0x2d1] sm:$0xff] }
 0x5e9   :  { %5277 = vmatmul.bf16.gmra.mxu0 %v5072_v54  ;;  %v4711_v29 = vpop.f32.mrf.mxu3 }
 0x5ea   :  { %v4823_v63 = vadd.f32 %v4711_v29, %v14376_v44  ;;  %v12537_v44 = vld [vmem:[%s16529_s4 + $0x58] sm:$0xff]  ;;  %v4973_v29 = vld [vmem:[#allocation2 + $0x2ea] sm:$0xff] }
 0x5eb   :  { %6909 = vmatpush.bf16.msra.mxu2 %v12537_v44  ;;  %v4452_v44 = vld [vmem:[#allocation2 + $0x2f1] sm:$0xff] }
 0x5ec   :  { %v14657_v47 = vadd.f32 %v5233_v42, %v4823_v63  ;;  %v4974_v63 = vld [vmem:[#allocation2 + $0x2f2] sm:$0xff] }
 0x5ee   :  { %16787 = vst [vmem:[#allocation67_spill] sm:$0xff] %v14657_v47  ;;  %v5240_v59 = vpop.f32.mrf.mxu0 }
 0x5f1   :  { %v4713_v34 = vpop.f32.mrf.mxu3 }
 0x5f2   :  { %v4824_v37 = vadd.f32 %v4713_v34, %v14381_v40  ;;  %v4450_v40 = vld [vmem:[#allocation2 + $0x2d9] sm:$0xff] }
 0x5f3   :  { %v4551_v62 = vpack.c.bf16 %v4450_v40, %v4449_v5 }
 0x5f4   :  { %v14660_v27 = vadd.f32 %v5235_v23, %v4824_v37  ;;  %v12529_v23 = vld [vmem:[%s16529_s4 + $0x18] sm:$0xff] }
 0x5f5   :  { %6387 = vmatpush.bf16.msra.mxu1 %v12529_v23 }
 0x5f6   :  { %16788 = vst [vmem:[#allocation68_spill] sm:$0xff] %v14660_v27  ;;  %v5243_v21 = vpop.f32.mrf.mxu0  ;;  %4755 = vmatmul.bf16.gmra.mxu3 %v4550_v36 }
 0x5f9   :  { %5282 = vmatmul.bf16.gmra.mxu0 %v5073_v30  ;;  %v4716_v42 = vpop.f32.mrf.mxu3  ;;  %v4451_v30 = vld [vmem:[#allocation2 + $0x2e9] sm:$0xff] }
 0x5fa   :  { %v4825_v12 = vadd.f32 %v4716_v42, %v14387_v55  ;;  %v5074_v55 = vpack.c.bf16 %v4974_v63, %v4973_v29  ;;  %v4552_v5 = vpack.c.bf16 %v4452_v44, %v4451_v30  ;;  %v4453_v63 = vld [vmem:[#allocation2 + $0x301] sm:$0xff] }
 0x5fc   :  { %v14666_v22 = vadd.f32 %v5238_v24, %v4825_v12  ;;  %v4975_v12 = vld [vmem:[#allocation2 + $0x302] sm:$0xff] }
 0x5fe   :  { %16789 = vst [vmem:[#allocation69_spill] sm:$0xff] %v14666_v22  ;;  %v5245_v41 = vpop.f32.mrf.mxu0  ;;  %v4976_v22 = vld [vmem:[#allocation2 + $0x30a] sm:$0xff] }
 0x5ff   :  { %v5075_v40 = vpack.c.bf16 %v4976_v22, %v4975_v12  ;;  %v4455_v12 = vld [vmem:[#allocation2 + $0x319] sm:$0xff] }
 0x601   :  { %v4718_v54 = vpop.f32.mrf.mxu3 }
 0x602   :  { %v4826_v51 = vadd.f32 %v4718_v54, %v14395_v57 }
 0x604   :  { %v14672_v34 = vadd.f32 %v5240_v59, %v4826_v51  ;;  %v4454_v51 = vld [vmem:[#allocation2 + $0x309] sm:$0xff] }
 0x606   :  { %16790 = vst [vmem:[#allocation70_spill] sm:$0xff] %v14672_v34  ;;  %v5248_v9 = vpop.f32.mrf.mxu0  ;;  %4760 = vmatmul.bf16.gmra.mxu3 %v4551_v62 }
 0x609   :  { %5287 = vmatmul.bf16.gmra.mxu0 %v5074_v55  ;;  %v4721_v24 = vpop.f32.mrf.mxu3  ;;  %v4977_v55 = vld [vmem:[#allocation2 + $0x31a] sm:$0xff] }
 0x60a   :  { %v4827_v17 = vadd.f32 %v4721_v24, %v14404_v16  ;;  %v4978_v24 = vld [vmem:[#allocation2 + $0x322] sm:$0xff] }
 0x60b   :  { %v5076_v22 = vpack.c.bf16 %v4978_v24, %v4977_v55  ;;  %v4457_v55 = vld [vmem:[#allocation2 + $0x331] sm:$0xff]  ;;  %v4458_v24 = vld [vmem:[#allocation2 + $0x339] sm:$0xff] }
 0x60c   :  { %v14675_v37 = vadd.f32 %v5243_v21, %v4827_v17 }
 0x60e   :  { %16791 = vst [vmem:[#allocation71_spill] sm:$0xff] %v14675_v37  ;;  %v5250_v36 = vpop.f32.mrf.mxu0 }
 0x611   :  { %v4723_v42 = vpop.f32.mrf.mxu3 }
 0x612   :  { %v4828_v57 = vadd.f32 %v4723_v42, %v14410_v2 }
 0x614   :  { %v14678_v59 = vadd.f32 %v5245_v41, %v4828_v57  ;;  %v4553_v41 = vpack.c.bf16 %v4454_v51, %v4453_v63  ;;  %v4456_v57 = vld [vmem:[#allocation2 + $0x321] sm:$0xff]  ;;  %v12536_v63 = vld [vmem:[%s16529_s4 + $0x50] sm:$0xff] }
 0x615   :  { %6910 = vmatpush.bf16.msra.mxu2 %v12536_v63 }
 0x616   :  { %v5253_v23 = vpop.f32.mrf.mxu0  ;;  %4765 = vmatmul.bf16.gmra.mxu3 %v4552_v5 }
 0x619   :  { %5292 = vmatmul.bf16.gmra.mxu0 %v5075_v40  ;;  %v4726_v54 = vpop.f32.mrf.mxu3  ;;  %v4979_v40 = vld [vmem:[#allocation2 + $0x332] sm:$0xff] }
 0x61a   :  { %v4829_v16 = vadd.f32 %v4726_v54, %v14431_v50  ;;  %v4554_v54 = vpack.c.bf16 %v4456_v57, %v4455_v12 }
 0x61c   :  { %v14681_v21 = vadd.f32 %v5248_v9, %v4829_v16 }
 0x61e   :  { %v14683_v29 = vpop.f32.mrf.mxu0 }
 0x621   :  { %v4728_v62 = vpop.f32.mrf.mxu3 }
 0x622   :  { %v4830_v2 = vadd.f32 %v4728_v62, %v14440_v60  ;;  %v4980_v60 = vld [vmem:[#allocation2 + $0x33a] sm:$0xff] }
 0x624   :  { %v14686_v17 = vadd.f32 %v5250_v36, %v4830_v2  ;;  %v5077_v36 = vpack.c.bf16 %v4980_v60, %v4979_v40  ;;  %v12528_v2 = vld [vmem:[%s16529_s4 + $0x10] sm:$0xff] }
 0x625   :  { %6388 = vmatpush.bf16.msra.mxu1 %v12528_v2 }
 0x626   :  { %v5258_v30 = vpop.f32.mrf.mxu0  ;;  %4770 = vmatmul.bf16.gmra.mxu3 %v4553_v41 }
 0x629   :  { %5297 = vmatmul.bf16.gmra.mxu0 %v5076_v22  ;;  %v4731_v44 = vpop.f32.mrf.mxu3  ;;  %v4981_v22 = vld [vmem:[#allocation2 + $0x34a] sm:$0xff] }
 0x62a   :  { %v4831_v50 = vadd.f32 %v4731_v44, %v14443_v11  ;;  %v4982_v44 = vld [vmem:[#allocation2 + $0x352] sm:$0xff] }
 0x62b   :  { %v5078_v12 = vpack.c.bf16 %v4982_v44, %v4981_v22 }
 0x62c   :  { %v14689_v9 = vadd.f32 %v5253_v23, %v4831_v50  ;;  %v4555_v50 = vpack.c.bf16 %v4458_v24, %v4457_v55 }
 0x62e   :  { %16792 = vst [vmem:[#allocation72_spill] sm:$0xff] %v14689_v9  ;;  %v14691_v42 = vpop.f32.mrf.mxu0 }
 0x631   :  { %v14693_v5 = vpop.f32.mrf.mxu3 }
 0x636   :  { %v5263_v16 = vpop.f32.mrf.mxu0  ;;  %4775 = vmatmul.bf16.gmra.mxu3 %v4554_v54  ;;  %v4459_v54 = vld [vmem:[#allocation2 + $0x349] sm:$0xff] }
 0x639   :  { %5302 = vmatmul.bf16.gmra.mxu0 %v5077_v36  ;;  %v4736_v11 = vpop.f32.mrf.mxu3  ;;  %v4460_v36 = vld [vmem:[#allocation2 + $0x351] sm:$0xff] }
 0x63a   :  { %v4833_v23 = vadd.f32 %v4736_v11, %v14454_v45  ;;  %v4556_v11 = vpack.c.bf16 %v4460_v36, %v4459_v54  ;;  %v5578_v54 = vmul.f32 %v14552_v48, %v14552_v48 }
 0x63c   :  { %v14699_v51 = vadd.f32 %v5258_v30, %v4833_v23 }
 0x63e   :  { %v14701_v62 = vpop.f32.mrf.mxu0 }
 0x641   :  { %v14706_v41 = vpop.f32.mrf.mxu3 }
 0x646   :  { %v5268_v57 = vpop.f32.mrf.mxu0  ;;  %4780 = vmatmul.bf16.gmra.mxu3 %v4555_v50  ;;  %v5575_v50 = vmul.f32 %v14537_v14, %v14537_v14 }
 0x649   :  { %5307 = vmatmul.bf16.gmra.mxu0 %v5078_v12  ;;  %v4741_v45 = vpop.f32.mrf.mxu3  ;;  %v5577_v12 = vmul.f32 %v14546_v8, %v14546_v8 }
 0x64a   :  { %v4835_v30 = vadd.f32 %v4741_v45, %v14465_v25 }
 0x64c   :  { %v14709_v40 = vadd.f32 %v5263_v16, %v4835_v30  ;;  %v5576_v16 = vmul.f32 %v14540_v3, %v14540_v3 }
 0x64e   :  { %16793 = vst [vmem:[#allocation73_spill] sm:$0xff] %v14709_v40  ;;  %v14711_v60 = vpop.f32.mrf.mxu0  ;;  %v5639_v30 = vadd.f32 %v5576_v16, %v5575_v50 }
 0x64f   :  { %16794 = vst [vmem:[#allocation74_spill] sm:$0xff] %v14711_v60 }
 0x651   :  { %v14713_v63 = vpop.f32.mrf.mxu3 }
 0x656   :  { %v5273_v23 = vpop.f32.mrf.mxu0  ;;  %4785 = vmatmul.bf16.gmra.mxu3 %v4556_v11 }
 0x659   :  { %v4746_v55 = vpop.f32.mrf.mxu3 }
 0x65a   :  { %v4837_v24 = vadd.f32 %v4746_v55, %v14475_v32  ;;  %v5505_v32 = vadd.f32 %v14540_v3, %v14537_v14  ;;  %v5640_v55 = vadd.f32 %v5639_v30, %v5577_v12  ;;  %v14751_v30 = vpop.f32.mrf.mxu1 }
 0x65c   :  { %v14716_v2 = vadd.f32 %v5268_v57, %v4837_v24  ;;  %v5506_v36 = vadd.f32 %v5505_v32, %v14546_v8  ;;  %v5579_v24 = vmul.f32 %v14555_v7, %v14555_v7  ;;  %v5641_v60 = vadd.f32 %v5640_v55, %v5578_v54 }
 0x65e   :  { %16795 = vst [vmem:[#allocation75_spill] sm:$0xff] %v14716_v2  ;;  %v14718_v22 = vpop.f32.mrf.mxu0  ;;  %v5507_v2 = vadd.f32 %v5506_v36, %v14552_v48  ;;  %v5642_v50 = vadd.f32 %v5641_v60, %v5579_v24 }
 0x65f   :  { %16796 = vst [vmem:[#allocation76_spill] sm:$0xff] %v14718_v22 }
 0x660   :  { %v5508_v16 = vadd.f32 %v5507_v2, %v14555_v7  ;;  %v5583_v2 = vmul.f32 %v14567_v4, %v14567_v4  ;;  %v5584_v7 = vmul.f32 %v14570_v31, %v14570_v31 }
 0x661   :  { %v14720_v44 = vpop.f32.mrf.mxu3 }
 0x662   :  { %v5509_v12 = vadd.f32 %v5508_v16, %v14558_v39  ;;  %v12535_v16 = vld [vmem:[%s16529_s4 + $0x48] sm:$0xff] }
 0x663   :  { %6911 = vmatpush.bf16.msra.mxu2 %v12535_v16 }
 0x664   :  { %v5510_v54 = vadd.f32 %v5509_v12, %v14561_v0 }
 0x666   :  { %v5278_v25 = vpop.f32.mrf.mxu0  ;;  %v5511_v55 = vadd.f32 %v5510_v54, %v14564_v52 }
 0x669   :  { %v4751_v45 = vpop.f32.mrf.mxu3 }
 0x66a   :  { %v4839_v57 = vadd.f32 %v4751_v45, %v14485_v53  ;;  %v5580_v53 = vmul.f32 %v14558_v39, %v14558_v39  ;;  %v5581_v45 = vmul.f32 %v14561_v0, %v14561_v0 }
 0x66c   :  { %v14734_v11 = vadd.f32 %v5273_v23, %v4839_v57  ;;  %v5643_v32 = vadd.f32 %v5642_v50, %v5580_v53  ;;  %v5582_v57 = vmul.f32 %v14564_v52, %v14564_v52  ;;  %v5512_v53 = vadd.f32 %v5511_v55, %v14567_v4  ;;  %v14763_v50 = vpop.f32.mrf.mxu2 }
 0x66e   :  { %v14738_v22 = vpop.f32.mrf.mxu0  ;;  %v5644_v36 = vadd.f32 %v5643_v32, %v5581_v45  ;;  %v5585_v45 = vmul.f32 %v14576_v19, %v14576_v19  ;;  %v5513_v0 = vadd.f32 %v5512_v53, %v14570_v31  ;;  %v16806_v31 = vld [vmem:[#allocation47_spill] sm:$0xff] }
 0x670   :  { %v5645_v24 = vadd.f32 %v5644_v36, %v5582_v57  ;;  %v5586_v36 = vmul.f32 %v14582_v61, %v14582_v61  ;;  %v5514_v55 = vadd.f32 %v5513_v0, %v14576_v19  ;;  %v12527_v0 = vld [vmem:[%s16529_s4 + $0x8] sm:$0xff] }
 0x671   :  { %v14746_v23 = vpop.f32.mrf.mxu3  ;;  %6389 = vmatpush.bf16.msra.mxu1 %v12527_v0 }
 0x672   :  { %v5646_v12 = vadd.f32 %v5645_v24, %v5583_v2  ;;  %v5587_v2 = vmul.f32 %v14585_v46, %v14585_v46  ;;  %v14776_v24 = vpop.f32.mrf.mxu1  ;;  %v5515_v39 = vadd.f32 %v5514_v55, %v14582_v61  ;;  %v5591_v55 = vmul.f32 %v14597_v13, %v14597_v13 }
 0x674   :  { %v5647_v54 = vadd.f32 %v5646_v12, %v5584_v7  ;;  %v5516_v16 = vadd.f32 %v5515_v39, %v14585_v46  ;;  %v5589_v12 = vmul.f32 %v14591_v56, %v14591_v56  ;;  %v5592_v46 = vmul.f32 %v14600_v20, %v14600_v20 }
 0x676   :  { %v5283_v60 = vpop.f32.mrf.mxu0  ;;  %v5648_v52 = vadd.f32 %v5647_v54, %v5585_v45  ;;  %v5590_v54 = vmul.f32 %v14594_v6, %v14594_v6 }
 0x678   :  { %v5649_v53 = vadd.f32 %v5648_v52, %v5586_v36  ;;  %v14792_v52 = vpop.f32.mrf.mxu2 }
 0x679   :  { %v4756_v32 = vpop.f32.mrf.mxu3 }
 0x67a   :  { %v4841_v57 = vadd.f32 %v4756_v32, %v14491_v38  ;;  %v5588_v38 = vmul.f32 %v14588_v28, %v14588_v28  ;;  %v5517_v32 = vadd.f32 %v5516_v16, %v14588_v28  ;;  %v14802_v16 = vpop.f32.mrf.mxu1 }
 0x67c   :  { %v14772_v4 = vadd.f32 %v5278_v25, %v4841_v57  ;;  %v5650_v25 = vadd.f32 %v5649_v53, %v5587_v2  ;;  %v5518_v39 = vadd.f32 %v5517_v32, %v14591_v56 }
 0x67e   :  { %v14781_v7 = vpop.f32.mrf.mxu0  ;;  %v5651_v57 = vadd.f32 %v5650_v25, %v5588_v38  ;;  %v5519_v2 = vadd.f32 %v5518_v39, %v14594_v6  ;;  %v5593_v25 = vmul.f32 %v14606_v35, %v14606_v35 }
 0x680   :  { %v5652_v36 = vadd.f32 %v5651_v57, %v5589_v12  ;;  %v5520_v0 = vadd.f32 %v5519_v2, %v14597_v13  ;;  %v14816_v2 = vpop.f32.mrf.mxu2 }
 0x681   :  { %v14789_v45 = vpop.f32.mrf.mxu3 }
 0x682   :  { %v5653_v53 = vadd.f32 %v5652_v36, %v5590_v54  ;;  %v5521_v12 = vadd.f32 %v5520_v0, %v14600_v20  ;;  %v5594_v54 = vmul.f32 %v14612_v18, %v14612_v18  ;;  %v5597_v0 = vmul.f32 %v14621_v33, %v14621_v33 }
 0x684   :  { %v5654_v38 = vadd.f32 %v5653_v53, %v5591_v55  ;;  %v5522_v36 = vadd.f32 %v5521_v12, %v14606_v35  ;;  %v5595_v53 = vmul.f32 %v14615_v15, %v14615_v15  ;;  %v16799_v35 = vld [vmem:[#allocation27_spill] sm:$0xff] }
 0x686   :  { %v14807_v32 = vpop.f32.mrf.mxu0  ;;  %v5655_v39 = vadd.f32 %v5654_v38, %v5592_v46  ;;  %v5523_v13 = vadd.f32 %v5522_v36, %v14612_v18  ;;  %v14828_v38 = vpop.f32.mrf.mxu1 }
 0x688   :  { %v5656_v55 = vadd.f32 %v5655_v39, %v5593_v25  ;;  %v5524_v46 = vadd.f32 %v5523_v13, %v14615_v15  ;;  %v16798_v13 = vld [vmem:[#allocation26_spill] sm:$0xff]  ;;  %v14839_v15 = vpop.f32.mrf.mxu2 }
 0x689   :  { %v4761_v28 = vpop.f32.mrf.mxu3 }
 0x68a   :  { %v4843_v57 = vadd.f32 %v4761_v28, %v14501_v10  ;;  %v5657_v56 = vadd.f32 %v5656_v55, %v5594_v54  ;;  %v5596_v10 = vmul.f32 %v14618_v26, %v14618_v26  ;;  %v5525_v25 = vadd.f32 %v5524_v46, %v14618_v26  ;;  %v16800_v26 = vld [vmem:[#allocation28_spill] sm:$0xff] }
 0x68b   :  { %v5600_v46 = vmul.f32 %v16799_v35, %v16799_v35  ;;  %v5601_v20 = vmul.f32 %v16800_v26, %v16800_v26 }
 0x68c   :  { %v14814_v6 = vadd.f32 %v5283_v60, %v4843_v57  ;;  %v5658_v28 = vadd.f32 %v5657_v56, %v5595_v53  ;;  %v16797_v57 = vld [vmem:[#allocation25_spill] sm:$0xff]  ;;  %v5526_v36 = vadd.f32 %v5525_v25, %v14621_v33  ;;  %v5599_v56 = vmul.f32 %v16798_v13, %v16798_v13 }
 0x68d   :  { %v5598_v39 = vmul.f32 %v16797_v57, %v16797_v57 }
 0x68e   :  { %v5659_v12 = vadd.f32 %v5658_v28, %v5596_v10  ;;  %v14833_v54 = vpop.f32.mrf.mxu0  ;;  %v5527_v53 = vadd.f32 %v5526_v36, %v16797_v57  ;;  %v14851_v36 = vpop.f32.mrf.mxu1  ;;  %v16801_v57 = vld [vmem:[#allocation30_spill] sm:$0xff] }
 0x690   :  { %v5660_v55 = vadd.f32 %v5659_v12, %v5597_v0  ;;  %v5528_v10 = vadd.f32 %v5527_v53, %v16798_v13  ;;  %v5602_v12 = vmul.f32 %v14642_v43, %v14642_v43  ;;  %v5603_v53 = vmul.f32 %v16801_v57, %v16801_v57 }
 0x691   :  { %v14826_v60 = vpop.f32.mrf.mxu3 }
 0x692   :  { %v5661_v18 = vadd.f32 %v5660_v55, %v5598_v39  ;;  %v5529_v0 = vadd.f32 %v5528_v10, %v16799_v35  ;;  %v5604_v10 = vmul.f32 %v14648_v49, %v14648_v49 }
 0x694   :  { %v5662_v28 = vadd.f32 %v5661_v18, %v5599_v56  ;;  %v5530_v39 = vadd.f32 %v5529_v0, %v16800_v26  ;;  %v5605_v0 = vmul.f32 %v14651_v1, %v14651_v1 }
 0x696   :  { %v5663_v25 = vadd.f32 %v5662_v28, %v5600_v46  ;;  %v14856_v18 = vpop.f32.mrf.mxu0  ;;  %v5531_v56 = vadd.f32 %v5530_v39, %v14642_v43  ;;  %v14862_v28 = vpop.f32.mrf.mxu2  ;;  %v5606_v39 = vmul.f32 %v14654_v58, %v14654_v58  ;;  %v5608_v43 = vmul.f32 %v14660_v27, %v14660_v27 }
 0x698   :  { %v5664_v55 = vadd.f32 %v5663_v25, %v5601_v20  ;;  %v5532_v46 = vadd.f32 %v5531_v56, %v16801_v57  ;;  %v5607_v56 = vmul.f32 %v14657_v47, %v14657_v47  ;;  %v14874_v57 = vpop.f32.mrf.mxu1 }
 0x699   :  { %v14846_v61 = vpop.f32.mrf.mxu3 }
 0x69a   :  { %v5665_v13 = vadd.f32 %v5664_v55, %v5602_v12  ;;  %v5533_v25 = vadd.f32 %v5532_v46, %v14648_v49  ;;  %v16803_v46 = vld [vmem:[#allocation33_spill] sm:$0xff] }
 0x69c   :  { %v5666_v35 = vadd.f32 %v5665_v13, %v5603_v53  ;;  %v5534_v12 = vadd.f32 %v5533_v25, %v14651_v1 }
 0x69e   :  { %v5667_v26 = vadd.f32 %v5666_v35, %v5604_v10  ;;  %v5535_v13 = vadd.f32 %v5534_v12, %v14654_v58  ;;  %v14879_v33 = vpop.f32.mrf.mxu0  ;;  %v16802_v10 = vld [vmem:[#allocation46_spill] sm:$0xff]  ;;  %v14889_v12 = vpop.f32.mrf.mxu2 }
 0x69f   :  { %v3787_v49 = vadd.f32 %v16803_v46, %v16802_v10  ;;  %v16807_v10 = vld [vmem:[#allocation35_spill] sm:$0xff]  ;;  %v5611_v46 = vmul.f32 %v14675_v37, %v14675_v37 }
 0x6a0   :  { %v5668_v55 = vadd.f32 %v5667_v26, %v5605_v0  ;;  %v5536_v35 = vadd.f32 %v5535_v13, %v14657_v47  ;;  %v16804_v26 = vld [vmem:[#allocation69_spill] sm:$0xff]  ;;  %v16805_v13 = vld [vmem:[#allocation34_spill] sm:$0xff] }
 0x6a1   :  { %v14866_v20 = vpop.f32.mrf.mxu3  ;;  %v5609_v0 = vmul.f32 %v16804_v26, %v16804_v26  ;;  %v4310_v47 = vadd.f32 %v16805_v13, %v3787_v49  ;;  %v16808_v49 = vld [vmem:[#allocation36_spill] sm:$0xff] }
 0x6a2   :  { %v5669_v53 = vadd.f32 %v5668_v55, %v5606_v39  ;;  %v5537_v19 = vadd.f32 %v5536_v35, %v14660_v27  ;;  %v5610_v55 = vmul.f32 %v14672_v34, %v14672_v34  ;;  %v14903_v27 = vpop.f32.mrf.mxu1 }
 0x6a4   :  { %v5670_v25 = vadd.f32 %v5669_v53, %v5607_v56  ;;  %v5538_v58 = vadd.f32 %v5537_v19, %v16804_v26  ;;  %v3789_v56 = vadd.f32 %v16807_v10, %v16806_v31  ;;  %v16809_v26 = vld [vmem:[#allocation50_spill] sm:$0xff]  ;;  %v16810_v31 = vld [vmem:[#allocation48_spill] sm:$0xff]  ;;  %v5613_v10 = vmul.f32 %v14681_v21, %v14681_v21 }
 0x6a6   :  { %v5671_v39 = vadd.f32 %v5670_v25, %v5608_v43  ;;  %v5539_v48 = vadd.f32 %v5538_v58, %v14672_v34  ;;  %v5612_v43 = vmul.f32 %v14678_v59, %v14678_v59  ;;  %v4832_v25 = vadd.f32 %v14693_v5, %v4310_v47  ;;  %v14926_v34 = vpop.f32.mrf.mxu2 }
 0x6a7   :  { %v4312_v13 = vadd.f32 %v16808_v49, %v3789_v56  ;;  %v5614_v5 = vmul.f32 %v14686_v17, %v14686_v17  ;;  %v16812_v49 = vld [vmem:[#allocation53_spill] sm:$0xff] }
 0x6a8   :  { %v5672_v53 = vadd.f32 %v5671_v39, %v5609_v0  ;;  %v5540_v19 = vadd.f32 %v5539_v48, %v14675_v37  ;;  %v3791_v0 = vadd.f32 %v16810_v31, %v16809_v26  ;;  %v14919_v48 = vadd.f32 %v14683_v29, %v4832_v25  ;;  %v16813_v31 = vld [vmem:[#allocation51_spill] sm:$0xff] }
 0x6a9   :  { %v14886_v1 = vpop.f32.mrf.mxu3  ;;  %v4834_v56 = vadd.f32 %v14706_v41, %v4312_v13  ;;  %v3793_v37 = vadd.f32 %v16813_v31, %v16812_v49 }
 0x6aa   :  { %v5673_v35 = vadd.f32 %v5672_v53, %v5610_v55  ;;  %v14913_v55 = vpop.f32.mrf.mxu0  ;;  %v5541_v53 = vadd.f32 %v5540_v19, %v14678_v59  ;;  %v5616_v29 = vmul.f32 %v14919_v48, %v14919_v48 }
 0x6ab   :  { %v14934_v41 = vadd.f32 %v14691_v42, %v4834_v56  ;;  %v14948_v42 = vpop.f32.mrf.mxu1 }
 0x6ac   :  { %v5674_v39 = vadd.f32 %v5673_v35, %v5611_v46  ;;  %v5542_v26 = vadd.f32 %v5541_v53, %v14681_v21  ;;  %v16811_v46 = vld [vmem:[#allocation49_spill] sm:$0xff] }
 0x6ad   :  { %v4314_v35 = vadd.f32 %v16811_v46, %v3791_v0  ;;  %16814 = vst [vmem:[#allocation46_spill] sm:$0xff] %v14934_v41  ;;  %v12534_v0 = vld [vmem:[%s16529_s4 + $0x40] sm:$0xff]  ;;  %v16817_v46 = vld [vmem:[#allocation54_spill] sm:$0xff] }
 0x6ae   :  { %v5675_v47 = vadd.f32 %v5674_v39, %v5612_v43  ;;  %v5615_v43 = vmul.f32 %v14689_v9, %v14689_v9  ;;  %v5543_v19 = vadd.f32 %v5542_v26, %v14686_v17  ;;  %6912 = vmatpush.bf16.msra.mxu2 %v12534_v0 }
 0x6af   :  { %v4836_v25 = vadd.f32 %v14713_v63, %v4314_v35  ;;  %v5618_v35 = vmul.f32 %v14934_v41, %v14934_v41 }
 0x6b0   :  { %v5676_v8 = vadd.f32 %v5675_v47, %v5613_v10  ;;  %v5544_v13 = vadd.f32 %v5543_v19, %v14689_v9  ;;  %v16815_v10 = vld [vmem:[#allocation52_spill] sm:$0xff] }
 0x6b1   :  { %v14911_v58 = vpop.f32.mrf.mxu3  ;;  %v4316_v53 = vadd.f32 %v16815_v10, %v3793_v37  ;;  %v16816_v47 = vld [vmem:[#allocation56_spill] sm:$0xff]  ;;  %v14954_v37 = vadd.f32 %v14701_v62, %v4836_v25  ;;  %v16821_v25 = vld [vmem:[#allocation74_spill] sm:$0xff] }
 0x6b2   :  { %v5677_v39 = vadd.f32 %v5676_v8, %v5614_v5  ;;  %v3795_v26 = vadd.f32 %v16817_v46, %v16816_v47  ;;  %v5617_v5 = vmul.f32 %v14699_v51, %v14699_v51  ;;  %v5545_v63 = vadd.f32 %v5544_v13, %v14919_v48  ;;  %v16819_v47 = vld [vmem:[#allocation59_spill] sm:$0xff]  ;;  %v16820_v46 = vld [vmem:[#allocation57_spill] sm:$0xff] }
 0x6b3   :  { %v4838_v31 = vadd.f32 %v14720_v44, %v4316_v53  ;;  %v3797_v9 = vadd.f32 %v16820_v46, %v16819_v47  ;;  %v5620_v44 = vmul.f32 %v14954_v37, %v14954_v37  ;;  %v16824_v46 = vld [vmem:[#allocation75_spill] sm:$0xff] }
 0x6b4   :  { %v5678_v8 = vadd.f32 %v5677_v39, %v5615_v43  ;;  %v14957_v43 = vpop.f32.mrf.mxu0  ;;  %v5546_v19 = vadd.f32 %v5545_v63, %v14699_v51  ;;  %v16818_v39 = vld [vmem:[#allocation55_spill] sm:$0xff] }
 0x6b5   :  { %v4318_v10 = vadd.f32 %v16818_v39, %v3795_v26  ;;  %v14971_v53 = vadd.f32 %v16821_v25, %v4838_v31  ;;  %v16825_v31 = vld [vmem:[#allocation61_spill] sm:$0xff] }
 0x6b6   :  { %v5679_v56 = vadd.f32 %v5678_v8, %v5616_v29  ;;  %v5619_v29 = vmul.f32 %v14709_v40, %v14709_v40  ;;  %v5547_v0 = vadd.f32 %v5546_v19, %v14934_v41  ;;  %v14966_v8 = vpop.f32.mrf.mxu2  ;;  %v16823_v19 = vld [vmem:[#allocation60_spill] sm:$0xff] }
 0x6b7   :  { %v4840_v26 = vadd.f32 %v14746_v23, %v4318_v10  ;;  %v3799_v47 = vadd.f32 %v14751_v30, %v16823_v19  ;;  %v3800_v23 = vadd.f32 %v14776_v24, %v16825_v31  ;;  %v5622_v25 = vmul.f32 %v14971_v53, %v14971_v53 }
 0x6b8   :  { %v5680_v13 = vadd.f32 %v5679_v56, %v5617_v5  ;;  %v5548_v63 = vadd.f32 %v5547_v0, %v14709_v40  ;;  %v12526_v5 = vld [vmem:[%s16529_s4] sm:$0xff]  ;;  %v16822_v56 = vld [vmem:[#allocation58_spill] sm:$0xff] }
 0x6b9   :  { %v14946_v49 = vpop.f32.mrf.mxu3  ;;  %v4320_v39 = vadd.f32 %v16822_v56, %v3797_v9  ;;  %6390 = vmatpush.bf16.msra.mxu1 %v12526_v5  ;;  %v16826_v9 = vld [vmem:[#allocation76_spill] sm:$0xff]  ;;  %v4322_v19 = vadd.f32 %v14763_v50, %v3799_v47  ;;  %v16827_v40 = vld [vmem:[#allocation62_spill] sm:$0xff]  ;;  %v4323_v5 = vadd.f32 %v14792_v52, %v3800_v23 }
 0x6ba   :  { %v5681_v62 = vadd.f32 %v5680_v13, %v5618_v35  ;;  %v5621_v13 = vmul.f32 %v16824_v46, %v16824_v46  ;;  %v5549_v10 = vadd.f32 %v5548_v63, %v14954_v37  ;;  %v14991_v56 = vadd.f32 %v16826_v9, %v4840_v26  ;;  %v16828_v26 = vld [vmem:[#allocation63_spill] sm:$0xff]  ;;  %v16829_v9 = vld [vmem:[#allocation64_spill] sm:$0xff] }
 0x6bb   :  { %v4842_v30 = vadd.f32 %v14789_v45, %v4320_v39  ;;  %v3801_v24 = vadd.f32 %v14802_v16, %v16827_v40  ;;  %v4844_v40 = vadd.f32 %v14826_v60, %v4322_v19  ;;  %v4845_v23 = vadd.f32 %v14846_v61, %v4323_v5 }
 0x6bc   :  { %v5682_v35 = vadd.f32 %v5681_v62, %v5619_v29  ;;  %v3738_v29 = vpop.f32.mrf.mxu1  ;;  %v5550_v62 = vadd.f32 %v5549_v10, %v16824_v46  ;;  %v15000_v63 = vpop.f32.mrf.mxu0  ;;  %v5624_v50 = vmul.f32 %v14991_v56, %v14991_v56 }
 0x6bd   :  { %v15009_v47 = vadd.f32 %v14738_v22, %v4842_v30  ;;  %v3803_v22 = vadd.f32 %v14851_v36, %v16829_v9  ;;  %v5627_v36 = vmul.f32 %v14814_v6, %v14814_v6 }
 0x6be   :  { %v5683_v0 = vadd.f32 %v5682_v35, %v5620_v44  ;;  %v5623_v44 = vmul.f32 %v14734_v11, %v14734_v11  ;;  %v3802_v35 = vadd.f32 %v14828_v38, %v16828_v26  ;;  %v5551_v45 = vadd.f32 %v5550_v62, %v14971_v53  ;;  %v4261_v10 = vpop.f32.mrf.mxu2 }
 0x6bf   :  { %v5625_v38 = vmul.f32 %v14772_v4, %v14772_v4  ;;  %v5626_v62 = vmul.f32 %v15009_v47, %v15009_v47  ;;  %v4326_v26 = vadd.f32 %v14862_v28, %v3803_v22  ;;  %v16834_v22 = vld [vmem:[#allocation40_spill] sm:$0xff] }
 0x6c0   :  { %v5684_v31 = vadd.f32 %v5683_v0, %v5621_v13  ;;  %v5552_v16 = vadd.f32 %v5551_v45, %v14734_v11  ;;  %v4324_v13 = vadd.f32 %v14816_v2, %v3801_v24  ;;  %v15024_v2 = vadd.f32 %v14781_v7, %v4844_v40  ;;  %v16830_v24 = vld [vmem:[#allocation65_spill] sm:$0xff] }
 0x6c1   :  { %v14983_v41 = vpop.f32.mrf.mxu3  ;;  %v3804_v61 = vadd.f32 %v14874_v57, %v16830_v24  ;;  %v16831_v7 = vld [vmem:[#allocation37_spill] sm:$0xff] }
 0x6c2   :  { %v5685_v39 = vadd.f32 %v5684_v31, %v5622_v25  ;;  %v4325_v25 = vadd.f32 %v14839_v15, %v3802_v35  ;;  %v5553_v30 = vadd.f32 %v5552_v16, %v14991_v56  ;;  %v4846_v19 = vadd.f32 %v14866_v20, %v4324_v13  ;;  %v16832_v16 = vld [vmem:[#allocation38_spill] sm:$0xff] }
 0x6c3   :  { %v3805_v35 = vadd.f32 %v14903_v27, %v16831_v7  ;;  %v4848_v27 = vadd.f32 %v14911_v58, %v4326_v26 }
 0x6c4   :  { %v5686_v52 = vadd.f32 %v5685_v39, %v5623_v44  ;;  %v5554_v31 = vadd.f32 %v5553_v30, %v14772_v4  ;;  %v15033_v44 = vadd.f32 %v14807_v32, %v4845_v23  ;;  %v4847_v5 = vadd.f32 %v14886_v1, %v4325_v25  ;;  %v3741_v20 = vpop.f32.mrf.mxu1  ;;  %v5305_v40 = vpop.f32.mrf.mxu0  ;;  %v16833_v25 = vld [vmem:[#allocation39_spill] sm:$0xff] }
 0x6c5   :  { %v5628_v39 = vmul.f32 %v15024_v2, %v15024_v2  ;;  %v4327_v32 = vadd.f32 %v14889_v12, %v3804_v61  ;;  %v3806_v1 = vadd.f32 %v14948_v42, %v16832_v16  ;;  %v3807_v9 = vadd.f32 %v3738_v29, %v16833_v25  ;;  %v16835_v16 = vld [vmem:[#allocation41_spill] sm:$0xff] }
 0x6c6   :  { %v5687_v60 = vadd.f32 %v5686_v52, %v5624_v50  ;;  %v5555_v45 = vadd.f32 %v5554_v31, %v15009_v47  ;;  %v15043_v50 = vadd.f32 %v14833_v54, %v4846_v19  ;;  %v5629_v52 = vmul.f32 %v15033_v44, %v15033_v44 }
 0x6c7   :  { %v4328_v54 = vadd.f32 %v14926_v34, %v3805_v35  ;;  %v4849_v42 = vadd.f32 %v14946_v49, %v4327_v32  ;;  %v3808_v30 = vadd.f32 %v3741_v20, %v16834_v22  ;;  %v4329_v19 = vadd.f32 %v14966_v8, %v3806_v1 }
 0x6c8   :  { %v5688_v15 = vadd.f32 %v5687_v60, %v5625_v38  ;;  %v5556_v28 = vadd.f32 %v5555_v45, %v14814_v6  ;;  %v15053_v38 = vadd.f32 %v14856_v18, %v4847_v5  ;;  %v4264_v60 = vpop.f32.mrf.mxu2  ;;  %v15065_v24 = vadd.f32 %v14879_v33, %v4848_v27 }
 0x6c9   :  { %v4781_v0 = vpop.f32.mrf.mxu3  ;;  %v4850_v34 = vadd.f32 %v14983_v41, %v4328_v54  ;;  %v4330_v61 = vadd.f32 %v4261_v10, %v3807_v9  ;;  %v4331_v5 = vadd.f32 %v4264_v60, %v3808_v30 }
 0x6ca   :  { %v5689_v57 = vadd.f32 %v5688_v15, %v5626_v62  ;;  %v5557_v12 = vadd.f32 %v5556_v28, %v15024_v2  ;;  %v5630_v62 = vmul.f32 %v15043_v50, %v15043_v50  ;;  %v5631_v49 = vmul.f32 %v15053_v38, %v15053_v38 }
 0x6cb   :  { %v15072_v15 = vadd.f32 %v14913_v55, %v4849_v42  ;;  %v5632_v33 = vmul.f32 %v15065_v24, %v15065_v24  ;;  %v15078_v41 = vadd.f32 %v14957_v43, %v4850_v34  ;;  %v12549_v55 = vld [vmem:[%s16529_s4 + $0xb8] sm:$0xff] }
 0x6cc   :  { %v5690_v13 = vadd.f32 %v5689_v57, %v5627_v36  ;;  %v5558_v18 = vadd.f32 %v5557_v12, %v15033_v44  ;;  %v4851_v36 = vadd.f32 %v4781_v0, %v4329_v19  ;;  %v3743_v26 = vpop.f32.mrf.mxu1  ;;  %v5308_v10 = vpop.f32.mrf.mxu0  ;;  %7427 = vmatpush.bf16.msrb.mxu3 %v12549_v55 }
 0x6cd   :  { %v5633_v57 = vmul.f32 %v15072_v15, %v15072_v15  ;;  %v3809_v43 = vadd.f32 %v3743_v26, %v16835_v16  ;;  %v5634_v27 = vmul.f32 %v15078_v41, %v15078_v41 }
 0x6ce   :  { %v5691_v58 = vadd.f32 %v5690_v13, %v5628_v39  ;;  %v5559_v31 = vadd.f32 %v5558_v18, %v15043_v50  ;;  %v15087_v39 = vadd.f32 %v15000_v63, %v4851_v36 }
 0x6d0   :  { %v5692_v29 = vadd.f32 %v5691_v58, %v5629_v52  ;;  %v5560_v7 = vadd.f32 %v5559_v31, %v15053_v38  ;;  %v4266_v52 = vpop.f32.mrf.mxu2  ;;  %v5635_v63 = vmul.f32 %v15087_v39, %v15087_v39 }
 0x6d1   :  { %v4783_v23 = vpop.f32.mrf.mxu3  ;;  %v4332_v9 = vadd.f32 %v4266_v52, %v3809_v43  ;;  %v12547_v52 = vld [vmem:[%s16529_s4 + $0xa8] sm:$0xff] }
 0x6d2   :  { %v5693_v8 = vadd.f32 %v5692_v29, %v5630_v62  ;;  %v4852_v35 = vadd.f32 %v4783_v23, %v4330_v61  ;;  %v5561_v0 = vadd.f32 %v5560_v7, %v15065_v24 }
 0x6d4   :  { %v5694_v20 = vadd.f32 %v5693_v8, %v5631_v49  ;;  %v5562_v28 = vadd.f32 %v5561_v0, %v15072_v15  ;;  %v15093_v13 = vadd.f32 %v5305_v40, %v4852_v35  ;;  %v5310_v19 = vpop.f32.mrf.mxu0  ;;  %v12548_v8 = vld [vmem:[%s16529_s4 + $0xb0] sm:$0xff] }
 0x6d5   :  { %7428 = vmatpush.bf16.msrb.mxu3 %v12548_v8  ;;  %v16836_v8 = vld [vmem:[#allocation42_spill] sm:$0xff] }
 0x6d6   :  { %v5695_v1 = vadd.f32 %v5694_v20, %v5632_v33  ;;  %v5563_v54 = vadd.f32 %v5562_v28, %v15078_v41  ;;  %v5636_v22 = vmul.f32 %v15093_v13, %v15093_v13 }
 0x6d8   :  { %v5696_v23 = vadd.f32 %v5695_v1, %v5633_v57  ;;  %v5564_v42 = vadd.f32 %v5563_v54, %v15087_v39 }
 0x6d9   :  { %v4786_v45 = vpop.f32.mrf.mxu3  ;;  %7429 = vmatpush.bf16.msrb.mxu3 %v12547_v52 }
 0x6da   :  { %v4853_v32 = vadd.f32 %v4786_v45, %v4331_v5  ;;  %v5697_v12 = vadd.f32 %v5696_v23, %v5634_v27  ;;  %v5565_v40 = vadd.f32 %v5564_v42, %v15093_v13 }
 0x6dc   :  { %v15098_v25 = vadd.f32 %v5308_v10, %v4853_v32  ;;  %v5698_v60 = vadd.f32 %v5697_v12, %v5635_v63 }
 0x6de   :  { %v5637_v58 = vmul.f32 %v15098_v25, %v15098_v25  ;;  %v5699_v18 = vadd.f32 %v5698_v60, %v5636_v22  ;;  %v5566_v34 = vadd.f32 %v5565_v40, %v15098_v25  ;;  %v5712_v22 = vld [vmem:[%s16528_s3] sm:$0x1] }
 0x6e0   :  { %v5700_v49 = vadd.f32 %v5699_v18, %v5637_v58  ;;  %v5725_v58 = vld [vmem:[%s16528_s3 + $0x1] sm:$0x1] }
 0x6e1   :  { %v4788_v30 = vpop.f32.mrf.mxu3 }
 0x6e2   :  { %v4854_v62 = vadd.f32 %v4788_v30, %v4332_v9 }
 0x6e4   :  { %v5376_v29 = vadd.f32 %v5310_v19, %v4854_v62 }
 0x6e6   :  { %v5567_v61 = vadd.f32 %v5566_v34, %v5376_v29  ;;  %v5638_v31 = vmul.f32 %v5376_v29, %v5376_v29 }
 0x6e8   :  { %v5568_v36 = vrot.slane %v5567_v61, 4  ;;  %v5701_v5 = vadd.f32 %v5700_v49, %v5638_v31 }
 0x6ea   :  { %v5569_v26 = vadd.f32 %v5568_v36, %v5567_v61  ;;  %v5702_v7 = vrot.slane %v5701_v5, 4 }
 0x6ec   :  { %v5570_v33 = vrot.slane %v5569_v26, 2  ;;  %v5703_v35 = vadd.f32 %v5702_v7, %v5701_v5  ;;  %v16837_v7 = vld [vmem:[#allocation43_spill] sm:$0xff] }
 0x6ee   :  { %v5571_v20 = vadd.f32 %v5570_v33, %v5569_v26  ;;  %v5704_v10 = vrot.slane %v5703_v35, 2 }
 0x6f0   :  { %v5572_v45 = vrot.slane %v5571_v20, 1  ;;  %v5705_v55 = vadd.f32 %v5704_v10, %v5703_v35  ;;  %v16838_v35 = vld [vmem:[#allocation44_spill] sm:$0xff] }
 0x6f2   :  { %v5573_v0 = vadd.f32 %v5572_v45, %v5571_v20  ;;  %v5706_v57 = vrot.slane %v5705_v55, 1  ;;  %v16839_v20 = vld [vmem:[#allocation45_spill] sm:$0xff]  ;;  %v16840_v45 = vld [vmem:[#allocation10_spill] sm:$0xff] }
 0x6f4   :  { %v5574_v32 = vmul.f32 0.001953125, %v5573_v0  ;;  %v5707_v16 = vadd.f32 %v5706_v57, %v5705_v55  ;;  %v16841_v0 = vld [vmem:[#allocation8_spill] sm:$0xff] }
 0x6f6   :  { %v5708_v43 = vmul.f32 0.001953125, %v5707_v16  ;;  %v5709_v1 = vmul.f32 %v5574_v32, %v5574_v32 }
 0x6f8   :  { %v5710_v28 = vsub.f32 %v5708_v43, %v5709_v1 }
 0x6fa   :  { %v5711_v27 = vmax.f32 %v5710_v28, 0.0 }
 0x6fc   :  { %v5713_v23 = vadd.f32 0.0001, %v5711_v27  ;;  %v16844_v27 = vld [vmem:[#allocation72_spill] sm:$0xff] }
 0x6fe   :  { %12637 = vrsqrt.f32 %v5713_v23  ;;  %vm5720_vm4 = vweird.f32 %v5713_v23 }
 0x704   :  { %v12638_v54 = vpop.eup %12637 }
 0x705   :  { %v5715_v63 = vmul.f32 %v12638_v54, %v5713_v23  ;;  %vm5721_vm3 = vweird.f32 %v12638_v54 }
 0x706   :  { %vm5722_vm5 = vmor %vm5720_vm4, %vm5721_vm3 }
 0x707   :  { %v5716_v9 = vmul.f32 %v12638_v54, %v5715_v63  ;;  %v16845_v63 = vld [vmem:[#allocation46_spill] sm:$0xff] }
 0x709   :  { %v5717_v12 = vmul.f32 0.5, %v5716_v9 }
 0x70b   :  { %v5718_v42 = vsub.f32 1.5, %v5717_v12  ;;  %v16846_v12 = vld [vmem:[#allocation73_spill] sm:$0xff] }
 0x70d   :  { %v5719_v30 = vmul.f32 %v12638_v54, %v5718_v42 }
 0x70f   :  { %v5723_v60 = vsel %vm5722_vm5, %v12638_v54, %v5719_v30 }
 0x710   :  { %v5724_v40 = vmul.f32 %v5723_v60, %v5712_v22 }
 0x712   :  { %v5726_v62 = vmul.f32 %v5724_v40, %v5574_v32  ;;  %v15119_v19 = vperm.slane %v5724_v40, 0  ;;  %v16843_v32 = vld [vmem:[#allocation11_spill] sm:$0xff] }
 0x714   :  { %v5727_v18 = vsub.f32 %v5725_v58, %v5726_v62  ;;  %v5792_v34 = vmul.f32 %v15119_v19, %v5376_v29  ;;  %v5729_v36 = vmul.f32 %v15119_v19, %v14537_v14  ;;  %v5730_v5 = vmul.f32 %v15119_v19, %v14540_v3  ;;  %v16842_v3 = vld [vmem:[#allocation9_spill] sm:$0xff] }
 0x715   :  { %v5731_v26 = vmul.f32 %v15119_v19, %v16836_v8  ;;  %v5732_v33 = vmul.f32 %v15119_v19, %v16837_v7  ;;  %v5733_v29 = vmul.f32 %v15119_v19, %v16838_v35  ;;  %v5734_v10 = vmul.f32 %v15119_v19, %v16839_v20  ;;  %v12545_v20 = vld [vmem:[%s16529_s4 + $0x98] sm:$0xff] }
 0x716   :  { %v15122_v49 = vperm.slane %v5727_v18, 0  ;;  %v5735_v55 = vmul.f32 %v15119_v19, %v16840_v45  ;;  %v15141_v14 = vmul.f32 %v15119_v19, %v16841_v0  ;;  %v15145_v57 = vmul.f32 %v15119_v19, %v16842_v3 }
 0x717   :  { %v15149_v16 = vmul.f32 %v15119_v19, %v16843_v32  ;;  %v5766_v43 = vmul.f32 %v15119_v19, %v14678_v59  ;;  %v5767_v1 = vmul.f32 %v15119_v19, %v14681_v21  ;;  %v5768_v28 = vmul.f32 %v15119_v19, %v14686_v17 }
 0x718   :  { %v5857_v61 = vadd.f32 %v15122_v49, %v5792_v34  ;;  %v5769_v52 = vmul.f32 %v15119_v19, %v16844_v27  ;;  %v5770_v23 = vmul.f32 %v15119_v19, %v14919_v48  ;;  %v5771_v54 = vmul.f32 %v15119_v19, %v14699_v51 }
 0x719   :  { %v5772_v9 = vmul.f32 %v15119_v19, %v16845_v63  ;;  %v5773_v59 = vmul.f32 %v15119_v19, %v16846_v12  ;;  %v5774_v21 = vmul.f32 %v15119_v19, %v14954_v37  ;;  %v5775_v17 = vmul.f32 %v15119_v19, %v16824_v46 }
 0x71a   :  { %v5921_v31 = vmax.f32 %v5857_v61, 0.0  ;;  %v5776_v42 = vmul.f32 %v15119_v19, %v14971_v53  ;;  %v5777_v48 = vmul.f32 %v15119_v19, %v14734_v11  ;;  %v5778_v51 = vmul.f32 %v15119_v19, %v14991_v56 }
 0x71b   :  { %v5779_v22 = vmul.f32 %v15119_v19, %v14772_v4  ;;  %v5780_v30 = vmul.f32 %v15119_v19, %v15009_v47  ;;  %v5781_v37 = vmul.f32 %v15119_v19, %v14814_v6  ;;  %v5782_v46 = vmul.f32 %v15119_v19, %v15024_v2 }
 0x71c   :  { %6094 = vst [vmem:[#allocation3 + $0x339] sm:$0xff] %v5921_v31  ;;  %v5783_v53 = vmul.f32 %v15119_v19, %v15033_v44  ;;  %v5784_v11 = vmul.f32 %v15119_v19, %v15043_v50  ;;  %v5785_v56 = vmul.f32 %v15119_v19, %v15053_v38  ;;  %v5786_v4 = vmul.f32 %v15119_v19, %v15065_v24 }
 0x71d   :  { %v5787_v47 = vmul.f32 %v15119_v19, %v15072_v15  ;;  %v5788_v6 = vmul.f32 %v15119_v19, %v15078_v41  ;;  %v5789_v2 = vmul.f32 %v15119_v19, %v15087_v39  ;;  %v5790_v44 = vmul.f32 %v15119_v19, %v15093_v13 }
 0x71e   :  { %v5791_v50 = vmul.f32 %v15119_v19, %v15098_v25  ;;  %v15204_v38 = vadd.f32 %v15122_v49, %v5729_v36  ;;  %v15207_v24 = vadd.f32 %v15122_v49, %v5730_v5  ;;  %v15210_v15 = vadd.f32 %v15122_v49, %v5731_v26  ;;  %v12546_v25 = vld [vmem:[%s16529_s4 + $0xa0] sm:$0xff] }
 0x71f   :  { %v15213_v41 = vadd.f32 %v15122_v49, %v5732_v33  ;;  %v15216_v39 = vadd.f32 %v15122_v49, %v5733_v29  ;;  %v15219_v13 = vadd.f32 %v15122_v49, %v5734_v10  ;;  %v15225_v60 = vadd.f32 %v15122_v49, %v5735_v55  ;;  %7430 = vmatpush.bf16.msrb.mxu3 %v12546_v25  ;;  %v16864_v25 = vld [vmem:[#allocation17_spill] sm:$0xff] }
 0x720   :  { %v15228_v40 = vadd.f32 %v15122_v49, %v5766_v43  ;;  %v15231_v58 = vadd.f32 %v15122_v49, %v5767_v1  ;;  %v15234_v62 = vadd.f32 %v15122_v49, %v5768_v28  ;;  %v15237_v18 = vadd.f32 %v15122_v49, %v5769_v52 }
 0x721   :  { %16847 = vst [vmem:[#allocation33_spill] sm:$0xff] %v15216_v39  ;;  %v15240_v34 = vadd.f32 %v15122_v49, %v5770_v23  ;;  %v15243_v61 = vadd.f32 %v15122_v49, %v5771_v54  ;;  %v15246_v31 = vadd.f32 %v15122_v49, %v5772_v9  ;;  %v15249_v36 = vadd.f32 %v15122_v49, %v5773_v59  ;;  %v12544_v59 = vld [vmem:[%s16529_s4 + $0x90] sm:$0xff] }
 0x722   :  { %16848 = vst [vmem:[#allocation34_spill] sm:$0xff] %v15219_v13  ;;  %v15252_v5 = vadd.f32 %v15122_v49, %v5774_v21  ;;  %v15255_v8 = vadd.f32 %v15122_v49, %v5775_v17  ;;  %v15258_v26 = vadd.f32 %v15122_v49, %v5776_v42  ;;  %v15261_v7 = vadd.f32 %v15122_v49, %v5777_v48  ;;  %v16859_v21 = vld [vmem:[#allocation12_spill] sm:$0xff]  ;;  %v16860_v48 = vld [vmem:[#allocation13_spill] sm:$0xff] }
 0x723   :  { %v15264_v33 = vadd.f32 %v15122_v49, %v5778_v51  ;;  %v15267_v35 = vadd.f32 %v15122_v49, %v5779_v22  ;;  %v15270_v29 = vadd.f32 %v15122_v49, %v5780_v30  ;;  %v15276_v10 = vadd.f32 %v15122_v49, %v5781_v37  ;;  %7431 = vmatpush.bf16.msrb.mxu3 %v12545_v20 }
 0x724   :  { %v15279_v45 = vadd.f32 %v15122_v49, %v5782_v46  ;;  %v15282_v55 = vadd.f32 %v15122_v49, %v5783_v53  ;;  %v15285_v0 = vadd.f32 %v15122_v49, %v5784_v11  ;;  %v15288_v3 = vadd.f32 %v15122_v49, %v5785_v56  ;;  %v16862_v11 = vld [vmem:[#allocation15_spill] sm:$0xff] }
 0x725   :  { %v15291_v32 = vadd.f32 %v15122_v49, %v5786_v4  ;;  %v15294_v43 = vadd.f32 %v15122_v49, %v5787_v47  ;;  %v15297_v1 = vadd.f32 %v15122_v49, %v5788_v6  ;;  %v15300_v28 = vadd.f32 %v15122_v49, %v5789_v2  ;;  %v12543_v47 = vld [vmem:[%s16529_s4 + $0x88] sm:$0xff]  ;;  %v16863_v6 = vld [vmem:[#allocation16_spill] sm:$0xff] }
 0x726   :  { %16849 = vst [vmem:[#allocation47_spill] sm:$0xff] %v15279_v45  ;;  %v15303_v27 = vadd.f32 %v15122_v49, %v5790_v44  ;;  %v15306_v52 = vadd.f32 %v15122_v49, %v5791_v50  ;;  %v16593_v23 = vmax.f32 %v15204_v38, 0.0  ;;  %v15311_v54 = vadd.f32 %v15122_v49, %v15141_v14 }
 0x727   :  { %16850 = vst [vmem:[#allocation35_spill] sm:$0xff] %v15282_v55  ;;  %v16591_v63 = vmax.f32 %v15207_v24, 0.0  ;;  %v16586_v9 = vmax.f32 %v15210_v15, 0.0  ;;  %v16585_v12 = vmax.f32 %v15213_v41, 0.0  ;;  %v5739_v17 = vmul.f32 %v15119_v19, %v16859_v21  ;;  %7432 = vmatpush.bf16.msrb.mxu3 %v12544_v59 }
 0x728   :  { %16851 = vst [vmem:[#allocation36_spill] sm:$0xff] %v15285_v0  ;;  %v15323_v42 = vadd.f32 %v15122_v49, %v15145_v57  ;;  %v16584_v14 = vmax.f32 %v15216_v39, 0.0  ;;  %v5740_v51 = vmul.f32 %v15119_v19, %v16860_v48  ;;  %v15332_v22 = vadd.f32 %v15122_v49, %v15149_v16  ;;  %v16861_v57 = vld [vmem:[#allocation14_spill] sm:$0xff] }
 0x729   :  { %16852 = vst [vmem:[#allocation50_spill] sm:$0xff] %v15288_v3  ;;  %v16583_v30 = vmax.f32 %v15219_v13, 0.0  ;;  %v5741_v37 = vmul.f32 %v15119_v19, %v16861_v57  ;;  %v15340_v46 = vadd.f32 %v15122_v49, %v5739_v17  ;;  %v16589_v53 = vmax.f32 %v15225_v60, 0.0  ;;  %v16865_v17 = vld [vmem:[#allocation18_spill] sm:$0xff] }
 0x72a   :  { %16853 = vst [vmem:[#allocation48_spill] sm:$0xff] %v15291_v32  ;;  %v5742_v16 = vmul.f32 %v15119_v19, %v16862_v11  ;;  %v15348_v56 = vadd.f32 %v15122_v49, %v5740_v51  ;;  %v16588_v4 = vmax.f32 %v15311_v54, 0.0  ;;  %v5743_v2 = vmul.f32 %v15119_v19, %v16863_v6  ;;  %v16894_v32 = vld [vmem:[#allocation70_spill] sm:$0xff] }
 0x72b   :  { %16854 = vst [vmem:[#allocation49_spill] sm:$0xff] %v15294_v43  ;;  %v15359_v44 = vadd.f32 %v15122_v49, %v5741_v37  ;;  %v16587_v50 = vmax.f32 %v15323_v42, 0.0  ;;  %v5744_v20 = vmul.f32 %v15119_v19, %v16864_v25  ;;  %v16590_v21 = vmax.f32 %v15332_v22, 0.0  ;;  %7433 = vmatpush.bf16.msrb.mxu3 %v12543_v47  ;;  %v16866_v37 = vld [vmem:[#allocation19_spill] sm:$0xff] }
 0x72c   :  { %16855 = vst [vmem:[#allocation53_spill] sm:$0xff] %v15297_v1  ;;  %v15367_v59 = vadd.f32 %v15122_v49, %v5742_v16  ;;  %v5745_v48 = vmul.f32 %v15119_v19, %v16865_v17  ;;  %v15375_v51 = vadd.f32 %v15122_v49, %v5743_v2  ;;  %v16592_v57 = vmax.f32 %v15340_v46, 0.0  ;;  %v12557_v47 = vld [vmem:[%s16529_s4 + $0xf8] sm:$0xff]  ;;  %v16867_v2 = vld [vmem:[#allocation20_spill] sm:$0xff] }
 0x72d   :  { %16856 = vst [vmem:[#allocation51_spill] sm:$0xff] %v15300_v28  ;;  %v5746_v11 = vmul.f32 %v15119_v19, %v16866_v37  ;;  %v15383_v16 = vadd.f32 %v15122_v49, %v5744_v20  ;;  %v16594_v6 = vmax.f32 %v15348_v56, 0.0  ;;  %v5747_v25 = vmul.f32 %v15119_v19, %v16867_v2  ;;  %v12542_v20 = vld [vmem:[%s16529_s4 + $0x80] sm:$0xff]  ;;  %7949 = vmatpush.bf16.msrb.mxu0 %v12557_v47  ;;  %v16873_v47 = vld [vmem:[#allocation26_spill] sm:$0xff] }
 0x72e   :  { %16857 = vst [vmem:[#allocation52_spill] sm:$0xff] %v15303_v27  ;;  %v15394_v17 = vadd.f32 %v15122_v49, %v5745_v48  ;;  %v16596_v37 = vmax.f32 %v15359_v44, 0.0  ;;  %v16869_v48 = vld [vmem:[#allocation22_spill] sm:$0xff]  ;;  %v16891_v1 = vld [vmem:[#allocation68_spill] sm:$0xff] }
 0x72f   :  { %16858 = vst [vmem:[#allocation56_spill] sm:$0xff] %v15306_v52  ;;  %7434 = vmatpush.bf16.msrb.mxu3 %v12542_v20  ;;  %v16876_v52 = vld [vmem:[#allocation27_spill] sm:$0xff] }
 0x730   :  { %6031 = vst [vmem:[#allocation3 + $0x19] sm:$0xff] %v16593_v23  ;;  %v16872_v23 = vld [vmem:[#allocation25_spill] sm:$0xff] }
 0x731   :  { %6032 = vst [vmem:[#allocation3 + $0x21] sm:$0xff] %v16591_v63  ;;  %v16871_v63 = vld [vmem:[#allocation24_spill] sm:$0xff] }
 0x732   :  { %6033 = vst [vmem:[#allocation3 + $0x31] sm:$0xff] %v16586_v9  ;;  %v5749_v9 = vmul.f32 %v15119_v19, %v16869_v48  ;;  %v6680_v48 = vld [vmem:[#allocation3 + $0x1] sm:$0xff]  ;;  %v5751_v20 = vmul.f32 %v15119_v19, %v16871_v63 }
 0x733   :  { %6034 = vst [vmem:[#allocation3 + $0x39] sm:$0xff] %v16585_v12  ;;  %v15405_v12 = vadd.f32 %v15122_v49, %v5746_v11 }
 0x734   :  { %6035 = vst [vmem:[#allocation3 + $0x49] sm:$0xff] %v16584_v14  ;;  %v15448_v13 = vadd.f32 %v15122_v49, %v5751_v20  ;;  %v12555_v20 = vld [vmem:[%s16529_s4 + $0xe8] sm:$0xff] }
 0x735   :  { %6036 = vst [vmem:[#allocation3 + $0x51] sm:$0xff] %v16583_v30  ;;  %v16868_v30 = vld [vmem:[#allocation21_spill] sm:$0xff] }
 0x736   :  { %6037 = vst [vmem:[#allocation3 + $0x61] sm:$0xff] %v16589_v53  ;;  %v5748_v14 = vmul.f32 %v15119_v19, %v16868_v30  ;;  %v16870_v30 = vld [vmem:[#allocation23_spill] sm:$0xff] }
 0x737   :  { %6038 = vst [vmem:[#allocation3 + $0x69] sm:$0xff] %v16588_v4  ;;  %v5750_v11 = vmul.f32 %v15119_v19, %v16870_v30  ;;  %v7202_v30 = vld [vmem:[#allocation3 + $0x2] sm:$0xff]  ;;  %v5753_v4 = vmul.f32 %v15119_v19, %v16873_v47 }
 0x738   :  { %6039 = vst [vmem:[#allocation3 + $0x79] sm:$0xff] %v16587_v50  ;;  %v15413_v50 = vadd.f32 %v15122_v49, %v5747_v25  ;;  %v15421_v53 = vadd.f32 %v15122_v49, %v5748_v14  ;;  %v12556_v25 = vld [vmem:[%s16529_s4 + $0xf0] sm:$0xff] }
 0x739   :  { %6040 = vst [vmem:[#allocation3 + $0x81] sm:$0xff] %v16590_v21  ;;  %v6681_v21 = vld [vmem:[#allocation3 + $0x9] sm:$0xff]  ;;  %v15442_v2 = vadd.f32 %v15122_v49, %v5750_v11  ;;  %7950 = vmatpush.bf16.msrb.mxu0 %v12556_v25  ;;  %v5754_v11 = vmul.f32 %v15119_v19, %v16876_v52  ;;  %v16877_v25 = vmax.f32 %v15383_v16, 0.0  ;;  %v15469_v52 = vadd.f32 %v15122_v49, %v5753_v4 }
 0x73a   :  { %6041 = vst [vmem:[#allocation3 + $0x91] sm:$0xff] %v16592_v57  ;;  %v15432_v57 = vadd.f32 %v15122_v49, %v5749_v9  ;;  %v16874_v9 = vmax.f32 %v15367_v59, 0.0  ;;  %v7203_v14 = vld [vmem:[#allocation3 + $0xa] sm:$0xff]  ;;  %v6808_v39 = vpack.c.bf16 %v6681_v21, %v6680_v48  ;;  %v16879_v21 = vld [vmem:[#allocation28_spill] sm:$0xff] }
 0x73b   :  { %6042 = vst [vmem:[#allocation3 + $0x99] sm:$0xff] %v16594_v6  ;;  %v5752_v6 = vmul.f32 %v15119_v19, %v16872_v23  ;;  %v16875_v23 = vmax.f32 %v15375_v51, 0.0  ;;  %v7330_v47 = vpack.c.bf16 %v7203_v14, %v7202_v30  ;;  %v5755_v48 = vmul.f32 %v15119_v19, %v16879_v21  ;;  %v16881_v30 = vld [vmem:[#allocation29_spill] sm:$0xff]  ;;  %v16883_v4 = vld [vmem:[#allocation30_spill] sm:$0xff] }
 0x73c   :  { %6043 = vst [vmem:[#allocation3 + $0xa9] sm:$0xff] %v16596_v37  ;;  %v12698_v37 = vld [vmem:[#allocation2] sm:$0xff]  ;;  %v16880_v14 = vmax.f32 %v15394_v17, 0.0  ;;  %6913 = vmatmul.bf16.vlgmr.msra.gmra.mxu2 %v6808_v39  ;;  %v16882_v21 = vmax.f32 %v15405_v12, 0.0  ;;  %v16889_v28 = vmax.f32 %v15442_v2, 0.0 }
 0x73d   :  { %6044 = vst [vmem:[#allocation3 + $0xb1] sm:$0xff] %v16874_v9  ;;  %v15456_v63 = vadd.f32 %v15122_v49, %v5752_v6  ;;  %v16598_v9 = vmax.f32 %v15421_v53, 0.0  ;;  %v15464_v27 = vpack.c.bf16 %v12698_v37, %v12698_v37  ;;  %7435 = vmatmul.bf16.vlgmr.msrb.gmra.mxu3 %v7330_v47  ;;  %7951 = vmatpush.bf16.msrb.mxu0 %v12555_v20  ;;  %v16888_v47 = vld [vmem:[#allocation32_spill] sm:$0xff] }
 0x73e   :  { %6045 = vst [vmem:[#allocation3 + $0xc1] sm:$0xff] %v16875_v23  ;;  %v5756_v23 = vmul.f32 %v15119_v19, %v16881_v30  ;;  %v5757_v6 = vmul.f32 %v15119_v19, %v16883_v4  ;;  %v15486_v39 = vadd.f32 %v15122_v49, %v5755_v48  ;;  %v12554_v48 = vld [vmem:[%s16529_s4 + $0xe0] sm:$0xff]  ;;  %v5760_v20 = vmul.f32 %v15119_v19, %v16888_v47 }
 0x73f   :  { %6046 = vst [vmem:[#allocation3 + $0xc9] sm:$0xff] %v16877_v25  ;;  %v15477_v25 = vadd.f32 %v15122_v49, %v5754_v11  ;;  %6391 = vmatmul.bf16.vlgmr.msra.gmra.mxu1 %v15464_v27  ;;  %v16885_v11 = vld [vmem:[#allocation31_spill] sm:$0xff]  ;;  %v16892_v47 = vmax.f32 %v15448_v13, 0.0  ;;  %v16895_v3 = vmax.f32 %v15456_v63, 0.0 }
 0x740   :  { %16878 = vst [vmem:[#allocation54_spill] sm:$0xff] %v15464_v27  ;;  %v5758_v30 = vmul.f32 %v15119_v19, %v16885_v11  ;;  %v15494_v37 = vadd.f32 %v15122_v49, %v5756_v23  ;;  %v16887_v23 = vmax.f32 %v15432_v57, 0.0  ;;  %v5762_v11 = vmul.f32 %v15119_v19, %v16891_v1  ;;  %v12553_v1 = vld [vmem:[%s16529_s4 + $0xd8] sm:$0xff] }
 0x741   :  { %6047 = vst [vmem:[#allocation3 + $0xd9] sm:$0xff] %v16880_v14  ;;  %v16884_v14 = vmax.f32 %v15413_v50, 0.0  ;;  %7952 = vmatpush.bf16.msrb.mxu0 %v12554_v48  ;;  %v5825_v48 = vadd.f32 %v15122_v49, %v5760_v20  ;;  %v16898_v55 = vmax.f32 %v15477_v25, 0.0 }
 0x742   :  { %6048 = vst [vmem:[#allocation3 + $0xe1] sm:$0xff] %v16882_v21  ;;  %v16886_v21 = vld [vmem:[#allocation66_spill] sm:$0xff]  ;;  %v5827_v20 = vadd.f32 %v15122_v49, %v5762_v11 }
 0x743   :  { %6049 = vst [vmem:[#allocation3 + $0xf1] sm:$0xff] %v16884_v14  ;;  %v5759_v4 = vmul.f32 %v15119_v19, %v16886_v21  ;;  %v15505_v14 = vadd.f32 %v15122_v49, %v5757_v6  ;;  %v16890_v21 = vld [vmem:[#allocation67_spill] sm:$0xff] }
 0x744   :  { %6050 = vst [vmem:[#allocation3 + $0xf9] sm:$0xff] %v16598_v9  ;;  %v15513_v9 = vadd.f32 %v15122_v49, %v5758_v30  ;;  %v5761_v6 = vmul.f32 %v15119_v19, %v16890_v21  ;;  %v16893_v30 = vld [vmem:[#allocation69_spill] sm:$0xff] }
 0x745   :  { %6051 = vst [vmem:[#allocation3 + $0x109] sm:$0xff] %v16887_v23  ;;  %v5824_v23 = vadd.f32 %v15122_v49, %v5759_v4  ;;  %v5763_v27 = vmul.f32 %v15119_v19, %v16893_v30  ;;  %v16896_v4 = vld [vmem:[#allocation71_spill] sm:$0xff]  ;;  %v5886_v30 = vmax.f32 %v15505_v14, 0.0  ;;  %7953 = vmatpush.bf16.msrb.mxu0 %v12553_v1  ;;  %v16899_v14 = vmax.f32 %v15486_v39, 0.0 }
 0x746   :  { %6052 = vst [vmem:[#allocation3 + $0x111] sm:$0xff] %v16889_v28  ;;  %v5764_v28 = vmul.f32 %v15119_v19, %v16894_v32  ;;  %v5826_v43 = vadd.f32 %v15122_v49, %v5761_v6  ;;  %v16897_v32 = vmax.f32 %v15469_v52, 0.0  ;;  %v5887_v0 = vmax.f32 %v15513_v9, 0.0  ;;  %v12565_v1 = vld [vmem:[%s16529_s4 + $0x138] sm:$0xff] }
 0x747   :  { %6053 = vst [vmem:[#allocation3 + $0x121] sm:$0xff] %v16892_v47  ;;  %v5765_v47 = vmul.f32 %v15119_v19, %v16896_v4  ;;  %v5828_v21 = vadd.f32 %v15122_v49, %v5763_v27  ;;  %v5888_v6 = vmax.f32 %v5824_v23, 0.0  ;;  %v5889_v4 = vmax.f32 %v5825_v48, 0.0  ;;  %v12552_v27 = vld [vmem:[%s16529_s4 + $0xd0] sm:$0xff]  ;;  %v12573_v48 = vld [vmem:[%s16529_s4 + $0x178] sm:$0xff]  ;;  %8471 = vmatpush.bf16.msrb.mxu1 %v12565_v1 }
 0x748   :  { %6054 = vst [vmem:[#allocation3 + $0x129] sm:$0xff] %v16895_v3  ;;  %v5829_v3 = vadd.f32 %v15122_v49, %v5764_v28  ;;  %v5890_v11 = vmax.f32 %v5826_v43, 0.0  ;;  %v5891_v9 = vmax.f32 %v5827_v20, 0.0  ;;  %v5895_v23 = vmax.f32 %v15228_v40, 0.0  ;;  %v12551_v43 = vld [vmem:[%s16529_s4 + $0xc8] sm:$0xff]  ;;  %8993 = vmatpush.bf16.msrb.mxu2 %v12573_v48 }
 0x749   :  { %6055 = vst [vmem:[#allocation3 + $0x139] sm:$0xff] %v16897_v32  ;;  %v5830_v19 = vadd.f32 %v15122_v49, %v5765_v47  ;;  %v16900_v32 = vmax.f32 %v15494_v37, 0.0  ;;  %v5892_v28 = vmax.f32 %v5828_v21, 0.0  ;;  %7954 = vmatpush.bf16.msrb.mxu0 %v12552_v27  ;;  %v16901_v21 = vmax.f32 %v15204_v38, 0.0 }
 0x74a   :  { %6056 = vst [vmem:[#allocation3 + $0x141] sm:$0xff] %v16898_v55  ;;  %v5893_v55 = vmax.f32 %v5829_v3, 0.0  ;;  %v16902_v47 = vmax.f32 %v15207_v24, 0.0  ;;  %v16903_v40 = vmax.f32 %v15225_v60, 0.0  ;;  %v16904_v3 = vmax.f32 %v15311_v54, 0.0 }
 0x74b   :  { %6057 = vst [vmem:[#allocation3 + $0x151] sm:$0xff] %v16899_v14  ;;  %v5894_v49 = vmax.f32 %v5830_v19, 0.0  ;;  %v6162_v14 = vld [vmem:[#allocation3 + $0x20] sm:$0xff]  ;;  %v16906_v27 = vmax.f32 %v15332_v22, 0.0  ;;  %v16907_v38 = vmax.f32 %v15340_v46, 0.0  ;;  %v16908_v24 = vmax.f32 %v15348_v56, 0.0 }
 0x74c   :  { %6058 = vst [vmem:[#allocation3 + $0x159] sm:$0xff] %v16900_v32  ;;  %v6809_v20 = vpack.c.bf16 %v16902_v47, %v16901_v21  ;;  %v15575_v19 = vpack.c.bf16 %v16904_v3, %v16903_v40  ;;  %v16905_v32 = vmax.f32 %v15323_v42, 0.0  ;;  %v16909_v60 = vmax.f32 %v15359_v44, 0.0  ;;  %v7204_v46 = vld [vmem:[#allocation3 + $0x1a] sm:$0xff]  ;;  %v7205_v56 = vld [vmem:[#allocation3 + $0x22] sm:$0xff] }
 0x74d   :  { %6059 = vst [vmem:[#allocation3 + $0x169] sm:$0xff] %v5886_v30  ;;  %v15587_v21 = vpack.c.bf16 %v16908_v24, %v16907_v38  ;;  %v16910_v54 = vmax.f32 %v15367_v59, 0.0  ;;  %v16912_v42 = vmax.f32 %v15383_v16, 0.0  ;;  %v16913_v3 = vmax.f32 %v15394_v17, 0.0  ;;  %7955 = vmatpush.bf16.msrb.mxu0 %v12551_v43  ;;  %v12550_v16 = vld [vmem:[%s16529_s4 + $0xc0] sm:$0xff]  ;;  %v16928_v24 = vld [vmem:[#allocation35_spill] sm:$0xff] }
 0x74e   :  { %6060 = vst [vmem:[#allocation3 + $0x171] sm:$0xff] %v5887_v0  ;;  %v15581_v45 = vpack.c.bf16 %v16906_v27, %v16905_v32  ;;  %v16914_v44 = vmax.f32 %v15405_v12, 0.0  ;;  %v16915_v59 = vmax.f32 %v15413_v50, 0.0  ;;  %6918 = vmatmul.bf16.gmra.mxu2 %v6809_v20  ;;  %v16917_v17 = vmax.f32 %v15432_v57, 0.0 }
 0x74f   :  { %6061 = vst [vmem:[#allocation3 + $0x181] sm:$0xff] %v5888_v6  ;;  %v6161_v6 = vld [vmem:[#allocation3 + $0x18] sm:$0xff]  ;;  %v15593_v47 = vpack.c.bf16 %v16910_v54, %v16909_v60  ;;  %v16918_v12 = vmax.f32 %v15442_v2, 0.0  ;;  %v16919_v50 = vmax.f32 %v15448_v13, 0.0  ;;  %v16921_v43 = vmax.f32 %v15469_v52, 0.0 }
 0x750   :  { %6062 = vst [vmem:[#allocation3 + $0x189] sm:$0xff] %v5889_v4  ;;  %v16911_v4 = vmax.f32 %v15375_v51, 0.0  ;;  %v6288_v22 = vpack.c.bf16 %v6162_v14, %v6161_v6  ;;  %v15605_v32 = vpack.c.bf16 %v16914_v44, %v16913_v3  ;;  %v16916_v51 = vmax.f32 %v15421_v53, 0.0  ;;  %v16934_v3 = vld [vmem:[#allocation51_spill] sm:$0xff] }
 0x751   :  { %6063 = vst [vmem:[#allocation3 + $0x1c9] sm:$0xff] %v5890_v11  ;;  %v7331_v11 = vpack.c.bf16 %v7205_v56, %v7204_v46  ;;  %v15620_v48 = vpack.c.bf16 %v16918_v12, %v16917_v17  ;;  %v16920_v53 = vmax.f32 %v15456_v63, 0.0  ;;  %v16922_v20 = vmax.f32 %v15477_v25, 0.0  ;;  %7956 = vmatpush.bf16.msrb.mxu0 %v12550_v16  ;;  %v16933_v46 = vld [vmem:[#allocation53_spill] sm:$0xff]  ;;  %v16935_v16 = vld [vmem:[#allocation52_spill] sm:$0xff] }
 0x752   :  { %v15599_v40 = vpack.c.bf16 %v16912_v42, %v16911_v4  ;;  %v15611_v27 = vpack.c.bf16 %v16916_v51, %v16915_v59  ;;  %6064 = vst [vmem:[#allocation3 + $0x1d1] sm:$0xff] %v5891_v9  ;;  %v5896_v9 = vmax.f32 %v15231_v58, 0.0  ;;  %6396 = vmatmul.bf16.gmra.mxu1 %v6288_v22  ;;  %v5897_v57 = vmax.f32 %v15234_v62, 0.0  ;;  %v16931_v4 = vld [vmem:[#allocation48_spill] sm:$0xff]  ;;  %v16932_v42 = vld [vmem:[#allocation49_spill] sm:$0xff]  ;;  %v12572_v59 = vld [vmem:[%s16529_s4 + $0x170] sm:$0xff] }
 0x753   :  { %v15626_v1 = vpack.c.bf16 %v16920_v53, %v16919_v50  ;;  %6065 = vst [vmem:[#allocation3 + $0x1e1] sm:$0xff] %v5892_v28  ;;  %v15633_v6 = vpack.c.bf16 %v16922_v20, %v16921_v43  ;;  %7440 = vmatmul.bf16.gmra.mxu3 %v7331_v11  ;;  %v16923_v13 = vmax.f32 %v15486_v39, 0.0  ;;  %v16924_v2 = vmax.f32 %v15494_v37, 0.0  ;;  %v7206_v28 = vld [vmem:[#allocation3 + $0x32] sm:$0xff]  ;;  %v16936_v17 = vld [vmem:[#allocation56_spill] sm:$0xff]  ;;  %8994 = vmatpush.bf16.msrb.mxu2 %v12572_v59  ;;  %v6165_v50 = vld [vmem:[#allocation3 + $0x48] sm:$0xff] }
 0x754   :  { %6066 = vst [vmem:[#allocation3 + $0x1e9] sm:$0xff] %v5893_v55  ;;  %v15642_v14 = vpack.c.bf16 %v5887_v0, %v5886_v30  ;;  %v5898_v58 = vmax.f32 %v15237_v18, 0.0  ;;  %v5899_v52 = vmax.f32 %v15240_v34, 0.0  ;;  %v5900_v25 = vmax.f32 %v15243_v61, 0.0  ;;  %7957 = vmatmul.bf16.vlgmr.msrb.gmra.mxu0 %v6288_v22  ;;  %v6164_v30 = vld [vmem:[#allocation3 + $0x38] sm:$0xff]  ;;  %v12564_v51 = vld [vmem:[%s16529_s4 + $0x130] sm:$0xff] }
 0x755   :  { %v15640_v63 = vpack.c.bf16 %v16924_v2, %v16923_v13  ;;  %6067 = vst [vmem:[#allocation3 + $0x1f9] sm:$0xff] %v5894_v49  ;;  %v5901_v62 = vmax.f32 %v15246_v31, 0.0  ;;  %v5902_v39 = vmax.f32 %v15249_v36, 0.0  ;;  %v5903_v0 = vmax.f32 %v15252_v5, 0.0  ;;  %v6163_v31 = vld [vmem:[#allocation3 + $0x30] sm:$0xff]  ;;  %v7207_v5 = vld [vmem:[#allocation3 + $0x3a] sm:$0xff]  ;;  %8472 = vmatpush.bf16.msrb.mxu1 %v12564_v51 }
 0x756   :  { %6068 = vst [vmem:[#allocation3 + $0x201] sm:$0xff] %v5895_v23  ;;  %v5904_v18 = vmax.f32 %v15255_v8, 0.0  ;;  %v5905_v34 = vmax.f32 %v15258_v26, 0.0  ;;  %v5906_v37 = vmax.f32 %v15261_v7, 0.0  ;;  %v5907_v61 = vmax.f32 %v15264_v33, 0.0  ;;  %v16927_v23 = vld [vmem:[#allocation47_spill] sm:$0xff] }
 0x757   :  { %6069 = vst [vmem:[#allocation3 + $0x211] sm:$0xff] %v5896_v9  ;;  %v5908_v36 = vmax.f32 %v15267_v35, 0.0  ;;  %v5909_v55 = vmax.f32 %v15270_v29, 0.0  ;;  %v16925_v8 = vmax.f32 %v15210_v15, 0.0  ;;  %v16926_v26 = vmax.f32 %v15213_v41, 0.0  ;;  %v16929_v29 = vld [vmem:[#allocation36_spill] sm:$0xff] }
 0x758   :  { %6070 = vst [vmem:[#allocation3 + $0x219] sm:$0xff] %v5897_v57  ;;  %v5910_v7 = vmax.f32 %v15276_v10, 0.0  ;;  %v6289_v33 = vpack.c.bf16 %v6164_v30, %v6163_v31  ;;  %v5911_v38 = vmax.f32 %v16927_v23, 0.0  ;;  %v7332_v35 = vpack.c.bf16 %v7207_v5, %v7206_v28  ;;  %v16930_v15 = vld [vmem:[#allocation50_spill] sm:$0xff]  ;;  %v16937_v20 = vld [vmem:[#allocation33_spill] sm:$0xff]  ;;  %v6170_v31 = vld [vmem:[#allocation3 + $0x80] sm:$0xff] }
 0x759   :  { %6071 = vst [vmem:[#allocation3 + $0x229] sm:$0xff] %v5898_v58  ;;  %v6810_v49 = vpack.c.bf16 %v16926_v26, %v16925_v8  ;;  %v5912_v60 = vmax.f32 %v16928_v24, 0.0  ;;  %v5913_v54 = vmax.f32 %v16929_v29, 0.0  ;;  %v5914_v41 = vmax.f32 %v16930_v15, 0.0  ;;  %v6166_v53 = vld [vmem:[#allocation3 + $0x50] sm:$0xff]  ;;  %v7212_v30 = vld [vmem:[#allocation3 + $0x7a] sm:$0xff] }
 0x75a   :  { %6072 = vst [vmem:[#allocation3 + $0x231] sm:$0xff] %v5899_v52  ;;  %v5915_v10 = vmax.f32 %v16931_v4, 0.0  ;;  %v5916_v22 = vmax.f32 %v16932_v42, 0.0  ;;  %v5917_v56 = vmax.f32 %v16933_v46, 0.0  ;;  %v5918_v44 = vmax.f32 %v16934_v3, 0.0  ;;  %v7208_v9 = vld [vmem:[#allocation3 + $0x4a] sm:$0xff] }
 0x75b   :  { %6073 = vst [vmem:[#allocation3 + $0x241] sm:$0xff] %v5900_v25  ;;  %v5919_v11 = vmax.f32 %v16935_v16, 0.0  ;;  %v5920_v12 = vmax.f32 %v16936_v17, 0.0  ;;  %v7209_v43 = vld [vmem:[#allocation3 + $0x52] sm:$0xff]  ;;  %v16938_v57 = vmax.f32 %v16937_v20, 0.0  ;;  %v6290_v52 = vpack.c.bf16 %v6166_v53, %v6165_v50  ;;  %v12563_v24 = vld [vmem:[%s16529_s4 + $0x128] sm:$0xff] }
 0x75c   :  { %6074 = vst [vmem:[#allocation3 + $0x249] sm:$0xff] %v5901_v62  ;;  %v16939_v13 = vld [vmem:[#allocation34_spill] sm:$0xff]  ;;  %v7333_v25 = vpack.c.bf16 %v7209_v43, %v7208_v9  ;;  %v6167_v62 = vld [vmem:[#allocation3 + $0x60] sm:$0xff]  ;;  %v6172_v8 = vld [vmem:[#allocation3 + $0x98] sm:$0xff]  ;;  %8473 = vmatpush.bf16.msrb.mxu1 %v12563_v24 }
 0x75d   :  { %6075 = vst [vmem:[#allocation3 + $0x259] sm:$0xff] %v5902_v39  ;;  %v16940_v2 = vmax.f32 %v16939_v13, 0.0  ;;  %v6168_v39 = vld [vmem:[#allocation3 + $0x68] sm:$0xff]  ;;  %v7214_v26 = vld [vmem:[#allocation3 + $0x92] sm:$0xff]  ;;  %v6175_v29 = vld [vmem:[#allocation3 + $0xc0] sm:$0xff] }
 0x75e   :  { %6076 = vst [vmem:[#allocation3 + $0x261] sm:$0xff] %v5903_v0  ;;  %6923 = vmatmul.bf16.gmra.mxu2 %v6810_v49  ;;  %v7210_v0 = vld [vmem:[#allocation3 + $0x62] sm:$0xff]  ;;  %v7215_v49 = vld [vmem:[#allocation3 + $0x9a] sm:$0xff]  ;;  %v6174_v23 = vld [vmem:[#allocation3 + $0xb0] sm:$0xff] }
 0x75f   :  { %6077 = vst [vmem:[#allocation3 + $0x271] sm:$0xff] %v5904_v18  ;;  %v6811_v58 = vpack.c.bf16 %v16940_v2, %v16938_v57  ;;  %v7211_v18 = vld [vmem:[#allocation3 + $0x6a] sm:$0xff]  ;;  %v6177_v16 = vld [vmem:[#allocation3 + $0xd8] sm:$0xff]  ;;  %v7221_v50 = vld [vmem:[#allocation3 + $0xe2] sm:$0xff] }
 0x760   :  { %6078 = vst [vmem:[#allocation3 + $0x279] sm:$0xff] %v5905_v34  ;;  %v6291_v34 = vpack.c.bf16 %v6168_v39, %v6167_v62  ;;  %v7219_v4 = vld [vmem:[#allocation3 + $0xca] sm:$0xff] }
 0x761   :  { %6079 = vst [vmem:[#allocation3 + $0x289] sm:$0xff] %v5906_v37  ;;  %v7334_v37 = vpack.c.bf16 %v7211_v18, %v7210_v0  ;;  %v6179_v0 = vld [vmem:[#allocation3 + $0xf0] sm:$0xff]  ;;  %v6180_v18 = vld [vmem:[#allocation3 + $0xf8] sm:$0xff] }
 0x762   :  { %6080 = vst [vmem:[#allocation3 + $0x291] sm:$0xff] %v5907_v61  ;;  %6401 = vmatmul.bf16.gmra.mxu1 %v6289_v33  ;;  %v6169_v61 = vld [vmem:[#allocation3 + $0x78] sm:$0xff]  ;;  %v6182_v24 = vld [vmem:[#allocation3 + $0x110] sm:$0xff] }
 0x763   :  { %6081 = vst [vmem:[#allocation3 + $0x2a1] sm:$0xff] %v5908_v36  ;;  %7445 = vmatmul.bf16.gmra.mxu3 %v7332_v35  ;;  %v7213_v36 = vld [vmem:[#allocation3 + $0x82] sm:$0xff]  ;;  %v6292_v28 = vpack.c.bf16 %v6170_v31, %v6169_v61  ;;  %v7217_v35 = vld [vmem:[#allocation3 + $0xb2] sm:$0xff]  ;;  %v7223_v61 = vld [vmem:[#allocation3 + $0xfa] sm:$0xff] }
 0x764   :  { %6082 = vst [vmem:[#allocation3 + $0x2a9] sm:$0xff] %v5909_v55  ;;  %7962 = vmatmul.bf16.gmra.mxu0 %v6289_v33  ;;  %v7335_v5 = vpack.c.bf16 %v7213_v36, %v7212_v30  ;;  %v6171_v55 = vld [vmem:[#allocation3 + $0x90] sm:$0xff]  ;;  %v12571_v33 = vld [vmem:[%s16529_s4 + $0x168] sm:$0xff]  ;;  %v6297_v36 = vpack.c.bf16 %v6180_v18, %v6179_v0 }
 0x765   :  { %6083 = vst [vmem:[#allocation3 + $0x2b9] sm:$0xff] %v5910_v7  ;;  %v7336_v7 = vpack.c.bf16 %v7215_v49, %v7214_v26  ;;  %8995 = vmatpush.bf16.msrb.mxu2 %v12571_v33  ;;  %v12570_v33 = vld [vmem:[%s16529_s4 + $0x160] sm:$0xff] }
 0x766   :  { %6084 = vst [vmem:[#allocation3 + $0x2c1] sm:$0xff] %v5911_v38  ;;  %v7216_v38 = vld [vmem:[#allocation3 + $0xaa] sm:$0xff] }
 0x767   :  { %6085 = vst [vmem:[#allocation3 + $0x2d1] sm:$0xff] %v5912_v60 }
 0x768   :  { %6086 = vst [vmem:[#allocation3 + $0x2d9] sm:$0xff] %v5913_v54  ;;  %v6176_v54 = vld [vmem:[#allocation3 + $0xc8] sm:$0xff] }
 0x769   :  { %6087 = vst [vmem:[#allocation3 + $0x2e9] sm:$0xff] %v5914_v41  ;;  %v7218_v41 = vld [vmem:[#allocation3 + $0xc2] sm:$0xff]  ;;  %8996 = vmatpush.bf16.msrb.mxu2 %v12570_v33 }
 0x76a   :  { %6088 = vst [vmem:[#allocation3 + $0x2f1] sm:$0xff] %v5915_v10  ;;  %v6295_v10 = vpack.c.bf16 %v6176_v54, %v6175_v29  ;;  %v7338_v42 = vpack.c.bf16 %v7219_v4, %v7218_v41  ;;  %v7224_v29 = vld [vmem:[#allocation3 + $0x10a] sm:$0xff]  ;;  %v7225_v54 = vld [vmem:[#allocation3 + $0x112] sm:$0xff] }
 0x76b   :  { %6089 = vst [vmem:[#allocation3 + $0x301] sm:$0xff] %v5916_v22 }
 0x76c   :  { %6090 = vst [vmem:[#allocation3 + $0x309] sm:$0xff] %v5917_v56 }
 0x76d   :  { %6091 = vst [vmem:[#allocation3 + $0x319] sm:$0xff] %v5918_v44 }
 0x76e   :  { %6092 = vst [vmem:[#allocation3 + $0x321] sm:$0xff] %v5919_v11  ;;  %6928 = vmatmul.bf16.gmra.mxu2 %v6811_v58  ;;  %v6178_v11 = vld [vmem:[#allocation3 + $0xe0] sm:$0xff] }
 0x76f   :  { %6093 = vst [vmem:[#allocation3 + $0x331] sm:$0xff] %v5920_v12  ;;  %v7220_v12 = vld [vmem:[#allocation3 + $0xda] sm:$0xff]  ;;  %v6296_v9 = vpack.c.bf16 %v6178_v11, %v6177_v16 }
 0x770   :  { %v6183_v11 = vld [vmem:[#allocation3 + $0x120] sm:$0xff] }
 0x772   :  { %6406 = vmatmul.bf16.gmra.mxu1 %v6290_v52 }
 0x773   :  { %7450 = vmatmul.bf16.gmra.mxu3 %v7333_v25 }
 0x774   :  { %7967 = vmatmul.bf16.gmra.mxu0 %v6290_v52 }
 0x77e   :  { %6933 = vmatmul.bf16.gmra.mxu2 %v15575_v19  ;;  %v6293_v19 = vpack.c.bf16 %v6172_v8, %v6171_v55 }
 0x782   :  { %6411 = vmatmul.bf16.gmra.mxu1 %v6291_v34 }
 0x783   :  { %7455 = vmatmul.bf16.gmra.mxu3 %v7334_v37  ;;  %v7222_v37 = vld [vmem:[#allocation3 + $0xf2] sm:$0xff] }
 0x784   :  { %7972 = vmatmul.bf16.gmra.mxu0 %v6291_v34 }
 0x78e   :  { %6938 = vmatmul.bf16.gmra.mxu2 %v15581_v45  ;;  %v6173_v45 = vld [vmem:[#allocation3 + $0xa8] sm:$0xff] }
 0x78f   :  { %v6294_v60 = vpack.c.bf16 %v6174_v23, %v6173_v45 }
 0x792   :  { %6416 = vmatmul.bf16.gmra.mxu1 %v6292_v28 }
 0x793   :  { %7460 = vmatmul.bf16.gmra.mxu3 %v7335_v5 }
 0x794   :  { %7977 = vmatmul.bf16.gmra.mxu0 %v6292_v28  ;;  %v7340_v28 = vpack.c.bf16 %v7223_v61, %v7222_v37  ;;  %v6185_v37 = vld [vmem:[#allocation3 + $0x138] sm:$0xff]  ;;  %v6186_v61 = vld [vmem:[#allocation3 + $0x140] sm:$0xff] }
 0x79e   :  { %6943 = vmatmul.bf16.gmra.mxu2 %v15587_v21  ;;  %v7337_v21 = vpack.c.bf16 %v7217_v35, %v7216_v38  ;;  %v6181_v35 = vld [vmem:[#allocation3 + $0x108] sm:$0xff] }
 0x79f   :  { %v6298_v4 = vpack.c.bf16 %v6182_v24, %v6181_v35 }
 0x7a2   :  { %6421 = vmatmul.bf16.gmra.mxu1 %v6293_v19 }
 0x7a3   :  { %7465 = vmatmul.bf16.gmra.mxu3 %v7336_v7 }
 0x7a4   :  { %7982 = vmatmul.bf16.gmra.mxu0 %v6293_v19 }
 0x7ae   :  { %6948 = vmatmul.bf16.gmra.mxu2 %v15593_v47 }
 0x7b2   :  { %6426 = vmatmul.bf16.gmra.mxu1 %v6294_v60 }
 0x7b3   :  { %7470 = vmatmul.bf16.gmra.mxu3 %v7337_v21 }
 0x7b4   :  { %7987 = vmatmul.bf16.gmra.mxu0 %v6294_v60 }
 0x7bc   :  { %v6392_v15 = vpop.f32.mrf.mxu1 }
 0x7be   :  { %6953 = vmatmul.bf16.gmra.mxu2 %v15599_v40  ;;  %v7339_v40 = vpack.c.bf16 %v7221_v50, %v7220_v12  ;;  %v7226_v50 = vld [vmem:[#allocation3 + $0x122] sm:$0xff] }
 0x7bf   :  { %v6914_v22 = vpop.f32.mrf.mxu2 }
 0x7c0   :  { %v7436_v46 = vpop.f32.mrf.mxu3  ;;  %v7074_v56 = vadd.f32 %v6914_v22, %v6392_v15 }
 0x7c2   :  { %6431 = vmatmul.bf16.gmra.mxu1 %v6295_v10  ;;  %v7596_v3 = vadd.f32 %v7436_v46, %v7074_v56 }
 0x7c3   :  { %7475 = vmatmul.bf16.gmra.mxu3 %v7338_v42 }
 0x7c4   :  { %v6394_v47 = vpop.f32.mrf.mxu1  ;;  %7992 = vmatmul.bf16.gmra.mxu0 %v6295_v10  ;;  %v7341_v10 = vpack.c.bf16 %v7225_v54, %v7224_v29  ;;  %v6188_v29 = vld [vmem:[#allocation3 + $0x158] sm:$0xff] }
 0x7c7   :  { %v6916_v44 = vpop.f32.mrf.mxu2 }
 0x7c8   :  { %v7438_v59 = vpop.f32.mrf.mxu3  ;;  %v7075_v51 = vadd.f32 %v6916_v44, %v6394_v47 }
 0x7ca   :  { %v7597_v17 = vadd.f32 %v7438_v59, %v7075_v51 }
 0x7ce   :  { %6958 = vmatmul.bf16.gmra.mxu2 %v15605_v32 }
 0x7cf   :  { %v6397_v53 = vpop.f32.mrf.mxu1 }
 0x7d1   :  { %v6919_v43 = vpop.f32.mrf.mxu2  ;;  %v7958_v20 = vpop.f32.mrf.mxu0 }
 0x7d2   :  { %6436 = vmatmul.bf16.gmra.mxu1 %v6296_v9  ;;  %v7076_v57 = vadd.f32 %v6919_v43, %v6397_v53  ;;  %v15693_v13 = vadd.f32 %v7958_v20, %v7596_v3  ;;  %v7227_v53 = vld [vmem:[#allocation3 + $0x12a] sm:$0xff] }
 0x7d3   :  { %7480 = vmatmul.bf16.gmra.mxu3 %v7339_v40  ;;  %v7342_v20 = vpack.c.bf16 %v7227_v53, %v7226_v50  ;;  %v6189_v53 = vld [vmem:[#allocation3 + $0x168] sm:$0xff] }
 0x7d4   :  { %7997 = vmatmul.bf16.gmra.mxu0 %v6296_v9 }
 0x7d6   :  { %v7441_v2 = vpop.f32.mrf.mxu3 }
 0x7d7   :  { %v7598_v58 = vadd.f32 %v7441_v2, %v7076_v57  ;;  %v6399_v52 = vpop.f32.mrf.mxu1 }
 0x7d9   :  { %v6921_v25 = vpop.f32.mrf.mxu2  ;;  %v7960_v62 = vpop.f32.mrf.mxu0 }
 0x7da   :  { %v7077_v39 = vadd.f32 %v6921_v25, %v6399_v52  ;;  %v15695_v34 = vadd.f32 %v7960_v62, %v7597_v17  ;;  %v6184_v17 = vld [vmem:[#allocation3 + $0x128] sm:$0xff] }
 0x7db   :  { %v6299_v43 = vpack.c.bf16 %v6184_v17, %v6183_v11  ;;  %v12569_v11 = vld [vmem:[%s16529_s4 + $0x158] sm:$0xff] }
 0x7dc   :  { %8997 = vmatpush.bf16.msrb.mxu2 %v12569_v11 }
 0x7de   :  { %v7443_v32 = vpop.f32.mrf.mxu3  ;;  %6963 = vmatmul.bf16.gmra.mxu2 %v15611_v27  ;;  %v12562_v27 = vld [vmem:[%s16529_s4 + $0x120] sm:$0xff] }
 0x7df   :  { %v7599_v31 = vadd.f32 %v7443_v32, %v7077_v39  ;;  %v6402_v30 = vpop.f32.mrf.mxu1  ;;  %8474 = vmatpush.bf16.msrb.mxu1 %v12562_v27 }
 0x7e1   :  { %v6924_v5 = vpop.f32.mrf.mxu2  ;;  %v7963_v55 = vpop.f32.mrf.mxu0 }
 0x7e2   :  { %6441 = vmatmul.bf16.gmra.mxu1 %v6297_v36  ;;  %v7078_v8 = vadd.f32 %v6924_v5, %v6402_v30  ;;  %v15698_v26 = vadd.f32 %v7963_v55, %v7598_v58  ;;  %v7228_v30 = vld [vmem:[#allocation3 + $0x13a] sm:$0xff]  ;;  %v6300_v55 = vpack.c.bf16 %v6186_v61, %v6185_v37 }
 0x7e3   :  { %7485 = vmatmul.bf16.gmra.mxu3 %v7340_v28 }
 0x7e4   :  { %8002 = vmatmul.bf16.gmra.mxu0 %v6297_v36  ;;  %v7229_v36 = vld [vmem:[#allocation3 + $0x142] sm:$0xff] }
 0x7e6   :  { %v7446_v49 = vpop.f32.mrf.mxu3 }
 0x7e7   :  { %v7600_v19 = vadd.f32 %v7446_v49, %v7078_v8  ;;  %v6404_v7 = vpop.f32.mrf.mxu1  ;;  %v7343_v8 = vpack.c.bf16 %v7229_v36, %v7228_v30  ;;  %v6712_v30 = vld [vmem:[#allocation3 + $0x1b1] sm:$0xff]  ;;  %v6713_v36 = vld [vmem:[#allocation3 + $0x1b9] sm:$0xff] }
 0x7e9   :  { %v6926_v45 = vpop.f32.mrf.mxu2  ;;  %v7965_v23 = vpop.f32.mrf.mxu0 }
 0x7ea   :  { %v7079_v38 = vadd.f32 %v6926_v45, %v6404_v7  ;;  %v15706_v60 = vadd.f32 %v7965_v23, %v7599_v31 }
 0x7ee   :  { %v7448_v21 = vpop.f32.mrf.mxu3  ;;  %6968 = vmatmul.bf16.gmra.mxu2 %v15620_v48 }
 0x7ef   :  { %v7601_v15 = vadd.f32 %v7448_v21, %v7079_v38  ;;  %v6407_v41 = vpop.f32.mrf.mxu1  ;;  %v6187_v21 = vld [vmem:[#allocation3 + $0x150] sm:$0xff] }
 0x7f1   :  { %v6929_v42 = vpop.f32.mrf.mxu2  ;;  %v7968_v22 = vpop.f32.mrf.mxu0 }
 0x7f2   :  { %6446 = vmatmul.bf16.gmra.mxu1 %v6298_v4  ;;  %v7080_v46 = vadd.f32 %v6929_v42, %v6407_v41  ;;  %v15709_v56 = vadd.f32 %v7968_v22, %v7600_v19  ;;  %v7231_v41 = vld [vmem:[#allocation3 + $0x15a] sm:$0xff]  ;;  %v6301_v42 = vpack.c.bf16 %v6188_v29, %v6187_v21 }
 0x7f3   :  { %7490 = vmatmul.bf16.gmra.mxu3 %v7341_v10 }
 0x7f4   :  { %8007 = vmatmul.bf16.gmra.mxu0 %v6298_v4 }
 0x7f6   :  { %v7451_v3 = vpop.f32.mrf.mxu3 }
 0x7f7   :  { %v7602_v47 = vadd.f32 %v7451_v3, %v7080_v46  ;;  %v6409_v44 = vpop.f32.mrf.mxu1 }
 0x7f9   :  { %v6931_v59 = vpop.f32.mrf.mxu2  ;;  %v7970_v51 = vpop.f32.mrf.mxu0 }
 0x7fa   :  { %v7081_v16 = vadd.f32 %v6931_v59, %v6409_v44  ;;  %v15711_v12 = vadd.f32 %v7970_v51, %v7601_v15  ;;  %v7230_v15 = vld [vmem:[#allocation3 + $0x152] sm:$0xff] }
 0x7fb   :  { %v7344_v22 = vpack.c.bf16 %v7231_v41, %v7230_v15 }
 0x7fe   :  { %v7453_v48 = vpop.f32.mrf.mxu3  ;;  %6973 = vmatmul.bf16.gmra.mxu2 %v15626_v1 }
 0x7ff   :  { %v7603_v9 = vadd.f32 %v7453_v48, %v7081_v16  ;;  %v6412_v40 = vpop.f32.mrf.mxu1 }
 0x801   :  { %v6934_v57 = vpop.f32.mrf.mxu2  ;;  %v7973_v2 = vpop.f32.mrf.mxu0 }
 0x802   :  { %6451 = vmatmul.bf16.gmra.mxu1 %v6299_v43  ;;  %v7082_v58 = vadd.f32 %v6934_v57, %v6412_v40  ;;  %v15714_v52 = vadd.f32 %v7973_v2, %v7602_v47  ;;  %v7233_v57 = vld [vmem:[#allocation3 + $0x172] sm:$0xff] }
 0x803   :  { %7495 = vmatmul.bf16.gmra.mxu3 %v7342_v20  ;;  %v7232_v20 = vld [vmem:[#allocation3 + $0x16a] sm:$0xff] }
 0x804   :  { %8012 = vmatmul.bf16.gmra.mxu0 %v6299_v43 }
 0x806   :  { %v7456_v25 = vpop.f32.mrf.mxu3 }
 0x807   :  { %v7604_v62 = vadd.f32 %v7456_v25, %v7082_v58  ;;  %v6414_v39 = vpop.f32.mrf.mxu1 }
 0x809   :  { %v6936_v0 = vpop.f32.mrf.mxu2  ;;  %v7975_v18 = vpop.f32.mrf.mxu0 }
 0x80a   :  { %v7083_v32 = vadd.f32 %v6936_v0, %v6414_v39  ;;  %v15716_v31 = vadd.f32 %v7975_v18, %v7603_v9  ;;  %v6190_v9 = vld [vmem:[#allocation3 + $0x170] sm:$0xff] }
 0x80b   :  { %v6302_v25 = vpack.c.bf16 %v6190_v9, %v6189_v53 }
 0x80e   :  { %v7458_v1 = vpop.f32.mrf.mxu3  ;;  %6978 = vmatmul.bf16.gmra.mxu2 %v15633_v6 }
 0x80f   :  { %v7605_v28 = vadd.f32 %v7458_v1, %v7083_v32  ;;  %v6417_v5 = vpop.f32.mrf.mxu1 }
 0x811   :  { %v6939_v49 = vpop.f32.mrf.mxu2  ;;  %v7978_v19 = vpop.f32.mrf.mxu0 }
 0x812   :  { %6456 = vmatmul.bf16.gmra.mxu1 %v6300_v55  ;;  %v7084_v7 = vadd.f32 %v6939_v49, %v6417_v5  ;;  %v15719_v33 = vadd.f32 %v7978_v19, %v7604_v62  ;;  %v7345_v62 = vpack.c.bf16 %v7233_v57, %v7232_v20  ;;  %v7234_v5 = vld [vmem:[#allocation3 + $0x1b2] sm:$0xff] }
 0x813   :  { %7500 = vmatmul.bf16.gmra.mxu3 %v7343_v8 }
 0x814   :  { %8017 = vmatmul.bf16.gmra.mxu0 %v6300_v55  ;;  %v7235_v55 = vld [vmem:[#allocation3 + $0x1ba] sm:$0xff] }
 0x816   :  { %v7461_v27 = vpop.f32.mrf.mxu3 }
 0x817   :  { %v7606_v45 = vadd.f32 %v7461_v27, %v7084_v7  ;;  %v6419_v23 = vpop.f32.mrf.mxu1 }
 0x819   :  { %v6941_v38 = vpop.f32.mrf.mxu2  ;;  %v7980_v35 = vpop.f32.mrf.mxu0 }
 0x81a   :  { %v7085_v24 = vadd.f32 %v6941_v38, %v6419_v23  ;;  %v15721_v54 = vadd.f32 %v7980_v35, %v7605_v28  ;;  %v7346_v23 = vpack.c.bf16 %v7235_v55, %v7234_v5  ;;  %v16941_v38 = vld [vmem:[#allocation54_spill] sm:$0xff]  ;;  %v7754_v35 = vld [vmem:[#allocation3 + $0x180] sm:$0xff] }
 0x81e   :  { %v7463_v6 = vpop.f32.mrf.mxu3  ;;  %6983 = vmatmul.bf16.gmra.mxu2 %v15640_v63  ;;  %v12561_v63 = vld [vmem:[%s16529_s4 + $0x118] sm:$0xff] }
 0x81f   :  { %v7607_v4 = vadd.f32 %v7463_v6, %v7085_v24  ;;  %v6422_v10 = vpop.f32.mrf.mxu1  ;;  %8475 = vmatpush.bf16.msrb.mxu1 %v12561_v63  ;;  %v7755_v24 = vld [vmem:[#allocation3 + $0x188] sm:$0xff] }
 0x820   :  { %v7867_v41 = vpack.c.bf16 %v7755_v24, %v7754_v35 }
 0x821   :  { %v6944_v46 = vpop.f32.mrf.mxu2  ;;  %v7983_v3 = vpop.f32.mrf.mxu0 }
 0x822   :  { %6461 = vmatmul.bf16.gmra.mxu1 %v6301_v42  ;;  %v7086_v47 = vadd.f32 %v6944_v46, %v6422_v10  ;;  %v15724_v44 = vadd.f32 %v7983_v3, %v7606_v45  ;;  %v6714_v46 = vld [vmem:[#allocation3 + $0x1c9] sm:$0xff]  ;;  %v6715_v3 = vld [vmem:[#allocation3 + $0x1d1] sm:$0xff] }
 0x823   :  { %7505 = vmatmul.bf16.gmra.mxu3 %v7344_v22  ;;  %v6825_v9 = vpack.c.bf16 %v6715_v3, %v6714_v46  ;;  %v6719_v46 = vld [vmem:[#allocation3 + $0x201] sm:$0xff] }
 0x824   :  { %8022 = vmatmul.bf16.gmra.mxu0 %v6301_v42 }
 0x826   :  { %v7466_v59 = vpop.f32.mrf.mxu3 }
 0x827   :  { %v7608_v51 = vadd.f32 %v7466_v59, %v7086_v47  ;;  %v6424_v16 = vpop.f32.mrf.mxu1 }
 0x829   :  { %v6946_v17 = vpop.f32.mrf.mxu2  ;;  %v7985_v48 = vpop.f32.mrf.mxu0 }
 0x82a   :  { %v7087_v50 = vadd.f32 %v6946_v17, %v6424_v16  ;;  %v15732_v40 = vadd.f32 %v7985_v48, %v7607_v4  ;;  %v6194_v16 = vld [vmem:[#allocation3 + $0x1d0] sm:$0xff] }
 0x82b   :  { %v7236_v17 = vld [vmem:[#allocation3 + $0x1ca] sm:$0xff]  ;;  %v7237_v48 = vld [vmem:[#allocation3 + $0x1d2] sm:$0xff] }
 0x82c   :  { %v7347_v20 = vpack.c.bf16 %v7237_v48, %v7236_v17  ;;  %v7240_v17 = vld [vmem:[#allocation3 + $0x1fa] sm:$0xff]  ;;  %v7241_v48 = vld [vmem:[#allocation3 + $0x202] sm:$0xff] }
 0x82e   :  { %v7468_v43 = vpop.f32.mrf.mxu3  ;;  %6988 = vmatmul.bf16.gmra.mxu2 %v15642_v14  ;;  %v6824_v14 = vpack.c.bf16 %v6713_v36, %v6712_v30  ;;  %v6195_v36 = vld [vmem:[#allocation3 + $0x1e0] sm:$0xff] }
 0x82f   :  { %v7609_v2 = vadd.f32 %v7468_v43, %v7087_v50  ;;  %v6427_v58 = vpop.f32.mrf.mxu1 }
 0x831   :  { %v6949_v39 = vpop.f32.mrf.mxu2  ;;  %v7988_v0 = vpop.f32.mrf.mxu0 }
 0x832   :  { %6466 = vmatmul.bf16.gmra.mxu1 %v6302_v25  ;;  %v7088_v18 = vadd.f32 %v6949_v39, %v6427_v58  ;;  %v15735_v32 = vadd.f32 %v7988_v0, %v7608_v51  ;;  %v6193_v51 = vld [vmem:[#allocation3 + $0x1c8] sm:$0xff] }
 0x833   :  { %7510 = vmatmul.bf16.gmra.mxu3 %v7345_v62  ;;  %v6304_v43 = vpack.c.bf16 %v6194_v16, %v6193_v51  ;;  %v6198_v51 = vld [vmem:[#allocation3 + $0x200] sm:$0xff] }
 0x834   :  { %8027 = vmatmul.bf16.gmra.mxu0 %v6302_v25 }
 0x836   :  { %v7471_v37 = vpop.f32.mrf.mxu3 }
 0x837   :  { %v7610_v61 = vadd.f32 %v7471_v37, %v7088_v18  ;;  %v6429_v1 = vpop.f32.mrf.mxu1  ;;  %v6716_v37 = vld [vmem:[#allocation3 + $0x1e1] sm:$0xff] }
 0x839   :  { %v6951_v28 = vpop.f32.mrf.mxu2  ;;  %v7990_v8 = vpop.f32.mrf.mxu0 }
 0x83a   :  { %v7089_v49 = vadd.f32 %v6951_v28, %v6429_v1  ;;  %v15737_v19 = vadd.f32 %v7990_v8, %v7609_v2  ;;  %v6196_v28 = vld [vmem:[#allocation3 + $0x1e8] sm:$0xff] }
 0x83b   :  { %v7238_v8 = vld [vmem:[#allocation3 + $0x1e2] sm:$0xff] }
 0x83e   :  { %v7473_v7 = vpop.f32.mrf.mxu3  ;;  %6993 = vmatmul.bf16.gmra.mxu2 %v6824_v14 }
 0x83f   :  { %v7611_v27 = vadd.f32 %v7473_v7, %v7089_v49  ;;  %v6432_v45 = vpop.f32.mrf.mxu1  ;;  %v7239_v49 = vld [vmem:[#allocation3 + $0x1ea] sm:$0xff] }
 0x841   :  { %v6954_v21 = vpop.f32.mrf.mxu2  ;;  %v7993_v29 = vpop.f32.mrf.mxu0 }
 0x842   :  { %6471 = vmatmul.bf16.gmra.mxu1 %v16941_v38  ;;  %v7090_v6 = vadd.f32 %v6954_v21, %v6432_v45  ;;  %v15740_v15 = vadd.f32 %v7993_v29, %v7610_v61  ;;  %v6717_v61 = vld [vmem:[#allocation3 + $0x1e9] sm:$0xff]  ;;  %v6305_v45 = vpack.c.bf16 %v6196_v28, %v6195_v36 }
 0x843   :  { %7515 = vmatmul.bf16.gmra.mxu3 %v7346_v23  ;;  %v7348_v23 = vpack.c.bf16 %v7239_v49, %v7238_v8  ;;  %v6199_v28 = vld [vmem:[#allocation3 + $0x210] sm:$0xff] }
 0x844   :  { %8032 = vmatmul.bf16.gmra.mxu0 %v7867_v41 }
 0x846   :  { %v7476_v4 = vpop.f32.mrf.mxu3 }
 0x847   :  { %v7612_v10 = vadd.f32 %v7476_v4, %v7090_v6  ;;  %v6434_v42 = vpop.f32.mrf.mxu1  ;;  %v12568_v4 = vld [vmem:[%s16529_s4 + $0x150] sm:$0xff] }
 0x848   :  { %8998 = vmatpush.bf16.msrb.mxu2 %v12568_v4 }
 0x849   :  { %v6956_v22 = vpop.f32.mrf.mxu2  ;;  %v7995_v47 = vpop.f32.mrf.mxu0 }
 0x84a   :  { %v7091_v59 = vadd.f32 %v6956_v22, %v6434_v42  ;;  %v15742_v11 = vadd.f32 %v7995_v47, %v7611_v27  ;;  %v6826_v27 = vpack.c.bf16 %v6717_v61, %v6716_v37  ;;  %v6718_v22 = vld [vmem:[#allocation3 + $0x1f9] sm:$0xff]  ;;  %v6720_v61 = vld [vmem:[#allocation3 + $0x211] sm:$0xff] }
 0x84e   :  { %v7478_v63 = vpop.f32.mrf.mxu3  ;;  %6998 = vmatmul.bf16.gmra.mxu2 %v6825_v9  ;;  %v6827_v9 = vpack.c.bf16 %v6719_v46, %v6718_v22  ;;  %v6722_v46 = vld [vmem:[#allocation3 + $0x229] sm:$0xff] }
 0x84f   :  { %v7613_v50 = vadd.f32 %v7478_v63, %v7091_v59  ;;  %v6437_v53 = vpop.f32.mrf.mxu1  ;;  %v6197_v59 = vld [vmem:[#allocation3 + $0x1f8] sm:$0xff] }
 0x851   :  { %v6959_v57 = vpop.f32.mrf.mxu2  ;;  %v7998_v2 = vpop.f32.mrf.mxu0 }
 0x852   :  { %6476 = vmatmul.bf16.gmra.mxu1 %v6304_v43  ;;  %v7092_v58 = vadd.f32 %v6959_v57, %v6437_v53  ;;  %v15744_v25 = vadd.f32 %v7998_v2, %v7612_v10  ;;  %v12560_v10 = vld [vmem:[%s16529_s4 + $0x110] sm:$0xff] }
 0x853   :  { %7520 = vmatmul.bf16.gmra.mxu3 %v7347_v20  ;;  %8476 = vmatpush.bf16.msrb.mxu1 %v12560_v10  ;;  %v7349_v20 = vpack.c.bf16 %v7241_v48, %v7240_v17 }
 0x854   :  { %8037 = vmatmul.bf16.gmra.mxu0 %v6304_v43  ;;  %v6306_v43 = vpack.c.bf16 %v6198_v51, %v6197_v59  ;;  %v6201_v51 = vld [vmem:[#allocation3 + $0x228] sm:$0xff] }
 0x856   :  { %v7481_v62 = vpop.f32.mrf.mxu3 }
 0x857   :  { %v7614_v39 = vadd.f32 %v7481_v62, %v7092_v58  ;;  %v6439_v0 = vpop.f32.mrf.mxu1 }
 0x859   :  { %v6961_v18 = vpop.f32.mrf.mxu2  ;;  %v8000_v1 = vpop.f32.mrf.mxu0 }
 0x85a   :  { %v7093_v30 = vadd.f32 %v6961_v18, %v6439_v0  ;;  %v15746_v5 = vadd.f32 %v8000_v1, %v7613_v50  ;;  %v6721_v1 = vld [vmem:[#allocation3 + $0x219] sm:$0xff] }
 0x85e   :  { %v7483_v55 = vpop.f32.mrf.mxu3  ;;  %7003 = vmatmul.bf16.gmra.mxu2 %v6826_v27 }
 0x85f   :  { %v7615_v14 = vadd.f32 %v7483_v55, %v7093_v30  ;;  %v6442_v7 = vpop.f32.mrf.mxu1  ;;  %v6200_v55 = vld [vmem:[#allocation3 + $0x218] sm:$0xff] }
 0x861   :  { %v6964_v38 = vpop.f32.mrf.mxu2  ;;  %v8003_v35 = vpop.f32.mrf.mxu0 }
 0x862   :  { %6481 = vmatmul.bf16.gmra.mxu1 %v6305_v45  ;;  %v7094_v24 = vadd.f32 %v6964_v38, %v6442_v7  ;;  %v15748_v21 = vadd.f32 %v8003_v35, %v7614_v39  ;;  %v7243_v7 = vld [vmem:[#allocation3 + $0x21a] sm:$0xff]  ;;  %v6307_v38 = vpack.c.bf16 %v6200_v55, %v6199_v28  ;;  %v6725_v28 = vld [vmem:[#allocation3 + $0x249] sm:$0xff] }
 0x863   :  { %7525 = vmatmul.bf16.gmra.mxu3 %v7348_v23  ;;  %v6828_v23 = vpack.c.bf16 %v6721_v1, %v6720_v61 }
 0x864   :  { %8042 = vmatmul.bf16.gmra.mxu0 %v6305_v45 }
 0x866   :  { %v7486_v29 = vpop.f32.mrf.mxu3 }
 0x867   :  { %v7616_v6 = vadd.f32 %v7486_v29, %v7094_v24  ;;  %v6444_v41 = vpop.f32.mrf.mxu1 }
 0x869   :  { %v6966_v42 = vpop.f32.mrf.mxu2  ;;  %v8005_v3 = vpop.f32.mrf.mxu0 }
 0x86a   :  { %v7095_v47 = vadd.f32 %v6966_v42, %v6444_v41  ;;  %v15756_v16 = vadd.f32 %v8005_v3, %v7615_v14  ;;  %v7242_v14 = vld [vmem:[#allocation3 + $0x212] sm:$0xff] }
 0x86b   :  { %v7350_v35 = vpack.c.bf16 %v7243_v7, %v7242_v14  ;;  %v6723_v3 = vld [vmem:[#allocation3 + $0x231] sm:$0xff]  ;;  %v6203_v14 = vld [vmem:[#allocation3 + $0x240] sm:$0xff]  ;;  %v6204_v7 = vld [vmem:[#allocation3 + $0x248] sm:$0xff] }
 0x86e   :  { %v7488_v63 = vpop.f32.mrf.mxu3  ;;  %7008 = vmatmul.bf16.gmra.mxu2 %v6827_v9 }
 0x86f   :  { %v7617_v50 = vadd.f32 %v7488_v63, %v7095_v47  ;;  %v6447_v53 = vpop.f32.mrf.mxu1  ;;  %v6202_v63 = vld [vmem:[#allocation3 + $0x230] sm:$0xff] }
 0x871   :  { %v6969_v57 = vpop.f32.mrf.mxu2  ;;  %v8008_v2 = vpop.f32.mrf.mxu0 }
 0x872   :  { %6486 = vmatmul.bf16.gmra.mxu1 %v6306_v43  ;;  %v7096_v58 = vadd.f32 %v6969_v57, %v6447_v53  ;;  %v15758_v62 = vadd.f32 %v8008_v2, %v7616_v6  ;;  %v7245_v53 = vld [vmem:[#allocation3 + $0x232] sm:$0xff]  ;;  %v6308_v57 = vpack.c.bf16 %v6202_v63, %v6201_v51  ;;  %v12567_v51 = vld [vmem:[%s16529_s4 + $0x148] sm:$0xff] }
 0x873   :  { %7530 = vmatmul.bf16.gmra.mxu3 %v7349_v20  ;;  %v6829_v20 = vpack.c.bf16 %v6723_v3, %v6722_v46  ;;  %v12559_v63 = vld [vmem:[%s16529_s4 + $0x108] sm:$0xff]  ;;  %8999 = vmatpush.bf16.msrb.mxu2 %v12567_v51 }
 0x874   :  { %8047 = vmatmul.bf16.gmra.mxu0 %v6306_v43  ;;  %8477 = vmatpush.bf16.msrb.mxu1 %v12559_v63 }
 0x876   :  { %v7491_v39 = vpop.f32.mrf.mxu3 }
 0x877   :  { %v7618_v0 = vadd.f32 %v7491_v39, %v7096_v58  ;;  %v6449_v18 = vpop.f32.mrf.mxu1 }
 0x879   :  { %v6971_v37 = vpop.f32.mrf.mxu2  ;;  %v8010_v30 = vpop.f32.mrf.mxu0 }
 0x87a   :  { %v7097_v36 = vadd.f32 %v6971_v37, %v6449_v18  ;;  %v15760_v8 = vadd.f32 %v8010_v30, %v7617_v50  ;;  %v7244_v50 = vld [vmem:[#allocation3 + $0x22a] sm:$0xff] }
 0x87b   :  { %v7351_v2 = vpack.c.bf16 %v7245_v53, %v7244_v50  ;;  %v6726_v50 = vld [vmem:[#allocation3 + $0x259] sm:$0xff]  ;;  %v6727_v53 = vld [vmem:[#allocation3 + $0x261] sm:$0xff] }
 0x87e   :  { %v7493_v49 = vpop.f32.mrf.mxu3  ;;  %7013 = vmatmul.bf16.gmra.mxu2 %v6828_v23  ;;  %v7246_v23 = vld [vmem:[#allocation3 + $0x242] sm:$0xff] }
 0x87f   :  { %v7619_v27 = vadd.f32 %v7493_v49, %v7097_v36  ;;  %v6452_v45 = vpop.f32.mrf.mxu1  ;;  %v6724_v36 = vld [vmem:[#allocation3 + $0x241] sm:$0xff] }
 0x881   :  { %v6974_v24 = vpop.f32.mrf.mxu2  ;;  %v8013_v29 = vpop.f32.mrf.mxu0 }
 0x882   :  { %6491 = vmatmul.bf16.gmra.mxu1 %v6307_v38  ;;  %v7098_v6 = vadd.f32 %v6974_v24, %v6452_v45  ;;  %v15762_v41 = vadd.f32 %v8013_v29, %v7618_v0  ;;  %v6830_v29 = vpack.c.bf16 %v6725_v28, %v6724_v36 }
 0x883   :  { %7535 = vmatmul.bf16.gmra.mxu3 %v7350_v35 }
 0x884   :  { %8052 = vmatmul.bf16.gmra.mxu0 %v6307_v38  ;;  %v7247_v38 = vld [vmem:[#allocation3 + $0x24a] sm:$0xff] }
 0x886   :  { %v7496_v4 = vpop.f32.mrf.mxu3 }
 0x887   :  { %v7620_v10 = vadd.f32 %v7496_v4, %v7098_v6  ;;  %v6454_v42 = vpop.f32.mrf.mxu1  ;;  %v6309_v6 = vpack.c.bf16 %v6204_v7, %v6203_v14  ;;  %v7352_v4 = vpack.c.bf16 %v7247_v38, %v7246_v23 }
 0x889   :  { %v6976_v22 = vpop.f32.mrf.mxu2  ;;  %v8015_v47 = vpop.f32.mrf.mxu0 }
 0x88a   :  { %v7099_v59 = vadd.f32 %v6976_v22, %v6454_v42  ;;  %v15764_v17 = vadd.f32 %v8015_v47, %v7619_v27 }
 0x88e   :  { %v7498_v48 = vpop.f32.mrf.mxu3  ;;  %7018 = vmatmul.bf16.gmra.mxu2 %v6829_v20  ;;  %v6205_v20 = vld [vmem:[#allocation3 + $0x258] sm:$0xff] }
 0x88f   :  { %v7621_v9 = vadd.f32 %v7498_v48, %v7099_v59  ;;  %v6457_v43 = vpop.f32.mrf.mxu1 }
 0x891   :  { %v6979_v58 = vpop.f32.mrf.mxu2  ;;  %v8018_v39 = vpop.f32.mrf.mxu0 }
 0x892   :  { %6496 = vmatmul.bf16.gmra.mxu1 %v6308_v57  ;;  %v7100_v0 = vadd.f32 %v6979_v58, %v6457_v43  ;;  %v15766_v18 = vadd.f32 %v8018_v39, %v7620_v10  ;;  %v7248_v39 = vld [vmem:[#allocation3 + $0x25a] sm:$0xff] }
 0x893   :  { %7540 = vmatmul.bf16.gmra.mxu3 %v7351_v2 }
 0x894   :  { %8057 = vmatmul.bf16.gmra.mxu0 %v6308_v57  ;;  %v6206_v57 = vld [vmem:[#allocation3 + $0x260] sm:$0xff] }
 0x896   :  { %v7501_v37 = vpop.f32.mrf.mxu3 }
 0x897   :  { %v7622_v61 = vadd.f32 %v7501_v37, %v7100_v0  ;;  %v6459_v1 = vpop.f32.mrf.mxu1  ;;  %v7249_v0 = vld [vmem:[#allocation3 + $0x262] sm:$0xff] }
 0x898   :  { %v7353_v36 = vpack.c.bf16 %v7249_v0, %v7248_v39 }
 0x899   :  { %v6981_v30 = vpop.f32.mrf.mxu2  ;;  %v8020_v55 = vpop.f32.mrf.mxu0 }
 0x89a   :  { %v7101_v49 = vadd.f32 %v6981_v30, %v6459_v1  ;;  %v15768_v27 = vadd.f32 %v8020_v55, %v7621_v9  ;;  %v6831_v1 = vpack.c.bf16 %v6727_v53, %v6726_v50  ;;  %v6310_v30 = vpack.c.bf16 %v6206_v57, %v6205_v20 }
 0x89e   :  { %v7503_v45 = vpop.f32.mrf.mxu3  ;;  %7023 = vmatmul.bf16.gmra.mxu2 %v6830_v29 }
 0x89f   :  { %v7623_v35 = vadd.f32 %v7503_v45, %v7101_v49  ;;  %v6462_v24 = vpop.f32.mrf.mxu1 }
 0x8a1   :  { %v6984_v10 = vpop.f32.mrf.mxu2  ;;  %v8023_v42 = vpop.f32.mrf.mxu0 }
 0x8a2   :  { %6501 = vmatmul.bf16.gmra.mxu1 %v6309_v6  ;;  %v7102_v22 = vadd.f32 %v6984_v10, %v6462_v24  ;;  %v15770_v46 = vadd.f32 %v8023_v42, %v7622_v61  ;;  %v6729_v24 = vld [vmem:[#allocation3 + $0x279] sm:$0xff] }
 0x8a3   :  { %7545 = vmatmul.bf16.gmra.mxu3 %v7352_v4  ;;  %v6207_v4 = vld [vmem:[#allocation3 + $0x270] sm:$0xff]  ;;  %v6208_v10 = vld [vmem:[#allocation3 + $0x278] sm:$0xff] }
 0x8a4   :  { %8062 = vmatmul.bf16.gmra.mxu0 %v6309_v6 }
 0x8a6   :  { %v7506_v3 = vpop.f32.mrf.mxu3 }
 0x8a7   :  { %v7624_v47 = vadd.f32 %v7506_v3, %v7102_v22  ;;  %v6464_v59 = vpop.f32.mrf.mxu1  ;;  %v7250_v3 = vld [vmem:[#allocation3 + $0x272] sm:$0xff] }
 0x8a9   :  { %v6986_v48 = vpop.f32.mrf.mxu2  ;;  %v8025_v9 = vpop.f32.mrf.mxu0 }
 0x8aa   :  { %v7103_v43 = vadd.f32 %v6986_v48, %v6464_v59  ;;  %v15778_v2 = vadd.f32 %v8025_v9, %v7623_v35  ;;  %v6728_v35 = vld [vmem:[#allocation3 + $0x271] sm:$0xff]  ;;  %v7251_v59 = vld [vmem:[#allocation3 + $0x27a] sm:$0xff]  ;;  %v6311_v48 = vpack.c.bf16 %v6208_v10, %v6207_v4 }
 0x8ab   :  { %v7354_v50 = vpack.c.bf16 %v7251_v59, %v7250_v3 }
 0x8ae   :  { %v7508_v58 = vpop.f32.mrf.mxu3  ;;  %7028 = vmatmul.bf16.gmra.mxu2 %v6831_v1 }
 0x8af   :  { %v7625_v37 = vadd.f32 %v7508_v58, %v7103_v43  ;;  %v6467_v61 = vpop.f32.mrf.mxu1 }
 0x8b1   :  { %v6989_v28 = vpop.f32.mrf.mxu2  ;;  %v8028_v55 = vpop.f32.mrf.mxu0 }
 0x8b2   :  { %6506 = vmatmul.bf16.gmra.mxu1 %v6310_v30  ;;  %v7104_v49 = vadd.f32 %v6989_v28, %v6467_v61  ;;  %v15780_v14 = vadd.f32 %v8028_v55, %v7624_v47  ;;  %v6832_v47 = vpack.c.bf16 %v6729_v24, %v6728_v35  ;;  %v6731_v61 = vld [vmem:[#allocation3 + $0x291] sm:$0xff] }
 0x8b3   :  { %7550 = vmatmul.bf16.gmra.mxu3 %v7353_v36  ;;  %v6209_v36 = vld [vmem:[#allocation3 + $0x288] sm:$0xff]  ;;  %v6210_v28 = vld [vmem:[#allocation3 + $0x290] sm:$0xff] }
 0x8b4   :  { %8067 = vmatmul.bf16.gmra.mxu0 %v6310_v30  ;;  %v6312_v24 = vpack.c.bf16 %v6210_v28, %v6209_v36 }
 0x8b6   :  { %v7511_v7 = vpop.f32.mrf.mxu3 }
 0x8b7   :  { %v7626_v45 = vadd.f32 %v7511_v7, %v7104_v49  ;;  %v6469_v23 = vpop.f32.mrf.mxu1  ;;  %v7252_v7 = vld [vmem:[#allocation3 + $0x28a] sm:$0xff] }
 0x8b9   :  { %v6991_v38 = vpop.f32.mrf.mxu2  ;;  %v8030_v29 = vpop.f32.mrf.mxu0 }
 0x8ba   :  { %v7105_v6 = vadd.f32 %v6991_v38, %v6469_v23  ;;  %v15782_v42 = vadd.f32 %v8030_v29, %v7625_v37  ;;  %v6730_v37 = vld [vmem:[#allocation3 + $0x289] sm:$0xff]  ;;  %v7253_v23 = vld [vmem:[#allocation3 + $0x292] sm:$0xff] }
 0x8bb   :  { %v7355_v29 = vpack.c.bf16 %v7253_v23, %v7252_v7 }
 0x8be   :  { %v7513_v22 = vpop.f32.mrf.mxu3  ;;  %7033 = vmatmul.bf16.gmra.mxu2 %v6832_v47  ;;  %v6732_v47 = vld [vmem:[#allocation3 + $0x2a1] sm:$0xff] }
 0x8bf   :  { %v7627_v51 = vadd.f32 %v7513_v22, %v7105_v6  ;;  %v6472_v63 = vpop.f32.mrf.mxu1 }
 0x8c1   :  { %v6994_v53 = vpop.f32.mrf.mxu2  ;;  %v8033_v9 = vpop.f32.mrf.mxu0 }
 0x8c2   :  { %6511 = vmatmul.bf16.gmra.mxu1 %v6311_v48  ;;  %v7106_v43 = vadd.f32 %v6994_v53, %v6472_v63  ;;  %v15784_v20 = vadd.f32 %v8033_v9, %v7626_v45  ;;  %v6833_v45 = vpack.c.bf16 %v6731_v61, %v6730_v37  ;;  %v6211_v9 = vld [vmem:[#allocation3 + $0x2a0] sm:$0xff]  ;;  %v7255_v37 = vld [vmem:[#allocation3 + $0x2aa] sm:$0xff] }
 0x8c3   :  { %7555 = vmatmul.bf16.gmra.mxu3 %v7354_v50 }
 0x8c4   :  { %8072 = vmatmul.bf16.gmra.mxu0 %v6311_v48  ;;  %v6733_v48 = vld [vmem:[#allocation3 + $0x2a9] sm:$0xff] }
 0x8c6   :  { %v7516_v57 = vpop.f32.mrf.mxu3 }
 0x8c7   :  { %v7628_v58 = vadd.f32 %v7516_v57, %v7106_v43  ;;  %v6474_v39 = vpop.f32.mrf.mxu1  ;;  %v6212_v43 = vld [vmem:[#allocation3 + $0x2a8] sm:$0xff] }
 0x8c9   :  { %v6996_v0 = vpop.f32.mrf.mxu2  ;;  %v8035_v1 = vpop.f32.mrf.mxu0 }
 0x8ca   :  { %v7107_v30 = vadd.f32 %v6996_v0, %v6474_v39  ;;  %v15786_v55 = vadd.f32 %v8035_v1, %v7627_v51  ;;  %v7254_v0 = vld [vmem:[#allocation3 + $0x2a2] sm:$0xff] }
 0x8cb   :  { %v7356_v36 = vpack.c.bf16 %v7255_v37, %v7254_v0 }
 0x8ce   :  { %v7518_v49 = vpop.f32.mrf.mxu3  ;;  %7038 = vmatmul.bf16.gmra.mxu2 %v6833_v45 }
 0x8cf   :  { %v7629_v38 = vadd.f32 %v7518_v49, %v7107_v30  ;;  %v6477_v35 = vpop.f32.mrf.mxu1  ;;  %v6313_v30 = vpack.c.bf16 %v6212_v43, %v6211_v9 }
 0x8d1   :  { %v6999_v6 = vpop.f32.mrf.mxu2  ;;  %v8038_v4 = vpop.f32.mrf.mxu0 }
 0x8d2   :  { %6516 = vmatmul.bf16.gmra.mxu1 %v6312_v24  ;;  %v7108_v10 = vadd.f32 %v6999_v6, %v6477_v35  ;;  %v15788_v22 = vadd.f32 %v8038_v4, %v7628_v58  ;;  %v6834_v58 = vpack.c.bf16 %v6733_v48, %v6732_v47  ;;  %v6734_v4 = vld [vmem:[#allocation3 + $0x2b9] sm:$0xff] }
 0x8d3   :  { %7560 = vmatmul.bf16.gmra.mxu3 %v7355_v29  ;;  %v12558_v29 = vld [vmem:[%s16529_s4 + $0x100] sm:$0xff] }
 0x8d4   :  { %8077 = vmatmul.bf16.gmra.mxu0 %v6312_v24  ;;  %v12566_v24 = vld [vmem:[%s16529_s4 + $0x140] sm:$0xff]  ;;  %8478 = vmatpush.bf16.msrb.mxu1 %v12558_v29 }
 0x8d5   :  { %9000 = vmatpush.bf16.msrb.mxu2 %v12566_v24 }
 0x8d6   :  { %v7521_v3 = vpop.f32.mrf.mxu3 }
 0x8d7   :  { %v7630_v59 = vadd.f32 %v7521_v3, %v7108_v10  ;;  %v6479_v51 = vpop.f32.mrf.mxu1  ;;  %v6735_v10 = vld [vmem:[#allocation3 + $0x2c1] sm:$0xff] }
 0x8d9   :  { %v7001_v63 = vpop.f32.mrf.mxu2  ;;  %v8040_v50 = vpop.f32.mrf.mxu0 }
 0x8da   :  { %v7109_v53 = vadd.f32 %v7001_v63, %v6479_v51  ;;  %v15790_v57 = vadd.f32 %v8040_v50, %v7629_v38  ;;  %v6213_v51 = vld [vmem:[#allocation3 + $0x2b8] sm:$0xff]  ;;  %v6214_v63 = vld [vmem:[#allocation3 + $0x2c0] sm:$0xff] }
 0x8db   :  { %v7256_v50 = vld [vmem:[#allocation3 + $0x2ba] sm:$0xff]  ;;  %v6314_v0 = vpack.c.bf16 %v6214_v63, %v6213_v51 }
 0x8dc   :  { %v7259_v51 = vld [vmem:[#allocation3 + $0x2da] sm:$0xff] }
 0x8de   :  { %v7523_v39 = vpop.f32.mrf.mxu3  ;;  %7043 = vmatmul.bf16.gmra.mxu2 %v6834_v58 }
 0x8df   :  { %v7631_v61 = vadd.f32 %v7523_v39, %v7109_v53  ;;  %v6482_v1 = vpop.f32.mrf.mxu1  ;;  %v7257_v53 = vld [vmem:[#allocation3 + $0x2c2] sm:$0xff]  ;;  %v6835_v39 = vpack.c.bf16 %v6735_v10, %v6734_v4  ;;  %v6216_v4 = vld [vmem:[#allocation3 + $0x2d8] sm:$0xff] }
 0x8e0   :  { %v7357_v37 = vpack.c.bf16 %v7257_v53, %v7256_v50 }
 0x8e1   :  { %v7004_v28 = vpop.f32.mrf.mxu2  ;;  %v8043_v49 = vpop.f32.mrf.mxu0 }
 0x8e2   :  { %6521 = vmatmul.bf16.gmra.mxu1 %v6313_v30  ;;  %v7110_v7 = vadd.f32 %v7004_v28, %v6482_v1  ;;  %v15792_v23 = vadd.f32 %v8043_v49, %v7630_v59 }
 0x8e3   :  { %7565 = vmatmul.bf16.gmra.mxu3 %v7356_v36 }
 0x8e4   :  { %8082 = vmatmul.bf16.gmra.mxu0 %v6313_v30 }
 0x8e6   :  { %v7526_v35 = vpop.f32.mrf.mxu3 }
 0x8e7   :  { %v7632_v45 = vadd.f32 %v7526_v35, %v7110_v7  ;;  %v6484_v38 = vpop.f32.mrf.mxu1  ;;  %v6736_v35 = vld [vmem:[#allocation3 + $0x2d1] sm:$0xff] }
 0x8e9   :  { %v7006_v6 = vpop.f32.mrf.mxu2  ;;  %v8045_v3 = vpop.f32.mrf.mxu0 }
 0x8ea   :  { %v7111_v59 = vadd.f32 %v7006_v6, %v6484_v38  ;;  %v15800_v47 = vadd.f32 %v8045_v3, %v7631_v61  ;;  %v6737_v38 = vld [vmem:[#allocation3 + $0x2d9] sm:$0xff]  ;;  %v6215_v6 = vld [vmem:[#allocation3 + $0x2d0] sm:$0xff] }
 0x8eb   :  { %v6315_v50 = vpack.c.bf16 %v6216_v4, %v6215_v6  ;;  %v7260_v4 = vld [vmem:[#allocation3 + $0x2ea] sm:$0xff] }
 0x8ee   :  { %v7528_v48 = vpop.f32.mrf.mxu3  ;;  %7048 = vmatmul.bf16.gmra.mxu2 %v6835_v39 }
 0x8ef   :  { %v7633_v9 = vadd.f32 %v7528_v48, %v7111_v59  ;;  %v6487_v43 = vpop.f32.mrf.mxu1  ;;  %v7258_v59 = vld [vmem:[#allocation3 + $0x2d2] sm:$0xff] }
 0x8f0   :  { %v7358_v53 = vpack.c.bf16 %v7259_v51, %v7258_v59  ;;  %v12580_v59 = vld [vmem:[%s16529_s4 + $0x1b0] sm:$0xff] }
 0x8f1   :  { %v7009_v1 = vpop.f32.mrf.mxu2  ;;  %v8048_v58 = vpop.f32.mrf.mxu0 }
 0x8f2   :  { %6526 = vmatmul.bf16.gmra.mxu1 %v6314_v0  ;;  %v7112_v30 = vadd.f32 %v7009_v1, %v6487_v43  ;;  %v15802_v36 = vadd.f32 %v8048_v58, %v7632_v45  ;;  %v6836_v45 = vpack.c.bf16 %v6737_v38, %v6736_v35 }
 0x8f3   :  { %7570 = vmatmul.bf16.gmra.mxu3 %v7357_v37 }
 0x8f4   :  { %8087 = vmatmul.bf16.gmra.mxu0 %v6314_v0 }
 0x8f6   :  { %v7531_v28 = vpop.f32.mrf.mxu3 }
 0x8f7   :  { %v7634_v49 = vadd.f32 %v7531_v28, %v7112_v30  ;;  %v6489_v61 = vpop.f32.mrf.mxu1  ;;  %v12581_v30 = vld [vmem:[%s16529_s4 + $0x1b8] sm:$0xff] }
 0x8f8   :  { %9516 = vmatpush.bf16.msra.mxu3 %v12581_v30  ;;  %v12578_v30 = vld [vmem:[%s16529_s4 + $0x1a0] sm:$0xff] }
 0x8f9   :  { %v7011_v7 = vpop.f32.mrf.mxu2  ;;  %v8050_v24 = vpop.f32.mrf.mxu0 }
 0x8fa   :  { %v7113_v29 = vadd.f32 %v7011_v7, %v6489_v61  ;;  %v15804_v10 = vadd.f32 %v8050_v24, %v7633_v9  ;;  %v6738_v61 = vld [vmem:[#allocation3 + $0x2e9] sm:$0xff]  ;;  %v6739_v7 = vld [vmem:[#allocation3 + $0x2f1] sm:$0xff] }
 0x8fb   :  { %v6217_v24 = vld [vmem:[#allocation3 + $0x2e8] sm:$0xff] }
 0x8fc   :  { %9517 = vmatpush.bf16.msra.mxu3 %v12580_v59  ;;  %v7262_v59 = vld [vmem:[#allocation3 + $0x302] sm:$0xff] }
 0x8fe   :  { %v7533_v3 = vpop.f32.mrf.mxu3  ;;  %7053 = vmatmul.bf16.gmra.mxu2 %v6836_v45  ;;  %v6837_v45 = vpack.c.bf16 %v6739_v7, %v6738_v61  ;;  %v12577_v7 = vld [vmem:[%s16529_s4 + $0x198] sm:$0xff] }
 0x8ff   :  { %v7635_v63 = vadd.f32 %v7533_v3, %v7113_v29  ;;  %v6492_v48 = vpop.f32.mrf.mxu1  ;;  %v6218_v29 = vld [vmem:[#allocation3 + $0x2f0] sm:$0xff] }
 0x900   :  { %v7261_v3 = vld [vmem:[#allocation3 + $0x2f2] sm:$0xff] }
 0x901   :  { %v7014_v43 = vpop.f32.mrf.mxu2  ;;  %v8053_v39 = vpop.f32.mrf.mxu0 }
 0x902   :  { %6531 = vmatmul.bf16.gmra.mxu1 %v6315_v50  ;;  %v7114_v0 = vadd.f32 %v7014_v43, %v6492_v48  ;;  %v15806_v37 = vadd.f32 %v8053_v39, %v7634_v49  ;;  %v7359_v43 = vpack.c.bf16 %v7261_v3, %v7260_v4  ;;  %v6219_v4 = vld [vmem:[#allocation3 + $0x300] sm:$0xff]  ;;  %v6220_v3 = vld [vmem:[#allocation3 + $0x308] sm:$0xff] }
 0x903   :  { %7575 = vmatmul.bf16.gmra.mxu3 %v7358_v53  ;;  %v12579_v53 = vld [vmem:[%s16529_s4 + $0x1a8] sm:$0xff] }
 0x904   :  { %8092 = vmatmul.bf16.gmra.mxu0 %v6315_v50  ;;  %v6316_v50 = vpack.c.bf16 %v6218_v29, %v6217_v24  ;;  %9518 = vmatpush.bf16.msra.mxu3 %v12579_v53  ;;  %v6741_v24 = vld [vmem:[#allocation3 + $0x309] sm:$0xff] }
 0x905   :  { %v12576_v53 = vld [vmem:[%s16529_s4 + $0x190] sm:$0xff] }
 0x906   :  { %v7536_v1 = vpop.f32.mrf.mxu3 }
 0x907   :  { %v7636_v58 = vadd.f32 %v7536_v1, %v7114_v0  ;;  %v6494_v9 = vpop.f32.mrf.mxu1 }
 0x908   :  { %9519 = vmatpush.bf16.msra.mxu3 %v12578_v30  ;;  %v12587_v30 = vld [vmem:[%s16529_s4 + $0x1e8] sm:$0xff] }
 0x909   :  { %v7016_v28 = vpop.f32.mrf.mxu2  ;;  %v8055_v35 = vpop.f32.mrf.mxu0 }
 0x90a   :  { %v7115_v38 = vadd.f32 %v7016_v28, %v6494_v9  ;;  %v15811_v6 = vadd.f32 %v8055_v35, %v7635_v63  ;;  %v12589_v35 = vld [vmem:[%s16529_s4 + $0x1f8] sm:$0xff] }
 0x90b   :  { %10038 = vmatpush.bf16.msra.mxu0 %v12589_v35 }
 0x90c   :  { %9520 = vmatpush.bf16.msra.mxu3 %v12577_v7 }
 0x90e   :  { %v7538_v49 = vpop.f32.mrf.mxu3  ;;  %7058 = vmatmul.bf16.gmra.mxu2 %v6837_v45 }
 0x90f   :  { %v7637_v51 = vadd.f32 %v7538_v49, %v7115_v38  ;;  %v6497_v48 = vpop.f32.mrf.mxu1  ;;  %v6740_v38 = vld [vmem:[#allocation3 + $0x301] sm:$0xff] }
 0x910   :  { %9521 = vmatpush.bf16.msra.mxu3 %v12576_v53  ;;  %v6742_v53 = vld [vmem:[#allocation3 + $0x319] sm:$0xff] }
 0x911   :  { %v7019_v63 = vpop.f32.mrf.mxu2  ;;  %v8058_v39 = vpop.f32.mrf.mxu0 }
 0x912   :  { %6536 = vmatmul.bf16.gmra.mxu1 %v6316_v50  ;;  %v7116_v0 = vadd.f32 %v7019_v63, %v6497_v48  ;;  %v15819_v1 = vadd.f32 %v8058_v39, %v7636_v58 }
 0x913   :  { %7580 = vmatmul.bf16.gmra.mxu3 %v7359_v43  ;;  %v12588_v43 = vld [vmem:[%s16529_s4 + $0x1f0] sm:$0xff] }
 0x914   :  { %16942 = vst [vmem:[#allocation55_spill] sm:$0xff] %v15819_v1  ;;  %8097 = vmatmul.bf16.gmra.mxu0 %v6316_v50  ;;  %v7263_v50 = vld [vmem:[#allocation3 + $0x30a] sm:$0xff] }
 0x915   :  { %10039 = vmatpush.bf16.msra.mxu0 %v12588_v43  ;;  %v6743_v43 = vld [vmem:[#allocation3 + $0x321] sm:$0xff] }
 0x916   :  { %v7541_v9 = vpop.f32.mrf.mxu3 }
 0x917   :  { %v7638_v28 = vadd.f32 %v7541_v9, %v7116_v0  ;;  %v6499_v61 = vpop.f32.mrf.mxu1  ;;  %v6838_v0 = vpack.c.bf16 %v6741_v24, %v6740_v38  ;;  %v6317_v9 = vpack.c.bf16 %v6220_v3, %v6219_v4 }
 0x919   :  { %v7021_v58 = vpop.f32.mrf.mxu2  ;;  %v8060_v29 = vpop.f32.mrf.mxu0  ;;  %10040 = vmatpush.bf16.msra.mxu0 %v12587_v30 }
 0x91a   :  { %v7117_v49 = vadd.f32 %v7021_v58, %v6499_v61  ;;  %v15830_v48 = vadd.f32 %v8060_v29, %v7637_v51  ;;  %v12575_v51 = vld [vmem:[%s16529_s4 + $0x188] sm:$0xff]  ;;  %v7360_v61 = vpack.c.bf16 %v7263_v50, %v7262_v59  ;;  %v12574_v29 = vld [vmem:[%s16529_s4 + $0x180] sm:$0xff]  ;;  %v12605_v59 = vld [vmem:[%s16530_s5 + $0x38] sm:$0xff] }
 0x91b   :  { %9522 = vmatpush.bf16.msra.mxu3 %v12575_v51  ;;  %11017 = vmatpush.bf16.msra.mxu2 %v12605_v59  ;;  %v6222_v51 = vld [vmem:[#allocation3 + $0x320] sm:$0xff] }
 0x91c   :  { %16943 = vst [vmem:[#allocation59_spill] sm:$0xff] %v15830_v48 }
 0x91e   :  { %v7543_v45 = vpop.f32.mrf.mxu3  ;;  %7063 = vmatmul.bf16.gmra.mxu2 %v6838_v0 }
 0x91f   :  { %v7639_v63 = vadd.f32 %v7543_v45, %v7117_v49  ;;  %v6502_v39 = vpop.f32.mrf.mxu1  ;;  %v12586_v49 = vld [vmem:[%s16529_s4 + $0x1e0] sm:$0xff]  ;;  %9523 = vmatpush.bf16.msra.mxu3 %v12574_v29  ;;  %v12585_v45 = vld [vmem:[%s16529_s4 + $0x1d8] sm:$0xff] }
 0x920   :  { %10041 = vmatpush.bf16.msra.mxu0 %v12586_v49  ;;  %v6839_v49 = vpack.c.bf16 %v6743_v43, %v6742_v53  ;;  %v12582_v53 = vld [vmem:[%s16529_s4 + $0x1c0] sm:$0xff] }
 0x921   :  { %v7024_v7 = vpop.f32.mrf.mxu2  ;;  %v8063_v35 = vpop.f32.mrf.mxu0 }
 0x922   :  { %6541 = vmatmul.bf16.gmra.mxu1 %v6317_v9  ;;  %v7118_v58 = vadd.f32 %v7024_v7, %v6502_v39  ;;  %v15844_v38 = vadd.f32 %v8063_v35, %v7638_v28  ;;  %v12597_v28 = vld [vmem:[%s16529_s4 + $0x238] sm:$0xff]  ;;  %v7265_v35 = vld [vmem:[#allocation3 + $0x322] sm:$0xff] }
 0x923   :  { %7585 = vmatmul.bf16.gmra.mxu3 %v7360_v61  ;;  %10560 = vmatpush.bf16.msra.mxu1 %v12597_v28  ;;  %v7264_v7 = vld [vmem:[#allocation3 + $0x31a] sm:$0xff] }
 0x924   :  { %16944 = vst [vmem:[#allocation57_spill] sm:$0xff] %v15844_v38  ;;  %8102 = vmatmul.bf16.gmra.mxu0 %v6317_v9  ;;  %v6221_v9 = vld [vmem:[#allocation3 + $0x318] sm:$0xff]  ;;  %v7361_v28 = vpack.c.bf16 %v7265_v35, %v7264_v7 }
 0x925   :  { %10042 = vmatpush.bf16.msra.mxu0 %v12585_v45  ;;  %v6318_v59 = vpack.c.bf16 %v6222_v51, %v6221_v9  ;;  %v8768_v51 = vld [vmem:[#allocation3 + $0x1a] sm:$0xff] }
 0x926   :  { %v7546_v24 = vpop.f32.mrf.mxu3 }
 0x927   :  { %v7640_v4 = vadd.f32 %v7546_v24, %v7118_v58  ;;  %v6504_v3 = vpop.f32.mrf.mxu1  ;;  %v12584_v58 = vld [vmem:[%s16529_s4 + $0x1d0] sm:$0xff] }
 0x929   :  { %v7026_v50 = vpop.f32.mrf.mxu2  ;;  %v8065_v39 = vpop.f32.mrf.mxu0  ;;  %10043 = vmatpush.bf16.msra.mxu0 %v12584_v58  ;;  %v8246_v58 = vld [vmem:[#allocation3 + $0x19] sm:$0xff] }
 0x92a   :  { %v7119_v0 = vadd.f32 %v7026_v50, %v6504_v3  ;;  %v15861_v30 = vadd.f32 %v8065_v39, %v7639_v63  ;;  %v12583_v3 = vld [vmem:[%s16529_s4 + $0x1c8] sm:$0xff] }
 0x92c   :  { %16945 = vst [vmem:[#allocation74_spill] sm:$0xff] %v15861_v30 }
 0x92d   :  { %10044 = vmatpush.bf16.msra.mxu0 %v12583_v3  ;;  %v9292_v3 = vld [vmem:[#allocation3 + $0x38] sm:$0xff] }
 0x92e   :  { %v7548_v61 = vpop.f32.mrf.mxu3  ;;  %7068 = vmatmul.bf16.gmra.mxu2 %v6839_v49  ;;  %v8247_v49 = vld [vmem:[#allocation3 + $0x21] sm:$0xff] }
 0x92f   :  { %v7641_v24 = vadd.f32 %v7548_v61, %v7119_v0  ;;  %v6507_v29 = vpop.f32.mrf.mxu1  ;;  %v8769_v61 = vld [vmem:[#allocation3 + $0x22] sm:$0xff]  ;;  %v8374_v38 = vpack.c.bf16 %v8247_v49, %v8246_v58  ;;  %v8248_v58 = vld [vmem:[#allocation3 + $0x31] sm:$0xff] }
 0x931   :  { %v7029_v63 = vpop.f32.mrf.mxu2  ;;  %v8068_v45 = vpop.f32.mrf.mxu0  ;;  %10045 = vmatpush.bf16.msra.mxu0 %v12582_v53 }
 0x932   :  { %6546 = vmatmul.bf16.gmra.mxu1 %v6318_v59  ;;  %v7120_v50 = vadd.f32 %v7029_v63, %v6507_v29  ;;  %v15869_v39 = vadd.f32 %v8068_v45, %v7640_v4 }
 0x933   :  { %7590 = vmatmul.bf16.gmra.mxu3 %v7361_v28  ;;  %v9291_v28 = vld [vmem:[#allocation3 + $0x30] sm:$0xff] }
 0x934   :  { %16946 = vst [vmem:[#allocation58_spill] sm:$0xff] %v15869_v39  ;;  %8107 = vmatmul.bf16.gmra.mxu0 %v6318_v59  ;;  %v8896_v39 = vpack.c.bf16 %v8769_v61, %v8768_v51  ;;  %v7786_v59 = vld [vmem:[#allocation3 + $0x330] sm:$0xff]  ;;  %v8771_v51 = vld [vmem:[#allocation3 + $0x3a] sm:$0xff] }
 0x936   :  { %v7551_v30 = vpop.f32.mrf.mxu3 }
 0x937   :  { %v7642_v43 = vadd.f32 %v7551_v30, %v7120_v50  ;;  %v6509_v0 = vpop.f32.mrf.mxu1  ;;  %v9419_v30 = vpack.c.bf16 %v9292_v3, %v9291_v28  ;;  %v7787_v50 = vld [vmem:[#allocation3 + $0x338] sm:$0xff]  ;;  %v9293_v3 = vld [vmem:[#allocation3 + $0x48] sm:$0xff] }
 0x939   :  { %v7031_v9 = vpop.f32.mrf.mxu2  ;;  %v8070_v7 = vpop.f32.mrf.mxu0 }
 0x93a   :  { %v7121_v35 = vadd.f32 %v7031_v9, %v6509_v0  ;;  %v15874_v29 = vadd.f32 %v8070_v7, %v7641_v24  ;;  %v7883_v24 = vpack.c.bf16 %v7787_v50, %v7786_v59 }
 0x93c   :  { %16947 = vst [vmem:[#allocation60_spill] sm:$0xff] %v15874_v29 }
 0x93e   :  { %v7553_v4 = vpop.f32.mrf.mxu3  ;;  %9001 = vmatmul.bf16.vlgmr.msrb.gmra.mxu2 %v8896_v39 }
 0x93f   :  { %v7643_v63 = vadd.f32 %v7553_v4, %v7121_v35  ;;  %v6512_v45 = vpop.f32.mrf.mxu1  ;;  %v8770_v4 = vld [vmem:[#allocation3 + $0x32] sm:$0xff] }
 0x941   :  { %v7034_v53 = vpop.f32.mrf.mxu2  ;;  %v8073_v48 = vpop.f32.mrf.mxu0 }
 0x942   :  { %8479 = vmatmul.bf16.vlgmr.msrb.gmra.mxu1 %v8374_v38  ;;  %v7122_v0 = vadd.f32 %v7034_v53, %v6512_v45  ;;  %v15876_v9 = vadd.f32 %v8073_v48, %v7642_v43  ;;  %v8249_v38 = vld [vmem:[#allocation3 + $0x39] sm:$0xff]  ;;  %v8897_v43 = vpack.c.bf16 %v8771_v51, %v8770_v4  ;;  %v8250_v4 = vld [vmem:[#allocation3 + $0x49] sm:$0xff]  ;;  %v8251_v51 = vld [vmem:[#allocation3 + $0x51] sm:$0xff] }
 0x943   :  { %9524 = vmatmul.bf16.vlgmr.msra.gmra.mxu3 %v9419_v30  ;;  %v9294_v30 = vld [vmem:[#allocation3 + $0x50] sm:$0xff]  ;;  %v8375_v59 = vpack.c.bf16 %v8249_v38, %v8248_v58 }
 0x944   :  { %16948 = vst [vmem:[#allocation75_spill] sm:$0xff] %v15876_v9  ;;  %8112 = vmatmul.bf16.gmra.mxu0 %v7883_v24  ;;  %v9420_v50 = vpack.c.bf16 %v9294_v30, %v9293_v3  ;;  %v8773_v9 = vld [vmem:[#allocation3 + $0x52] sm:$0xff]  ;;  %v9295_v3 = vld [vmem:[#allocation3 + $0x60] sm:$0xff]  ;;  %v9296_v30 = vld [vmem:[#allocation3 + $0x68] sm:$0xff] }
 0x946   :  { %v7556_v7 = vpop.f32.mrf.mxu3 }
 0x947   :  { %v7644_v29 = vadd.f32 %v7556_v7, %v7122_v0  ;;  %v6514_v1 = vpop.f32.mrf.mxu1 }
 0x949   :  { %v7036_v35 = vpop.f32.mrf.mxu2  ;;  %v8075_v61 = vpop.f32.mrf.mxu0 }
 0x94a   :  { %v7123_v39 = vadd.f32 %v7036_v35, %v6514_v1  ;;  %v15878_v49 = vadd.f32 %v8075_v61, %v7643_v63 }
 0x94c   :  { %16949 = vst [vmem:[#allocation61_spill] sm:$0xff] %v15878_v49  ;;  %v8772_v49 = vld [vmem:[#allocation3 + $0x4a] sm:$0xff] }
 0x94e   :  { %v7558_v28 = vpop.f32.mrf.mxu3  ;;  %9006 = vmatmul.bf16.gmra.mxu2 %v8897_v43 }
 0x94f   :  { %v7645_v45 = vadd.f32 %v7558_v28, %v7123_v39  ;;  %v6517_v48 = vpop.f32.mrf.mxu1 }
 0x951   :  { %v7039_v53 = vpop.f32.mrf.mxu2  ;;  %v8078_v0 = vpop.f32.mrf.mxu0 }
 0x952   :  { %8484 = vmatmul.bf16.gmra.mxu1 %v8375_v59  ;;  %v7124_v24 = vadd.f32 %v7039_v53, %v6517_v48  ;;  %v15880_v7 = vadd.f32 %v8078_v0, %v7644_v29  ;;  %v8898_v29 = vpack.c.bf16 %v8773_v9, %v8772_v49  ;;  %v9421_v53 = vpack.c.bf16 %v9296_v30, %v9295_v3  ;;  %v12596_v9 = vld [vmem:[%s16529_s4 + $0x230] sm:$0xff] }
 0x953   :  { %9529 = vmatmul.bf16.gmra.mxu3 %v9420_v50  ;;  %v8376_v50 = vpack.c.bf16 %v8251_v51, %v8250_v4  ;;  %10561 = vmatpush.bf16.msra.mxu1 %v12596_v9  ;;  %v8775_v4 = vld [vmem:[#allocation3 + $0x6a] sm:$0xff] }
 0x954   :  { %16950 = vst [vmem:[#allocation76_spill] sm:$0xff] %v15880_v7  ;;  %10046 = vmatmul.bf16.vlgmr.msra.gmra.mxu0 %v8375_v59  ;;  %v8253_v3 = vld [vmem:[#allocation3 + $0x69] sm:$0xff] }
 0x955   :  { %v8777_v7 = vld [vmem:[#allocation3 + $0x82] sm:$0xff] }
 0x956   :  { %v7561_v1 = vpop.f32.mrf.mxu3 }
 0x957   :  { %v7646_v35 = vadd.f32 %v7561_v1, %v7124_v24  ;;  %v6519_v63 = vpop.f32.mrf.mxu1 }
 0x959   :  { %v7041_v61 = vpop.f32.mrf.mxu2  ;;  %v8080_v39 = vpop.f32.mrf.mxu0 }
 0x95a   :  { %v7125_v28 = vadd.f32 %v7041_v61, %v6519_v63  ;;  %v15882_v58 = vadd.f32 %v8080_v39, %v7645_v45  ;;  %v12604_v39 = vld [vmem:[%s16530_s5 + $0x30] sm:$0xff] }
 0x95b   :  { %11018 = vmatpush.bf16.msra.mxu2 %v12604_v39 }
 0x95c   :  { %16951 = vst [vmem:[#allocation62_spill] sm:$0xff] %v15882_v58 }
 0x95e   :  { %v7563_v38 = vpop.f32.mrf.mxu3  ;;  %9011 = vmatmul.bf16.gmra.mxu2 %v8898_v29  ;;  %v9297_v29 = vld [vmem:[#allocation3 + $0x78] sm:$0xff] }
 0x95f   :  { %v7647_v43 = vadd.f32 %v7563_v38, %v7125_v28  ;;  %v6522_v48 = vpop.f32.mrf.mxu1  ;;  %v8774_v28 = vld [vmem:[#allocation3 + $0x62] sm:$0xff] }
 0x960   :  { %v8252_v38 = vld [vmem:[#allocation3 + $0x61] sm:$0xff] }
 0x961   :  { %v7044_v59 = vpop.f32.mrf.mxu2  ;;  %v8083_v0 = vpop.f32.mrf.mxu0 }
 0x962   :  { %8489 = vmatmul.bf16.gmra.mxu1 %v8376_v50  ;;  %v7126_v24 = vadd.f32 %v7044_v59, %v6522_v48  ;;  %v15884_v1 = vadd.f32 %v8083_v0, %v7646_v35  ;;  %v8899_v0 = vpack.c.bf16 %v8775_v4, %v8774_v28  ;;  %v8254_v28 = vld [vmem:[#allocation3 + $0x79] sm:$0xff]  ;;  %v8255_v4 = vld [vmem:[#allocation3 + $0x81] sm:$0xff] }
 0x963   :  { %9534 = vmatmul.bf16.gmra.mxu3 %v9421_v53 }
 0x964   :  { %16952 = vst [vmem:[#allocation63_spill] sm:$0xff] %v15884_v1  ;;  %10051 = vmatmul.bf16.gmra.mxu0 %v8376_v50  ;;  %v9298_v50 = vld [vmem:[#allocation3 + $0x80] sm:$0xff] }
 0x966   :  { %v7566_v63 = vpop.f32.mrf.mxu3 }
 0x967   :  { %v7648_v61 = vadd.f32 %v7566_v63, %v7126_v24  ;;  %v6524_v45 = vpop.f32.mrf.mxu1  ;;  %v8377_v24 = vpack.c.bf16 %v8253_v3, %v8252_v38  ;;  %v9422_v63 = vpack.c.bf16 %v9298_v50, %v9297_v29  ;;  %v9299_v29 = vld [vmem:[#allocation3 + $0x90] sm:$0xff]  ;;  %v9300_v50 = vld [vmem:[#allocation3 + $0x98] sm:$0xff] }
 0x969   :  { %v7046_v49 = vpop.f32.mrf.mxu2  ;;  %v8085_v51 = vpop.f32.mrf.mxu0 }
 0x96a   :  { %v7127_v35 = vadd.f32 %v7046_v49, %v6524_v45  ;;  %v15892_v30 = vadd.f32 %v8085_v51, %v7647_v43 }
 0x96c   :  { %16953 = vst [vmem:[#allocation64_spill] sm:$0xff] %v15892_v30  ;;  %v8776_v30 = vld [vmem:[#allocation3 + $0x7a] sm:$0xff] }
 0x96e   :  { %v7568_v48 = vpop.f32.mrf.mxu3  ;;  %9016 = vmatmul.bf16.gmra.mxu2 %v8899_v0 }
 0x96f   :  { %v7649_v53 = vadd.f32 %v7568_v48, %v7127_v35  ;;  %v6527_v59 = vpop.f32.mrf.mxu1 }
 0x971   :  { %v7049_v39 = vpop.f32.mrf.mxu2  ;;  %v8088_v9 = vpop.f32.mrf.mxu0 }
 0x972   :  { %8494 = vmatmul.bf16.gmra.mxu1 %v8377_v24  ;;  %v7128_v1 = vadd.f32 %v7049_v39, %v6527_v59  ;;  %v15894_v58 = vadd.f32 %v8088_v9, %v7648_v61  ;;  %v8900_v61 = vpack.c.bf16 %v8777_v7, %v8776_v30  ;;  %v8256_v7 = vld [vmem:[#allocation3 + $0x91] sm:$0xff]  ;;  %v8257_v30 = vld [vmem:[#allocation3 + $0x99] sm:$0xff] }
 0x973   :  { %9539 = vmatmul.bf16.gmra.mxu3 %v9422_v63  ;;  %v8378_v63 = vpack.c.bf16 %v8255_v4, %v8254_v28 }
 0x974   :  { %16954 = vst [vmem:[#allocation65_spill] sm:$0xff] %v15894_v58  ;;  %10056 = vmatmul.bf16.gmra.mxu0 %v8377_v24  ;;  %v8779_v58 = vld [vmem:[#allocation3 + $0x9a] sm:$0xff] }
 0x976   :  { %v7571_v45 = vpop.f32.mrf.mxu3 }
 0x977   :  { %v7650_v49 = vadd.f32 %v7571_v45, %v7128_v1  ;;  %v6529_v43 = vpop.f32.mrf.mxu1  ;;  %v9423_v1 = vpack.c.bf16 %v9300_v50, %v9299_v29  ;;  %v9301_v29 = vld [vmem:[#allocation3 + $0xa8] sm:$0xff]  ;;  %v9302_v50 = vld [vmem:[#allocation3 + $0xb0] sm:$0xff] }
 0x979   :  { %v7051_v51 = vpop.f32.mrf.mxu2  ;;  %v8090_v35 = vpop.f32.mrf.mxu0 }
 0x97a   :  { %v7129_v48 = vadd.f32 %v7051_v51, %v6529_v43  ;;  %v15896_v38 = vadd.f32 %v8090_v35, %v7649_v53 }
 0x97c   :  { %16955 = vst [vmem:[#allocation37_spill] sm:$0xff] %v15896_v38  ;;  %v8778_v38 = vld [vmem:[#allocation3 + $0x92] sm:$0xff] }
 0x97e   :  { %v7573_v3 = vpop.f32.mrf.mxu3  ;;  %9021 = vmatmul.bf16.gmra.mxu2 %v8900_v61 }
 0x97f   :  { %v7651_v0 = vadd.f32 %v7573_v3, %v7129_v48  ;;  %v6532_v59 = vpop.f32.mrf.mxu1 }
 0x981   :  { %v7054_v24 = vpop.f32.mrf.mxu2  ;;  %v8093_v39 = vpop.f32.mrf.mxu0 }
 0x982   :  { %8499 = vmatmul.bf16.gmra.mxu1 %v8378_v63  ;;  %v7130_v9 = vadd.f32 %v7054_v24, %v6532_v59  ;;  %v15898_v45 = vadd.f32 %v8093_v39, %v7650_v49  ;;  %v8901_v49 = vpack.c.bf16 %v8779_v58, %v8778_v38  ;;  %v9424_v24 = vpack.c.bf16 %v9302_v50, %v9301_v29  ;;  %v8258_v58 = vld [vmem:[#allocation3 + $0xa9] sm:$0xff]  ;;  %v8259_v38 = vld [vmem:[#allocation3 + $0xb1] sm:$0xff]  ;;  %v9303_v29 = vld [vmem:[#allocation3 + $0xc0] sm:$0xff] }
 0x983   :  { %9544 = vmatmul.bf16.gmra.mxu3 %v9423_v1  ;;  %v8379_v1 = vpack.c.bf16 %v8257_v30, %v8256_v7  ;;  %v9304_v50 = vld [vmem:[#allocation3 + $0xc8] sm:$0xff] }
 0x984   :  { %16956 = vst [vmem:[#allocation38_spill] sm:$0xff] %v15898_v45  ;;  %10061 = vmatmul.bf16.gmra.mxu0 %v8378_v63  ;;  %v8781_v45 = vld [vmem:[#allocation3 + $0xb2] sm:$0xff] }
 0x986   :  { %v7576_v43 = vpop.f32.mrf.mxu3 }
 0x987   :  { %v7652_v51 = vadd.f32 %v7576_v43, %v7130_v9  ;;  %v6534_v53 = vpop.f32.mrf.mxu1 }
 0x989   :  { %v7056_v35 = vpop.f32.mrf.mxu2  ;;  %v8095_v48 = vpop.f32.mrf.mxu0 }
 0x98a   :  { %v7131_v3 = vadd.f32 %v7056_v35, %v6534_v53  ;;  %v15900_v28 = vadd.f32 %v8095_v48, %v7651_v0 }
 0x98c   :  { %16957 = vst [vmem:[#allocation39_spill] sm:$0xff] %v15900_v28  ;;  %v8780_v28 = vld [vmem:[#allocation3 + $0xaa] sm:$0xff] }
 0x98e   :  { %v7578_v4 = vpop.f32.mrf.mxu3  ;;  %9026 = vmatmul.bf16.gmra.mxu2 %v8901_v49 }
 0x98f   :  { %v7653_v61 = vadd.f32 %v7578_v4, %v7131_v3  ;;  %v6537_v59 = vpop.f32.mrf.mxu1 }
 0x991   :  { %v7059_v63 = vpop.f32.mrf.mxu2  ;;  %v8098_v39 = vpop.f32.mrf.mxu0 }
 0x992   :  { %8504 = vmatmul.bf16.gmra.mxu1 %v8379_v1  ;;  %v7132_v9 = vadd.f32 %v7059_v63, %v6537_v59  ;;  %v15902_v43 = vadd.f32 %v8098_v39, %v7652_v51  ;;  %v8902_v51 = vpack.c.bf16 %v8781_v45, %v8780_v28  ;;  %v9425_v63 = vpack.c.bf16 %v9304_v50, %v9303_v29  ;;  %v12595_v45 = vld [vmem:[%s16529_s4 + $0x228] sm:$0xff] }
 0x993   :  { %9549 = vmatmul.bf16.gmra.mxu3 %v9424_v24  ;;  %v8380_v24 = vpack.c.bf16 %v8259_v38, %v8258_v58  ;;  %10562 = vmatpush.bf16.msra.mxu1 %v12595_v45  ;;  %v8783_v58 = vld [vmem:[#allocation3 + $0xca] sm:$0xff] }
 0x994   :  { %16958 = vst [vmem:[#allocation40_spill] sm:$0xff] %v15902_v43  ;;  %10066 = vmatmul.bf16.gmra.mxu0 %v8379_v1  ;;  %v8261_v29 = vld [vmem:[#allocation3 + $0xc9] sm:$0xff] }
 0x995   :  { %v8785_v43 = vld [vmem:[#allocation3 + $0xe2] sm:$0xff] }
 0x996   :  { %v7581_v53 = vpop.f32.mrf.mxu3 }
 0x997   :  { %v7654_v35 = vadd.f32 %v7581_v53, %v7132_v9  ;;  %v6539_v0 = vpop.f32.mrf.mxu1 }
 0x999   :  { %v7061_v48 = vpop.f32.mrf.mxu2  ;;  %v8100_v3 = vpop.f32.mrf.mxu0 }
 0x99a   :  { %v7133_v4 = vadd.f32 %v7061_v48, %v6539_v0  ;;  %v15904_v7 = vadd.f32 %v8100_v3, %v7653_v61  ;;  %v12603_v3 = vld [vmem:[%s16530_s5 + $0x28] sm:$0xff] }
 0x99b   :  { %11019 = vmatpush.bf16.msra.mxu2 %v12603_v3 }
 0x99c   :  { %16959 = vst [vmem:[#allocation41_spill] sm:$0xff] %v15904_v7 }
 0x99e   :  { %v7583_v30 = vpop.f32.mrf.mxu3  ;;  %9031 = vmatmul.bf16.gmra.mxu2 %v8902_v51  ;;  %v9305_v51 = vld [vmem:[#allocation3 + $0xd8] sm:$0xff] }
 0x99f   :  { %v7655_v49 = vadd.f32 %v7583_v30, %v7133_v4  ;;  %v6542_v59 = vpop.f32.mrf.mxu1  ;;  %v8782_v4 = vld [vmem:[#allocation3 + $0xc2] sm:$0xff] }
 0x9a0   :  { %v8260_v30 = vld [vmem:[#allocation3 + $0xc1] sm:$0xff] }
 0x9a1   :  { %v7064_v1 = vpop.f32.mrf.mxu2  ;;  %v8103_v39 = vpop.f32.mrf.mxu0 }
 0x9a2   :  { %8509 = vmatmul.bf16.gmra.mxu1 %v8380_v24  ;;  %v7134_v9 = vadd.f32 %v7064_v1, %v6542_v59  ;;  %v15906_v53 = vadd.f32 %v8103_v39, %v7654_v35  ;;  %v8903_v39 = vpack.c.bf16 %v8783_v58, %v8782_v4  ;;  %v8262_v4 = vld [vmem:[#allocation3 + $0xd9] sm:$0xff]  ;;  %v8263_v58 = vld [vmem:[#allocation3 + $0xe1] sm:$0xff] }
 0x9a3   :  { %9554 = vmatmul.bf16.gmra.mxu3 %v9425_v63 }
 0x9a4   :  { %16960 = vst [vmem:[#allocation42_spill] sm:$0xff] %v15906_v53  ;;  %10071 = vmatmul.bf16.gmra.mxu0 %v8380_v24  ;;  %v9306_v24 = vld [vmem:[#allocation3 + $0xe0] sm:$0xff] }
 0x9a6   :  { %v7586_v0 = vpop.f32.mrf.mxu3 }
 0x9a7   :  { %v7656_v48 = vadd.f32 %v7586_v0, %v7134_v9  ;;  %v6544_v61 = vpop.f32.mrf.mxu1  ;;  %v8381_v9 = vpack.c.bf16 %v8261_v29, %v8260_v30  ;;  %v9426_v0 = vpack.c.bf16 %v9306_v24, %v9305_v51  ;;  %v9307_v51 = vld [vmem:[#allocation3 + $0xf0] sm:$0xff]  ;;  %v9308_v24 = vld [vmem:[#allocation3 + $0xf8] sm:$0xff] }
 0x9a9   :  { %v7066_v28 = vpop.f32.mrf.mxu2  ;;  %v8105_v38 = vpop.f32.mrf.mxu0 }
 0x9aa   :  { %v7135_v35 = vadd.f32 %v7066_v28, %v6544_v61  ;;  %v15914_v50 = vadd.f32 %v8105_v38, %v7655_v49 }
 0x9ac   :  { %16961 = vst [vmem:[#allocation43_spill] sm:$0xff] %v15914_v50  ;;  %v8784_v50 = vld [vmem:[#allocation3 + $0xda] sm:$0xff] }
 0x9ae   :  { %v7588_v59 = vpop.f32.mrf.mxu3  ;;  %9036 = vmatmul.bf16.gmra.mxu2 %v8903_v39 }
 0x9af   :  { %v7657_v63 = vadd.f32 %v7588_v59, %v7135_v35  ;;  %v6547_v1 = vpop.f32.mrf.mxu1 }
 0x9b1   :  { %v7069_v3 = vpop.f32.mrf.mxu2  ;;  %v8108_v45 = vpop.f32.mrf.mxu0 }
 0x9b2   :  { %8514 = vmatmul.bf16.gmra.mxu1 %v8381_v9  ;;  %v7136_v53 = vadd.f32 %v7069_v3, %v6547_v1  ;;  %v15916_v7 = vadd.f32 %v8108_v45, %v7656_v48  ;;  %v8904_v48 = vpack.c.bf16 %v8785_v43, %v8784_v50  ;;  %v8786_v43 = vld [vmem:[#allocation3 + $0xf2] sm:$0xff]  ;;  %v8787_v50 = vld [vmem:[#allocation3 + $0xfa] sm:$0xff] }
 0x9b3   :  { %9559 = vmatmul.bf16.gmra.mxu3 %v9426_v0 }
 0x9b4   :  { %10076 = vmatmul.bf16.gmra.mxu0 %v8381_v9  ;;  %v9427_v9 = vpack.c.bf16 %v9308_v24, %v9307_v51  ;;  %v8265_v51 = vld [vmem:[#allocation3 + $0xf9] sm:$0xff] }
 0x9b6   :  { %v7591_v61 = vpop.f32.mrf.mxu3 }
 0x9b7   :  { %v7658_v28 = vadd.f32 %v7591_v61, %v7136_v53  ;;  %v6549_v49 = vpop.f32.mrf.mxu1  ;;  %v8382_v53 = vpack.c.bf16 %v8263_v58, %v8262_v4  ;;  %v8264_v58 = vld [vmem:[#allocation3 + $0xf1] sm:$0xff] }
 0x9b9   :  { %v7071_v38 = vpop.f32.mrf.mxu2  ;;  %v8110_v35 = vpop.f32.mrf.mxu0 }
 0x9ba   :  { %v7137_v59 = vadd.f32 %v7071_v38, %v6549_v49  ;;  %v15918_v30 = vadd.f32 %v8110_v35, %v7657_v63 }
 0x9be   :  { %v7593_v29 = vpop.f32.mrf.mxu3  ;;  %9041 = vmatmul.bf16.gmra.mxu2 %v8904_v48  ;;  %v9309_v48 = vld [vmem:[#allocation3 + $0x108] sm:$0xff] }
 0x9bf   :  { %v7659_v39 = vadd.f32 %v7593_v29, %v7137_v59  ;;  %v8480_v1 = vpop.f32.mrf.mxu1 }
 0x9c0   :  { %v8640_v0 = vadd.f32 %v8480_v1, %v15693_v13 }
 0x9c1   :  { %v9002_v3 = vpop.f32.mrf.mxu2  ;;  %v8113_v45 = vpop.f32.mrf.mxu0 }
 0x9c2   :  { %8519 = vmatmul.bf16.gmra.mxu1 %v8382_v53  ;;  %v9162_v61 = vadd.f32 %v9002_v3, %v8640_v0  ;;  %v15921_v49 = vadd.f32 %v8113_v45, %v7658_v28  ;;  %v9310_v0 = vld [vmem:[#allocation3 + $0x110] sm:$0xff]  ;;  %v8905_v3 = vpack.c.bf16 %v8787_v50, %v8786_v43 }
 0x9c3   :  { %9564 = vmatmul.bf16.gmra.mxu3 %v9427_v9  ;;  %v8788_v43 = vld [vmem:[#allocation3 + $0x10a] sm:$0xff]  ;;  %v8789_v50 = vld [vmem:[#allocation3 + $0x112] sm:$0xff] }
 0x9c4   :  { %10081 = vmatmul.bf16.gmra.mxu0 %v8382_v53  ;;  %v8383_v53 = vpack.c.bf16 %v8265_v51, %v8264_v58  ;;  %v8266_v51 = vld [vmem:[#allocation3 + $0x109] sm:$0xff] }
 0x9c6   :  { %v9525_v63 = vpop.f32.mrf.mxu3 }
 0x9c7   :  { %v9685_v38 = vadd.f32 %v9525_v63, %v9162_v61  ;;  %v8482_v35 = vpop.f32.mrf.mxu1 }
 0x9c8   :  { %v8641_v59 = vadd.f32 %v8482_v35, %v15695_v34  ;;  %v9428_v34 = vpack.c.bf16 %v9310_v0, %v9309_v48  ;;  %v8267_v48 = vld [vmem:[#allocation3 + $0x111] sm:$0xff] }
 0x9c9   :  { %v9004_v29 = vpop.f32.mrf.mxu2  ;;  %v8115_v13 = vpop.f32.mrf.mxu0 }
 0x9ca   :  { %v9163_v4 = vadd.f32 %v9004_v29, %v8641_v59  ;;  %v15924_v24 = vadd.f32 %v8115_v13, %v7659_v39 }
 0x9ce   :  { %v9527_v1 = vpop.f32.mrf.mxu3  ;;  %9046 = vmatmul.bf16.gmra.mxu2 %v8905_v3  ;;  %v9311_v3 = vld [vmem:[#allocation3 + $0x120] sm:$0xff] }
 0x9cf   :  { %v9686_v28 = vadd.f32 %v9527_v1, %v9163_v4  ;;  %v8485_v9 = vpop.f32.mrf.mxu1 }
 0x9d0   :  { %v8642_v45 = vadd.f32 %v8485_v9, %v15698_v26 }
 0x9d1   :  { %v9007_v61 = vpop.f32.mrf.mxu2  ;;  %v10047_v63 = vpop.f32.mrf.mxu0 }
 0x9d2   :  { %8524 = vmatmul.bf16.gmra.mxu1 %v8383_v53  ;;  %v9164_v35 = vadd.f32 %v9007_v61, %v8642_v45  ;;  %v15927_v59 = vadd.f32 %v10047_v63, %v9685_v38  ;;  %v9312_v45 = vld [vmem:[#allocation3 + $0x128] sm:$0xff]  ;;  %v8906_v61 = vpack.c.bf16 %v8789_v50, %v8788_v43  ;;  %v12594_v43 = vld [vmem:[%s16529_s4 + $0x220] sm:$0xff] }
 0x9d3   :  { %9569 = vmatmul.bf16.gmra.mxu3 %v9428_v34  ;;  %10563 = vmatpush.bf16.msra.mxu1 %v12594_v43 }
 0x9d4   :  { %10086 = vmatmul.bf16.gmra.mxu0 %v8383_v53  ;;  %v8384_v53 = vpack.c.bf16 %v8267_v48, %v8266_v51  ;;  %v8790_v51 = vld [vmem:[#allocation3 + $0x122] sm:$0xff] }
 0x9d6   :  { %v9530_v39 = vpop.f32.mrf.mxu3 }
 0x9d7   :  { %v9687_v29 = vadd.f32 %v9530_v39, %v9164_v35  ;;  %v8487_v13 = vpop.f32.mrf.mxu1 }
 0x9d8   :  { %v8643_v4 = vadd.f32 %v8487_v13, %v15706_v60  ;;  %v9429_v60 = vpack.c.bf16 %v9312_v45, %v9311_v3  ;;  %v8268_v3 = vld [vmem:[#allocation3 + $0x121] sm:$0xff]  ;;  %v8269_v45 = vld [vmem:[#allocation3 + $0x129] sm:$0xff] }
 0x9d9   :  { %v9009_v1 = vpop.f32.mrf.mxu2  ;;  %v10049_v26 = vpop.f32.mrf.mxu0 }
 0x9da   :  { %v9165_v58 = vadd.f32 %v9009_v1, %v8643_v4  ;;  %v15930_v0 = vadd.f32 %v10049_v26, %v9686_v28 }
 0x9de   :  { %v9532_v9 = vpop.f32.mrf.mxu3  ;;  %9051 = vmatmul.bf16.gmra.mxu2 %v8906_v61  ;;  %v9313_v61 = vld [vmem:[#allocation3 + $0x138] sm:$0xff] }
 0x9df   :  { %v9688_v38 = vadd.f32 %v9532_v9, %v9165_v58  ;;  %v8490_v34 = vpop.f32.mrf.mxu1 }
 0x9e0   :  { %v8644_v63 = vadd.f32 %v8490_v34, %v15709_v56  ;;  %v12602_v56 = vld [vmem:[%s16530_s5 + $0x20] sm:$0xff] }
 0x9e1   :  { %v9012_v35 = vpop.f32.mrf.mxu2  ;;  %v10052_v39 = vpop.f32.mrf.mxu0  ;;  %11020 = vmatpush.bf16.msra.mxu2 %v12602_v56 }
 0x9e2   :  { %8529 = vmatmul.bf16.gmra.mxu1 %v8384_v53  ;;  %v9166_v13 = vadd.f32 %v9012_v35, %v8644_v63  ;;  %v15933_v4 = vadd.f32 %v10052_v39, %v9687_v29  ;;  %v8791_v29 = vld [vmem:[#allocation3 + $0x12a] sm:$0xff]  ;;  %v9314_v63 = vld [vmem:[#allocation3 + $0x140] sm:$0xff] }
 0x9e3   :  { %9574 = vmatmul.bf16.gmra.mxu3 %v9429_v60  ;;  %v8907_v35 = vpack.c.bf16 %v8791_v29, %v8790_v51  ;;  %v8792_v51 = vld [vmem:[#allocation3 + $0x13a] sm:$0xff]  ;;  %v8793_v29 = vld [vmem:[#allocation3 + $0x142] sm:$0xff] }
 0x9e4   :  { %10091 = vmatmul.bf16.gmra.mxu0 %v8384_v53 }
 0x9e6   :  { %v9535_v28 = vpop.f32.mrf.mxu3 }
 0x9e7   :  { %v9689_v1 = vadd.f32 %v9535_v28, %v9166_v13  ;;  %v8492_v26 = vpop.f32.mrf.mxu1  ;;  %v8385_v13 = vpack.c.bf16 %v8269_v45, %v8268_v3  ;;  %v9430_v28 = vpack.c.bf16 %v9314_v63, %v9313_v61  ;;  %v8270_v45 = vld [vmem:[#allocation3 + $0x139] sm:$0xff]  ;;  %v8271_v61 = vld [vmem:[#allocation3 + $0x141] sm:$0xff] }
 0x9e8   :  { %v8645_v58 = vadd.f32 %v8492_v26, %v15711_v12 }
 0x9e9   :  { %v9014_v50 = vpop.f32.mrf.mxu2  ;;  %v10054_v48 = vpop.f32.mrf.mxu0 }
 0x9ea   :  { %v9167_v9 = vadd.f32 %v9014_v50, %v8645_v58  ;;  %v15942_v34 = vadd.f32 %v10054_v48, %v9688_v38 }
 0x9ee   :  { %v9537_v12 = vpop.f32.mrf.mxu3  ;;  %9056 = vmatmul.bf16.gmra.mxu2 %v8907_v35  ;;  %v9315_v35 = vld [vmem:[#allocation3 + $0x150] sm:$0xff] }
 0x9ef   :  { %v9690_v53 = vadd.f32 %v9537_v12, %v9167_v9  ;;  %v8495_v60 = vpop.f32.mrf.mxu1 }
 0x9f0   :  { %v8646_v39 = vadd.f32 %v8495_v60, %v15714_v52 }
 0x9f1   :  { %v9017_v26 = vpop.f32.mrf.mxu2  ;;  %v10057_v56 = vpop.f32.mrf.mxu0 }
 0x9f2   :  { %8534 = vmatmul.bf16.gmra.mxu1 %v8385_v13  ;;  %v9168_v58 = vadd.f32 %v9017_v26, %v8646_v39  ;;  %v15945_v43 = vadd.f32 %v10057_v56, %v9689_v1  ;;  %v9316_v39 = vld [vmem:[#allocation3 + $0x158] sm:$0xff]  ;;  %v8908_v26 = vpack.c.bf16 %v8793_v29, %v8792_v51 }
 0x9f3   :  { %9579 = vmatmul.bf16.gmra.mxu3 %v9430_v28  ;;  %v8794_v51 = vld [vmem:[#allocation3 + $0x152] sm:$0xff]  ;;  %v8795_v29 = vld [vmem:[#allocation3 + $0x15a] sm:$0xff] }
 0x9f4   :  { %10096 = vmatmul.bf16.gmra.mxu0 %v8385_v13  ;;  %v8386_v13 = vpack.c.bf16 %v8271_v61, %v8270_v45  ;;  %v8272_v61 = vld [vmem:[#allocation3 + $0x151] sm:$0xff] }
 0x9f6   :  { %v9540_v38 = vpop.f32.mrf.mxu3 }
 0x9f7   :  { %v9691_v50 = vadd.f32 %v9540_v38, %v9168_v58  ;;  %v8497_v48 = vpop.f32.mrf.mxu1 }
 0x9f8   :  { %v8647_v9 = vadd.f32 %v8497_v48, %v15716_v31  ;;  %v9431_v31 = vpack.c.bf16 %v9316_v39, %v9315_v35  ;;  %v8273_v35 = vld [vmem:[#allocation3 + $0x159] sm:$0xff] }
 0x9f9   :  { %v9019_v12 = vpop.f32.mrf.mxu2  ;;  %v10059_v52 = vpop.f32.mrf.mxu0 }
 0x9fa   :  { %v9169_v3 = vadd.f32 %v9019_v12, %v8647_v9  ;;  %v15948_v63 = vadd.f32 %v10059_v52, %v9690_v53 }
 0x9fe   :  { %v9542_v60 = vpop.f32.mrf.mxu3  ;;  %9061 = vmatmul.bf16.gmra.mxu2 %v8908_v26  ;;  %v9317_v26 = vld [vmem:[#allocation3 + $0x168] sm:$0xff] }
 0x9ff   :  { %v9692_v1 = vadd.f32 %v9542_v60, %v9169_v3  ;;  %v8500_v28 = vpop.f32.mrf.mxu1 }
 0xa00   :  { %v8648_v56 = vadd.f32 %v8500_v28, %v15719_v33 }
 0xa01   :  { %v9022_v58 = vpop.f32.mrf.mxu2  ;;  %v10062_v38 = vpop.f32.mrf.mxu0 }
 0xa02   :  { %8539 = vmatmul.bf16.gmra.mxu1 %v8386_v13  ;;  %v9170_v48 = vadd.f32 %v9022_v58, %v8648_v56  ;;  %v15951_v9 = vadd.f32 %v10062_v38, %v9691_v50  ;;  %v9318_v56 = vld [vmem:[#allocation3 + $0x170] sm:$0xff]  ;;  %v8909_v58 = vpack.c.bf16 %v8795_v29, %v8794_v51 }
 0xa03   :  { %9584 = vmatmul.bf16.gmra.mxu3 %v9431_v31  ;;  %v8796_v51 = vld [vmem:[#allocation3 + $0x16a] sm:$0xff]  ;;  %v8797_v29 = vld [vmem:[#allocation3 + $0x172] sm:$0xff] }
 0xa04   :  { %10101 = vmatmul.bf16.gmra.mxu0 %v8386_v13  ;;  %v8387_v13 = vpack.c.bf16 %v8273_v35, %v8272_v61  ;;  %v8274_v35 = vld [vmem:[#allocation3 + $0x169] sm:$0xff] }
 0xa06   :  { %v9545_v53 = vpop.f32.mrf.mxu3 }
 0xa07   :  { %v9693_v12 = vadd.f32 %v9545_v53, %v9170_v48  ;;  %v8502_v52 = vpop.f32.mrf.mxu1 }
 0xa08   :  { %v8649_v3 = vadd.f32 %v8502_v52, %v15721_v54  ;;  %v9432_v54 = vpack.c.bf16 %v9318_v56, %v9317_v26  ;;  %v8275_v26 = vld [vmem:[#allocation3 + $0x171] sm:$0xff] }
 0xa09   :  { %v9024_v60 = vpop.f32.mrf.mxu2  ;;  %v10064_v33 = vpop.f32.mrf.mxu0 }
 0xa0a   :  { %v9171_v45 = vadd.f32 %v9024_v60, %v8649_v3  ;;  %v15954_v39 = vadd.f32 %v10064_v33, %v9692_v1 }
 0xa0e   :  { %v9547_v28 = vpop.f32.mrf.mxu3  ;;  %9066 = vmatmul.bf16.gmra.mxu2 %v8909_v58  ;;  %v9319_v58 = vld [vmem:[#allocation3 + $0x180] sm:$0xff] }
 0xa0f   :  { %v9694_v50 = vadd.f32 %v9547_v28, %v9171_v45  ;;  %v8505_v31 = vpop.f32.mrf.mxu1 }
 0xa10   :  { %v8650_v38 = vadd.f32 %v8505_v31, %v15724_v44 }
 0xa11   :  { %v9027_v48 = vpop.f32.mrf.mxu2  ;;  %v10067_v53 = vpop.f32.mrf.mxu0 }
 0xa12   :  { %8544 = vmatmul.bf16.gmra.mxu1 %v8387_v13  ;;  %v9172_v52 = vadd.f32 %v9027_v48, %v8650_v38  ;;  %v15957_v3 = vadd.f32 %v10067_v53, %v9693_v12  ;;  %v9320_v38 = vld [vmem:[#allocation3 + $0x188] sm:$0xff]  ;;  %v8910_v48 = vpack.c.bf16 %v8797_v29, %v8796_v51  ;;  %v12593_v51 = vld [vmem:[%s16529_s4 + $0x218] sm:$0xff] }
 0xa13   :  { %9589 = vmatmul.bf16.gmra.mxu3 %v9432_v54  ;;  %10564 = vmatpush.bf16.msra.mxu1 %v12593_v51 }
 0xa14   :  { %10106 = vmatmul.bf16.gmra.mxu0 %v8387_v13  ;;  %v8388_v13 = vpack.c.bf16 %v8275_v26, %v8274_v35  ;;  %v8798_v35 = vld [vmem:[#allocation3 + $0x182] sm:$0xff] }
 0xa16   :  { %v9550_v1 = vpop.f32.mrf.mxu3 }
 0xa17   :  { %v9695_v60 = vadd.f32 %v9550_v1, %v9172_v52  ;;  %v8507_v33 = vpop.f32.mrf.mxu1 }
 0xa18   :  { %v8651_v45 = vadd.f32 %v8507_v33, %v15732_v40  ;;  %v9433_v40 = vpack.c.bf16 %v9320_v38, %v9319_v58  ;;  %v8276_v58 = vld [vmem:[#allocation3 + $0x181] sm:$0xff]  ;;  %v8277_v38 = vld [vmem:[#allocation3 + $0x189] sm:$0xff] }
 0xa19   :  { %v9029_v28 = vpop.f32.mrf.mxu2  ;;  %v10069_v44 = vpop.f32.mrf.mxu0 }
 0xa1a   :  { %v9173_v61 = vadd.f32 %v9029_v28, %v8651_v45  ;;  %v15960_v56 = vadd.f32 %v10069_v44, %v9694_v50 }
 0xa1e   :  { %v9552_v31 = vpop.f32.mrf.mxu3  ;;  %9071 = vmatmul.bf16.gmra.mxu2 %v8910_v48 }
 0xa1f   :  { %v9696_v12 = vadd.f32 %v9552_v31, %v9173_v61  ;;  %v8510_v54 = vpop.f32.mrf.mxu1 }
 0xa20   :  { %v8652_v53 = vadd.f32 %v8510_v54, %v15735_v32  ;;  %v12601_v32 = vld [vmem:[%s16530_s5 + $0x18] sm:$0xff] }
 0xa21   :  { %v9032_v52 = vpop.f32.mrf.mxu2  ;;  %v10072_v1 = vpop.f32.mrf.mxu0  ;;  %11021 = vmatpush.bf16.msra.mxu2 %v12601_v32 }
 0xa22   :  { %8549 = vmatmul.bf16.gmra.mxu1 %v8388_v13  ;;  %v9174_v33 = vadd.f32 %v9032_v52, %v8652_v53  ;;  %v15963_v45 = vadd.f32 %v10072_v1, %v9695_v60  ;;  %v8799_v60 = vld [vmem:[#allocation3 + $0x18a] sm:$0xff] }
 0xa23   :  { %9594 = vmatmul.bf16.gmra.mxu3 %v9433_v40  ;;  %v12699_v40 = vld [vmem:[#allocation2] sm:$0xff] }
 0xa24   :  { %10111 = vmatmul.bf16.gmra.mxu0 %v8388_v13  ;;  %v8911_v13 = vpack.c.bf16 %v8799_v60, %v8798_v35  ;;  %v15974_v52 = vpack.c.bf16 %v12699_v40, %v12699_v40  ;;  %v9323_v40 = vld [vmem:[#allocation3 + $0x1e0] sm:$0xff] }
 0xa26   :  { %v9555_v50 = vpop.f32.mrf.mxu3 }
 0xa27   :  { %v9697_v28 = vadd.f32 %v9555_v50, %v9174_v33  ;;  %v8512_v44 = vpop.f32.mrf.mxu1  ;;  %v8389_v33 = vpack.c.bf16 %v8277_v38, %v8276_v58  ;;  %v8278_v38 = vld [vmem:[#allocation3 + $0x1c9] sm:$0xff] }
 0xa28   :  { %v8653_v61 = vadd.f32 %v8512_v44, %v15737_v19 }
 0xa29   :  { %v9034_v29 = vpop.f32.mrf.mxu2  ;;  %v10074_v26 = vpop.f32.mrf.mxu0 }
 0xa2a   :  { %v9175_v31 = vadd.f32 %v9034_v29, %v8653_v61  ;;  %v15972_v54 = vadd.f32 %v10074_v26, %v9696_v12  ;;  %v8800_v26 = vld [vmem:[#allocation3 + $0x1ca] sm:$0xff] }
 0xa2c   :  { %16962 = vst [vmem:[#allocation44_spill] sm:$0xff] %v15972_v54 }
 0xa2e   :  { %v9557_v19 = vpop.f32.mrf.mxu3  ;;  %9076 = vmatmul.bf16.gmra.mxu2 %v8911_v13 }
 0xa2f   :  { %v9698_v48 = vadd.f32 %v9557_v19, %v9175_v31  ;;  %v8515_v53 = vpop.f32.mrf.mxu1  ;;  %v8801_v31 = vld [vmem:[#allocation3 + $0x1d2] sm:$0xff] }
 0xa30   :  { %v8654_v1 = vadd.f32 %v8515_v53, %v15740_v15  ;;  %v8279_v19 = vld [vmem:[#allocation3 + $0x1d1] sm:$0xff] }
 0xa31   :  { %v9037_v50 = vpop.f32.mrf.mxu2  ;;  %v10077_v44 = vpop.f32.mrf.mxu0 }
 0xa32   :  { %8554 = vmatmul.bf16.gmra.mxu1 %v8389_v33  ;;  %v9176_v61 = vadd.f32 %v9037_v50, %v8654_v1  ;;  %v15978_v32 = vadd.f32 %v10077_v44, %v9697_v28  ;;  %v9324_v1 = vld [vmem:[#allocation3 + $0x1e8] sm:$0xff]  ;;  %v8912_v44 = vpack.c.bf16 %v8801_v31, %v8800_v26 }
 0xa33   :  { %9599 = vmatmul.bf16.gmra.mxu3 %v15974_v52  ;;  %v8802_v31 = vld [vmem:[#allocation3 + $0x1e2] sm:$0xff] }
 0xa34   :  { %16963 = vst [vmem:[#allocation45_spill] sm:$0xff] %v15978_v32  ;;  %10116 = vmatmul.bf16.gmra.mxu0 %v8389_v33  ;;  %v8390_v33 = vpack.c.bf16 %v8279_v19, %v8278_v38  ;;  %v8803_v38 = vld [vmem:[#allocation3 + $0x1ea] sm:$0xff] }
 0xa36   :  { %v9560_v12 = vpop.f32.mrf.mxu3 }
 0xa37   :  { %v9699_v51 = vadd.f32 %v9560_v12, %v9176_v61  ;;  %v8517_v29 = vpop.f32.mrf.mxu1  ;;  %v9843_v12 = vld [vmem:[#allocation3 + $0x199] sm:$0xff] }
 0xa38   :  { %v8655_v35 = vadd.f32 %v8517_v29, %v15742_v11  ;;  %v9435_v11 = vpack.c.bf16 %v9324_v1, %v9323_v40  ;;  %v9844_v29 = vld [vmem:[#allocation3 + $0x1a1] sm:$0xff]  ;;  %v8281_v1 = vld [vmem:[#allocation3 + $0x1e9] sm:$0xff] }
 0xa39   :  { %v9039_v60 = vpop.f32.mrf.mxu2  ;;  %v10079_v15 = vpop.f32.mrf.mxu0  ;;  %v8280_v40 = vld [vmem:[#allocation3 + $0x1e1] sm:$0xff] }
 0xa3a   :  { %v9177_v58 = vadd.f32 %v9039_v60, %v8655_v35  ;;  %v15981_v53 = vadd.f32 %v10079_v15, %v9698_v48  ;;  %v9956_v35 = vpack.c.bf16 %v9844_v29, %v9843_v12  ;;  %v8391_v12 = vpack.c.bf16 %v8281_v1, %v8280_v40  ;;  %v8282_v40 = vld [vmem:[#allocation3 + $0x1f9] sm:$0xff]  ;;  %v8283_v1 = vld [vmem:[#allocation3 + $0x201] sm:$0xff] }
 0xa3c   :  { %16964 = vst [vmem:[#allocation10_spill] sm:$0xff] %v15981_v53 }
 0xa3e   :  { %v9562_v13 = vpop.f32.mrf.mxu3  ;;  %9081 = vmatmul.bf16.gmra.mxu2 %v8912_v44 }
 0xa3f   :  { %v9700_v28 = vadd.f32 %v9562_v13, %v9177_v58  ;;  %v8520_v50 = vpop.f32.mrf.mxu1 }
 0xa40   :  { %v8656_v61 = vadd.f32 %v8520_v50, %v15744_v25 }
 0xa41   :  { %v9042_v60 = vpop.f32.mrf.mxu2  ;;  %v10082_v32 = vpop.f32.mrf.mxu0 }
 0xa42   :  { %8559 = vmatmul.bf16.gmra.mxu1 %v8390_v33  ;;  %v9178_v48 = vadd.f32 %v9042_v60, %v8656_v61  ;;  %v15984_v15 = vadd.f32 %v10082_v32, %v9699_v51  ;;  %v9325_v33 = vld [vmem:[#allocation3 + $0x1f8] sm:$0xff]  ;;  %v9326_v61 = vld [vmem:[#allocation3 + $0x200] sm:$0xff] }
 0xa43   :  { %9604 = vmatmul.bf16.gmra.mxu3 %v9435_v11  ;;  %v8913_v11 = vpack.c.bf16 %v8803_v38, %v8802_v31  ;;  %v8804_v31 = vld [vmem:[#allocation3 + $0x1fa] sm:$0xff]  ;;  %v8805_v38 = vld [vmem:[#allocation3 + $0x202] sm:$0xff] }
 0xa44   :  { %10121 = vmatmul.bf16.gmra.mxu0 %v9956_v35 }
 0xa46   :  { %v9565_v53 = vpop.f32.mrf.mxu3 }
 0xa47   :  { %v9701_v54 = vadd.f32 %v9565_v53, %v9178_v48  ;;  %v8522_v58 = vpop.f32.mrf.mxu1 }
 0xa48   :  { %v8657_v26 = vadd.f32 %v8522_v58, %v15746_v5  ;;  %v9436_v5 = vpack.c.bf16 %v9326_v61, %v9325_v33  ;;  %v9327_v61 = vld [vmem:[#allocation3 + $0x210] sm:$0xff] }
 0xa49   :  { %v9044_v25 = vpop.f32.mrf.mxu2  ;;  %v10084_v19 = vpop.f32.mrf.mxu0 }
 0xa4a   :  { %v9179_v13 = vadd.f32 %v9044_v25, %v8657_v26  ;;  %v15987_v50 = vadd.f32 %v10084_v19, %v9700_v28 }
 0xa4e   :  { %v9567_v44 = vpop.f32.mrf.mxu3  ;;  %9086 = vmatmul.bf16.gmra.mxu2 %v8913_v11 }
 0xa4f   :  { %v9702_v32 = vadd.f32 %v9567_v44, %v9179_v13  ;;  %v8525_v51 = vpop.f32.mrf.mxu1 }
 0xa50   :  { %v8658_v53 = vadd.f32 %v8525_v51, %v15748_v21  ;;  %v9328_v51 = vld [vmem:[#allocation3 + $0x218] sm:$0xff] }
 0xa51   :  { %v9047_v29 = vpop.f32.mrf.mxu2  ;;  %v10087_v35 = vpop.f32.mrf.mxu0 }
 0xa52   :  { %8564 = vmatmul.bf16.gmra.mxu1 %v8391_v12  ;;  %v9180_v60 = vadd.f32 %v9047_v29, %v8658_v53  ;;  %v15990_v48 = vadd.f32 %v10087_v35, %v9701_v54  ;;  %v8914_v53 = vpack.c.bf16 %v8805_v38, %v8804_v31  ;;  %v12592_v31 = vld [vmem:[%s16529_s4 + $0x210] sm:$0xff] }
 0xa53   :  { %9609 = vmatmul.bf16.gmra.mxu3 %v9436_v5  ;;  %10565 = vmatpush.bf16.msra.mxu1 %v12592_v31 }
 0xa54   :  { %10126 = vmatmul.bf16.gmra.mxu0 %v8391_v12  ;;  %v8392_v12 = vpack.c.bf16 %v8283_v1, %v8282_v40  ;;  %v8284_v1 = vld [vmem:[#allocation3 + $0x211] sm:$0xff] }
 0xa56   :  { %v9570_v28 = vpop.f32.mrf.mxu3 }
 0xa57   :  { %v9703_v58 = vadd.f32 %v9570_v28, %v9180_v60  ;;  %v8527_v26 = vpop.f32.mrf.mxu1 }
 0xa58   :  { %v8659_v25 = vadd.f32 %v8527_v26, %v15756_v16  ;;  %v9437_v16 = vpack.c.bf16 %v9328_v51, %v9327_v61  ;;  %v9329_v51 = vld [vmem:[#allocation3 + $0x228] sm:$0xff] }
 0xa59   :  { %v9049_v19 = vpop.f32.mrf.mxu2  ;;  %v10089_v21 = vpop.f32.mrf.mxu0 }
 0xa5a   :  { %v9181_v13 = vadd.f32 %v9049_v19, %v8659_v25  ;;  %v15993_v44 = vadd.f32 %v10089_v21, %v9702_v32  ;;  %v8806_v21 = vld [vmem:[#allocation3 + $0x212] sm:$0xff] }
 0xa5e   :  { %v9572_v33 = vpop.f32.mrf.mxu3  ;;  %9091 = vmatmul.bf16.gmra.mxu2 %v8914_v53 }
 0xa5f   :  { %v9704_v54 = vadd.f32 %v9572_v33, %v9181_v13  ;;  %v8530_v11 = vpop.f32.mrf.mxu1  ;;  %v8285_v33 = vld [vmem:[#allocation3 + $0x219] sm:$0xff] }
 0xa60   :  { %v8660_v5 = vadd.f32 %v8530_v11, %v15758_v62  ;;  %v12600_v62 = vld [vmem:[%s16530_s5 + $0x10] sm:$0xff] }
 0xa61   :  { %v9052_v29 = vpop.f32.mrf.mxu2  ;;  %v10092_v35 = vpop.f32.mrf.mxu0  ;;  %11022 = vmatpush.bf16.msra.mxu2 %v12600_v62  ;;  %v9330_v11 = vld [vmem:[#allocation3 + $0x230] sm:$0xff] }
 0xa62   :  { %8569 = vmatmul.bf16.gmra.mxu1 %v8392_v12  ;;  %v9182_v60 = vadd.f32 %v9052_v29, %v8660_v5  ;;  %v15996_v28 = vadd.f32 %v10092_v35, %v9703_v58  ;;  %v8807_v58 = vld [vmem:[#allocation3 + $0x21a] sm:$0xff]  ;;  %v8393_v29 = vpack.c.bf16 %v8285_v33, %v8284_v1  ;;  %v9438_v35 = vpack.c.bf16 %v9330_v11, %v9329_v51  ;;  %v8286_v1 = vld [vmem:[#allocation3 + $0x229] sm:$0xff]  ;;  %v8287_v33 = vld [vmem:[#allocation3 + $0x231] sm:$0xff] }
 0xa63   :  { %9614 = vmatmul.bf16.gmra.mxu3 %v9437_v16  ;;  %v9331_v11 = vld [vmem:[#allocation3 + $0x240] sm:$0xff] }
 0xa64   :  { %10131 = vmatmul.bf16.gmra.mxu0 %v8392_v12  ;;  %v8915_v12 = vpack.c.bf16 %v8807_v58, %v8806_v21  ;;  %v8808_v21 = vld [vmem:[#allocation3 + $0x22a] sm:$0xff]  ;;  %v8809_v58 = vld [vmem:[#allocation3 + $0x232] sm:$0xff] }
 0xa66   :  { %v9575_v32 = vpop.f32.mrf.mxu3 }
 0xa67   :  { %v9705_v26 = vadd.f32 %v9575_v32, %v9182_v60  ;;  %v8532_v25 = vpop.f32.mrf.mxu1 }
 0xa68   :  { %v8661_v19 = vadd.f32 %v8532_v25, %v15760_v8 }
 0xa69   :  { %v9054_v38 = vpop.f32.mrf.mxu2  ;;  %v10094_v13 = vpop.f32.mrf.mxu0 }
 0xa6a   :  { %v9183_v40 = vadd.f32 %v9054_v38, %v8661_v19  ;;  %v16005_v61 = vadd.f32 %v10094_v13, %v9704_v54 }
 0xa6e   :  { %v9577_v8 = vpop.f32.mrf.mxu3  ;;  %9096 = vmatmul.bf16.gmra.mxu2 %v8915_v12 }
 0xa6f   :  { %v9706_v53 = vadd.f32 %v9577_v8, %v9183_v40  ;;  %v8535_v5 = vpop.f32.mrf.mxu1 }
 0xa70   :  { %v8662_v16 = vadd.f32 %v8535_v5, %v15762_v41  ;;  %v9332_v5 = vld [vmem:[#allocation3 + $0x248] sm:$0xff] }
 0xa71   :  { %v9057_v60 = vpop.f32.mrf.mxu2  ;;  %v10097_v32 = vpop.f32.mrf.mxu0 }
 0xa72   :  { %8574 = vmatmul.bf16.gmra.mxu1 %v8393_v29  ;;  %v9184_v25 = vadd.f32 %v9057_v60, %v8662_v16  ;;  %v16008_v19 = vadd.f32 %v10097_v32, %v9705_v26  ;;  %v8916_v16 = vpack.c.bf16 %v8809_v58, %v8808_v21  ;;  %v8810_v21 = vld [vmem:[#allocation3 + $0x242] sm:$0xff]  ;;  %v8811_v58 = vld [vmem:[#allocation3 + $0x24a] sm:$0xff] }
 0xa73   :  { %9619 = vmatmul.bf16.gmra.mxu3 %v9438_v35 }
 0xa74   :  { %10136 = vmatmul.bf16.gmra.mxu0 %v8393_v29  ;;  %v8394_v29 = vpack.c.bf16 %v8287_v33, %v8286_v1  ;;  %v8288_v1 = vld [vmem:[#allocation3 + $0x241] sm:$0xff]  ;;  %v8289_v33 = vld [vmem:[#allocation3 + $0x249] sm:$0xff] }
 0xa76   :  { %v9580_v54 = vpop.f32.mrf.mxu3 }
 0xa77   :  { %v9707_v62 = vadd.f32 %v9580_v54, %v9184_v25  ;;  %v8537_v31 = vpop.f32.mrf.mxu1 }
 0xa78   :  { %v8663_v38 = vadd.f32 %v8537_v31, %v15764_v17  ;;  %v9439_v17 = vpack.c.bf16 %v9332_v5, %v9331_v11  ;;  %v9333_v5 = vld [vmem:[#allocation3 + $0x258] sm:$0xff] }
 0xa79   :  { %v9059_v13 = vpop.f32.mrf.mxu2  ;;  %v10099_v41 = vpop.f32.mrf.mxu0 }
 0xa7a   :  { %v9185_v40 = vadd.f32 %v9059_v13, %v8663_v38  ;;  %v16011_v8 = vadd.f32 %v10099_v41, %v9706_v53 }
 0xa7e   :  { %v9582_v51 = vpop.f32.mrf.mxu3  ;;  %9101 = vmatmul.bf16.gmra.mxu2 %v8916_v16 }
 0xa7f   :  { %v9708_v26 = vadd.f32 %v9582_v51, %v9185_v40  ;;  %v8540_v12 = vpop.f32.mrf.mxu1 }
 0xa80   :  { %v8664_v35 = vadd.f32 %v8540_v12, %v15766_v18  ;;  %v9334_v12 = vld [vmem:[#allocation3 + $0x260] sm:$0xff] }
 0xa81   :  { %v9062_v60 = vpop.f32.mrf.mxu2  ;;  %v10102_v32 = vpop.f32.mrf.mxu0 }
 0xa82   :  { %8579 = vmatmul.bf16.gmra.mxu1 %v8394_v29  ;;  %v9186_v25 = vadd.f32 %v9062_v60, %v8664_v35  ;;  %v16014_v54 = vadd.f32 %v10102_v32, %v9707_v62  ;;  %v8917_v35 = vpack.c.bf16 %v8811_v58, %v8810_v21  ;;  %v8812_v21 = vld [vmem:[#allocation3 + $0x25a] sm:$0xff]  ;;  %v8813_v58 = vld [vmem:[#allocation3 + $0x262] sm:$0xff] }
 0xa83   :  { %9624 = vmatmul.bf16.gmra.mxu3 %v9439_v17 }
 0xa84   :  { %10141 = vmatmul.bf16.gmra.mxu0 %v8394_v29  ;;  %v8395_v29 = vpack.c.bf16 %v8289_v33, %v8288_v1  ;;  %v8290_v1 = vld [vmem:[#allocation3 + $0x259] sm:$0xff]  ;;  %v8291_v33 = vld [vmem:[#allocation3 + $0x261] sm:$0xff] }
 0xa86   :  { %v9585_v53 = vpop.f32.mrf.mxu3 }
 0xa87   :  { %v9709_v31 = vadd.f32 %v9585_v53, %v9186_v25  ;;  %v8542_v38 = vpop.f32.mrf.mxu1 }
 0xa88   :  { %v8665_v13 = vadd.f32 %v8542_v38, %v15768_v27  ;;  %v9440_v27 = vpack.c.bf16 %v9334_v12, %v9333_v5  ;;  %v9335_v12 = vld [vmem:[#allocation3 + $0x270] sm:$0xff] }
 0xa89   :  { %v9064_v41 = vpop.f32.mrf.mxu2  ;;  %v10104_v18 = vpop.f32.mrf.mxu0 }
 0xa8a   :  { %v9187_v40 = vadd.f32 %v9064_v41, %v8665_v13  ;;  %v16017_v51 = vadd.f32 %v10104_v18, %v9708_v26 }
 0xa8e   :  { %v9587_v11 = vpop.f32.mrf.mxu3  ;;  %9106 = vmatmul.bf16.gmra.mxu2 %v8917_v35 }
 0xa8f   :  { %v9710_v62 = vadd.f32 %v9587_v11, %v9187_v40  ;;  %v8545_v16 = vpop.f32.mrf.mxu1 }
 0xa90   :  { %v8666_v17 = vadd.f32 %v8545_v16, %v15770_v46  ;;  %v9336_v16 = vld [vmem:[#allocation3 + $0x278] sm:$0xff] }
 0xa91   :  { %v9067_v60 = vpop.f32.mrf.mxu2  ;;  %v10107_v32 = vpop.f32.mrf.mxu0 }
 0xa92   :  { %8584 = vmatmul.bf16.gmra.mxu1 %v8395_v29  ;;  %v9188_v25 = vadd.f32 %v9067_v60, %v8666_v17  ;;  %v16020_v53 = vadd.f32 %v10107_v32, %v9709_v31  ;;  %v8918_v17 = vpack.c.bf16 %v8813_v58, %v8812_v21  ;;  %v12591_v21 = vld [vmem:[%s16529_s4 + $0x208] sm:$0xff] }
 0xa93   :  { %9629 = vmatmul.bf16.gmra.mxu3 %v9440_v27  ;;  %10566 = vmatpush.bf16.msra.mxu1 %v12591_v21 }
 0xa94   :  { %10146 = vmatmul.bf16.gmra.mxu0 %v8395_v29  ;;  %v8396_v29 = vpack.c.bf16 %v8291_v33, %v8290_v1  ;;  %v8292_v33 = vld [vmem:[#allocation3 + $0x271] sm:$0xff] }
 0xa96   :  { %v9590_v26 = vpop.f32.mrf.mxu3 }
 0xa97   :  { %v9711_v38 = vadd.f32 %v9590_v26, %v9188_v25  ;;  %v8547_v13 = vpop.f32.mrf.mxu1 }
 0xa98   :  { %v8667_v41 = vadd.f32 %v8547_v13, %v15778_v2  ;;  %v9441_v2 = vpack.c.bf16 %v9336_v16, %v9335_v12  ;;  %v9337_v16 = vld [vmem:[#allocation3 + $0x288] sm:$0xff] }
 0xa99   :  { %v9069_v18 = vpop.f32.mrf.mxu2  ;;  %v10109_v46 = vpop.f32.mrf.mxu0 }
 0xa9a   :  { %v9189_v40 = vadd.f32 %v9069_v18, %v8667_v41  ;;  %v16023_v11 = vadd.f32 %v10109_v46, %v9710_v62  ;;  %v8814_v46 = vld [vmem:[#allocation3 + $0x272] sm:$0xff] }
 0xa9e   :  { %v9592_v5 = vpop.f32.mrf.mxu3  ;;  %9111 = vmatmul.bf16.gmra.mxu2 %v8918_v17 }
 0xa9f   :  { %v9712_v31 = vadd.f32 %v9592_v5, %v9189_v40  ;;  %v8550_v35 = vpop.f32.mrf.mxu1  ;;  %v8293_v5 = vld [vmem:[#allocation3 + $0x279] sm:$0xff] }
 0xaa0   :  { %v8668_v27 = vadd.f32 %v8550_v35, %v15780_v14  ;;  %v12599_v14 = vld [vmem:[%s16530_s5 + $0x8] sm:$0xff]  ;;  %v9338_v35 = vld [vmem:[#allocation3 + $0x290] sm:$0xff] }
 0xaa1   :  { %v9072_v60 = vpop.f32.mrf.mxu2  ;;  %v10112_v32 = vpop.f32.mrf.mxu0  ;;  %11023 = vmatpush.bf16.msra.mxu2 %v12599_v14 }
 0xaa2   :  { %8589 = vmatmul.bf16.gmra.mxu1 %v8396_v29  ;;  %v9190_v25 = vadd.f32 %v9072_v60, %v8668_v27  ;;  %v16026_v26 = vadd.f32 %v10112_v32, %v9711_v38  ;;  %v8815_v38 = vld [vmem:[#allocation3 + $0x27a] sm:$0xff]  ;;  %v8397_v60 = vpack.c.bf16 %v8293_v5, %v8292_v33  ;;  %v9442_v32 = vpack.c.bf16 %v9338_v35, %v9337_v16  ;;  %v8294_v33 = vld [vmem:[#allocation3 + $0x289] sm:$0xff]  ;;  %v8295_v5 = vld [vmem:[#allocation3 + $0x291] sm:$0xff] }
 0xaa3   :  { %9634 = vmatmul.bf16.gmra.mxu3 %v9441_v2  ;;  %v9339_v35 = vld [vmem:[#allocation3 + $0x2a0] sm:$0xff] }
 0xaa4   :  { %10151 = vmatmul.bf16.gmra.mxu0 %v8396_v29  ;;  %v8919_v29 = vpack.c.bf16 %v8815_v38, %v8814_v46  ;;  %v8816_v46 = vld [vmem:[#allocation3 + $0x28a] sm:$0xff]  ;;  %v8817_v38 = vld [vmem:[#allocation3 + $0x292] sm:$0xff] }
 0xaa6   :  { %v9595_v62 = vpop.f32.mrf.mxu3 }
 0xaa7   :  { %v9713_v13 = vadd.f32 %v9595_v62, %v9190_v25  ;;  %v8552_v41 = vpop.f32.mrf.mxu1 }
 0xaa8   :  { %v8669_v18 = vadd.f32 %v8552_v41, %v15782_v42 }
 0xaa9   :  { %v9074_v58 = vpop.f32.mrf.mxu2  ;;  %v10114_v40 = vpop.f32.mrf.mxu0 }
 0xaaa   :  { %v9191_v1 = vadd.f32 %v9074_v58, %v8669_v18  ;;  %v16035_v12 = vadd.f32 %v10114_v40, %v9712_v31 }
 0xaae   :  { %v9597_v42 = vpop.f32.mrf.mxu3  ;;  %9116 = vmatmul.bf16.gmra.mxu2 %v8919_v29 }
 0xaaf   :  { %v9714_v17 = vadd.f32 %v9597_v42, %v9191_v1  ;;  %v8555_v27 = vpop.f32.mrf.mxu1 }
 0xab0   :  { %v8670_v2 = vadd.f32 %v8555_v27, %v15784_v20  ;;  %v9340_v27 = vld [vmem:[#allocation3 + $0x2a8] sm:$0xff] }
 0xab1   :  { %v9077_v25 = vpop.f32.mrf.mxu2  ;;  %v10117_v62 = vpop.f32.mrf.mxu0 }
 0xab2   :  { %8594 = vmatmul.bf16.gmra.mxu1 %v8397_v60  ;;  %v9192_v41 = vadd.f32 %v9077_v25, %v8670_v2  ;;  %v16038_v18 = vadd.f32 %v10117_v62, %v9713_v13  ;;  %v8920_v2 = vpack.c.bf16 %v8817_v38, %v8816_v46  ;;  %v8818_v46 = vld [vmem:[#allocation3 + $0x2a2] sm:$0xff]  ;;  %v8819_v38 = vld [vmem:[#allocation3 + $0x2aa] sm:$0xff] }
 0xab3   :  { %9639 = vmatmul.bf16.gmra.mxu3 %v9442_v32 }
 0xab4   :  { %10156 = vmatmul.bf16.gmra.mxu0 %v8397_v60  ;;  %v8398_v60 = vpack.c.bf16 %v8295_v5, %v8294_v33  ;;  %v8296_v33 = vld [vmem:[#allocation3 + $0x2a1] sm:$0xff]  ;;  %v8297_v5 = vld [vmem:[#allocation3 + $0x2a9] sm:$0xff] }
 0xab6   :  { %v9600_v31 = vpop.f32.mrf.mxu3 }
 0xab7   :  { %v9715_v14 = vadd.f32 %v9600_v31, %v9192_v41  ;;  %v8557_v21 = vpop.f32.mrf.mxu1 }
 0xab8   :  { %v8671_v58 = vadd.f32 %v8557_v21, %v15786_v55  ;;  %v9443_v55 = vpack.c.bf16 %v9340_v27, %v9339_v35  ;;  %v9341_v27 = vld [vmem:[#allocation3 + $0x2b8] sm:$0xff] }
 0xab9   :  { %v9079_v40 = vpop.f32.mrf.mxu2  ;;  %v10119_v20 = vpop.f32.mrf.mxu0 }
 0xaba   :  { %v9193_v1 = vadd.f32 %v9079_v40, %v8671_v58  ;;  %v16041_v42 = vadd.f32 %v10119_v20, %v9714_v17 }
 0xabe   :  { %v9602_v16 = vpop.f32.mrf.mxu3  ;;  %9121 = vmatmul.bf16.gmra.mxu2 %v8920_v2 }
 0xabf   :  { %v9716_v13 = vadd.f32 %v9602_v16, %v9193_v1  ;;  %v8560_v29 = vpop.f32.mrf.mxu1 }
 0xac0   :  { %v8672_v32 = vadd.f32 %v8560_v29, %v15788_v22  ;;  %v9342_v29 = vld [vmem:[#allocation3 + $0x2c0] sm:$0xff] }
 0xac1   :  { %v9082_v25 = vpop.f32.mrf.mxu2  ;;  %v10122_v62 = vpop.f32.mrf.mxu0 }
 0xac2   :  { %8599 = vmatmul.bf16.gmra.mxu1 %v8398_v60  ;;  %v9194_v41 = vadd.f32 %v9082_v25, %v8672_v32  ;;  %v16044_v31 = vadd.f32 %v10122_v62, %v9715_v14  ;;  %v8921_v32 = vpack.c.bf16 %v8819_v38, %v8818_v46  ;;  %v8820_v46 = vld [vmem:[#allocation3 + $0x2ba] sm:$0xff]  ;;  %v8821_v38 = vld [vmem:[#allocation3 + $0x2c2] sm:$0xff] }
 0xac3   :  { %9644 = vmatmul.bf16.gmra.mxu3 %v9443_v55 }
 0xac4   :  { %10161 = vmatmul.bf16.gmra.mxu0 %v8398_v60  ;;  %v8399_v60 = vpack.c.bf16 %v8297_v5, %v8296_v33  ;;  %v8298_v33 = vld [vmem:[#allocation3 + $0x2b9] sm:$0xff]  ;;  %v8299_v5 = vld [vmem:[#allocation3 + $0x2c1] sm:$0xff] }
 0xac6   :  { %v9605_v17 = vpop.f32.mrf.mxu3 }
 0xac7   :  { %v9717_v21 = vadd.f32 %v9605_v17, %v9194_v41  ;;  %v8562_v58 = vpop.f32.mrf.mxu1 }
 0xac8   :  { %v8673_v40 = vadd.f32 %v8562_v58, %v15790_v57  ;;  %v9444_v57 = vpack.c.bf16 %v9342_v29, %v9341_v27  ;;  %v9343_v29 = vld [vmem:[#allocation3 + $0x2d0] sm:$0xff] }
 0xac9   :  { %v9084_v20 = vpop.f32.mrf.mxu2  ;;  %v10124_v22 = vpop.f32.mrf.mxu0 }
 0xaca   :  { %v9195_v1 = vadd.f32 %v9084_v20, %v8673_v40  ;;  %v16047_v16 = vadd.f32 %v10124_v22, %v9716_v13 }
 0xace   :  { %v9607_v35 = vpop.f32.mrf.mxu3  ;;  %9126 = vmatmul.bf16.gmra.mxu2 %v8921_v32 }
 0xacf   :  { %v9718_v14 = vadd.f32 %v9607_v35, %v9195_v1  ;;  %v8565_v2 = vpop.f32.mrf.mxu1 }
 0xad0   :  { %v8674_v55 = vadd.f32 %v8565_v2, %v15792_v23  ;;  %v9344_v2 = vld [vmem:[#allocation3 + $0x2d8] sm:$0xff] }
 0xad1   :  { %v9087_v25 = vpop.f32.mrf.mxu2  ;;  %v10127_v62 = vpop.f32.mrf.mxu0 }
 0xad2   :  { %8604 = vmatmul.bf16.gmra.mxu1 %v8399_v60  ;;  %v9196_v41 = vadd.f32 %v9087_v25, %v8674_v55  ;;  %v16050_v17 = vadd.f32 %v10127_v62, %v9717_v21  ;;  %v8922_v55 = vpack.c.bf16 %v8821_v38, %v8820_v46  ;;  %v12590_v46 = vld [vmem:[%s16529_s4 + $0x200] sm:$0xff] }
 0xad3   :  { %9649 = vmatmul.bf16.gmra.mxu3 %v9444_v57  ;;  %10567 = vmatpush.bf16.msra.mxu1 %v12590_v46 }
 0xad4   :  { %10166 = vmatmul.bf16.gmra.mxu0 %v8399_v60  ;;  %v8400_v60 = vpack.c.bf16 %v8299_v5, %v8298_v33  ;;  %v8300_v5 = vld [vmem:[#allocation3 + $0x2d1] sm:$0xff] }
 0xad6   :  { %v9610_v13 = vpop.f32.mrf.mxu3 }
 0xad7   :  { %v9719_v58 = vadd.f32 %v9610_v13, %v9196_v41  ;;  %v8567_v40 = vpop.f32.mrf.mxu1 }
 0xad8   :  { %v8675_v20 = vadd.f32 %v8567_v40, %v15800_v47  ;;  %v9445_v47 = vpack.c.bf16 %v9344_v2, %v9343_v29  ;;  %v9345_v2 = vld [vmem:[#allocation3 + $0x2e8] sm:$0xff] }
 0xad9   :  { %v9089_v22 = vpop.f32.mrf.mxu2  ;;  %v10129_v23 = vpop.f32.mrf.mxu0 }
 0xada   :  { %v9197_v1 = vadd.f32 %v9089_v22, %v8675_v20  ;;  %v16053_v35 = vadd.f32 %v10129_v23, %v9718_v14  ;;  %v8822_v23 = vld [vmem:[#allocation3 + $0x2d2] sm:$0xff] }
 0xade   :  { %v9612_v27 = vpop.f32.mrf.mxu3  ;;  %9131 = vmatmul.bf16.gmra.mxu2 %v8922_v55 }
 0xadf   :  { %v9720_v21 = vadd.f32 %v9612_v27, %v9197_v1  ;;  %v8570_v32 = vpop.f32.mrf.mxu1  ;;  %v8301_v27 = vld [vmem:[#allocation3 + $0x2d9] sm:$0xff] }
 0xae0   :  { %v8676_v57 = vadd.f32 %v8570_v32, %v15802_v36  ;;  %v12598_v36 = vld [vmem:[%s16530_s5] sm:$0xff]  ;;  %v9346_v32 = vld [vmem:[#allocation3 + $0x2f0] sm:$0xff] }
 0xae1   :  { %v9092_v25 = vpop.f32.mrf.mxu2  ;;  %v10132_v62 = vpop.f32.mrf.mxu0  ;;  %11024 = vmatpush.bf16.msra.mxu2 %v12598_v36 }
 0xae2   :  { %8609 = vmatmul.bf16.gmra.mxu1 %v8400_v60  ;;  %v9198_v41 = vadd.f32 %v9092_v25, %v8676_v57  ;;  %v16056_v13 = vadd.f32 %v10132_v62, %v9719_v58  ;;  %v8823_v58 = vld [vmem:[#allocation3 + $0x2da] sm:$0xff]  ;;  %v8401_v25 = vpack.c.bf16 %v8301_v27, %v8300_v5  ;;  %v9446_v62 = vpack.c.bf16 %v9346_v32, %v9345_v2  ;;  %v8302_v5 = vld [vmem:[#allocation3 + $0x2e9] sm:$0xff]  ;;  %v8303_v27 = vld [vmem:[#allocation3 + $0x2f1] sm:$0xff] }
 0xae3   :  { %9654 = vmatmul.bf16.gmra.mxu3 %v9445_v47  ;;  %v9347_v32 = vld [vmem:[#allocation3 + $0x300] sm:$0xff] }
 0xae4   :  { %10171 = vmatmul.bf16.gmra.mxu0 %v8400_v60  ;;  %v8923_v60 = vpack.c.bf16 %v8823_v58, %v8822_v23  ;;  %v8824_v23 = vld [vmem:[#allocation3 + $0x2ea] sm:$0xff]  ;;  %v8825_v58 = vld [vmem:[#allocation3 + $0x2f2] sm:$0xff] }
 0xae6   :  { %v9615_v14 = vpop.f32.mrf.mxu3 }
 0xae7   :  { %v9721_v40 = vadd.f32 %v9615_v14, %v9198_v41  ;;  %v8572_v20 = vpop.f32.mrf.mxu1 }
 0xae8   :  { %v8677_v22 = vadd.f32 %v8572_v20, %v15804_v10 }
 0xae9   :  { %v9094_v38 = vpop.f32.mrf.mxu2  ;;  %v10134_v1 = vpop.f32.mrf.mxu0 }
 0xaea   :  { %v9199_v33 = vadd.f32 %v9094_v38, %v8677_v22  ;;  %v16065_v29 = vadd.f32 %v10134_v1, %v9720_v21 }
 0xaee   :  { %v9617_v10 = vpop.f32.mrf.mxu3  ;;  %9136 = vmatmul.bf16.gmra.mxu2 %v8923_v60 }
 0xaef   :  { %v9722_v55 = vadd.f32 %v9617_v10, %v9199_v33  ;;  %v8575_v57 = vpop.f32.mrf.mxu1 }
 0xaf0   :  { %v8678_v47 = vadd.f32 %v8575_v57, %v15806_v37  ;;  %v9348_v57 = vld [vmem:[#allocation3 + $0x308] sm:$0xff] }
 0xaf1   :  { %v9097_v41 = vpop.f32.mrf.mxu2  ;;  %v10137_v14 = vpop.f32.mrf.mxu0 }
 0xaf2   :  { %8614 = vmatmul.bf16.gmra.mxu1 %v8401_v25  ;;  %v9200_v20 = vadd.f32 %v9097_v41, %v8678_v47  ;;  %v16068_v22 = vadd.f32 %v10137_v14, %v9721_v40  ;;  %v8924_v47 = vpack.c.bf16 %v8825_v58, %v8824_v23  ;;  %v8827_v23 = vld [vmem:[#allocation3 + $0x30a] sm:$0xff] }
 0xaf3   :  { %9659 = vmatmul.bf16.gmra.mxu3 %v9446_v62  ;;  %v16965_v62 = vld [vmem:[#allocation55_spill] sm:$0xff] }
 0xaf4   :  { %10176 = vmatmul.bf16.gmra.mxu0 %v8401_v25  ;;  %v8402_v25 = vpack.c.bf16 %v8303_v27, %v8302_v5  ;;  %v8304_v5 = vld [vmem:[#allocation3 + $0x301] sm:$0xff]  ;;  %v8305_v27 = vld [vmem:[#allocation3 + $0x309] sm:$0xff] }
 0xaf6   :  { %v9620_v21 = vpop.f32.mrf.mxu3 }
 0xaf7   :  { %v9723_v36 = vadd.f32 %v9620_v21, %v9200_v20  ;;  %v8577_v46 = vpop.f32.mrf.mxu1 }
 0xaf8   :  { %v8679_v38 = vadd.f32 %v8577_v46, %v15811_v6  ;;  %v9447_v6 = vpack.c.bf16 %v9348_v57, %v9347_v32  ;;  %v9349_v57 = vld [vmem:[#allocation3 + $0x318] sm:$0xff] }
 0xaf9   :  { %v9099_v1 = vpop.f32.mrf.mxu2  ;;  %v10139_v37 = vpop.f32.mrf.mxu0 }
 0xafa   :  { %v9201_v33 = vadd.f32 %v9099_v1, %v8679_v38  ;;  %v16071_v10 = vadd.f32 %v10139_v37, %v9722_v55  ;;  %v16966_v38 = vld [vmem:[#allocation59_spill] sm:$0xff] }
 0xafe   :  { %v9622_v2 = vpop.f32.mrf.mxu3  ;;  %9141 = vmatmul.bf16.gmra.mxu2 %v8924_v47 }
 0xaff   :  { %v9724_v40 = vadd.f32 %v9622_v2, %v9201_v33  ;;  %v8580_v60 = vpop.f32.mrf.mxu1  ;;  %v8826_v33 = vld [vmem:[#allocation3 + $0x302] sm:$0xff] }
 0xb00   :  { %v8680_v41 = vadd.f32 %v8580_v60, %v16965_v62  ;;  %v9350_v60 = vld [vmem:[#allocation3 + $0x320] sm:$0xff]  ;;  %v8925_v62 = vpack.c.bf16 %v8827_v23, %v8826_v33 }
 0xb01   :  { %v9102_v14 = vpop.f32.mrf.mxu2  ;;  %v10142_v20 = vpop.f32.mrf.mxu0  ;;  %v8306_v33 = vld [vmem:[#allocation3 + $0x319] sm:$0xff]  ;;  %v8307_v23 = vld [vmem:[#allocation3 + $0x321] sm:$0xff] }
 0xb02   :  { %8619 = vmatmul.bf16.gmra.mxu1 %v8402_v25  ;;  %v16074_v21 = vadd.f32 %v9102_v14, %v8680_v41  ;;  %v16076_v46 = vadd.f32 %v10142_v20, %v9723_v36  ;;  %v16968_v36 = vld [vmem:[#allocation57_spill] sm:$0xff] }
 0xb03   :  { %9664 = vmatmul.bf16.gmra.mxu3 %v9447_v6  ;;  %v8403_v6 = vpack.c.bf16 %v8305_v27, %v8304_v5  ;;  %v9352_v5 = vld [vmem:[#allocation3 + $0x338] sm:$0xff] }
 0xb04   :  { %10181 = vmatmul.bf16.gmra.mxu0 %v8402_v25  ;;  %v9448_v25 = vpack.c.bf16 %v9350_v60, %v9349_v57  ;;  %v16972_v60 = vld [vmem:[#allocation58_spill] sm:$0xff] }
 0xb07   :  { %v8582_v55 = vpop.f32.mrf.mxu1 }
 0xb08   :  { %v8681_v1 = vadd.f32 %v8582_v55, %v16966_v38  ;;  %v16970_v38 = vld [vmem:[#allocation74_spill] sm:$0xff] }
 0xb09   :  { %v9104_v37 = vpop.f32.mrf.mxu2  ;;  %v10144_v58 = vpop.f32.mrf.mxu0 }
 0xb0a   :  { %v16079_v2 = vadd.f32 %v9104_v37, %v8681_v1  ;;  %v16081_v32 = vadd.f32 %v10144_v58, %v9724_v40  ;;  %v8828_v37 = vld [vmem:[#allocation3 + $0x31a] sm:$0xff]  ;;  %v8829_v58 = vld [vmem:[#allocation3 + $0x322] sm:$0xff] }
 0xb0b   :  { %v8926_v57 = vpack.c.bf16 %v8829_v58, %v8828_v37  ;;  %v8308_v37 = vld [vmem:[#allocation3 + $0x331] sm:$0xff]  ;;  %v8309_v58 = vld [vmem:[#allocation3 + $0x339] sm:$0xff] }
 0xb0c   :  { %16967 = vst [vmem:[#allocation8_spill] sm:$0xff] %v16079_v2 }
 0xb0e   :  { %9146 = vmatmul.bf16.gmra.mxu2 %v8925_v62 }
 0xb0f   :  { %v8585_v47 = vpop.f32.mrf.mxu1 }
 0xb10   :  { %v8682_v41 = vadd.f32 %v8585_v47, %v16968_v36  ;;  %v9351_v47 = vld [vmem:[#allocation3 + $0x330] sm:$0xff]  ;;  %v8404_v36 = vpack.c.bf16 %v8307_v23, %v8306_v33  ;;  %v16974_v23 = vld [vmem:[#allocation75_spill] sm:$0xff] }
 0xb11   :  { %v9107_v14 = vpop.f32.mrf.mxu2 }
 0xb12   :  { %8624 = vmatmul.bf16.gmra.mxu1 %v8403_v6  ;;  %v16084_v20 = vadd.f32 %v9107_v14, %v8682_v41  ;;  %v9449_v41 = vpack.c.bf16 %v9352_v5, %v9351_v47  ;;  %v8405_v5 = vpack.c.bf16 %v8309_v58, %v8308_v37  ;;  %v16976_v37 = vld [vmem:[#allocation76_spill] sm:$0xff] }
 0xb13   :  { %9669 = vmatmul.bf16.gmra.mxu3 %v9448_v25 }
 0xb14   :  { %16969 = vst [vmem:[#allocation9_spill] sm:$0xff] %v16084_v20  ;;  %10186 = vmatmul.bf16.gmra.mxu0 %v8403_v6 }
 0xb17   :  { %v8587_v55 = vpop.f32.mrf.mxu1 }
 0xb18   :  { %v8683_v1 = vadd.f32 %v8587_v55, %v16970_v38  ;;  %v16973_v55 = vld [vmem:[#allocation60_spill] sm:$0xff] }
 0xb19   :  { %v9109_v40 = vpop.f32.mrf.mxu2 }
 0xb1a   :  { %v16087_v2 = vadd.f32 %v9109_v40, %v8683_v1  ;;  %v8830_v40 = vld [vmem:[#allocation3 + $0x332] sm:$0xff] }
 0xb1c   :  { %16971 = vst [vmem:[#allocation11_spill] sm:$0xff] %v16087_v2  ;;  %v8831_v2 = vld [vmem:[#allocation3 + $0x33a] sm:$0xff] }
 0xb1d   :  { %v8927_v33 = vpack.c.bf16 %v8831_v2, %v8830_v40  ;;  %v12359_v2 = vld [vmem:[%s16525_s0 + $0x21] sm:$0xff] }
 0xb1e   :  { %9151 = vmatmul.bf16.gmra.mxu2 %v8926_v57 }
 0xb1f   :  { %v8590_v27 = vpop.f32.mrf.mxu1 }
 0xb20   :  { %v8684_v62 = vadd.f32 %v8590_v27, %v16972_v60 }
 0xb21   :  { %v9112_v6 = vpop.f32.mrf.mxu2 }
 0xb22   :  { %8629 = vmatmul.bf16.gmra.mxu1 %v8404_v36  ;;  %v16090_v25 = vadd.f32 %v9112_v6, %v8684_v62  ;;  %v12358_v6 = vld [vmem:[%s16525_s0 + $0x19] sm:$0xff] }
 0xb23   :  { %9674 = vmatmul.bf16.gmra.mxu3 %v9449_v41 }
 0xb24   :  { %10191 = vmatmul.bf16.gmra.mxu0 %v8404_v36  ;;  %v16975_v36 = vld [vmem:[#allocation61_spill] sm:$0xff] }
 0xb27   :  { %v8592_v14 = vpop.f32.mrf.mxu1 }
 0xb28   :  { %v8685_v38 = vadd.f32 %v8592_v14, %v16973_v55 }
 0xb29   :  { %v9114_v1 = vpop.f32.mrf.mxu2 }
 0xb2a   :  { %v16093_v20 = vadd.f32 %v9114_v1, %v8685_v38  ;;  %v10335_v38 = vld [vmem:[#allocation3 + $0x32] sm:$0xff]  ;;  %v10921_v1 = vpack.c.bf16 %v12359_v2, %v12358_v6 }
 0xb2b   :  { %v12360_v6 = vld [vmem:[%s16525_s0 + $0x31] sm:$0xff]  ;;  %v12361_v2 = vld [vmem:[%s16525_s0 + $0x39] sm:$0xff] }
 0xb2e   :  { %9156 = vmatmul.bf16.gmra.mxu2 %v8927_v33  ;;  %v9875_v33 = vld [vmem:[#allocation3 + $0x349] sm:$0xff] }
 0xb2f   :  { %v8595_v27 = vpop.f32.mrf.mxu1 }
 0xb30   :  { %v8686_v47 = vadd.f32 %v8595_v27, %v16974_v23  ;;  %v9876_v23 = vld [vmem:[#allocation3 + $0x351] sm:$0xff] }
 0xb31   :  { %v9117_v57 = vpop.f32.mrf.mxu2 }
 0xb32   :  { %8634 = vmatmul.bf16.gmra.mxu1 %v8405_v5  ;;  %v16097_v60 = vadd.f32 %v9117_v57, %v8686_v47  ;;  %v9972_v47 = vpack.c.bf16 %v9876_v23, %v9875_v33 }
 0xb33   :  { %9679 = vmatmul.bf16.gmra.mxu3 %v15974_v52  ;;  %v10336_v52 = vld [vmem:[#allocation3 + $0x3a] sm:$0xff] }
 0xb34   :  { %10196 = vmatmul.bf16.gmra.mxu0 %v8405_v5  ;;  %v10463_v27 = vpack.c.bf16 %v10336_v52, %v10335_v38  ;;  %v10337_v52 = vld [vmem:[#allocation3 + $0x4a] sm:$0xff] }
 0xb37   :  { %v8597_v62 = vpop.f32.mrf.mxu1 }
 0xb38   :  { %v8687_v41 = vadd.f32 %v8597_v62, %v16975_v36  ;;  %v16977_v36 = vld [vmem:[#allocation62_spill] sm:$0xff] }
 0xb39   :  { %v9119_v14 = vpop.f32.mrf.mxu2 }
 0xb3a   :  { %v16106_v55 = vadd.f32 %v9119_v14, %v8687_v41 }
 0xb3e   :  { %11025 = vmatmul.bf16.vlgmr.msra.gmra.mxu2 %v10921_v1  ;;  %v10338_v1 = vld [vmem:[#allocation3 + $0x52] sm:$0xff] }
 0xb3f   :  { %v8600_v40 = vpop.f32.mrf.mxu1  ;;  %v10464_v33 = vpack.c.bf16 %v10338_v1, %v10337_v52  ;;  %v10339_v52 = vld [vmem:[#allocation3 + $0x62] sm:$0xff]  ;;  %v10340_v1 = vld [vmem:[#allocation3 + $0x6a] sm:$0xff] }
 0xb40   :  { %v8688_v58 = vadd.f32 %v8600_v40, %v16976_v37  ;;  %v10922_v40 = vpack.c.bf16 %v12361_v2, %v12360_v6  ;;  %v12363_v6 = vld [vmem:[%s16525_s0 + $0x51] sm:$0xff] }
 0xb41   :  { %v9122_v5 = vpop.f32.mrf.mxu2 }
 0xb42   :  { %10568 = vmatmul.bf16.vlgmr.msra.gmra.mxu1 %v10463_v27  ;;  %v16109_v57 = vadd.f32 %v9122_v5, %v8688_v58  ;;  %v16979_v58 = vld [vmem:[#allocation63_spill] sm:$0xff] }
 0xb44   :  { %10201 = vmatmul.bf16.gmra.mxu0 %v9972_v47 }
 0xb47   :  { %v8602_v62 = vpop.f32.mrf.mxu1 }
 0xb48   :  { %v8689_v41 = vadd.f32 %v8602_v62, %v16977_v36  ;;  %v16981_v62 = vld [vmem:[#allocation64_spill] sm:$0xff] }
 0xb49   :  { %v9124_v14 = vpop.f32.mrf.mxu2 }
 0xb4a   :  { %v16118_v38 = vadd.f32 %v9124_v14, %v8689_v41  ;;  %v12362_v41 = vld [vmem:[%s16525_s0 + $0x49] sm:$0xff] }
 0xb4c   :  { %16978 = vst [vmem:[#allocation72_spill] sm:$0xff] %v16118_v38 }
 0xb4e   :  { %11030 = vmatmul.bf16.gmra.mxu2 %v10922_v40  ;;  %v10923_v40 = vpack.c.bf16 %v12363_v6, %v12362_v41  ;;  %v12365_v41 = vld [vmem:[%s16525_s0 + $0x69] sm:$0xff] }
 0xb4f   :  { %v8605_v37 = vpop.f32.mrf.mxu1 }
 0xb50   :  { %v8690_v27 = vadd.f32 %v8605_v37, %v16979_v58  ;;  %v16983_v58 = vld [vmem:[#allocation65_spill] sm:$0xff] }
 0xb51   :  { %v9127_v23 = vpop.f32.mrf.mxu2 }
 0xb52   :  { %10573 = vmatmul.bf16.gmra.mxu1 %v10464_v33  ;;  %v16121_v47 = vadd.f32 %v9127_v23, %v8690_v27  ;;  %v10465_v33 = vpack.c.bf16 %v10340_v1, %v10339_v52  ;;  %v10341_v52 = vld [vmem:[#allocation3 + $0x7a] sm:$0xff]  ;;  %v10342_v1 = vld [vmem:[#allocation3 + $0x82] sm:$0xff] }
 0xb54   :  { %16980 = vst [vmem:[#allocation46_spill] sm:$0xff] %v16121_v47  ;;  %v16985_v47 = vld [vmem:[#allocation37_spill] sm:$0xff] }
 0xb57   :  { %v8607_v5 = vpop.f32.mrf.mxu1 }
 0xb58   :  { %v8691_v36 = vadd.f32 %v8607_v5, %v16981_v62 }
 0xb59   :  { %v9129_v2 = vpop.f32.mrf.mxu2 }
 0xb5a   :  { %v16130_v14 = vadd.f32 %v9129_v2, %v8691_v36  ;;  %v12364_v36 = vld [vmem:[%s16525_s0 + $0x61] sm:$0xff] }
 0xb5c   :  { %16982 = vst [vmem:[#allocation73_spill] sm:$0xff] %v16130_v14 }
 0xb5e   :  { %11035 = vmatmul.bf16.gmra.mxu2 %v10923_v40  ;;  %v10924_v40 = vpack.c.bf16 %v12365_v41, %v12364_v36  ;;  %v12367_v36 = vld [vmem:[%s16525_s0 + $0x81] sm:$0xff] }
 0xb5f   :  { %v8610_v37 = vpop.f32.mrf.mxu1 }
 0xb60   :  { %v8692_v27 = vadd.f32 %v8610_v37, %v16983_v58  ;;  %v16987_v58 = vld [vmem:[#allocation38_spill] sm:$0xff] }
 0xb61   :  { %v9132_v23 = vpop.f32.mrf.mxu2 }
 0xb62   :  { %10578 = vmatmul.bf16.gmra.mxu1 %v10465_v33  ;;  %v16133_v5 = vadd.f32 %v9132_v23, %v8692_v27  ;;  %v10466_v33 = vpack.c.bf16 %v10342_v1, %v10341_v52  ;;  %v10343_v52 = vld [vmem:[#allocation3 + $0x92] sm:$0xff]  ;;  %v10344_v1 = vld [vmem:[#allocation3 + $0x9a] sm:$0xff] }
 0xb64   :  { %16984 = vst [vmem:[#allocation12_spill] sm:$0xff] %v16133_v5  ;;  %v16989_v5 = vld [vmem:[#allocation39_spill] sm:$0xff] }
 0xb67   :  { %v8612_v62 = vpop.f32.mrf.mxu1 }
 0xb68   :  { %v8693_v38 = vadd.f32 %v8612_v62, %v16985_v47 }
 0xb69   :  { %v9134_v6 = vpop.f32.mrf.mxu2 }
 0xb6a   :  { %v16142_v2 = vadd.f32 %v9134_v6, %v8693_v38  ;;  %v12366_v38 = vld [vmem:[%s16525_s0 + $0x79] sm:$0xff] }
 0xb6c   :  { %16986 = vst [vmem:[#allocation13_spill] sm:$0xff] %v16142_v2 }
 0xb6e   :  { %11040 = vmatmul.bf16.gmra.mxu2 %v10924_v40  ;;  %v10925_v40 = vpack.c.bf16 %v12367_v36, %v12366_v38  ;;  %v12369_v38 = vld [vmem:[%s16525_s0 + $0x99] sm:$0xff] }
 0xb6f   :  { %v8615_v37 = vpop.f32.mrf.mxu1 }
 0xb70   :  { %v8694_v27 = vadd.f32 %v8615_v37, %v16987_v58  ;;  %v16991_v58 = vld [vmem:[#allocation40_spill] sm:$0xff] }
 0xb71   :  { %v9137_v47 = vpop.f32.mrf.mxu2 }
 0xb72   :  { %10583 = vmatmul.bf16.gmra.mxu1 %v10466_v33  ;;  %v16145_v23 = vadd.f32 %v9137_v47, %v8694_v27  ;;  %v10467_v33 = vpack.c.bf16 %v10344_v1, %v10343_v52  ;;  %v10345_v52 = vld [vmem:[#allocation3 + $0xaa] sm:$0xff]  ;;  %v10346_v1 = vld [vmem:[#allocation3 + $0xb2] sm:$0xff] }
 0xb74   :  { %16988 = vst [vmem:[#allocation14_spill] sm:$0xff] %v16145_v23  ;;  %v16993_v23 = vld [vmem:[#allocation41_spill] sm:$0xff] }
 0xb77   :  { %v8617_v62 = vpop.f32.mrf.mxu1 }
 0xb78   :  { %v8695_v14 = vadd.f32 %v8617_v62, %v16989_v5 }
 0xb79   :  { %v9139_v41 = vpop.f32.mrf.mxu2 }
 0xb7a   :  { %v16154_v6 = vadd.f32 %v9139_v41, %v8695_v14  ;;  %v12368_v14 = vld [vmem:[%s16525_s0 + $0x91] sm:$0xff] }
 0xb7c   :  { %16990 = vst [vmem:[#allocation15_spill] sm:$0xff] %v16154_v6 }
 0xb7e   :  { %11045 = vmatmul.bf16.gmra.mxu2 %v10925_v40  ;;  %v10926_v40 = vpack.c.bf16 %v12369_v38, %v12368_v14  ;;  %v12371_v14 = vld [vmem:[%s16525_s0 + $0xb1] sm:$0xff] }
 0xb7f   :  { %v8620_v37 = vpop.f32.mrf.mxu1 }
 0xb80   :  { %v8696_v27 = vadd.f32 %v8620_v37, %v16991_v58  ;;  %v16994_v58 = vld [vmem:[#allocation42_spill] sm:$0xff] }
 0xb81   :  { %v9142_v5 = vpop.f32.mrf.mxu2 }
 0xb82   :  { %10588 = vmatmul.bf16.gmra.mxu1 %v10467_v33  ;;  %v16157_v47 = vadd.f32 %v9142_v5, %v8696_v27  ;;  %v10468_v33 = vpack.c.bf16 %v10346_v1, %v10345_v52  ;;  %v10347_v52 = vld [vmem:[#allocation3 + $0xc2] sm:$0xff]  ;;  %v10348_v1 = vld [vmem:[#allocation3 + $0xca] sm:$0xff] }
 0xb84   :  { %16992 = vst [vmem:[#allocation16_spill] sm:$0xff] %v16157_v47  ;;  %v16995_v47 = vld [vmem:[#allocation43_spill] sm:$0xff] }
 0xb87   :  { %v8622_v62 = vpop.f32.mrf.mxu1 }
 0xb88   :  { %v8697_v2 = vadd.f32 %v8622_v62, %v16993_v23 }
 0xb89   :  { %v9144_v36 = vpop.f32.mrf.mxu2 }
 0xb8a   :  { %v16166_v41 = vadd.f32 %v9144_v36, %v8697_v2  ;;  %v12370_v2 = vld [vmem:[%s16525_s0 + $0xa9] sm:$0xff] }
 0xb8e   :  { %11050 = vmatmul.bf16.gmra.mxu2 %v10926_v40  ;;  %v10927_v40 = vpack.c.bf16 %v12371_v14, %v12370_v2  ;;  %v12373_v2 = vld [vmem:[%s16525_s0 + $0xc9] sm:$0xff] }
 0xb8f   :  { %v8625_v37 = vpop.f32.mrf.mxu1 }
 0xb90   :  { %v8698_v27 = vadd.f32 %v8625_v37, %v16994_v58 }
 0xb91   :  { %v9147_v23 = vpop.f32.mrf.mxu2 }
 0xb92   :  { %10593 = vmatmul.bf16.gmra.mxu1 %v10468_v33  ;;  %v16169_v5 = vadd.f32 %v9147_v23, %v8698_v27  ;;  %v10469_v27 = vpack.c.bf16 %v10348_v1, %v10347_v52  ;;  %v10350_v52 = vld [vmem:[#allocation3 + $0xe2] sm:$0xff] }
 0xb97   :  { %v8627_v62 = vpop.f32.mrf.mxu1 }
 0xb98   :  { %v8699_v6 = vadd.f32 %v8627_v62, %v16995_v47 }
 0xb99   :  { %v9149_v38 = vpop.f32.mrf.mxu2 }
 0xb9a   :  { %v16178_v36 = vadd.f32 %v9149_v38, %v8699_v6  ;;  %v12372_v6 = vld [vmem:[%s16525_s0 + $0xc1] sm:$0xff] }
 0xb9b   :  { %v10928_v1 = vpack.c.bf16 %v12373_v2, %v12372_v6  ;;  %v12375_v6 = vld [vmem:[%s16525_s0 + $0xe1] sm:$0xff] }
 0xb9e   :  { %11055 = vmatmul.bf16.gmra.mxu2 %v10927_v40 }
 0xb9f   :  { %v8630_v37 = vpop.f32.mrf.mxu1 }
 0xba0   :  { %v8700_v58 = vadd.f32 %v8630_v37, %v15916_v7  ;;  %v10349_v7 = vld [vmem:[#allocation3 + $0xda] sm:$0xff] }
 0xba1   :  { %v9152_v47 = vpop.f32.mrf.mxu2 }
 0xba2   :  { %10598 = vmatmul.bf16.gmra.mxu1 %v10469_v27  ;;  %v16181_v33 = vadd.f32 %v9152_v47, %v8700_v58  ;;  %v10470_v58 = vpack.c.bf16 %v10350_v52, %v10349_v7  ;;  %v10352_v7 = vld [vmem:[#allocation3 + $0xfa] sm:$0xff] }
 0xba7   :  { %v8632_v23 = vpop.f32.mrf.mxu1 }
 0xba8   :  { %v8701_v62 = vadd.f32 %v8632_v23, %v15918_v30 }
 0xba9   :  { %v9154_v14 = vpop.f32.mrf.mxu2 }
 0xbaa   :  { %v16190_v38 = vadd.f32 %v9154_v14, %v8701_v62  ;;  %v12374_v62 = vld [vmem:[%s16525_s0 + $0xd9] sm:$0xff] }
 0xbab   :  { %v10929_v52 = vpack.c.bf16 %v12375_v6, %v12374_v62  ;;  %v12376_v62 = vld [vmem:[%s16525_s0 + $0xf1] sm:$0xff] }
 0xbae   :  { %11060 = vmatmul.bf16.gmra.mxu2 %v10928_v1 }
 0xbaf   :  { %v8635_v40 = vpop.f32.mrf.mxu1 }
 0xbb0   :  { %v8702_v37 = vadd.f32 %v8635_v40, %v15921_v49  ;;  %v10351_v49 = vld [vmem:[#allocation3 + $0xf2] sm:$0xff] }
 0xbb1   :  { %v9157_v30 = vpop.f32.mrf.mxu2  ;;  %v10471_v40 = vpack.c.bf16 %v10352_v7, %v10351_v49  ;;  %v10353_v7 = vld [vmem:[#allocation3 + $0x10a] sm:$0xff] }
 0xbb2   :  { %10603 = vmatmul.bf16.gmra.mxu1 %v10470_v58  ;;  %v16193_v27 = vadd.f32 %v9157_v30, %v8702_v37 }
 0xbb7   :  { %v8637_v47 = vpop.f32.mrf.mxu1 }
 0xbb8   :  { %v8703_v23 = vadd.f32 %v8637_v47, %v15924_v24  ;;  %v16208_v24 = vld [vmem:[%s16528_s3 + $0x2] ss:$0 sm:$0xff] }
 0xbb9   :  { %v9159_v2 = vpop.f32.mrf.mxu2 }
 0xbba   :  { %v16202_v14 = vadd.f32 %v9159_v2, %v8703_v23 }
 0xbbc   :  { %16996 = vst [vmem:[#allocation17_spill] sm:$0xff] %v16202_v14 }
 0xbbe   :  { %11065 = vmatmul.bf16.gmra.mxu2 %v10929_v52  ;;  %v10354_v52 = vld [vmem:[#allocation3 + $0x112] sm:$0xff] }
 0xbbf   :  { %v10569_v1 = vpop.f32.mrf.mxu1 }
 0xbc0   :  { %v10729_v37 = vadd.f32 %v10569_v1, %v15927_v59  ;;  %v12377_v59 = vld [vmem:[%s16525_s0 + $0xf9] sm:$0xff] }
 0xbc1   :  { %v11026_v58 = vpop.f32.mrf.mxu2  ;;  %v10930_v1 = vpack.c.bf16 %v12377_v59, %v12376_v62  ;;  %v12378_v62 = vld [vmem:[%s16525_s0 + $0x109] sm:$0xff]  ;;  %v12379_v59 = vld [vmem:[%s16525_s0 + $0x111] sm:$0xff] }
 0xbc2   :  { %10608 = vmatmul.bf16.gmra.mxu1 %v10471_v40  ;;  %v11250_v30 = vadd.f32 %v11026_v58, %v10729_v37  ;;  %v10472_v58 = vpack.c.bf16 %v10354_v52, %v10353_v7  ;;  %v10356_v7 = vld [vmem:[#allocation3 + $0x12a] sm:$0xff]  ;;  %v10931_v52 = vpack.c.bf16 %v12379_v59, %v12378_v62  ;;  %v10357_v59 = vld [vmem:[#allocation3 + $0x13a] sm:$0xff] }
 0xbc4   :  { %v11316_v47 = vadd.f32 %v16208_v24, %v11250_v30 }
 0xbc6   :  { %11380 = vst [vmem:[#allocation5] sm:$0xff] %v11316_v47 }
 0xbc7   :  { %v10571_v23 = vpop.f32.mrf.mxu1 }
 0xbc8   :  { %v10730_v2 = vadd.f32 %v10571_v23, %v15930_v0 }
 0xbc9   :  { %v11028_v6 = vpop.f32.mrf.mxu2 }
 0xbca   :  { %v11251_v49 = vadd.f32 %v11028_v6, %v10730_v2 }
 0xbcc   :  { %v11317_v40 = vadd.f32 %v16208_v24, %v11251_v49  ;;  %v10355_v49 = vld [vmem:[#allocation3 + $0x122] sm:$0xff] }
 0xbce   :  { %11381 = vst [vmem:[#allocation5 + $0x8] sm:$0xff] %v11317_v40  ;;  %11070 = vmatmul.bf16.gmra.mxu2 %v10930_v1 }
 0xbcf   :  { %v10574_v37 = vpop.f32.mrf.mxu1 }
 0xbd0   :  { %v10731_v0 = vadd.f32 %v10574_v37, %v15933_v4  ;;  %v10473_v37 = vpack.c.bf16 %v10356_v7, %v10355_v49 }
 0xbd1   :  { %v11031_v30 = vpop.f32.mrf.mxu2 }
 0xbd2   :  { %10613 = vmatmul.bf16.gmra.mxu1 %v10472_v58  ;;  %v11252_v47 = vadd.f32 %v11031_v30, %v10731_v0 }
 0xbd4   :  { %v11318_v23 = vadd.f32 %v16208_v24, %v11252_v47 }
 0xbd6   :  { %11382 = vst [vmem:[#allocation5 + $0x10] sm:$0xff] %v11318_v23  ;;  %v12380_v23 = vld [vmem:[%s16525_s0 + $0x121] sm:$0xff] }
 0xbd7   :  { %v10576_v14 = vpop.f32.mrf.mxu1 }
 0xbd8   :  { %v10732_v2 = vadd.f32 %v10576_v14, %v15942_v34 }
 0xbd9   :  { %v11033_v6 = vpop.f32.mrf.mxu2 }
 0xbda   :  { %v11253_v4 = vadd.f32 %v11033_v6, %v10732_v2  ;;  %v12381_v2 = vld [vmem:[%s16525_s0 + $0x129] sm:$0xff] }
 0xbdb   :  { %v10358_v6 = vld [vmem:[#allocation3 + $0x142] sm:$0xff] }
 0xbdc   :  { %v11319_v1 = vadd.f32 %v16208_v24, %v11253_v4  ;;  %v10932_v4 = vpack.c.bf16 %v12381_v2, %v12380_v23  ;;  %v10360_v23 = vld [vmem:[#allocation3 + $0x15a] sm:$0xff] }
 0xbde   :  { %11383 = vst [vmem:[#allocation5 + $0x18] sm:$0xff] %v11319_v1  ;;  %11075 = vmatmul.bf16.gmra.mxu2 %v10931_v52  ;;  %v10474_v52 = vpack.c.bf16 %v10358_v6, %v10357_v59 }
 0xbdf   :  { %v10579_v40 = vpop.f32.mrf.mxu1 }
 0xbe0   :  { %v10733_v34 = vadd.f32 %v10579_v40, %v15945_v43 }
 0xbe1   :  { %v11036_v14 = vpop.f32.mrf.mxu2 }
 0xbe2   :  { %10618 = vmatmul.bf16.gmra.mxu1 %v10473_v37  ;;  %v11254_v58 = vadd.f32 %v11036_v14, %v10733_v34 }
 0xbe4   :  { %v11320_v0 = vadd.f32 %v16208_v24, %v11254_v58  ;;  %v12382_v58 = vld [vmem:[%s16525_s0 + $0x139] sm:$0xff] }
 0xbe6   :  { %11384 = vst [vmem:[#allocation5 + $0x20] sm:$0xff] %v11320_v0  ;;  %v12383_v0 = vld [vmem:[%s16525_s0 + $0x141] sm:$0xff] }
 0xbe7   :  { %v10581_v30 = vpop.f32.mrf.mxu1  ;;  %v10933_v2 = vpack.c.bf16 %v12383_v0, %v12382_v58 }
 0xbe8   :  { %v10734_v47 = vadd.f32 %v10581_v30, %v15948_v63 }
 0xbe9   :  { %v11038_v62 = vpop.f32.mrf.mxu2 }
 0xbea   :  { %v11255_v43 = vadd.f32 %v11038_v62, %v10734_v47  ;;  %v10359_v47 = vld [vmem:[#allocation3 + $0x152] sm:$0xff] }
 0xbeb   :  { %v10475_v59 = vpack.c.bf16 %v10360_v23, %v10359_v47 }
 0xbec   :  { %v11321_v49 = vadd.f32 %v16208_v24, %v11255_v43 }
 0xbee   :  { %11385 = vst [vmem:[#allocation5 + $0x28] sm:$0xff] %v11321_v49  ;;  %11080 = vmatmul.bf16.gmra.mxu2 %v10932_v4 }
 0xbef   :  { %v10584_v7 = vpop.f32.mrf.mxu1 }
 0xbf0   :  { %v10735_v63 = vadd.f32 %v10584_v7, %v15951_v9 }
 0xbf1   :  { %v11041_v1 = vpop.f32.mrf.mxu2 }
 0xbf2   :  { %10623 = vmatmul.bf16.gmra.mxu1 %v10474_v52  ;;  %v11256_v40 = vadd.f32 %v11041_v1, %v10735_v63  ;;  %v12384_v63 = vld [vmem:[%s16525_s0 + $0x151] sm:$0xff]  ;;  %v12385_v1 = vld [vmem:[%s16525_s0 + $0x159] sm:$0xff] }
 0xbf4   :  { %v11322_v37 = vadd.f32 %v16208_v24, %v11256_v40 }
 0xbf6   :  { %11386 = vst [vmem:[#allocation5 + $0x30] sm:$0xff] %v11322_v37  ;;  %v10361_v37 = vld [vmem:[#allocation3 + $0x16a] sm:$0xff] }
 0xbf7   :  { %v10586_v34 = vpop.f32.mrf.mxu1 }
 0xbf8   :  { %v10736_v14 = vadd.f32 %v10586_v34, %v15954_v39  ;;  %v10362_v34 = vld [vmem:[#allocation3 + $0x172] sm:$0xff] }
 0xbf9   :  { %v11043_v30 = vpop.f32.mrf.mxu2 }
 0xbfa   :  { %v11257_v9 = vadd.f32 %v11043_v30, %v10736_v14  ;;  %v10934_v14 = vpack.c.bf16 %v12385_v1, %v12384_v63  ;;  %v10476_v30 = vpack.c.bf16 %v10362_v34, %v10361_v37 }
 0xbfc   :  { %v11323_v62 = vadd.f32 %v16208_v24, %v11257_v9 }
 0xbfe   :  { %11387 = vst [vmem:[#allocation5 + $0x38] sm:$0xff] %v11323_v62  ;;  %11085 = vmatmul.bf16.gmra.mxu2 %v10933_v2  ;;  %v16997_v62 = vld [vmem:[#allocation44_spill] sm:$0xff] }
 0xbff   :  { %v10589_v43 = vpop.f32.mrf.mxu1 }
 0xc00   :  { %v10737_v39 = vadd.f32 %v10589_v43, %v15957_v3 }
 0xc01   :  { %v11046_v6 = vpop.f32.mrf.mxu2 }
 0xc02   :  { %10628 = vmatmul.bf16.gmra.mxu1 %v10475_v59  ;;  %v11258_v4 = vadd.f32 %v11046_v6, %v10737_v39  ;;  %v12386_v59 = vld [vmem:[%s16525_s0 + $0x169] sm:$0xff]  ;;  %v12387_v39 = vld [vmem:[%s16525_s0 + $0x171] sm:$0xff] }
 0xc04   :  { %v11324_v49 = vadd.f32 %v16208_v24, %v11258_v4  ;;  %v10363_v4 = vld [vmem:[#allocation3 + $0x182] sm:$0xff] }
 0xc06   :  { %11388 = vst [vmem:[#allocation5 + $0x40] sm:$0xff] %v11324_v49  ;;  %v10364_v49 = vld [vmem:[#allocation3 + $0x18a] sm:$0xff] }
 0xc07   :  { %v10591_v7 = vpop.f32.mrf.mxu1  ;;  %v10477_v1 = vpack.c.bf16 %v10364_v49, %v10363_v4 }
 0xc08   :  { %v10738_v52 = vadd.f32 %v10591_v7, %v15960_v56  ;;  %v10935_v7 = vpack.c.bf16 %v12387_v39, %v12386_v59 }
 0xc09   :  { %v11048_v40 = vpop.f32.mrf.mxu2 }
 0xc0a   :  { %v11259_v3 = vadd.f32 %v11048_v40, %v10738_v52  ;;  %v16998_v40 = vld [vmem:[#allocation45_spill] sm:$0xff] }
 0xc0c   :  { %v11325_v58 = vadd.f32 %v16208_v24, %v11259_v3 }
 0xc0e   :  { %11389 = vst [vmem:[#allocation5 + $0x48] sm:$0xff] %v11325_v58  ;;  %11090 = vmatmul.bf16.gmra.mxu2 %v10934_v14 }
 0xc0f   :  { %v10594_v0 = vpop.f32.mrf.mxu1 }
 0xc10   :  { %v10739_v56 = vadd.f32 %v10594_v0, %v15963_v45  ;;  %v16999_v0 = vld [vmem:[#allocation10_spill] sm:$0xff] }
 0xc11   :  { %v11051_v9 = vpop.f32.mrf.mxu2 }
 0xc12   :  { %10633 = vmatmul.bf16.gmra.mxu1 %v10476_v30  ;;  %v11260_v47 = vadd.f32 %v11051_v9, %v10739_v56  ;;  %v12388_v56 = vld [vmem:[%s16525_s0 + $0x181] sm:$0xff]  ;;  %v12389_v9 = vld [vmem:[%s16525_s0 + $0x189] sm:$0xff] }
 0xc14   :  { %v11326_v23 = vadd.f32 %v16208_v24, %v11260_v47  ;;  %v10365_v47 = vld [vmem:[#allocation3 + $0x19a] sm:$0xff] }
 0xc16   :  { %11390 = vst [vmem:[#allocation5 + $0x50] sm:$0xff] %v11326_v23  ;;  %v10366_v23 = vld [vmem:[#allocation3 + $0x1a2] sm:$0xff] }
 0xc17   :  { %v10596_v2 = vpop.f32.mrf.mxu1  ;;  %v10478_v59 = vpack.c.bf16 %v10366_v23, %v10365_v47 }
 0xc18   :  { %v10740_v43 = vadd.f32 %v10596_v2, %v16997_v62 }
 0xc19   :  { %v11053_v6 = vpop.f32.mrf.mxu2 }
 0xc1a   :  { %v11261_v45 = vadd.f32 %v11053_v6, %v10740_v43  ;;  %v10936_v43 = vpack.c.bf16 %v12389_v9, %v12388_v56 }
 0xc1c   :  { %v11327_v52 = vadd.f32 %v16208_v24, %v11261_v45 }
 0xc1e   :  { %11391 = vst [vmem:[#allocation5 + $0x58] sm:$0xff] %v11327_v52  ;;  %11095 = vmatmul.bf16.gmra.mxu2 %v10935_v7 }
 0xc1f   :  { %v10599_v63 = vpop.f32.mrf.mxu1 }
 0xc20   :  { %v10741_v3 = vadd.f32 %v10599_v63, %v16998_v40  ;;  %v12391_v40 = vld [vmem:[%s16525_s0 + $0x1d1] sm:$0xff] }
 0xc21   :  { %v11056_v37 = vpop.f32.mrf.mxu2 }
 0xc22   :  { %10638 = vmatmul.bf16.gmra.mxu1 %v10477_v1  ;;  %v11262_v34 = vadd.f32 %v11056_v37, %v10741_v3  ;;  %v12390_v1 = vld [vmem:[%s16525_s0 + $0x1c9] sm:$0xff] }
 0xc23   :  { %v10367_v37 = vld [vmem:[#allocation3 + $0x1e2] sm:$0xff] }
 0xc24   :  { %v11328_v14 = vadd.f32 %v16208_v24, %v11262_v34  ;;  %v10368_v34 = vld [vmem:[#allocation3 + $0x1ea] sm:$0xff] }
 0xc26   :  { %11392 = vst [vmem:[#allocation5 + $0x60] sm:$0xff] %v11328_v14  ;;  %v10937_v14 = vpack.c.bf16 %v12391_v40, %v12390_v1 }
 0xc27   :  { %v10601_v58 = vpop.f32.mrf.mxu1 }
 0xc28   :  { %v10742_v30 = vadd.f32 %v10601_v58, %v16999_v0 }
 0xc29   :  { %v11058_v2 = vpop.f32.mrf.mxu2 }
 0xc2a   :  { %v11263_v62 = vadd.f32 %v11058_v2, %v10742_v30  ;;  %v10479_v30 = vpack.c.bf16 %v10368_v34, %v10367_v37  ;;  %v12395_v37 = vld [vmem:[%s16525_s0 + $0x201] sm:$0xff] }
 0xc2c   :  { %v11329_v39 = vadd.f32 %v16208_v24, %v11263_v62  ;;  %v12392_v62 = vld [vmem:[%s16525_s0 + $0x1e1] sm:$0xff] }
 0xc2e   :  { %11393 = vst [vmem:[#allocation5 + $0x68] sm:$0xff] %v11329_v39  ;;  %11100 = vmatmul.bf16.gmra.mxu2 %v10936_v43  ;;  %v12393_v43 = vld [vmem:[%s16525_s0 + $0x1e9] sm:$0xff]  ;;  %v10369_v39 = vld [vmem:[#allocation3 + $0x1fa] sm:$0xff] }
 0xc2f   :  { %v10604_v6 = vpop.f32.mrf.mxu1 }
 0xc30   :  { %v10743_v45 = vadd.f32 %v10604_v6, %v15984_v15  ;;  %v10370_v6 = vld [vmem:[#allocation3 + $0x202] sm:$0xff] }
 0xc31   :  { %v11061_v4 = vpop.f32.mrf.mxu2 }
 0xc32   :  { %10643 = vmatmul.bf16.gmra.mxu1 %v10478_v59  ;;  %v11264_v49 = vadd.f32 %v11061_v4, %v10743_v45  ;;  %v10938_v45 = vpack.c.bf16 %v12393_v43, %v12392_v62  ;;  %v12396_v43 = vld [vmem:[%s16525_s0 + $0x211] sm:$0xff] }
 0xc34   :  { %v11330_v7 = vadd.f32 %v16208_v24, %v11264_v49 }
 0xc36   :  { %11394 = vst [vmem:[#allocation5 + $0x70] sm:$0xff] %v11330_v7  ;;  %v10480_v7 = vpack.c.bf16 %v10370_v6, %v10369_v39  ;;  %v10373_v39 = vld [vmem:[#allocation3 + $0x22a] sm:$0xff]  ;;  %v10374_v6 = vld [vmem:[#allocation3 + $0x232] sm:$0xff] }
 0xc37   :  { %v10606_v52 = vpop.f32.mrf.mxu1 }
 0xc38   :  { %v10744_v63 = vadd.f32 %v10606_v52, %v15987_v50 }
 0xc39   :  { %v11063_v3 = vpop.f32.mrf.mxu2 }
 0xc3a   :  { %v11265_v15 = vadd.f32 %v11063_v3, %v10744_v63 }
 0xc3c   :  { %v11331_v58 = vadd.f32 %v16208_v24, %v11265_v15  ;;  %v12394_v15 = vld [vmem:[%s16525_s0 + $0x1f9] sm:$0xff] }
 0xc3e   :  { %11395 = vst [vmem:[#allocation5 + $0x78] sm:$0xff] %v11331_v58  ;;  %11105 = vmatmul.bf16.gmra.mxu2 %v10937_v14  ;;  %v10371_v14 = vld [vmem:[#allocation3 + $0x212] sm:$0xff]  ;;  %v10372_v58 = vld [vmem:[#allocation3 + $0x21a] sm:$0xff] }
 0xc3f   :  { %v10609_v0 = vpop.f32.mrf.mxu1 }
 0xc40   :  { %v10745_v50 = vadd.f32 %v10609_v0, %v15990_v48  ;;  %v10939_v0 = vpack.c.bf16 %v12395_v37, %v12394_v15  ;;  %v12399_v15 = vld [vmem:[%s16525_s0 + $0x231] sm:$0xff] }
 0xc41   :  { %v11066_v56 = vpop.f32.mrf.mxu2 }
 0xc42   :  { %10648 = vmatmul.bf16.gmra.mxu1 %v10479_v30  ;;  %v11266_v9 = vadd.f32 %v11066_v56, %v10745_v50  ;;  %v10481_v56 = vpack.c.bf16 %v10372_v58, %v10371_v14 }
 0xc44   :  { %v11332_v47 = vadd.f32 %v16208_v24, %v11266_v9 }
 0xc46   :  { %11396 = vst [vmem:[#allocation5 + $0x80] sm:$0xff] %v11332_v47 }
 0xc47   :  { %v10611_v23 = vpop.f32.mrf.mxu1 }
 0xc48   :  { %v10746_v2 = vadd.f32 %v10611_v23, %v15993_v44 }
 0xc49   :  { %v11068_v59 = vpop.f32.mrf.mxu2 }
 0xc4a   :  { %v11267_v48 = vadd.f32 %v11068_v59, %v10746_v2  ;;  %v12397_v59 = vld [vmem:[%s16525_s0 + $0x219] sm:$0xff] }
 0xc4c   :  { %v11333_v4 = vadd.f32 %v16208_v24, %v11267_v48 }
 0xc4e   :  { %11397 = vst [vmem:[#allocation5 + $0x88] sm:$0xff] %v11333_v4  ;;  %11110 = vmatmul.bf16.gmra.mxu2 %v10938_v45  ;;  %v10940_v45 = vpack.c.bf16 %v12397_v59, %v12396_v43  ;;  %v10377_v43 = vld [vmem:[#allocation3 + $0x25a] sm:$0xff]  ;;  %v10378_v59 = vld [vmem:[#allocation3 + $0x262] sm:$0xff] }
 0xc4f   :  { %v10614_v49 = vpop.f32.mrf.mxu1 }
 0xc50   :  { %v10747_v44 = vadd.f32 %v10614_v49, %v15996_v28 }
 0xc51   :  { %v11071_v52 = vpop.f32.mrf.mxu2 }
 0xc52   :  { %10653 = vmatmul.bf16.gmra.mxu1 %v10480_v7  ;;  %v11268_v63 = vadd.f32 %v11071_v52, %v10747_v44  ;;  %v10482_v7 = vpack.c.bf16 %v10374_v6, %v10373_v39  ;;  %v10484_v6 = vpack.c.bf16 %v10378_v59, %v10377_v43 }
 0xc54   :  { %v11334_v1 = vadd.f32 %v16208_v24, %v11268_v63 }
 0xc56   :  { %11398 = vst [vmem:[#allocation5 + $0x90] sm:$0xff] %v11334_v1 }
 0xc57   :  { %v10616_v40 = vpop.f32.mrf.mxu1 }
 0xc58   :  { %v10748_v3 = vadd.f32 %v10616_v40, %v16005_v61 }
 0xc59   :  { %v11073_v34 = vpop.f32.mrf.mxu2 }
 0xc5a   :  { %v11269_v28 = vadd.f32 %v11073_v34, %v10748_v3  ;;  %v12398_v3 = vld [vmem:[%s16525_s0 + $0x229] sm:$0xff] }
 0xc5b   :  { %v10375_v34 = vld [vmem:[#allocation3 + $0x242] sm:$0xff]  ;;  %v10941_v14 = vpack.c.bf16 %v12399_v15, %v12398_v3 }
 0xc5c   :  { %v11335_v30 = vadd.f32 %v16208_v24, %v11269_v28  ;;  %v10376_v28 = vld [vmem:[#allocation3 + $0x24a] sm:$0xff] }
 0xc5e   :  { %11399 = vst [vmem:[#allocation5 + $0x98] sm:$0xff] %v11335_v30  ;;  %11115 = vmatmul.bf16.gmra.mxu2 %v10939_v0  ;;  %v10483_v30 = vpack.c.bf16 %v10376_v28, %v10375_v34 }
 0xc5f   :  { %v10619_v50 = vpop.f32.mrf.mxu1 }
 0xc60   :  { %v10749_v61 = vadd.f32 %v10619_v50, %v16008_v19 }
 0xc61   :  { %v11076_v9 = vpop.f32.mrf.mxu2 }
 0xc62   :  { %10658 = vmatmul.bf16.gmra.mxu1 %v10481_v56  ;;  %v11270_v47 = vadd.f32 %v11076_v9, %v10749_v61 }
 0xc64   :  { %v11336_v23 = vadd.f32 %v16208_v24, %v11270_v47 }
 0xc66   :  { %11400 = vst [vmem:[#allocation5 + $0xa0] sm:$0xff] %v11336_v23  ;;  %v12400_v23 = vld [vmem:[%s16525_s0 + $0x241] sm:$0xff] }
 0xc67   :  { %v10621_v2 = vpop.f32.mrf.mxu1 }
 0xc68   :  { %v10750_v62 = vadd.f32 %v10621_v2, %v16011_v8  ;;  %v12401_v2 = vld [vmem:[%s16525_s0 + $0x249] sm:$0xff] }
 0xc69   :  { %v11078_v48 = vpop.f32.mrf.mxu2 }
 0xc6a   :  { %v11271_v19 = vadd.f32 %v11078_v48, %v10750_v62  ;;  %v10942_v48 = vpack.c.bf16 %v12401_v2, %v12400_v23 }
 0xc6c   :  { %v11337_v4 = vadd.f32 %v16208_v24, %v11271_v19 }
 0xc6e   :  { %11401 = vst [vmem:[#allocation5 + $0xa8] sm:$0xff] %v11337_v4  ;;  %11120 = vmatmul.bf16.gmra.mxu2 %v10940_v45 }
 0xc6f   :  { %v10624_v49 = vpop.f32.mrf.mxu1 }
 0xc70   :  { %v10751_v8 = vadd.f32 %v10624_v49, %v16014_v54 }
 0xc71   :  { %v11081_v44 = vpop.f32.mrf.mxu2 }
 0xc72   :  { %10663 = vmatmul.bf16.gmra.mxu1 %v10482_v7  ;;  %v11272_v52 = vadd.f32 %v11081_v44, %v10751_v8  ;;  %v12402_v44 = vld [vmem:[%s16525_s0 + $0x259] sm:$0xff] }
 0xc74   :  { %v11338_v63 = vadd.f32 %v16208_v24, %v11272_v52  ;;  %v12403_v52 = vld [vmem:[%s16525_s0 + $0x261] sm:$0xff] }
 0xc75   :  { %v10943_v3 = vpack.c.bf16 %v12403_v52, %v12402_v44 }
 0xc76   :  { %11402 = vst [vmem:[#allocation5 + $0xb0] sm:$0xff] %v11338_v63 }
 0xc77   :  { %v10626_v1 = vpop.f32.mrf.mxu1 }
 0xc78   :  { %v10752_v40 = vadd.f32 %v10626_v1, %v16017_v51  ;;  %v10379_v1 = vld [vmem:[#allocation3 + $0x272] sm:$0xff] }
 0xc79   :  { %v11083_v37 = vpop.f32.mrf.mxu2 }
 0xc7a   :  { %v11273_v54 = vadd.f32 %v11083_v37, %v10752_v40  ;;  %v10380_v40 = vld [vmem:[#allocation3 + $0x27a] sm:$0xff] }
 0xc7c   :  { %v11339_v58 = vadd.f32 %v16208_v24, %v11273_v54  ;;  %v10485_v54 = vpack.c.bf16 %v10380_v40, %v10379_v1  ;;  %v12408_v40 = vld [vmem:[%s16525_s0 + $0x2a1] sm:$0xff] }
 0xc7e   :  { %11403 = vst [vmem:[#allocation5 + $0xb8] sm:$0xff] %v11339_v58  ;;  %11125 = vmatmul.bf16.gmra.mxu2 %v10941_v14 }
 0xc7f   :  { %v10629_v0 = vpop.f32.mrf.mxu1 }
 0xc80   :  { %v10753_v51 = vadd.f32 %v10629_v0, %v16020_v53 }
 0xc81   :  { %v11086_v50 = vpop.f32.mrf.mxu2 }
 0xc82   :  { %10668 = vmatmul.bf16.gmra.mxu1 %v10483_v30  ;;  %v11274_v56 = vadd.f32 %v11086_v50, %v10753_v51  ;;  %v12404_v30 = vld [vmem:[%s16525_s0 + $0x271] sm:$0xff]  ;;  %v12405_v51 = vld [vmem:[%s16525_s0 + $0x279] sm:$0xff] }
 0xc84   :  { %v11340_v61 = vadd.f32 %v16208_v24, %v11274_v56  ;;  %v10381_v56 = vld [vmem:[#allocation3 + $0x28a] sm:$0xff] }
 0xc86   :  { %11404 = vst [vmem:[#allocation5 + $0xc0] sm:$0xff] %v11340_v61  ;;  %v10382_v61 = vld [vmem:[#allocation3 + $0x292] sm:$0xff] }
 0xc87   :  { %v10631_v9 = vpop.f32.mrf.mxu1  ;;  %v10486_v2 = vpack.c.bf16 %v10382_v61, %v10381_v56 }
 0xc88   :  { %v10754_v47 = vadd.f32 %v10631_v9, %v16023_v11  ;;  %v10944_v9 = vpack.c.bf16 %v12405_v51, %v12404_v30 }
 0xc89   :  { %v11088_v62 = vpop.f32.mrf.mxu2 }
 0xc8a   :  { %v11275_v53 = vadd.f32 %v11088_v62, %v10754_v47 }
 0xc8c   :  { %v11341_v19 = vadd.f32 %v16208_v24, %v11275_v53 }
 0xc8e   :  { %11405 = vst [vmem:[#allocation5 + $0xc8] sm:$0xff] %v11341_v19  ;;  %11130 = vmatmul.bf16.gmra.mxu2 %v10942_v48  ;;  %v12406_v19 = vld [vmem:[%s16525_s0 + $0x289] sm:$0xff] }
 0xc8f   :  { %v10634_v39 = vpop.f32.mrf.mxu1 }
 0xc90   :  { %v10755_v11 = vadd.f32 %v10634_v39, %v16026_v26  ;;  %v12407_v39 = vld [vmem:[%s16525_s0 + $0x291] sm:$0xff] }
 0xc91   :  { %v11091_v45 = vpop.f32.mrf.mxu2 }
 0xc92   :  { %10673 = vmatmul.bf16.gmra.mxu1 %v10484_v6  ;;  %v11276_v4 = vadd.f32 %v11091_v45, %v10755_v11  ;;  %v10383_v11 = vld [vmem:[#allocation3 + $0x2a2] sm:$0xff]  ;;  %v10384_v45 = vld [vmem:[#allocation3 + $0x2aa] sm:$0xff] }
 0xc94   :  { %v11342_v49 = vadd.f32 %v16208_v24, %v11276_v4  ;;  %v10945_v4 = vpack.c.bf16 %v12407_v39, %v12406_v19 }
 0xc96   :  { %11406 = vst [vmem:[#allocation5 + $0xd0] sm:$0xff] %v11342_v49 }
 0xc97   :  { %v10636_v7 = vpop.f32.mrf.mxu1 }
 0xc98   :  { %v10756_v8 = vadd.f32 %v10636_v7, %v16035_v12 }
 0xc99   :  { %v11093_v63 = vpop.f32.mrf.mxu2 }
 0xc9a   :  { %v11277_v26 = vadd.f32 %v11093_v63, %v10756_v8  ;;  %v10487_v8 = vpack.c.bf16 %v10384_v45, %v10383_v11 }
 0xc9c   :  { %v11343_v15 = vadd.f32 %v16208_v24, %v11277_v26 }
 0xc9e   :  { %11407 = vst [vmem:[#allocation5 + $0xd8] sm:$0xff] %v11343_v15  ;;  %11135 = vmatmul.bf16.gmra.mxu2 %v10943_v3  ;;  %v12409_v3 = vld [vmem:[%s16525_s0 + $0x2a9] sm:$0xff]  ;;  %v16378_v15 = vpop.f32.mrf.mxu3 }
 0xc9f   :  { %v10639_v37 = vpop.f32.mrf.mxu1 }
 0xca0   :  { %v10757_v12 = vadd.f32 %v10639_v37, %v16038_v18 }
 0xca1   :  { %v11096_v34 = vpop.f32.mrf.mxu2 }
 0xca2   :  { %10678 = vmatmul.bf16.gmra.mxu1 %v10485_v54  ;;  %v11278_v28 = vadd.f32 %v11096_v34, %v10757_v12  ;;  %v10385_v54 = vld [vmem:[#allocation3 + $0x2ba] sm:$0xff]  ;;  %v10386_v12 = vld [vmem:[#allocation3 + $0x2c2] sm:$0xff]  ;;  %v10946_v34 = vpack.c.bf16 %v12409_v3, %v12408_v40 }
 0xca4   :  { %v11344_v14 = vadd.f32 %v16208_v24, %v11278_v28  ;;  %v16380_v28 = vpop.f32.mrf.mxu0 }
 0xca6   :  { %11408 = vst [vmem:[#allocation5 + $0xe0] sm:$0xff] %v11344_v14 }
 0xca7   :  { %v10641_v58 = vpop.f32.mrf.mxu1 }
 0xca8   :  { %v10758_v0 = vadd.f32 %v10641_v58, %v16041_v42  ;;  %v10488_v58 = vpack.c.bf16 %v10386_v12, %v10385_v54 }
 0xca9   :  { %v11098_v50 = vpop.f32.mrf.mxu2 }
 0xcaa   :  { %v11279_v18 = vadd.f32 %v11098_v50, %v10758_v0  ;;  %v16384_v50 = vpop.f32.mrf.mxu3 }
 0xcac   :  { %v11345_v47 = vadd.f32 %v16208_v24, %v11279_v18  ;;  %v16387_v61 = vpop.f32.mrf.mxu0 }
 0xcae   :  { %11409 = vst [vmem:[#allocation5 + $0xe8] sm:$0xff] %v11345_v47  ;;  %11140 = vmatmul.bf16.gmra.mxu2 %v10944_v9  ;;  %v12410_v47 = vld [vmem:[%s16525_s0 + $0x2b9] sm:$0xff] }
 0xcaf   :  { %v10644_v23 = vpop.f32.mrf.mxu1 }
 0xcb0   :  { %v10759_v42 = vadd.f32 %v10644_v23, %v16044_v31 }
 0xcb1   :  { %v11101_v62 = vpop.f32.mrf.mxu2 }
 0xcb2   :  { %10683 = vmatmul.bf16.gmra.mxu1 %v10486_v2  ;;  %v11280_v53 = vadd.f32 %v11101_v62, %v10759_v42  ;;  %v10387_v42 = vld [vmem:[#allocation3 + $0x2d2] sm:$0xff]  ;;  %v10388_v62 = vld [vmem:[#allocation3 + $0x2da] sm:$0xff] }
 0xcb3   :  { %v10489_v19 = vpack.c.bf16 %v10388_v62, %v10387_v42 }
 0xcb4   :  { %v11346_v43 = vadd.f32 %v16208_v24, %v11280_v53  ;;  %v16400_v39 = vpop.f32.mrf.mxu0 }
 0xcb6   :  { %11410 = vst [vmem:[#allocation5 + $0xf0] sm:$0xff] %v11346_v43 }
 0xcb7   :  { %v10646_v59 = vpop.f32.mrf.mxu1 }
 0xcb8   :  { %v10760_v48 = vadd.f32 %v10646_v59, %v16047_v16 }
 0xcb9   :  { %v11103_v6 = vpop.f32.mrf.mxu2 }
 0xcba   :  { %v11281_v31 = vadd.f32 %v11103_v6, %v10760_v48  ;;  %v16397_v48 = vpop.f32.mrf.mxu3 }
 0xcbc   :  { %v11347_v49 = vadd.f32 %v16208_v24, %v11281_v31 }
 0xcbe   :  { %11411 = vst [vmem:[#allocation5 + $0xf8] sm:$0xff] %v11347_v49  ;;  %11145 = vmatmul.bf16.gmra.mxu2 %v10945_v4 }
 0xcbf   :  { %v10649_v7 = vpop.f32.mrf.mxu1 }
 0xcc0   :  { %v10761_v16 = vadd.f32 %v10649_v7, %v16050_v17  ;;  %v12412_v7 = vld [vmem:[%s16525_s0 + $0x2d1] sm:$0xff] }
 0xcc1   :  { %v11106_v44 = vpop.f32.mrf.mxu2 }
 0xcc2   :  { %10688 = vmatmul.bf16.gmra.mxu1 %v10487_v8  ;;  %v11282_v52 = vadd.f32 %v11106_v44, %v10761_v16  ;;  %v16404_v49 = vpop.f32.mrf.mxu3  ;;  %v16412_v8 = vpop.f32.mrf.mxu0 }
 0xcc4   :  { %v11348_v63 = vadd.f32 %v16208_v24, %v11282_v52  ;;  %v10389_v52 = vld [vmem:[#allocation3 + $0x2ea] sm:$0xff] }
 0xcc6   :  { %11412 = vst [vmem:[#allocation5 + $0x100] sm:$0xff] %v11348_v63  ;;  %v10390_v63 = vld [vmem:[#allocation3 + $0x2f2] sm:$0xff] }
 0xcc7   :  { %v10651_v26 = vpop.f32.mrf.mxu1  ;;  %v10490_v40 = vpack.c.bf16 %v10390_v63, %v10389_v52 }
 0xcc8   :  { %v10762_v1 = vadd.f32 %v10651_v26, %v16053_v35 }
 0xcc9   :  { %v11108_v17 = vpop.f32.mrf.mxu2 }
 0xcca   :  { %v11283_v37 = vadd.f32 %v11108_v17, %v10762_v1  ;;  %v16416_v17 = vpop.f32.mrf.mxu3  ;;  %v16418_v12 = vpop.f32.mrf.mxu0 }
 0xccc   :  { %v11349_v14 = vadd.f32 %v16208_v24, %v11283_v37 }
 0xcce   :  { %11413 = vst [vmem:[#allocation5 + $0x108] sm:$0xff] %v11349_v14  ;;  %11150 = vmatmul.bf16.gmra.mxu2 %v10946_v34 }
 0xccf   :  { %v10654_v35 = vpop.f32.mrf.mxu1 }
 0xcd0   :  { %v10763_v0 = vadd.f32 %v10654_v35, %v16056_v13  ;;  %v12411_v13 = vld [vmem:[%s16525_s0 + $0x2c1] sm:$0xff] }
 0xcd1   :  { %v11111_v30 = vpop.f32.mrf.mxu2  ;;  %v10947_v53 = vpack.c.bf16 %v12411_v13, %v12410_v47 }
 0xcd2   :  { %10693 = vmatmul.bf16.gmra.mxu1 %v10488_v58  ;;  %v11284_v51 = vadd.f32 %v11111_v30, %v10763_v0  ;;  %v12414_v58 = vld [vmem:[%s16525_s0 + $0x2e9] sm:$0xff]  ;;  %v9725_v30 = vadd.f32 %v16378_v15, %v16074_v21  ;;  %v16430_v47 = vpop.f32.mrf.mxu3  ;;  %v17000_v21 = vld [vmem:[#allocation8_spill] sm:$0xff] }
 0xcd3   :  { %v9726_v15 = vadd.f32 %v16384_v50, %v17000_v21  ;;  %v12417_v50 = vld [vmem:[%s16525_s0 + $0x309] sm:$0xff] }
 0xcd4   :  { %v11350_v18 = vadd.f32 %v16208_v24, %v11284_v51 }
 0xcd6   :  { %11414 = vst [vmem:[#allocation5 + $0x110] sm:$0xff] %v11350_v18  ;;  %v10391_v18 = vld [vmem:[#allocation3 + $0x302] sm:$0xff] }
 0xcd7   :  { %v10656_v56 = vpop.f32.mrf.mxu1 }
 0xcd8   :  { %v10764_v9 = vadd.f32 %v10656_v56, %v16065_v29  ;;  %v10392_v56 = vld [vmem:[#allocation3 + $0x30a] sm:$0xff] }
 0xcd9   :  { %v11113_v23 = vpop.f32.mrf.mxu2  ;;  %v10491_v42 = vpack.c.bf16 %v10392_v56, %v10391_v18  ;;  %v10396_v56 = vld [vmem:[#allocation3 + $0x33a] sm:$0xff] }
 0xcda   :  { %v11285_v2 = vadd.f32 %v11113_v23, %v10764_v9 }
 0xcdc   :  { %v11351_v43 = vadd.f32 %v16208_v24, %v11285_v2  ;;  %v16434_v2 = vpop.f32.mrf.mxu0 }
 0xcde   :  { %11415 = vst [vmem:[#allocation5 + $0x118] sm:$0xff] %v11351_v43  ;;  %11155 = vmatmul.bf16.gmra.mxu2 %v10947_v53 }
 0xcdf   :  { %v10659_v59 = vpop.f32.mrf.mxu1 }
 0xce0   :  { %v10765_v29 = vadd.f32 %v10659_v59, %v16068_v22  ;;  %v12413_v22 = vld [vmem:[%s16525_s0 + $0x2d9] sm:$0xff]  ;;  %v10248_v59 = vadd.f32 %v16387_v61, %v9726_v15  ;;  %v9730_v15 = vadd.f32 %v16430_v47, %v16093_v20 }
 0xce1   :  { %v11116_v6 = vpop.f32.mrf.mxu2  ;;  %v10948_v26 = vpack.c.bf16 %v12413_v22, %v12412_v7  ;;  %v10393_v22 = vld [vmem:[#allocation3 + $0x31a] sm:$0xff]  ;;  %v10398_v20 = vld [vmem:[#allocation3 + $0x352] sm:$0xff] }
 0xce2   :  { %10698 = vmatmul.bf16.gmra.mxu1 %v10489_v19  ;;  %v11286_v31 = vadd.f32 %v11116_v6, %v10765_v29  ;;  %v16440_v29 = vpop.f32.mrf.mxu3 }
 0xce4   :  { %v11352_v11 = vadd.f32 %v16208_v24, %v11286_v31  ;;  %v16442_v31 = vpop.f32.mrf.mxu0 }
 0xce6   :  { %11416 = vst [vmem:[#allocation5 + $0x120] sm:$0xff] %v11352_v11  ;;  %v12416_v11 = vld [vmem:[%s16525_s0 + $0x301] sm:$0xff] }
 0xce7   :  { %v10661_v45 = vpop.f32.mrf.mxu1 }
 0xce8   :  { %v10766_v4 = vadd.f32 %v10661_v45, %v16071_v10 }
 0xce9   :  { %v11118_v16 = vpop.f32.mrf.mxu2 }
 0xcea   :  { %v11287_v44 = vadd.f32 %v11118_v16, %v10766_v4  ;;  %v17001_v4 = vld [vmem:[#allocation9_spill] sm:$0xff] }
 0xceb   :  { %v9727_v61 = vadd.f32 %v16397_v48, %v17001_v4  ;;  %v10394_v16 = vld [vmem:[#allocation3 + $0x322] sm:$0xff] }
 0xcec   :  { %v11353_v1 = vadd.f32 %v16208_v24, %v11287_v44  ;;  %v10950_v44 = vpack.c.bf16 %v12417_v50, %v12416_v11  ;;  %v12421_v11 = vld [vmem:[%s16525_s0 + $0x339] sm:$0xff]  ;;  %v10397_v50 = vld [vmem:[#allocation3 + $0x34a] sm:$0xff] }
 0xced   :  { %v10249_v52 = vadd.f32 %v16400_v39, %v9727_v61  ;;  %v10494_v61 = vpack.c.bf16 %v10398_v20, %v10397_v50 }
 0xcee   :  { %11417 = vst [vmem:[#allocation5 + $0x128] sm:$0xff] %v11353_v1  ;;  %11160 = vmatmul.bf16.gmra.mxu2 %v10948_v26  ;;  %v10492_v1 = vpack.c.bf16 %v10394_v16, %v10393_v22 }
 0xcef   :  { %v10664_v10 = vpop.f32.mrf.mxu1 }
 0xcf0   :  { %v10767_v3 = vadd.f32 %v10664_v10, %v16076_v46  ;;  %v12415_v46 = vld [vmem:[%s16525_s0 + $0x2f1] sm:$0xff] }
 0xcf1   :  { %v11121_v37 = vpop.f32.mrf.mxu2  ;;  %v10949_v9 = vpack.c.bf16 %v12415_v46, %v12414_v58  ;;  %v12418_v46 = vld [vmem:[%s16525_s0 + $0x319] sm:$0xff] }
 0xcf2   :  { %10703 = vmatmul.bf16.gmra.mxu1 %v10490_v40  ;;  %v11288_v54 = vadd.f32 %v11121_v37, %v10767_v3  ;;  %v9642_v40 = vpop.f32.mrf.mxu3  ;;  %v10164_v3 = vpop.f32.mrf.mxu0 }
 0xcf4   :  { %v11354_v34 = vadd.f32 %v16208_v24, %v11288_v54  ;;  %v17002_v54 = vld [vmem:[#allocation11_spill] sm:$0xff] }
 0xcf5   :  { %v9728_v48 = vadd.f32 %v16404_v49, %v17002_v54  ;;  %v9729_v49 = vadd.f32 %v16416_v17, %v16090_v25 }
 0xcf6   :  { %11418 = vst [vmem:[#allocation5 + $0x130] sm:$0xff] %v11354_v34 }
 0xcf7   :  { %v10666_v14 = vpop.f32.mrf.mxu1 }
 0xcf8   :  { %v10768_v35 = vadd.f32 %v10666_v14, %v16081_v32  ;;  %v10247_v32 = vadd.f32 %v16380_v28, %v9725_v30  ;;  %v10250_v14 = vadd.f32 %v16412_v8, %v9728_v48  ;;  %v10395_v8 = vld [vmem:[#allocation3 + $0x332] sm:$0xff] }
 0xcf9   :  { %v11123_v0 = vpop.f32.mrf.mxu2 }
 0xcfa   :  { %v11289_v51 = vadd.f32 %v11123_v0, %v10768_v35  ;;  %v12419_v0 = vld [vmem:[%s16525_s0 + $0x321] sm:$0xff]  ;;  %v9645_v30 = vpop.f32.mrf.mxu3 }
 0xcfc   :  { %v11355_v13 = vadd.f32 %v16208_v24, %v11289_v51 }
 0xcfe   :  { %11419 = vst [vmem:[#allocation5 + $0x138] sm:$0xff] %v11355_v13  ;;  %11165 = vmatmul.bf16.gmra.mxu2 %v10949_v9  ;;  %v10951_v9 = vpack.c.bf16 %v12419_v0, %v12418_v46  ;;  %v10251_v13 = vadd.f32 %v16418_v12, %v9729_v49 }
 0xcff   :  { %v10669_v23 = vpop.f32.mrf.mxu1 }
 0xd00   :  { %v10769_v62 = vadd.f32 %v10669_v23, %v10247_v32  ;;  %v10167_v32 = vpop.f32.mrf.mxu0 }
 0xd01   :  { %v11126_v53 = vpop.f32.mrf.mxu2 }
 0xd02   :  { %10708 = vmatmul.bf16.gmra.mxu1 %v10491_v42  ;;  %v11290_v43 = vadd.f32 %v11126_v53, %v10769_v62  ;;  %v10493_v62 = vpack.c.bf16 %v10396_v56, %v10395_v8  ;;  %v9647_v17 = vpop.f32.mrf.mxu3  ;;  %v16490_v56 = vld [vmem:[%s16528_s3 + $0x2] ss:$0 sm:$0xff]  ;;  %s12729_s3 = smov [#allocation5]  }
 0xd03   :  { %s11448_s14 = sshll.u32 %s12729_s3, 4  ;;  %s11449_s14 = int_to_ptr.vmem [resolvable:$true] %s11448_s14 }
 0xd04   :  { %v11356_v19 = vadd.f32 %v16208_v24, %v11290_v43  ;;  %v10252_v43 = vadd.f32 %v16434_v2, %v9730_v15  ;;  %v9731_v2 = vadd.f32 %v16440_v29, %v16097_v60 }
 0xd06   :  { %11420 = vst [vmem:[#allocation5 + $0x140] sm:$0xff] %v11356_v19 }
 0xd07   :  { %v10671_v28 = vpop.f32.mrf.mxu1 }
 0xd08   :  { %v10770_v6 = vadd.f32 %v10671_v28, %v10248_v59  ;;  %v10169_v12 = vpop.f32.mrf.mxu0 }
 0xd09   :  { %v11128_v45 = vpop.f32.mrf.mxu2 }
 0xd0a   :  { %v11291_v7 = vadd.f32 %v11128_v45, %v10770_v6  ;;  %v12420_v6 = vld [vmem:[%s16525_s0 + $0x331] sm:$0xff] }
 0xd0b   :  { %v10952_v4 = vpack.c.bf16 %v12421_v11, %v12420_v6 }
 0xd0c   :  { %v11357_v63 = vadd.f32 %v16208_v24, %v11291_v7  ;;  %v10253_v7 = vadd.f32 %v16442_v31, %v9731_v2  ;;  %v17006_v2 = vld [vmem:[#allocation12_spill] sm:$0xff] }
 0xd0e   :  { %11421 = vst [vmem:[#allocation5 + $0x148] sm:$0xff] %v11357_v63  ;;  %11170 = vmatmul.bf16.gmra.mxu2 %v10950_v44  ;;  %v9650_v44 = vpop.f32.mrf.mxu3 }
 0xd0f   :  { %v10674_v26 = vpop.f32.mrf.mxu1 }
 0xd10   :  { %v10771_v10 = vadd.f32 %v10674_v26, %v10249_v52  ;;  %v10172_v63 = vpop.f32.mrf.mxu0 }
 0xd11   :  { %v11131_v37 = vpop.f32.mrf.mxu2 }
 0xd12   :  { %10713 = vmatmul.bf16.gmra.mxu1 %v10492_v1  ;;  %v11292_v34 = vadd.f32 %v11131_v37, %v10771_v10  ;;  %v9732_v1 = vadd.f32 %v9642_v40, %v16106_v55 }
 0xd14   :  { %v11358_v35 = vadd.f32 %v16208_v24, %v11292_v34  ;;  %v10254_v37 = vadd.f32 %v10164_v3, %v9732_v1  ;;  %v17003_v3 = vld [vmem:[#allocation72_spill] sm:$0xff] }
 0xd16   :  { %11422 = vst [vmem:[#allocation5 + $0x150] sm:$0xff] %v11358_v35  ;;  %v9652_v31 = vpop.f32.mrf.mxu3 }
 0xd17   :  { %v10676_v39 = vpop.f32.mrf.mxu1 }
 0xd18   :  { %v10772_v58 = vadd.f32 %v10676_v39, %v10250_v14  ;;  %v10174_v48 = vpop.f32.mrf.mxu0  ;;  %v9733_v14 = vadd.f32 %v9645_v30, %v16109_v57 }
 0xd19   :  { %v11133_v51 = vpop.f32.mrf.mxu2 }
 0xd1a   :  { %v11293_v18 = vadd.f32 %v11133_v51, %v10772_v58  ;;  %v10255_v39 = vadd.f32 %v10167_v32, %v9733_v14  ;;  %v9734_v51 = vadd.f32 %v9647_v17, %v17003_v3  ;;  %v17004_v32 = vld [vmem:[#allocation46_spill] sm:$0xff]  ;;  %v17009_v3 = vld [vmem:[#allocation15_spill] sm:$0xff] }
 0xd1c   :  { %v11359_v23 = vadd.f32 %v16208_v24, %v11293_v18  ;;  %v10256_v8 = vadd.f32 %v10169_v12, %v9734_v51 }
 0xd1e   :  { %11423 = vst [vmem:[#allocation5 + $0x158] sm:$0xff] %v11359_v23  ;;  %11175 = vmatmul.bf16.gmra.mxu2 %v10951_v9  ;;  %v9655_v55 = vpop.f32.mrf.mxu3 }
 0xd1f   :  { %v10679_v42 = vpop.f32.mrf.mxu1 }
 0xd20   :  { %v10773_v53 = vadd.f32 %v10679_v42, %v10251_v13  ;;  %v10177_v18 = vpop.f32.mrf.mxu0  ;;  %v9735_v13 = vadd.f32 %v9650_v44, %v17004_v32 }
 0xd21   :  { %v11136_v21 = vpop.f32.mrf.mxu2 }
 0xd22   :  { %10718 = vmatmul.bf16.gmra.mxu1 %v10493_v62  ;;  %v11294_v25 = vadd.f32 %v11136_v21, %v10773_v53  ;;  %v10257_v62 = vadd.f32 %v10172_v63, %v9735_v13  ;;  %v17010_v13 = vld [vmem:[#allocation16_spill] sm:$0xff] }
 0xd24   :  { %v11360_v59 = vadd.f32 %v16208_v24, %v11294_v25 }
 0xd26   :  { %11424 = vst [vmem:[#allocation5 + $0x160] sm:$0xff] %v11360_v59  ;;  %v9657_v42 = vpop.f32.mrf.mxu3 }
 0xd27   :  { %v10681_v19 = vpop.f32.mrf.mxu1 }
 0xd28   :  { %v10774_v28 = vadd.f32 %v10681_v19, %v10252_v43  ;;  %v10179_v15 = vpop.f32.mrf.mxu0  ;;  %v17005_v43 = vld [vmem:[#allocation73_spill] sm:$0xff] }
 0xd29   :  { %v11138_v47 = vpop.f32.mrf.mxu2  ;;  %v9736_v59 = vadd.f32 %v9652_v31, %v17005_v43 }
 0xd2a   :  { %v11295_v45 = vadd.f32 %v11138_v47, %v10774_v28 }
 0xd2b   :  { %v10258_v12 = vadd.f32 %v10174_v48, %v9736_v59 }
 0xd2c   :  { %v11361_v22 = vadd.f32 %v16208_v24, %v11295_v45  ;;  %v9737_v45 = vadd.f32 %v9655_v55, %v17006_v2 }
 0xd2e   :  { %11425 = vst [vmem:[#allocation5 + $0x168] sm:$0xff] %v11361_v22  ;;  %11180 = vmatmul.bf16.gmra.mxu2 %v10952_v4  ;;  %v9660_v11 = vpop.f32.mrf.mxu3 }
 0xd2f   :  { %v10684_v16 = vpop.f32.mrf.mxu1 }
 0xd30   :  { %v10775_v52 = vadd.f32 %v10684_v16, %v10253_v7  ;;  %v10182_v20 = vpop.f32.mrf.mxu0 }
 0xd31   :  { %v11141_v26 = vpop.f32.mrf.mxu2 }
 0xd32   :  { %10723 = vmatmul.bf16.gmra.mxu1 %v10494_v61  ;;  %v11296_v10 = vadd.f32 %v11141_v26, %v10775_v52  ;;  %v10259_v61 = vadd.f32 %v10177_v18, %v9737_v45  ;;  %v17007_v26 = vld [vmem:[#allocation13_spill] sm:$0xff] }
 0xd33   :  { %v9738_v1 = vadd.f32 %v9657_v42, %v17007_v26 }
 0xd34   :  { %v11362_v60 = vadd.f32 %v16208_v24, %v11296_v10 }
 0xd36   :  { %11426 = vst [vmem:[#allocation5 + $0x170] sm:$0xff] %v11362_v60  ;;  %v9662_v44 = vpop.f32.mrf.mxu3 }
 0xd37   :  { %v10686_v29 = vpop.f32.mrf.mxu1  ;;  %v9740_v51 = vadd.f32 %v9662_v44, %v17009_v3 }
 0xd38   :  { %v10776_v54 = vadd.f32 %v10686_v29, %v10254_v37  ;;  %v10184_v52 = vpop.f32.mrf.mxu0  ;;  %v10260_v37 = vadd.f32 %v10179_v15, %v9738_v1 }
 0xd39   :  { %v11143_v34 = vpop.f32.mrf.mxu2 }
 0xd3a   :  { %v11297_v35 = vadd.f32 %v11143_v34, %v10776_v54  ;;  %v17008_v34 = vld [vmem:[#allocation14_spill] sm:$0xff] }
 0xd3b   :  { %v9739_v14 = vadd.f32 %v9660_v11, %v17008_v34 }
 0xd3c   :  { %v11363_v58 = vadd.f32 %v16208_v24, %v11297_v35 }
 0xd3e   :  { %11427 = vst [vmem:[#allocation5 + $0x178] sm:$0xff] %v11363_v58  ;;  %v9665_v31 = vpop.f32.mrf.mxu3  ;;  %v10261_v58 = vadd.f32 %v10182_v20, %v9739_v14 }
 0xd3f   :  { %v10689_v46 = vpop.f32.mrf.mxu1 }
 0xd40   :  { %v10777_v0 = vadd.f32 %v10689_v46, %v10255_v39  ;;  %v10187_v39 = vpop.f32.mrf.mxu0 }
 0xd41   :  { %v11146_v40 = vpop.f32.mrf.mxu2 }
 0xd42   :  { %v11298_v49 = vadd.f32 %v11146_v40, %v10777_v0 }
 0xd44   :  { %v11364_v57 = vadd.f32 %v16490_v56, %v11298_v49 }
 0xd46   :  { %11428 = vst [vmem:[#allocation5 + $0x180] sm:$0xff] %v11364_v57  ;;  %v9667_v18 = vpop.f32.mrf.mxu3 }
 0xd47   :  { %v10691_v30 = vpop.f32.mrf.mxu1  ;;  %v9742_v59 = vadd.f32 %v9667_v18, %v16166_v41 }
 0xd48   :  { %v10778_v24 = vadd.f32 %v10691_v30, %v10256_v8  ;;  %v10262_v8 = vadd.f32 %v10184_v52, %v9740_v51 }
 0xd49   :  { %v11148_v9 = vpop.f32.mrf.mxu2 }
 0xd4a   :  { %v11299_v23 = vadd.f32 %v11148_v9, %v10778_v24  ;;  %v10189_v24 = vpop.f32.mrf.mxu0 }
 0xd4c   :  { %v11365_v53 = vadd.f32 %v16490_v56, %v11299_v23  ;;  %v9741_v23 = vadd.f32 %v9665_v31, %v17010_v13  ;;  %v17011_v13 = vld [vmem:[#allocation17_spill] sm:$0xff] }
 0xd4e   :  { %11429 = vst [vmem:[#allocation5 + $0x188] sm:$0xff] %v11365_v53  ;;  %v9670_v15 = vpop.f32.mrf.mxu3 }
 0xd4f   :  { %v10694_v21 = vpop.f32.mrf.mxu1  ;;  %v9743_v2 = vadd.f32 %v9670_v15, %v16169_v5 }
 0xd50   :  { %v10779_v25 = vadd.f32 %v10694_v21, %v10257_v62  ;;  %v10263_v62 = vadd.f32 %v10187_v39, %v9741_v23 }
 0xd51   :  { %v11151_v17 = vpop.f32.mrf.mxu2 }
 0xd52   :  { %v11300_v19 = vadd.f32 %v11151_v17, %v10779_v25  ;;  %v10192_v17 = vpop.f32.mrf.mxu0 }
 0xd54   :  { %v11366_v28 = vadd.f32 %v16490_v56, %v11300_v19 }
 0xd56   :  { %11430 = vst [vmem:[#allocation5 + $0x190] sm:$0xff] %v11366_v28 }
 0xd57   :  { %v10696_v6 = vpop.f32.mrf.mxu1 }
 0xd58   :  { %v10780_v50 = vadd.f32 %v10696_v6, %v10258_v12  ;;  %v10264_v12 = vadd.f32 %v10189_v24, %v9742_v59 }
 0xd59   :  { %v11153_v47 = vpop.f32.mrf.mxu2 }
 0xd5a   :  { %v11301_v4 = vadd.f32 %v11153_v47, %v10780_v50  ;;  %v9672_v50 = vpop.f32.mrf.mxu3  ;;  %v10194_v20 = vpop.f32.mrf.mxu0 }
 0xd5b   :  { %v9744_v44 = vadd.f32 %v9672_v50, %v16178_v36 }
 0xd5c   :  { %v11367_v7 = vadd.f32 %v16490_v56, %v11301_v4  ;;  %v10265_v4 = vadd.f32 %v10192_v17, %v9743_v2 }
 0xd5d   :  { %v10266_v26 = vadd.f32 %v10194_v20, %v9744_v44 }
 0xd5e   :  { %11431 = vst [vmem:[#allocation5 + $0x198] sm:$0xff] %v11367_v7 }
 0xd5f   :  { %v10699_v22 = vpop.f32.mrf.mxu1 }
 0xd60   :  { %v10781_v16 = vadd.f32 %v10699_v22, %v10259_v61 }
 0xd61   :  { %v11156_v63 = vpop.f32.mrf.mxu2 }
 0xd62   :  { %v11302_v10 = vadd.f32 %v11156_v63, %v10781_v16  ;;  %v9675_v41 = vpop.f32.mrf.mxu3  ;;  %v10197_v63 = vpop.f32.mrf.mxu0 }
 0xd64   :  { %v11368_v60 = vadd.f32 %v16490_v56, %v11302_v10 }
 0xd66   :  { %11432 = vst [vmem:[#allocation5 + $0x1a0] sm:$0xff] %v11368_v60  ;;  %v9745_v60 = vadd.f32 %v9675_v41, %v16181_v33 }
 0xd67   :  { %v10701_v29 = vpop.f32.mrf.mxu1 }
 0xd68   :  { %v10782_v54 = vadd.f32 %v10701_v29, %v10260_v37  ;;  %v10267_v31 = vadd.f32 %v10197_v63, %v9745_v60 }
 0xd69   :  { %v11158_v48 = vpop.f32.mrf.mxu2 }
 0xd6a   :  { %v11303_v35 = vadd.f32 %v11158_v48, %v10782_v54  ;;  %v9677_v54 = vpop.f32.mrf.mxu3  ;;  %v10199_v14 = vpop.f32.mrf.mxu0 }
 0xd6b   :  { %v9746_v39 = vadd.f32 %v9677_v54, %v16190_v38 }
 0xd6c   :  { %v11369_v46 = vadd.f32 %v16490_v56, %v11303_v35 }
 0xd6e   :  { %11433 = vst [vmem:[#allocation5 + $0x1a8] sm:$0xff] %v11369_v46  ;;  %v10268_v46 = vadd.f32 %v10199_v14, %v9746_v39 }
 0xd6f   :  { %v10704_v0 = vpop.f32.mrf.mxu1 }
 0xd70   :  { %v10783_v55 = vadd.f32 %v10704_v0, %v10261_v58 }
 0xd71   :  { %v11161_v40 = vpop.f32.mrf.mxu2 }
 0xd72   :  { %v11304_v49 = vadd.f32 %v11161_v40, %v10783_v55  ;;  %v9680_v40 = vpop.f32.mrf.mxu3  ;;  %v10202_v3 = vpop.f32.mrf.mxu0 }
 0xd74   :  { %v11370_v57 = vadd.f32 %v16490_v56, %v11304_v49  ;;  %v9747_v49 = vadd.f32 %v9680_v40, %v16193_v27 }
 0xd76   :  { %11434 = vst [vmem:[#allocation5 + $0x1b0] sm:$0xff] %v11370_v57 }
 0xd77   :  { %v10706_v30 = vpop.f32.mrf.mxu1 }
 0xd78   :  { %v10784_v9 = vadd.f32 %v10706_v30, %v10262_v8  ;;  %v10269_v8 = vadd.f32 %v10202_v3, %v9747_v49 }
 0xd79   :  { %v11163_v32 = vpop.f32.mrf.mxu2 }
 0xd7a   :  { %v11305_v42 = vadd.f32 %v11163_v32, %v10784_v9  ;;  %v9682_v38 = vpop.f32.mrf.mxu3  ;;  %v10204_v9 = vpop.f32.mrf.mxu0 }
 0xd7b   :  { %v9748_v23 = vadd.f32 %v9682_v38, %v17011_v13 }
 0xd7c   :  { %v11371_v53 = vadd.f32 %v16490_v56, %v11305_v42 }
 0xd7e   :  { %11435 = vst [vmem:[#allocation5 + $0x1b8] sm:$0xff] %v11371_v53 }
 0xd7f   :  { %v10709_v21 = vpop.f32.mrf.mxu1 }
 0xd80   :  { %v10785_v25 = vadd.f32 %v10709_v21, %v10263_v62  ;;  %v10270_v62 = vadd.f32 %v10204_v9, %v9748_v23 }
 0xd81   :  { %v11166_v43 = vpop.f32.mrf.mxu2 }
 0xd82   :  { %v11306_v19 = vadd.f32 %v11166_v43, %v10785_v25 }
 0xd84   :  { %v11372_v28 = vadd.f32 %v16490_v56, %v11306_v19 }
 0xd86   :  { %11436 = vst [vmem:[#allocation5 + $0x1c0] sm:$0xff] %v11372_v28 }
 0xd87   :  { %v10711_v6 = vpop.f32.mrf.mxu1 }
 0xd88   :  { %v10786_v11 = vadd.f32 %v10711_v6, %v10264_v12 }
 0xd89   :  { %v11168_v47 = vpop.f32.mrf.mxu2 }
 0xd8a   :  { %v11307_v45 = vadd.f32 %v11168_v47, %v10786_v11 }
 0xd8c   :  { %v11373_v61 = vadd.f32 %v16490_v56, %v11307_v45 }
 0xd8e   :  { %11437 = vst [vmem:[#allocation5 + $0x1c8] sm:$0xff] %v11373_v61 }
 0xd8f   :  { %v10714_v7 = vpop.f32.mrf.mxu1 }
 0xd90   :  { %v10787_v22 = vadd.f32 %v10714_v7, %v10265_v4 }
 0xd91   :  { %v11171_v16 = vpop.f32.mrf.mxu2 }
 0xd92   :  { %v11308_v52 = vadd.f32 %v11171_v16, %v10787_v22 }
 0xd94   :  { %v11374_v1 = vadd.f32 %v16490_v56, %v11308_v52 }
 0xd96   :  { %11438 = vst [vmem:[#allocation5 + $0x1d0] sm:$0xff] %v11374_v1 }
 0xd97   :  { %v10716_v10 = vpop.f32.mrf.mxu1 }
 0xd98   :  { %v10788_v37 = vadd.f32 %v10716_v10, %v10266_v26 }
 0xd99   :  { %v11173_v5 = vpop.f32.mrf.mxu2 }
 0xd9a   :  { %v11309_v29 = vadd.f32 %v11173_v5, %v10788_v37 }
 0xd9c   :  { %v11375_v48 = vadd.f32 %v16490_v56, %v11309_v29 }
 0xd9e   :  { %11439 = vst [vmem:[#allocation5 + $0x1d8] sm:$0xff] %v11375_v48 }
 0xd9f   :  { %v10719_v34 = vpop.f32.mrf.mxu1 }
 0xda0   :  { %v10789_v36 = vadd.f32 %v10719_v34, %v10267_v31 }
 0xda1   :  { %v11176_v35 = vpop.f32.mrf.mxu2 }
 0xda2   :  { %v11310_v58 = vadd.f32 %v11176_v35, %v10789_v36 }
 0xda4   :  { %v11376_v0 = vadd.f32 %v16490_v56, %v11310_v58 }
 0xda6   :  { %11440 = vst [vmem:[#allocation5 + $0x1e0] sm:$0xff] %v11376_v0 }
 0xda7   :  { %v10721_v55 = vpop.f32.mrf.mxu1 }
 0xda8   :  { %v10790_v33 = vadd.f32 %v10721_v55, %v10268_v46 }
 0xda9   :  { %v11178_v51 = vpop.f32.mrf.mxu2 }
 0xdaa   :  { %v11311_v18 = vadd.f32 %v11178_v51, %v10790_v33 }
 0xdac   :  { %v11377_v57 = vadd.f32 %v16490_v56, %v11311_v18 }
 0xdae   :  { %11441 = vst [vmem:[#allocation5 + $0x1e8] sm:$0xff] %v11377_v57 }
 0xdaf   :  { %v10724_v30 = vpop.f32.mrf.mxu1 }
 0xdb0   :  { %v10791_v24 = vadd.f32 %v10724_v30, %v10269_v8 }
 0xdb1   :  { %v11181_v32 = vpop.f32.mrf.mxu2 }
 0xdb2   :  { %v11312_v42 = vadd.f32 %v11181_v32, %v10791_v24 }
 0xdb4   :  { %v11378_v53 = vadd.f32 %v16490_v56, %v11312_v42 }
 0xdb6   :  { %11442 = vst [vmem:[#allocation5 + $0x1f0] sm:$0xff] %v11378_v53 }
 0xdb7   :  { %v10726_v21 = vpop.f32.mrf.mxu1 }
 0xdb8   :  { %v10792_v15 = vadd.f32 %v10726_v21, %v10270_v62 }
 0xdb9   :  { %v11183_v27 = vpop.f32.mrf.mxu2 }
 0xdba   :  { %v11313_v25 = vadd.f32 %v11183_v27, %v10792_v15 }
 0xdbc   :  { %v11379_v17 = vadd.f32 %v16490_v56, %v11313_v25 }
 0xdbe   :  { %11443 = vst [vmem:[#allocation5 + $0x1f8] sm:$0xff] %v11379_v17 }
 0xdbf   :  { %11456 = dma.vmem_to_hbm [thread:$0]  %s11449_s14, 8192, %s11451_s17, [#allocation6], %s12730_s18, %s12730_s18, %s12731_s19  }
 0xdc0   :  { %12725 = dma.done.wait [#allocation6], 8192  }
 0xdc1   :  { %12726 = vsyncadd [#allocation6], 4294959104 }
 0xdc2   :  { %11461 = vsyncpa [#allocation6], 1 }

</bundles_post_ra>
